<compile_context>
chip_gen: v7x
topology: tpu7x:2x2x1
jax: 0.10.0
libtpu: 0.0.40
codegen_flags: <defaults>
</compile_context>

<pallas_src>
import functools
import math

import jax
import jax.numpy as jnp
from jax import lax
from jax.experimental import pallas as pl
from jax.experimental.pallas import tpu as pltpu


def _round_up(x, m):
    return (x + m - 1) // m * m


def _cdiv(a, b):
    return (a + b - 1) // b


TK_MAX = 3840   # max K tile; keeps worst-case VMEM ~4.5 MB (fits v5e/v6e/v7x defaults)
TM = 128        # M (lane) tile of the output


# ---------------------------------------------------------------------------
# Pallas kernels:  out^T = W^T @ patches^T  (+ bias, + SiLU, optional fused 1x1 head)
# ---------------------------------------------------------------------------
def _gemm_t_kernel(w_ref, p_ref, b_ref, o_ref, acc_ref, *, apply_silu):
    k = pl.program_id(1)

    @pl.when(k == 0)
    def _():
        acc_ref[...] = jnp.zeros_like(acc_ref)

    acc_ref[...] += jnp.dot(w_ref[...], p_ref[...],
                            preferred_element_type=jnp.float32)

    @pl.when(k == pl.num_programs(1) - 1)
    def _():
        out = acc_ref[...] + b_ref[...]
        if apply_silu:
            out = out * jax.nn.sigmoid(out)
        o_ref[...] = out.astype(o_ref.dtype)


def _gemm_t_fused_head_kernel(w_ref, p_ref, b_ref, w2_ref, b2_ref, o_ref, acc_ref):
    k = pl.program_id(1)

    @pl.when(k == 0)
    def _():
        acc_ref[...] = jnp.zeros_like(acc_ref)

    acc_ref[...] += jnp.dot(w_ref[...], p_ref[...],
                            preferred_element_type=jnp.float32)

    @pl.when(k == pl.num_programs(1) - 1)
    def _():
        v = acc_ref[...] + b_ref[...]
        v = v * jax.nn.sigmoid(v)                       # SiLU of the penultimate layer
        out = jnp.dot(w2_ref[...], v,                   # fused 1x1 ConvTranspose head
                      preferred_element_type=jnp.float32) + b2_ref[...]
        o_ref[...] = out.astype(o_ref.dtype)


def pallas_gemm_t(wt_pad, b_pad, patches_t, tk, *, apply_silu, head=None):
    """wt_pad: (Coutp, Kp); patches_t: (K, M); b_pad: (Coutp, 1) -> (rows, Mp) f32."""
    coutp, kp = wt_pad.shape
    kdim, m = patches_t.shape
    assert kp % tk == 0 and kp >= kdim
    mp = _round_up(m, TM)
    p_pad = jnp.pad(patches_t, ((0, kp - kdim), (0, mp - m)))

    m_blocks = mp // TM
    k_blocks = kp // tk

    w_spec = pl.BlockSpec((coutp, tk), lambda mi, ki: (0, ki))
    p_spec = pl.BlockSpec((tk, TM), lambda mi, ki: (ki, mi))
    b_spec = pl.BlockSpec((coutp, 1), lambda mi, ki: (0, 0))

    if head is None:
        kernel = functools.partial(_gemm_t_kernel, apply_silu=apply_silu)
        in_specs = [w_spec, p_spec, b_spec]
        operands = (wt_pad, p_pad, b_pad)
        out_rows = coutp
    else:
        w2_pad, b2_pad = head
        out_rows = w2_pad.shape[0]
        kernel = _gemm_t_fused_head_kernel
        in_specs = [w_spec, p_spec, b_spec,
                    pl.BlockSpec((out_rows, coutp), lambda mi, ki: (0, 0)),
                    pl.BlockSpec((out_rows, 1), lambda mi, ki: (0, 0))]
        operands = (wt_pad, p_pad, b_pad, w2_pad, b2_pad)

    out = pl.pallas_call(
        kernel,
        out_shape=jax.ShapeDtypeStruct((out_rows, mp), jnp.float32),
        grid_spec=pltpu.PrefetchScalarGridSpec(
            num_scalar_prefetch=0,
            grid=(m_blocks, k_blocks),
            in_specs=in_specs,
            out_specs=pl.BlockSpec((out_rows, TM), lambda mi, ki: (0, mi)),
            scratch_shapes=[pltpu.VMEM((coutp, TM), jnp.float32)],
        ),
        compiler_params=pltpu.CompilerParams(
            dimension_semantics=("parallel", "arbitrary"),
        ),
    )(*operands)
    return out


# ---------------------------------------------------------------------------
# Parameter preparation (done ONCE at build time, outside the jitted forward)
# ---------------------------------------------------------------------------
def _prep_layer(w, b, stride, padding):
    """Padded transposed-GEMM weight/bias for one ConvTranspose2d layer."""
    cin, cout, kh, kw = w.shape
    kdim = kh * kw * cin
    n_k = max(1, _cdiv(kdim, TK_MAX))
    tk = _round_up(_cdiv(kdim, n_k), 128)
    kp = n_k * tk
    coutp = _round_up(cout, 8)
    # flipped kernel, patch ordering (kh, kw, cin)  ->  (Cout, K) matrix
    w_flip = w[:, :, ::-1, ::-1]
    wt = jnp.transpose(w_flip, (2, 3, 0, 1)).reshape(kdim, cout).T
    wt_pad = jnp.pad(wt, ((0, coutp - cout), (0, kp - kdim)))
    b_pad = jnp.pad(b.reshape(cout, 1), ((0, coutp - cout), (0, 0)))
    return dict(wt=wt_pad, b=b_pad, tk=tk, cout=cout, coutp=coutp,
                kh=kh, kw=kw, stride=stride, padding=padding)


def _prep_head(w, b, coutp_prev):
    """Fused 1x1 ConvTranspose head (Cin2 -> Cout2), padded to the prev layer's Coutp."""
    cin2, cout2, kh, kw = w.shape
    assert kh == 1 and kw == 1
    cout2p = _round_up(cout2, 8)
    wt = w[:, :, 0, 0].T                                    # (Cout2, Cin2)
    wt_pad = jnp.pad(wt, ((0, cout2p - cout2), (0, coutp_prev - cin2)))
    b_pad = jnp.pad(b.reshape(cout2, 1), ((0, cout2p - cout2), (0, 0)))
    return dict(wt=wt_pad, b=b_pad, cout=cout2)


# ---------------------------------------------------------------------------
# One ConvTranspose2d layer: dilate+pad, im2col^T (channel concat), Pallas GEMM
# ---------------------------------------------------------------------------
def conv_transpose_layer(x, layer, *, apply_silu, head=None):
    """x: (N, Cin, H, W) NCHW -> (N, Cout, Ho, Wo) NCHW (head's Cout if fused)."""
    n, cin, h, w = x.shape
    kh, kw = layer["kh"], layer["kw"]
    s, p = layer["stride"], layer["padding"]
    ph, pw = kh - 1 - p, kw - 1 - p
    ho = (h - 1) * s - 2 * p + kh
    wo = (w - 1) * s - 2 * p + kw
    hp, wp = ho + kh - 1, wo + kw - 1

    # zero-dilate by `stride` and pad by (k-1-padding) in a single scatter
    if s == 1 and ph == 0 and pw == 0:
        xp = x
    else:
        xp = jnp.zeros((n, cin, hp, wp), x.dtype)
        xp = xp.at[:, :, ph:ph + (h - 1) * s + 1:s,
                         pw:pw + (w - 1) * s + 1:s].set(x)

    # im2col^T: shifted windows concatenated along the channel axis (order kh, kw, cin)
    # TODO(synk): this patch materialization is still XLA glue; a fully in-kernel
    # gather would need Element-offset BlockSpecs over the padded NCHW input.
    wins = [xp[:, :, a:a + ho, c:c + wo] for a in range(kh) for c in range(kw)]
    cat = wins[0] if len(wins) == 1 else jnp.concatenate(wins, axis=1)
    kdim = kh * kw * cin
    m = n * ho * wo
    patches_t = jnp.transpose(cat, (1, 0, 2, 3)).reshape(kdim, m)

    head_args = None if head is None else (head["wt"], head["b"])
    out_t = pallas_gemm_t(layer["wt"], layer["b"], patches_t, layer["tk"],
                          apply_silu=apply_silu, head=head_args)

    cout = layer["cout"] if head is None else head["cout"]
    out = out_t[:cout, :m].reshape(cout, n, ho, wo)
    return jnp.transpose(out, (1, 0, 2, 3))


# ---------------------------------------------------------------------------
# Model forward (Pallas) and pure-JAX reference
# ---------------------------------------------------------------------------
def model_forward(params, x1):
    x = conv_transpose_layer(x1, params["ct6"], apply_silu=True)
    x = conv_transpose_layer(x, params["ct19"], apply_silu=True)
    # ct31 + SiLU with the 1x1 ct43 (no activation) fused into the kernel epilogue
    x = conv_transpose_layer(x, params["ct31"], apply_silu=True, head=params["ct43"])
    return x


def conv_transpose2d_ref(x, w, b, stride, padding):
    _, cout, kh, kw = w.shape
    w_oihw = jnp.transpose(w[:, :, ::-1, ::-1], (1, 0, 2, 3))
    out = lax.conv_general_dilated(
        x, w_oihw, window_strides=(1, 1),
        padding=[(kh - 1 - padding, kh - 1 - padding),
                 (kw - 1 - padding, kw - 1 - padding)],
        lhs_dilation=(stride, stride),
        dimension_numbers=("NCHW", "OIHW", "NCHW"))
    return out + b.reshape(1, cout, 1, 1)


def _silu(x):
    return x * jax.nn.sigmoid(x)


def model_forward_ref(raw, x1):
    w, b = raw["ct6"];  v = _silu(conv_transpose2d_ref(x1, w, b, 1, 0))
    w, b = raw["ct19"]; v = _silu(conv_transpose2d_ref(v, w, b, 2, 4))
    w, b = raw["ct31"]; v = _silu(conv_transpose2d_ref(v, w, b, 1, 0))
    w, b = raw["ct43"]
    return conv_transpose2d_ref(v, w, b, 1, 0)


# ---------------------------------------------------------------------------
# Deterministic parameter init + run
# ---------------------------------------------------------------------------
def init_convT_params(key, cin, cout, k):
    kw_, kb_ = jax.random.split(key)
    bound = 1.0 / math.sqrt(cin * k * k)
    w = jax.random.uniform(kw_, (cin, cout, k, k), jnp.float32, -bound, bound)
    b = jax.random.uniform(kb_, (cout,), jnp.float32, -bound, bound)
    return w, b


def build_params(key):
    k1, k2, k3, k4 = jax.random.split(key, 4)
    raw = {
        "ct6":  init_convT_params(k1, 191, 113, 3),
        "ct19": init_convT_params(k2, 113, 22, 8),
        "ct31": init_convT_params(k3, 22, 9, 6),
        "ct43": init_convT_params(k4, 9, 1, 1),
    }
    prepped = {
        "ct6":  _prep_layer(*raw["ct6"], stride=1, padding=0),
        "ct19": _prep_layer(*raw["ct19"], stride=2, padding=4),
        "ct31": _prep_layer(*raw["ct31"], stride=1, padding=0),
    }
    prepped["ct43"] = _prep_head(*raw["ct43"], coutp_prev=prepped["ct31"]["coutp"])
    return raw, prepped


if __name__ == "__main__":
    key = jax.random.PRNGKey(0)
    kp, kx = jax.random.split(key)
    raw, prepped = build_params(kp)

    # Small spatial size; channel counts are fixed by the module architecture.
    x1 = jax.random.normal(kx, (1, 191, 8, 8), jnp.float32)

    fwd = jax.jit(functools.partial(model_forward, prepped))
    out = jax.block_until_ready(fwd(x1))

    ref_fwd = jax.jit(functools.partial(model_forward_ref, raw))
    ref = jax.block_until_ready(ref_fwd(x1))

    assert out.shape == ref.shape, (out.shape, ref.shape)
    err = float(jnp.max(jnp.abs(out - ref)))
    assert jnp.allclose(out, ref, rtol=1e-3, atol=1e-3), err

    print("KERNEL_OK")
</pallas_src>

<mosaic_0001>
module attributes {stable_mosaic.version = 11 : i64} {
  func.func @_gemm_t_kernel(%arg0: i32, %arg1: i32, %arg2: memref<120x1792xf32, #tpu.memory_space<vmem>>, %arg3: memref<1792x128xf32, #tpu.memory_space<vmem>>, %arg4: memref<120x1xf32, #tpu.memory_space<vmem>>, %arg5: memref<120x128xf32, #tpu.memory_space<vmem>>, %arg6: memref<120x128xf32, #tpu.memory_space<vmem>>) attributes {dimension_semantics = [#tpu.dimension_semantics<parallel>, #tpu.dimension_semantics<arbitrary>], iteration_bounds = array<i64: 1, 1>, scalar_prefetch = 0 : i64, scratch_operands = 1 : i64, tpu.core_type = #tpu.core_type<tc>, window_params = [{transform_indices = @transform_0, window_bounds = array<i64: 120, 1792>}, {transform_indices = @transform_1, window_bounds = array<i64: 1792, 128>}, {pipeline_mode = #tpu.pipeline_mode<synchronous>, transform_indices = @transform_2, window_bounds = array<i64: 120, 1>}, {transform_indices = @transform_3, window_bounds = array<i64: 120, 128>}]} {
    %c0_i32 = arith.constant 0 : i32
    %0 = arith.cmpi eq, %arg1, %c0_i32 : i32
    %1 = arith.extui %0 : i1 to i32
    %c0_i32_0 = arith.constant 0 : i32
    %2 = arith.cmpi ne, %1, %c0_i32_0 : i32
    scf.if %2 {
      %cst_10 = arith.constant 0.000000e+00 : f32
      %12 = vector.broadcast %cst_10 : f32 to vector<120x128xf32>
      %c0_11 = arith.constant 0 : index
      %c0_12 = arith.constant 0 : index
      %13 = vector.load %arg6[%c0_11, %c0_12] : memref<120x128xf32, #tpu.memory_space<vmem>>, vector<120x128xf32>
      tpu.vector_store %arg6[%c0_11, %c0_12], %12 {strides = array<i32>} : memref<120x128xf32, #tpu.memory_space<vmem>>, vector<120x128xf32>,
    } else {
    }
    %c0 = arith.constant 0 : index
    %c0_1 = arith.constant 0 : index
    %3 = vector.load %arg6[%c0, %c0_1] : memref<120x128xf32, #tpu.memory_space<vmem>>, vector<120x128xf32>
    %c0_2 = arith.constant 0 : index
    %c0_3 = arith.constant 0 : index
    %4 = vector.load %arg2[%c0_2, %c0_3] : memref<120x1792xf32, #tpu.memory_space<vmem>>, vector<120x1792xf32>
    %c0_4 = arith.constant 0 : index
    %c0_5 = arith.constant 0 : index
    %5 = vector.load %arg3[%c0_4, %c0_5] : memref<1792x128xf32, #tpu.memory_space<vmem>>, vector<1792x128xf32>
    %cst = arith.constant dense<0.000000e+00> : vector<120x128xf32>
    %6 = tpu.matmul %4, %5, %cst {dimension_numbers = #tpu.dot_dimension_numbers<[1], [0], [0], [1], [0, 0, 1, 1], [], []>} : vector<120x1792xf32>, vector<1792x128xf32>, vector<120x128xf32> -> vector<120x128xf32>
    %7 = arith.addf %3, %6 : vector<120x128xf32>
    %c0_6 = arith.constant 0 : index
    %c0_7 = arith.constant 0 : index
    %8 = vector.load %arg6[%c0_6, %c0_7] : memref<120x128xf32, #tpu.memory_space<vmem>>, vector<120x128xf32>
    tpu.vector_store %arg6[%c0_6, %c0_7], %7 {strides = array<i32>} : memref<120x128xf32, #tpu.memory_space<vmem>>, vector<120x128xf32>,
    %c0_i32_8 = arith.constant 0 : i32
    %9 = arith.cmpi eq, %arg1, %c0_i32_8 : i32
    %10 = arith.extui %9 : i1 to i32
    %c0_i32_9 = arith.constant 0 : i32
    %11 = arith.cmpi ne, %10, %c0_i32_9 : i32
    scf.if %11 {
      %c0_10 = arith.constant 0 : index
      %c0_11 = arith.constant 0 : index
      %12 = vector.load %arg6[%c0_10, %c0_11] : memref<120x128xf32, #tpu.memory_space<vmem>>, vector<120x128xf32>
      %c0_12 = arith.constant 0 : index
      %c0_13 = arith.constant 0 : index
      %13 = vector.load %arg4[%c0_12, %c0_13] : memref<120x1xf32, #tpu.memory_space<vmem>>, vector<120x1xf32>
      %14 = vector.broadcast %13 : vector<120x1xf32> to vector<120x128xf32>
      %15 = arith.addf %12, %14 : vector<120x128xf32>
      %16 = arith.negf %15 : vector<120x128xf32>
      %17 = math.exp %16 : vector<120x128xf32>
      %cst_14 = arith.constant 1.000000e+00 : f32
      %18 = vector.broadcast %cst_14 : f32 to vector<120x128xf32>
      %19 = arith.addf %18, %17 : vector<120x128xf32>
      %20 = arith.divf %18, %19 : vector<120x128xf32>
      %21 = arith.mulf %15, %20 : vector<120x128xf32>
      %c0_15 = arith.constant 0 : index
      %c0_16 = arith.constant 0 : index
      %22 = vector.load %arg5[%c0_15, %c0_16] : memref<120x128xf32, #tpu.memory_space<vmem>>, vector<120x128xf32>
      tpu.vector_store %arg5[%c0_15, %c0_16], %21 {strides = array<i32>} : memref<120x128xf32, #tpu.memory_space<vmem>>, vector<120x128xf32>,
    } else {
    }
    return
  }
  func.func @transform_0(%arg0: i32, %arg1: i32) -> (i32, i32) {
    %c0_i32 = arith.constant 0 : i32
    %c0_i32_0 = arith.constant 0 : i32
    return %c0_i32, %arg1 : i32, i32
  }
  func.func @transform_1(%arg0: i32, %arg1: i32) -> (i32, i32) {
    %c0_i32 = arith.constant 0 : i32
    return %arg1, %arg0 : i32, i32
  }
  func.func @transform_2(%arg0: i32, %arg1: i32) -> (i32, i32) {
    %c0_i32 = arith.constant 0 : i32
    %c0_i32_0 = arith.constant 0 : i32
    %c0_i32_1 = arith.constant 0 : i32
    return %c0_i32, %c0_i32_0 : i32, i32
  }
  func.func @transform_3(%arg0: i32, %arg1: i32) -> (i32, i32) {
    %c0_i32 = arith.constant 0 : i32
    %c0_i32_0 = arith.constant 0 : i32
    return %c0_i32, %arg0 : i32, i32
  }
}

module attributes {stable_mosaic.version = 11 : i64} {
  func.func @_gemm_t_kernel(%arg0: i32, %arg1: i32, %arg2: memref<24x3712xf32, #tpu.memory_space<vmem>>, %arg3: memref<3712x128xf32, #tpu.memory_space<vmem>>, %arg4: memref<24x1xf32, #tpu.memory_space<vmem>>, %arg5: memref<24x128xf32, #tpu.memory_space<vmem>>, %arg6: memref<24x128xf32, #tpu.memory_space<vmem>>) attributes {dimension_semantics = [#tpu.dimension_semantics<parallel>, #tpu.dimension_semantics<arbitrary>], iteration_bounds = array<i64: 3, 2>, scalar_prefetch = 0 : i64, scratch_operands = 1 : i64, tpu.core_type = #tpu.core_type<tc>, window_params = [{transform_indices = @transform_0, window_bounds = array<i64: 24, 3712>}, {transform_indices = @transform_1, window_bounds = array<i64: 3712, 128>}, {pipeline_mode = #tpu.pipeline_mode<synchronous>, transform_indices = @transform_2, window_bounds = array<i64: 24, 1>}, {transform_indices = @transform_3, window_bounds = array<i64: 24, 128>}]} {
    %c0_i32 = arith.constant 0 : i32
    %0 = arith.cmpi eq, %arg1, %c0_i32 : i32
    %1 = arith.extui %0 : i1 to i32
    %c0_i32_0 = arith.constant 0 : i32
    %2 = arith.cmpi ne, %1, %c0_i32_0 : i32
    scf.if %2 {
      %cst_9 = arith.constant 0.000000e+00 : f32
      %12 = vector.broadcast %cst_9 : f32 to vector<24x128xf32>
      %c0_10 = arith.constant 0 : index
      %c0_11 = arith.constant 0 : index
      %13 = vector.load %arg6[%c0_10, %c0_11] : memref<24x128xf32, #tpu.memory_space<vmem>>, vector<24x128xf32>
      tpu.vector_store %arg6[%c0_10, %c0_11], %12 {strides = array<i32>} : memref<24x128xf32, #tpu.memory_space<vmem>>, vector<24x128xf32>,
    } else {
    }
    %c0 = arith.constant 0 : index
    %c0_1 = arith.constant 0 : index
    %3 = vector.load %arg6[%c0, %c0_1] : memref<24x128xf32, #tpu.memory_space<vmem>>, vector<24x128xf32>
    %c0_2 = arith.constant 0 : index
    %c0_3 = arith.constant 0 : index
    %4 = vector.load %arg2[%c0_2, %c0_3] : memref<24x3712xf32, #tpu.memory_space<vmem>>, vector<24x3712xf32>
    %c0_4 = arith.constant 0 : index
    %c0_5 = arith.constant 0 : index
    %5 = vector.load %arg3[%c0_4, %c0_5] : memref<3712x128xf32, #tpu.memory_space<vmem>>, vector<3712x128xf32>
    %cst = arith.constant dense<0.000000e+00> : vector<24x128xf32>
    %6 = tpu.matmul %4, %5, %cst {dimension_numbers = #tpu.dot_dimension_numbers<[1], [0], [0], [1], [0, 0, 1, 1], [], []>} : vector<24x3712xf32>, vector<3712x128xf32>, vector<24x128xf32> -> vector<24x128xf32>
    %7 = arith.addf %3, %6 : vector<24x128xf32>
    %c0_6 = arith.constant 0 : index
    %c0_7 = arith.constant 0 : index
    %8 = vector.load %arg6[%c0_6, %c0_7] : memref<24x128xf32, #tpu.memory_space<vmem>>, vector<24x128xf32>
    tpu.vector_store %arg6[%c0_6, %c0_7], %7 {strides = array<i32>} : memref<24x128xf32, #tpu.memory_space<vmem>>, vector<24x128xf32>,
    %c1_i32 = arith.constant 1 : i32
    %9 = arith.cmpi eq, %arg1, %c1_i32 : i32
    %10 = arith.extui %9 : i1 to i32
    %c0_i32_8 = arith.constant 0 : i32
    %11 = arith.cmpi ne, %10, %c0_i32_8 : i32
    scf.if %11 {
      %c0_9 = arith.constant 0 : index
      %c0_10 = arith.constant 0 : index
      %12 = vector.load %arg6[%c0_9, %c0_10] : memref<24x128xf32, #tpu.memory_space<vmem>>, vector<24x128xf32>
      %c0_11 = arith.constant 0 : index
      %c0_12 = arith.constant 0 : index
      %13 = vector.load %arg4[%c0_11, %c0_12] : memref<24x1xf32, #tpu.memory_space<vmem>>, vector<24x1xf32>
      %14 = vector.broadcast %13 : vector<24x1xf32> to vector<24x128xf32>
      %15 = arith.addf %12, %14 : vector<24x128xf32>
      %16 = arith.negf %15 : vector<24x128xf32>
      %17 = math.exp %16 : vector<24x128xf32>
      %cst_13 = arith.constant 1.000000e+00 : f32
      %18 = vector.broadcast %cst_13 : f32 to vector<24x128xf32>
      %19 = arith.addf %18, %17 : vector<24x128xf32>
      %20 = arith.divf %18, %19 : vector<24x128xf32>
      %21 = arith.mulf %15, %20 : vector<24x128xf32>
      %c0_14 = arith.constant 0 : index
      %c0_15 = arith.constant 0 : index
      %22 = vector.load %arg5[%c0_14, %c0_15] : memref<24x128xf32, #tpu.memory_space<vmem>>, vector<24x128xf32>
      tpu.vector_store %arg5[%c0_14, %c0_15], %21 {strides = array<i32>} : memref<24x128xf32, #tpu.memory_space<vmem>>, vector<24x128xf32>,
    } else {
    }
    return
  }
  func.func @transform_0(%arg0: i32, %arg1: i32) -> (i32, i32) {
    %c0_i32 = arith.constant 0 : i32
    %c0_i32_0 = arith.constant 0 : i32
    return %c0_i32, %arg1 : i32, i32
  }
  func.func @transform_1(%arg0: i32, %arg1: i32) -> (i32, i32) {
    %c0_i32 = arith.constant 0 : i32
    return %arg1, %arg0 : i32, i32
  }
  func.func @transform_2(%arg0: i32, %arg1: i32) -> (i32, i32) {
    %c0_i32 = arith.constant 0 : i32
    %c0_i32_0 = arith.constant 0 : i32
    %c0_i32_1 = arith.constant 0 : i32
    return %c0_i32, %c0_i32_0 : i32, i32
  }
  func.func @transform_3(%arg0: i32, %arg1: i32) -> (i32, i32) {
    %c0_i32 = arith.constant 0 : i32
    %c0_i32_0 = arith.constant 0 : i32
    return %c0_i32, %arg0 : i32, i32
  }
}

module attributes {stable_mosaic.version = 11 : i64} {
  func.func @_gemm_t_fused_head_kernel(%arg0: i32, %arg1: i32, %arg2: memref<16x896xf32, #tpu.memory_space<vmem>>, %arg3: memref<896x128xf32, #tpu.memory_space<vmem>>, %arg4: memref<16x1xf32, #tpu.memory_space<vmem>>, %arg5: memref<8x16xf32, #tpu.memory_space<vmem>>, %arg6: memref<8x1xf32, #tpu.memory_space<vmem>>, %arg7: memref<8x128xf32, #tpu.memory_space<vmem>>, %arg8: memref<16x128xf32, #tpu.memory_space<vmem>>) attributes {dimension_semantics = [#tpu.dimension_semantics<parallel>, #tpu.dimension_semantics<arbitrary>], iteration_bounds = array<i64: 5, 1>, scalar_prefetch = 0 : i64, scratch_operands = 1 : i64, tpu.core_type = #tpu.core_type<tc>, window_params = [{transform_indices = @transform_0, window_bounds = array<i64: 16, 896>}, {transform_indices = @transform_1, window_bounds = array<i64: 896, 128>}, {pipeline_mode = #tpu.pipeline_mode<synchronous>, transform_indices = @transform_2, window_bounds = array<i64: 16, 1>}, {pipeline_mode = #tpu.pipeline_mode<synchronous>, transform_indices = @transform_3, window_bounds = array<i64: 8, 16>}, {pipeline_mode = #tpu.pipeline_mode<synchronous>, transform_indices = @transform_4, window_bounds = array<i64: 8, 1>}, {transform_indices = @transform_5, window_bounds = array<i64: 8, 128>}]} {
    %c0_i32 = arith.constant 0 : i32
    %0 = arith.cmpi eq, %arg1, %c0_i32 : i32
    %1 = arith.extui %0 : i1 to i32
    %c0_i32_0 = arith.constant 0 : i32
    %2 = arith.cmpi ne, %1, %c0_i32_0 : i32
    scf.if %2 {
      %cst_10 = arith.constant 0.000000e+00 : f32
      %12 = vector.broadcast %cst_10 : f32 to vector<16x128xf32>
      %c0_11 = arith.constant 0 : index
      %c0_12 = arith.constant 0 : index
      %13 = vector.load %arg8[%c0_11, %c0_12] : memref<16x128xf32, #tpu.memory_space<vmem>>, vector<16x128xf32>
      tpu.vector_store %arg8[%c0_11, %c0_12], %12 {strides = array<i32>} : memref<16x128xf32, #tpu.memory_space<vmem>>, vector<16x128xf32>,
    } else {
    }
    %c0 = arith.constant 0 : index
    %c0_1 = arith.constant 0 : index
    %3 = vector.load %arg8[%c0, %c0_1] : memref<16x128xf32, #tpu.memory_space<vmem>>, vector<16x128xf32>
    %c0_2 = arith.constant 0 : index
    %c0_3 = arith.constant 0 : index
    %4 = vector.load %arg2[%c0_2, %c0_3] : memref<16x896xf32, #tpu.memory_space<vmem>>, vector<16x896xf32>
    %c0_4 = arith.constant 0 : index
    %c0_5 = arith.constant 0 : index
    %5 = vector.load %arg3[%c0_4, %c0_5] : memref<896x128xf32, #tpu.memory_space<vmem>>, vector<896x128xf32>
    %cst = arith.constant dense<0.000000e+00> : vector<16x128xf32>
    %6 = tpu.matmul %4, %5, %cst {dimension_numbers = #tpu.dot_dimension_numbers<[1], [0], [0], [1], [0, 0, 1, 1], [], []>} : vector<16x896xf32>, vector<896x128xf32>, vector<16x128xf32> -> vector<16x128xf32>
    %7 = arith.addf %3, %6 : vector<16x128xf32>
    %c0_6 = arith.constant 0 : index
    %c0_7 = arith.constant 0 : index
    %8 = vector.load %arg8[%c0_6, %c0_7] : memref<16x128xf32, #tpu.memory_space<vmem>>, vector<16x128xf32>
    tpu.vector_store %arg8[%c0_6, %c0_7], %7 {strides = array<i32>} : memref<16x128xf32, #tpu.memory_space<vmem>>, vector<16x128xf32>,
    %c0_i32_8 = arith.constant 0 : i32
    %9 = arith.cmpi eq, %arg1, %c0_i32_8 : i32
    %10 = arith.extui %9 : i1 to i32
    %c0_i32_9 = arith.constant 0 : i32
    %11 = arith.cmpi ne, %10, %c0_i32_9 : i32
    scf.if %11 {
      %c0_10 = arith.constant 0 : index
      %c0_11 = arith.constant 0 : index
      %12 = vector.load %arg8[%c0_10, %c0_11] : memref<16x128xf32, #tpu.memory_space<vmem>>, vector<16x128xf32>
      %c0_12 = arith.constant 0 : index
      %c0_13 = arith.constant 0 : index
      %13 = vector.load %arg4[%c0_12, %c0_13] : memref<16x1xf32, #tpu.memory_space<vmem>>, vector<16x1xf32>
      %14 = vector.broadcast %13 : vector<16x1xf32> to vector<16x128xf32>
      %15 = arith.addf %12, %14 : vector<16x128xf32>
      %16 = arith.negf %15 : vector<16x128xf32>
      %17 = math.exp %16 : vector<16x128xf32>
      %cst_14 = arith.constant 1.000000e+00 : f32
      %18 = vector.broadcast %cst_14 : f32 to vector<16x128xf32>
      %19 = arith.addf %18, %17 : vector<16x128xf32>
      %20 = arith.divf %18, %19 : vector<16x128xf32>
      %21 = arith.mulf %15, %20 : vector<16x128xf32>
      %c0_15 = arith.constant 0 : index
      %c0_16 = arith.constant 0 : index
      %22 = vector.load %arg5[%c0_15, %c0_16] : memref<8x16xf32, #tpu.memory_space<vmem>>, vector<8x16xf32>
      %cst_17 = arith.constant dense<0.000000e+00> : vector<8x128xf32>
      %23 = tpu.matmul %22, %21, %cst_17 {dimension_numbers = #tpu.dot_dimension_numbers<[1], [0], [0], [1], [0, 0, 1, 1], [], []>} : vector<8x16xf32>, vector<16x128xf32>, vector<8x128xf32> -> vector<8x128xf32>
      %c0_18 = arith.constant 0 : index
      %c0_19 = arith.constant 0 : index
      %24 = vector.load %arg6[%c0_18, %c0_19] : memref<8x1xf32, #tpu.memory_space<vmem>>, vector<8x1xf32>
      %25 = vector.broadcast %24 : vector<8x1xf32> to vector<8x128xf32>
      %26 = arith.addf %23, %25 : vector<8x128xf32>
      %c0_20 = arith.constant 0 : index
      %c0_21 = arith.constant 0 : index
      %27 = vector.load %arg7[%c0_20, %c0_21] : memref<8x128xf32, #tpu.memory_space<vmem>>, vector<8x128xf32>
      tpu.vector_store %arg7[%c0_20, %c0_21], %26 {strides = array<i32>} : memref<8x128xf32, #tpu.memory_space<vmem>>, vector<8x128xf32>,
    } else {
    }
    return
  }
  func.func @transform_0(%arg0: i32, %arg1: i32) -> (i32, i32) {
    %c0_i32 = arith.constant 0 : i32
    %c0_i32_0 = arith.constant 0 : i32
    return %c0_i32, %arg1 : i32, i32
  }
  func.func @transform_1(%arg0: i32, %arg1: i32) -> (i32, i32) {
    %c0_i32 = arith.constant 0 : i32
    return %arg1, %arg0 : i32, i32
  }
  func.func @transform_2(%arg0: i32, %arg1: i32) -> (i32, i32) {
    %c0_i32 = arith.constant 0 : i32
    %c0_i32_0 = arith.constant 0 : i32
    %c0_i32_1 = arith.constant 0 : i32
    return %c0_i32, %c0_i32_0 : i32, i32
  }
  func.func @transform_3(%arg0: i32, %arg1: i32) -> (i32, i32) {
    %c0_i32 = arith.constant 0 : i32
    %c0_i32_0 = arith.constant 0 : i32
    %c0_i32_1 = arith.constant 0 : i32
    return %c0_i32, %c0_i32_0 : i32, i32
  }
  func.func @transform_4(%arg0: i32, %arg1: i32) -> (i32, i32) {
    %c0_i32 = arith.constant 0 : i32
    %c0_i32_0 = arith.constant 0 : i32
    %c0_i32_1 = arith.constant 0 : i32
    return %c0_i32, %c0_i32_0 : i32, i32
  }
  func.func @transform_5(%arg0: i32, %arg1: i32) -> (i32, i32) {
    %c0_i32 = arith.constant 0 : i32
    %c0_i32_0 = arith.constant 0 : i32
    return %c0_i32, %arg0 : i32, i32
  }
}

</mosaic_0001>

<bundles_post_ra>
// kernel: model_forward.3
= control target key start
LH: loop header
LB: loop body
LE: loop exit
PB: predicated region body
PF: predicated region fallthrough
CT: control target
= control target key end

     0   :  { %s4171_s1 = inlined_call_operand.vmem [shape: f32[1792,128], index: 1, kind: input, shape index: {}]   ;;  %s4172_s0 = inlined_call_operand.vmem [shape: f32[120,1792], index: 0, kind: input, shape index: {}]   ;;  %s4173_s2 = inlined_call_operand.vmem [shape: f32[120,1], index: 2, kind: input, shape index: {}]   ;;  %s4174_s3 = inlined_call_operand.vmem [shape: f32[120,128], index: 3, kind: output, shape index: {}]  }
   0x1   :  { %v274_v0 = vld [vmem:[%s4171_s1 + $0x80] sm:$0xff]  ;;  %v275_v1 = vld [vmem:[%s4171_s1 + $0x88] sm:$0xff]  ;;  %v276_v5 = vld [vmem:[%s4171_s1 + $0x90] sm:$0xff] }
   0x2   :  { %v258_v2 = vld [vmem:[%s4171_s1] sm:$0xff]  ;;  %v2293_v3 = vpack.c.bf16 %v275_v1, %v274_v0  ;;  %v259_v4 = vld [vmem:[%s4171_s1 + $0x8] sm:$0xff]  ;;  %v277_v6 = vld [vmem:[%s4171_s1 + $0x98] sm:$0xff] }
   0x3   :  { %v2295_v7 = vpack.c.bf16 %v259_v4, %v258_v2  ;;  %v2297_v8 = vpack.c.bf16 %v277_v6, %v276_v5  ;;  %v260_v9 = vld [vmem:[%s4171_s1 + $0x10] sm:$0xff]  ;;  %v261_v10 = vld [vmem:[%s4171_s1 + $0x18] sm:$0xff]  ;;  %v278_v11 = vld [vmem:[%s4171_s1 + $0xa0] sm:$0xff] }
   0x4   :  { %2517 = vmatprep.subr.bf16.mxu1 %v2293_v3  ;;  %2294 = vmatprep.subr.bf16.mxu0 %v2293_v3  ;;  %v279_v12 = vld [vmem:[%s4171_s1 + $0xa8] sm:$0xff]  ;;  %v2299_v13 = vpack.c.bf16 %v261_v10, %v260_v9  ;;  %v262_v15 = vld [vmem:[%s4171_s1 + $0x20] sm:$0xff]  ;;  %v280_v17 = vld [vmem:[%s4171_s1 + $0xb0] sm:$0xff] }
   0x5   :  { %2525 = vmatpush3.bf16.msra.mxu1 %v2295_v7  ;;  %2296 = vmatpush3.bf16.msra.mxu0 %v2295_v7  ;;  %v2301_v14 = vpack.c.bf16 %v279_v12, %v278_v11  ;;  %v263_v16 = vld [vmem:[%s4171_s1 + $0x28] sm:$0xff]  ;;  %v281_v18 = vld [vmem:[%s4171_s1 + $0xb8] sm:$0xff]  ;;  %v264_v21 = vld [vmem:[%s4171_s1 + $0x30] sm:$0xff] }
   0x6   :  { %2518 = vmatprep.subr.bf16.mxu1 %v2297_v8  ;;  %2298 = vmatprep.subr.bf16.mxu0 %v2297_v8  ;;  %v2303_v19 = vpack.c.bf16 %v263_v16, %v262_v15  ;;  %v2305_v20 = vpack.c.bf16 %v281_v18, %v280_v17  ;;  %v265_v22 = vld [vmem:[%s4171_s1 + $0x38] sm:$0xff]  ;;  %v282_v23 = vld [vmem:[%s4171_s1 + $0xc0] sm:$0xff]  ;;  %v283_v24 = vld [vmem:[%s4171_s1 + $0xc8] sm:$0xff] }
   0x7   :  { %v161_v25 = vld [vmem:[%s4172_s0 + $0x388] sm:$0xff]  ;;  %v2307_v26 = vpack.c.bf16 %v265_v22, %v264_v21  ;;  %v2309_v28 = vpack.c.bf16 %v283_v24, %v282_v23  ;;  %v266_v29 = vld [vmem:[%s4171_s1 + $0x40] sm:$0xff]  ;;  %v284_v31 = vld [vmem:[%s4171_s1 + $0xd0] sm:$0xff] }
   0x8   :  { %586 = vmatprep.mubr.f32.mxu1 %v161_v25  ;;  %v49_v27 = vld [vmem:[%s4172_s0 + $0x8] sm:$0xff]  ;;  %v285_v32 = vld [vmem:[%s4171_s1 + $0xd8] sm:$0xff]  ;;  %v268_v35 = vld [vmem:[%s4171_s1 + $0x50] sm:$0xff] }
   0x9   :  { %2526 = vmatpush3.bf16.msra.mxu1 %v2299_v13  ;;  %2300 = vmatpush3.bf16.msra.mxu0 %v2299_v13  ;;  %v267_v30 = vld [vmem:[%s4171_s1 + $0x48] sm:$0xff]  ;;  %v2313_v34 = vpack.c.bf16 %v285_v32, %v284_v31  ;;  %v269_v36 = vld [vmem:[%s4171_s1 + $0x58] sm:$0xff]  ;;  %v286_v37 = vld [vmem:[%s4171_s1 + $0xe0] sm:$0xff] }
   0xa   :  { %2519 = vmatprep.subr.bf16.mxu1 %v2301_v14  ;;  %2302 = vmatprep.subr.bf16.mxu0 %v2301_v14  ;;  %v2311_v33 = vpack.c.bf16 %v267_v30, %v266_v29  ;;  %v287_v38 = vld [vmem:[%s4171_s1 + $0xe8] sm:$0xff]  ;;  %v2315_v39 = vpack.c.bf16 %v269_v36, %v268_v35  ;;  %v270_v41 = vld [vmem:[%s4171_s1 + $0x60] sm:$0xff]  ;;  %v288_v43 = vld [vmem:[%s4171_s1 + $0xf0] sm:$0xff] }
   0xb   :  { %546 = vmatprep.mubr.f32.mxu0 %v49_v27  ;;  %v2317_v40 = vpack.c.bf16 %v287_v38, %v286_v37  ;;  %v271_v42 = vld [vmem:[%s4171_s1 + $0x68] sm:$0xff]  ;;  %v289_v44 = vld [vmem:[%s4171_s1 + $0xf8] sm:$0xff]  ;;  %v272_v47 = vld [vmem:[%s4171_s1 + $0x70] sm:$0xff] }
   0xc   :  { %v2319_v45 = vpack.c.bf16 %v271_v42, %v270_v41  ;;  %v2321_v46 = vpack.c.bf16 %v289_v44, %v288_v43  ;;  %v273_v48 = vld [vmem:[%s4171_s1 + $0x78] sm:$0xff]  ;;  %v306_v49 = vld [vmem:[%s4171_s1 + $0x180] sm:$0xff]  ;;  %v307_v50 = vld [vmem:[%s4171_s1 + $0x188] sm:$0xff] }
   0xd   :  { %2527 = vmatpush3.bf16.msra.mxu1 %v2303_v19  ;;  %2304 = vmatpush3.bf16.msra.mxu0 %v2303_v19  ;;  %v338_v51 = vld [vmem:[%s4171_s1 + $0x280] sm:$0xff]  ;;  %v339_v52 = vld [vmem:[%s4171_s1 + $0x288] sm:$0xff]  ;;  %v2323_v53 = vpack.c.bf16 %v273_v48, %v272_v47  ;;  %v2325_v55 = vpack.c.bf16 %v307_v50, %v306_v49  ;;  %v308_v60 = vld [vmem:[%s4171_s1 + $0x190] sm:$0xff] }
   0xe   :  { %2520 = vmatprep.subr.bf16.mxu1 %v2305_v20  ;;  %2306 = vmatprep.subr.bf16.mxu0 %v2305_v20  ;;  %v290_v54 = vld [vmem:[%s4171_s1 + $0x100] sm:$0xff]  ;;  %v291_v56 = vld [vmem:[%s4171_s1 + $0x108] sm:$0xff]  ;;  %v2357_v57 = vpack.c.bf16 %v339_v52, %v338_v51  ;;  %v309_v61 = vld [vmem:[%s4171_s1 + $0x198] sm:$0xff] }
   0xf   :  { %v322_v58 = vld [vmem:[%s4171_s1 + $0x200] sm:$0xff]  ;;  %v323_v59 = vld [vmem:[%s4171_s1 + $0x208] sm:$0xff]  ;;  %v340_v62 = vld [vmem:[%s4171_s1 + $0x290] sm:$0xff]  ;;  %v2327_v1 = vpack.c.bf16 %v291_v56, %v290_v54  ;;  %v2329_v5 = vpack.c.bf16 %v309_v61, %v308_v60 }
  0x10   :  { %v341_v63 = vld [vmem:[%s4171_s1 + $0x298] sm:$0xff]  ;;  %v160_v0 = vld [vmem:[%s4172_s0 + $0x380] sm:$0xff]  ;;  %v2359_v3 = vpack.c.bf16 %v323_v59, %v322_v58  ;;  %v292_v4 = vld [vmem:[%s4171_s1 + $0x110] sm:$0xff] }
  0x11   :  { %2528 = vmatpush3.bf16.msra.mxu1 %v2307_v26  ;;  %2308 = vmatpush3.bf16.msra.mxu0 %v2307_v26  ;;  %v48_v2 = vld [vmem:[%s4172_s0] sm:$0xff]  ;;  %v293_v6 = vld [vmem:[%s4171_s1 + $0x118] sm:$0xff]  ;;  %v324_v7 = vld [vmem:[%s4171_s1 + $0x210] sm:$0xff]  ;;  %v2361_v10 = vpack.c.bf16 %v341_v63, %v340_v62 }
  0x12   :  { %2521 = vmatprep.subr.bf16.mxu1 %v2309_v28  ;;  %2310 = vmatprep.subr.bf16.mxu0 %v2309_v28  ;;  %v325_v8 = vld [vmem:[%s4171_s1 + $0x218] sm:$0xff]  ;;  %v310_v11 = vld [vmem:[%s4171_s1 + $0x1a0] sm:$0xff]  ;;  %v311_v12 = vld [vmem:[%s4171_s1 + $0x1a8] sm:$0xff]  ;;  %v2331_v16 = vpack.c.bf16 %v293_v6, %v292_v4 }
  0x13   :  { %v63_v9 = vld [vmem:[%s4172_s0 + $0x78] sm:$0xff]  ;;  %v342_v14 = vld [vmem:[%s4171_s1 + $0x2a0] sm:$0xff]  ;;  %v343_v15 = vld [vmem:[%s4171_s1 + $0x2a8] sm:$0xff]  ;;  %v2363_v18 = vpack.c.bf16 %v325_v8, %v324_v7  ;;  %v2333_v21 = vpack.c.bf16 %v311_v12, %v310_v11 }
  0x14   :  { %v175_v13 = vld [vmem:[%s4172_s0 + $0x3f8] sm:$0xff]  ;;  %v62_v17 = vld [vmem:[%s4172_s0 + $0x70] sm:$0xff]  ;;  %v294_v20 = vld [vmem:[%s4171_s1 + $0x120] sm:$0xff]  ;;  %v2365_v26 = vpack.c.bf16 %v343_v15, %v342_v14 }
  0x15   :  { %2529 = vmatpush3.bf16.msra.mxu1 %v2311_v33  ;;  %2312 = vmatpush3.bf16.msra.mxu0 %v2311_v33  ;;  %v174_v19 = vld [vmem:[%s4172_s0 + $0x3f0] sm:$0xff]  ;;  %v295_v22 = vld [vmem:[%s4171_s1 + $0x128] sm:$0xff]  ;;  %v326_v23 = vld [vmem:[%s4171_s1 + $0x220] sm:$0xff] }
  0x16   :  { %2522 = vmatprep.subr.bf16.mxu1 %v2313_v34  ;;  %2314 = vmatprep.subr.bf16.mxu0 %v2313_v34  ;;  %v327_v24 = vld [vmem:[%s4171_s1 + $0x228] sm:$0xff]  ;;  %v312_v27 = vld [vmem:[%s4171_s1 + $0x1b0] sm:$0xff]  ;;  %v313_v28 = vld [vmem:[%s4171_s1 + $0x1b8] sm:$0xff]  ;;  %v2335_v32 = vpack.c.bf16 %v295_v22, %v294_v20 }
  0x17   :  { %v77_v25 = vld [vmem:[%s4172_s0 + $0xe8] sm:$0xff]  ;;  %v344_v30 = vld [vmem:[%s4171_s1 + $0x2b0] sm:$0xff]  ;;  %v345_v31 = vld [vmem:[%s4171_s1 + $0x2b8] sm:$0xff]  ;;  %v2367_v34 = vpack.c.bf16 %v327_v24, %v326_v23  ;;  %v2337_v37 = vpack.c.bf16 %v313_v28, %v312_v27 }
  0x18   :  { %v189_v29 = vld [vmem:[%s4172_s0 + $0x468] sm:$0xff]  ;;  %v76_v33 = vld [vmem:[%s4172_s0 + $0xe0] sm:$0xff]  ;;  %v296_v36 = vld [vmem:[%s4171_s1 + $0x130] sm:$0xff]  ;;  %v2369_v42 = vpack.c.bf16 %v345_v31, %v344_v30 }
  0x19   :  { %2530 = vmatpush3.bf16.msra.mxu1 %v2315_v39  ;;  %2316 = vmatpush3.bf16.msra.mxu0 %v2315_v39  ;;  %v188_v35 = vld [vmem:[%s4172_s0 + $0x460] sm:$0xff]  ;;  %v297_v38 = vld [vmem:[%s4171_s1 + $0x138] sm:$0xff]  ;;  %v328_v39 = vld [vmem:[%s4171_s1 + $0x230] sm:$0xff] }
  0x1a   :  { %2523 = vmatprep.subr.bf16.mxu1 %v2317_v40  ;;  %2318 = vmatprep.subr.bf16.mxu0 %v2317_v40  ;;  %v329_v40 = vld [vmem:[%s4171_s1 + $0x238] sm:$0xff]  ;;  %v314_v43 = vld [vmem:[%s4171_s1 + $0x1c0] sm:$0xff]  ;;  %v315_v44 = vld [vmem:[%s4171_s1 + $0x1c8] sm:$0xff]  ;;  %v2339_v48 = vpack.c.bf16 %v297_v38, %v296_v36 }
  0x1b   :  { %v91_v41 = vld [vmem:[%s4172_s0 + $0x158] sm:$0xff]  ;;  %v347_v47 = vld [vmem:[%s4171_s1 + $0x2c8] sm:$0xff]  ;;  %v90_v49 = vld [vmem:[%s4172_s0 + $0x150] sm:$0xff]  ;;  %v2371_v50 = vpack.c.bf16 %v329_v40, %v328_v39 }
  0x1c   :  { %v202_v51 = vld [vmem:[%s4172_s0 + $0x4d0] sm:$0xff]  ;;  %v298_v52 = vld [vmem:[%s4171_s1 + $0x140] sm:$0xff]  ;;  %v299_v54 = vld [vmem:[%s4171_s1 + $0x148] sm:$0xff] }
  0x1d   :  { %2531 = vmatpush3.bf16.msra.mxu1 %v2319_v45  ;;  %2320 = vmatpush3.bf16.msra.mxu0 %v2319_v45  ;;  %v203_v45 = vld [vmem:[%s4172_s0 + $0x4d8] sm:$0xff]  ;;  %v331_v56 = vld [vmem:[%s4171_s1 + $0x248] sm:$0xff]  ;;  %v316_v59 = vld [vmem:[%s4171_s1 + $0x1d0] sm:$0xff] }
  0x1e   :  { %2524 = vmatprep.subr.bf16.mxu1 %v2321_v46  ;;  %2322 = vmatprep.subr.bf16.mxu0 %v2321_v46  ;;  %v346_v46 = vld [vmem:[%s4171_s1 + $0x2c0] sm:$0xff]  ;;  %v317_v60 = vld [vmem:[%s4171_s1 + $0x1d8] sm:$0xff]  ;;  %v217_v61 = vld [vmem:[%s4172_s0 + $0x548] sm:$0xff] }
  0x1f   :  { %v2373_v58 = vpack.c.bf16 %v347_v47, %v346_v46  ;;  %v348_v62 = vld [vmem:[%s4171_s1 + $0x2d0] sm:$0xff]  ;;  %v349_v63 = vld [vmem:[%s4171_s1 + $0x2d8] sm:$0xff]  ;;  %v318_v11 = vld [vmem:[%s4171_s1 + $0x1e0] sm:$0xff] }
  0x20   :  { %v300_v4 = vld [vmem:[%s4171_s1 + $0x150] sm:$0xff]  ;;  %v301_v6 = vld [vmem:[%s4171_s1 + $0x158] sm:$0xff]  ;;  %v319_v12 = vld [vmem:[%s4171_s1 + $0x1e8] sm:$0xff] }
  0x21   :  { %2532 = vmatpush3.bf16.msra.mxu1 %v2323_v53  ;;  %2324 = vmatpush3.bf16.msra.mxu0 %v2323_v53  ;;  %v2341_v53 = vpack.c.bf16 %v315_v44, %v314_v43  ;;  %v332_v7 = vld [vmem:[%s4171_s1 + $0x250] sm:$0xff]  ;;  %v333_v8 = vld [vmem:[%s4171_s1 + $0x258] sm:$0xff]  ;;  %v350_v14 = vld [vmem:[%s4171_s1 + $0x2e0] sm:$0xff] }
  0x22   :  { %2326 = vmatprep.subr.bf16.mxu1 %v2325_v55  ;;  %2358 = vmatprep.subr.bf16.mxu0 %v2357_v57  ;;  %v330_v55 = vld [vmem:[%s4171_s1 + $0x240] sm:$0xff]  ;;  %v105_v57 = vld [vmem:[%s4172_s0 + $0x1c8] sm:$0xff]  ;;  %v320_v27 = vld [vmem:[%s4171_s1 + $0x1f0] sm:$0xff] }
  0x23   :  { %v351_v15 = vld [vmem:[%s4171_s1 + $0x2e8] sm:$0xff]  ;;  %v302_v20 = vld [vmem:[%s4171_s1 + $0x160] sm:$0xff]  ;;  %v321_v28 = vld [vmem:[%s4171_s1 + $0x1f8] sm:$0xff] }
  0x24   :  { %587 = vmatmul.mubr.f32.vlgmr.msra.gmra.mrb[0].mxu1 %v160_v0  ;;  %547 = vmatmul.mubr.f32.vlgmr.msra.gmra.mrb[0].mxu0 %v48_v2  ;;  %v2343_v0 = vpack.c.bf16 %v299_v54, %v298_v52  ;;  %v2375_v2 = vpack.c.bf16 %v331_v56, %v330_v55  ;;  %v303_v22 = vld [vmem:[%s4171_s1 + $0x168] sm:$0xff]  ;;  %v334_v23 = vld [vmem:[%s4171_s1 + $0x260] sm:$0xff]  ;;  %v352_v30 = vld [vmem:[%s4171_s1 + $0x2f0] sm:$0xff] }
  0x25   :  { %2328 = vmatpush3.bf16.msra.mxu1 %v2327_v1  ;;  %2360 = vmatpush3.bf16.msra.mxu0 %v2359_v3  ;;  %v104_v1 = vld [vmem:[%s4172_s0 + $0x1c0] sm:$0xff]  ;;  %v335_v24 = vld [vmem:[%s4171_s1 + $0x268] sm:$0xff]  ;;  %v353_v31 = vld [vmem:[%s4171_s1 + $0x2f8] sm:$0xff] }
  0x26   :  { %2330 = vmatprep.subr.bf16.mxu1 %v2329_v5  ;;  %551 = vmatprep.mubr.f32.mxu0 %v63_v9  ;;  %v216_v3 = vld [vmem:[%s4172_s0 + $0x540] sm:$0xff]  ;;  %v2345_v5 = vpack.c.bf16 %v317_v60, %v316_v59  ;;  %v119_v9 = vld [vmem:[%s4172_s0 + $0x238] sm:$0xff]  ;;  %v304_v36 = vld [vmem:[%s4171_s1 + $0x170] sm:$0xff] }
  0x27   :  { %2362 = vmatprep.subr.bf16.mxu0 %v2361_v10  ;;  %591 = vmatprep.mubr.f32.mxu1 %v175_v13  ;;  %v2377_v10 = vpack.c.bf16 %v349_v63, %v348_v62  ;;  %v231_v13 = vld [vmem:[%s4172_s0 + $0x5b8] sm:$0xff]  ;;  %v336_v39 = vld [vmem:[%s4171_s1 + $0x270] sm:$0xff]  ;;  %v370_v43 = vld [vmem:[%s4171_s1 + $0x380] sm:$0xff] }
  0x28   :  { %552 = vmatmul.mubr.f32.gmra.mrb[2].mxu0 %v62_v17  ;;  %592 = vmatmul.mubr.f32.gmra.mrb[2].mxu1 %v174_v19  ;;  %v118_v17 = vld [vmem:[%s4172_s0 + $0x230] sm:$0xff]  ;;  %v305_v38 = vld [vmem:[%s4171_s1 + $0x178] sm:$0xff]  ;;  %v371_v44 = vld [vmem:[%s4171_s1 + $0x388] sm:$0xff] }
  0x29   :  { %2332 = vmatpush3.bf16.msra.mxu1 %v2331_v16  ;;  %2364 = vmatpush3.bf16.msra.mxu0 %v2363_v18  ;;  %v2347_v16 = vpack.c.bf16 %v301_v6, %v300_v4  ;;  %v2379_v18 = vpack.c.bf16 %v333_v8, %v332_v7  ;;  %v230_v19 = vld [vmem:[%s4172_s0 + $0x5b0] sm:$0xff]  ;;  %v337_v40 = vld [vmem:[%s4171_s1 + $0x278] sm:$0xff]  ;;  %v402_v46 = vld [vmem:[%s4171_s1 + $0x480] sm:$0xff] }
  0x2a   :  { %2334 = vmatprep.subr.bf16.mxu1 %v2333_v21  ;;  %556 = vmatprep.mubr.f32.mxu0 %v77_v25  ;;  %v2349_v21 = vpack.c.bf16 %v319_v12, %v318_v11  ;;  %v133_v25 = vld [vmem:[%s4172_s0 + $0x2a8] sm:$0xff]  ;;  %v386_v56 = vld [vmem:[%s4171_s1 + $0x400] sm:$0xff]  ;;  %v373_v59 = vld [vmem:[%s4171_s1 + $0x398] sm:$0xff] }
  0x2b   :  { %2366 = vmatprep.subr.bf16.mxu0 %v2365_v26  ;;  %596 = vmatprep.mubr.f32.mxu1 %v189_v29  ;;  %v2381_v26 = vpack.c.bf16 %v351_v15, %v350_v14  ;;  %v245_v29 = vld [vmem:[%s4172_s0 + $0x628] sm:$0xff]  ;;  %v404_v60 = vld [vmem:[%s4171_s1 + $0x490] sm:$0xff]  ;;  %v406_v12 = vld [vmem:[%s4171_s1 + $0x4a0] sm:$0xff] }
  0x2c   :  { %557 = vmatmul.mubr.f32.gmra.mrb[4].mxu0 %v76_v33  ;;  %597 = vmatmul.mubr.f32.gmra.mrb[4].mxu1 %v188_v35  ;;  %v132_v33 = vld [vmem:[%s4172_s0 + $0x2a0] sm:$0xff]  ;;  %v403_v47 = vld [vmem:[%s4171_s1 + $0x488] sm:$0xff]  ;;  %v50_v62 = vld [vmem:[%s4172_s0 + $0x10] sm:$0xff] }
  0x2d   :  { %2336 = vmatpush3.bf16.msra.mxu1 %v2335_v32  ;;  %2368 = vmatpush3.bf16.msra.mxu0 %v2367_v34  ;;  %v2351_v32 = vpack.c.bf16 %v303_v22, %v302_v20  ;;  %v2383_v34 = vpack.c.bf16 %v335_v24, %v334_v23  ;;  %v244_v35 = vld [vmem:[%s4172_s0 + $0x620] sm:$0xff]  ;;  %v53_v52 = vld [vmem:[%s4172_s0 + $0x28] sm:$0xff]  ;;  %v2421_v55 = vpack.c.bf16 %v403_v47, %v402_v46  ;;  %v356_v4 = vld [vmem:[%s4171_s1 + $0x310] sm:$0xff] }
  0x2e   :  { %2338 = vmatprep.subr.bf16.mxu1 %v2337_v37  ;;  %561 = vmatprep.mubr.f32.mxu0 %v91_v41  ;;  %v2353_v37 = vpack.c.bf16 %v321_v28, %v320_v27  ;;  %v147_v41 = vld [vmem:[%s4172_s0 + $0x318] sm:$0xff]  ;;  %v355_v54 = vld [vmem:[%s4171_s1 + $0x308] sm:$0xff]  ;;  %v388_v8 = vld [vmem:[%s4171_s1 + $0x410] sm:$0xff] }
  0x2f   :  { %2370 = vmatprep.subr.bf16.mxu0 %v2369_v42  ;;  %601 = vmatprep.mubr.f32.mxu1 %v203_v45  ;;  %v2385_v42 = vpack.c.bf16 %v353_v31, %v352_v30  ;;  %v51_v45 = vld [vmem:[%s4172_s0 + $0x18] sm:$0xff]  ;;  %v375_v11 = vld [vmem:[%s4171_s1 + $0x3a8] sm:$0xff]  ;;  %v64_v14 = vld [vmem:[%s4172_s0 + $0x80] sm:$0xff] }
  0x30   :  { %562 = vmatmul.mubr.f32.gmra.mrb[6].mxu0 %v90_v49  ;;  %602 = vmatmul.mubr.f32.gmra.mrb[6].mxu1 %v202_v51  ;;  %v146_v49 = vld [vmem:[%s4172_s0 + $0x310] sm:$0xff]  ;;  %v2389_v51 = vpack.c.bf16 %v371_v44, %v370_v43  ;;  %v358_v20 = vld [vmem:[%s4171_s1 + $0x320] sm:$0xff]  ;;  %v377_v27 = vld [vmem:[%s4171_s1 + $0x3b8] sm:$0xff] }
  0x31   :  { %2340 = vmatpush3.bf16.msra.mxu1 %v2339_v48  ;;  %2372 = vmatpush3.bf16.msra.mxu0 %v2371_v50  ;;  %v2355_v48 = vpack.c.bf16 %v305_v38, %v304_v36  ;;  %v2387_v50 = vpack.c.bf16 %v337_v40, %v336_v39  ;;  %v66_v15 = vld [vmem:[%s4172_s0 + $0x90] sm:$0xff]  ;;  %v390_v24 = vld [vmem:[%s4171_s1 + $0x420] sm:$0xff]  ;;  %v379_v43 = vld [vmem:[%s4171_s1 + $0x3c8] sm:$0xff] }
  0x32   :  { %2342 = vmatprep.subr.bf16.mxu1 %v2341_v53  ;;  %566 = vmatprep.mubr.f32.mxu0 %v105_v57  ;;  %v354_v53 = vld [vmem:[%s4171_s1 + $0x300] sm:$0xff]  ;;  %v387_v57 = vld [vmem:[%s4171_s1 + $0x408] sm:$0xff]  ;;  %v408_v28 = vld [vmem:[%s4171_s1 + $0x4b0] sm:$0xff] }
  0x33   :  { %2374 = vmatprep.subr.bf16.mxu0 %v2373_v58  ;;  %606 = vmatprep.mubr.f32.mxu1 %v217_v61  ;;  %v372_v58 = vld [vmem:[%s4171_s1 + $0x390] sm:$0xff]  ;;  %v405_v61 = vld [vmem:[%s4171_s1 + $0x498] sm:$0xff]  ;;  %v2391_v63 = vpack.c.bf16 %v355_v54, %v354_v53  ;;  %v80_v31 = vld [vmem:[%s4172_s0 + $0x100] sm:$0xff] }
  0x34   :  { %567 = vmatmul.mubr.f32.gmra.mrb[8].mxu0 %v104_v1  ;;  %607 = vmatmul.mubr.f32.gmra.mrb[8].mxu1 %v216_v3  ;;  %v65_v1 = vld [vmem:[%s4172_s0 + $0x88] sm:$0xff]  ;;  %v67_v3 = vld [vmem:[%s4172_s0 + $0x98] sm:$0xff]  ;;  %v2393_v6 = vpack.c.bf16 %v373_v59, %v372_v58  ;;  %v2425_v7 = vpack.c.bf16 %v405_v61, %v404_v60  ;;  %v78_v30 = vld [vmem:[%s4172_s0 + $0xf0] sm:$0xff] }
  0x35   :  { %2344 = vmatpush3.bf16.msra.mxu1 %v2343_v0  ;;  %2376 = vmatpush3.bf16.msra.mxu0 %v2375_v2  ;;  %v52_v0 = vld [vmem:[%s4172_s0 + $0x20] sm:$0xff]  ;;  %v2423_v2 = vpack.c.bf16 %v387_v57, %v386_v56  ;;  %v360_v36 = vld [vmem:[%s4171_s1 + $0x330] sm:$0xff]  ;;  %v363_v53 = vld [vmem:[%s4171_s1 + $0x348] sm:$0xff] }
  0x36   :  { %2346 = vmatprep.subr.bf16.mxu1 %v2345_v5  ;;  %571 = vmatprep.mubr.f32.mxu0 %v119_v9  ;;  %v357_v5 = vld [vmem:[%s4171_s1 + $0x318] sm:$0xff]  ;;  %v392_v40 = vld [vmem:[%s4171_s1 + $0x430] sm:$0xff]  ;;  %v410_v44 = vld [vmem:[%s4171_s1 + $0x4c0] sm:$0xff] }
  0x37   :  { %2378 = vmatprep.subr.bf16.mxu0 %v2377_v10  ;;  %611 = vmatprep.mubr.f32.mxu1 %v231_v13  ;;  %v389_v9 = vld [vmem:[%s4171_s1 + $0x418] sm:$0xff]  ;;  %v374_v10 = vld [vmem:[%s4171_s1 + $0x3a0] sm:$0xff]  ;;  %v407_v13 = vld [vmem:[%s4171_s1 + $0x4a8] sm:$0xff] }
  0x38   :  { %572 = vmatmul.mubr.f32.gmra.mrb[10].mxu0 %v118_v17  ;;  %612 = vmatmul.mubr.f32.gmra.mrb[10].mxu1 %v230_v19  ;;  %v81_v17 = vld [vmem:[%s4172_s0 + $0x108] sm:$0xff]  ;;  %v2427_v19 = vpack.c.bf16 %v389_v9, %v388_v8  ;;  %v2397_v22 = vpack.c.bf16 %v375_v11, %v374_v10  ;;  %v2429_v23 = vpack.c.bf16 %v407_v13, %v406_v12  ;;  %v92_v46 = vld [vmem:[%s4172_s0 + $0x160] sm:$0xff]  ;;  %v94_v47 = vld [vmem:[%s4172_s0 + $0x170] sm:$0xff] }
  0x39   :  { %2348 = vmatpush3.bf16.msra.mxu1 %v2347_v16  ;;  %2380 = vmatpush3.bf16.msra.mxu0 %v2379_v18  ;;  %v79_v16 = vld [vmem:[%s4172_s0 + $0xf8] sm:$0xff]  ;;  %v2395_v18 = vpack.c.bf16 %v357_v5, %v356_v4  ;;  %v394_v56 = vld [vmem:[%s4171_s1 + $0x440] sm:$0xff]  ;;  %v395_v57 = vld [vmem:[%s4171_s1 + $0x448] sm:$0xff] }
  0x3a   :  { %2350 = vmatprep.subr.bf16.mxu1 %v2349_v21  ;;  %576 = vmatprep.mubr.f32.mxu0 %v133_v25  ;;  %v359_v21 = vld [vmem:[%s4171_s1 + $0x328] sm:$0xff]  ;;  %v380_v58 = vld [vmem:[%s4171_s1 + $0x3d0] sm:$0xff]  ;;  %v381_v59 = vld [vmem:[%s4171_s1 + $0x3d8] sm:$0xff] }
  0x3b   :  { %2382 = vmatprep.subr.bf16.mxu0 %v2381_v26  ;;  %616 = vmatprep.mubr.f32.mxu1 %v245_v29  ;;  %v391_v25 = vld [vmem:[%s4171_s1 + $0x428] sm:$0xff]  ;;  %v376_v26 = vld [vmem:[%s4171_s1 + $0x3b0] sm:$0xff]  ;;  %v409_v29 = vld [vmem:[%s4171_s1 + $0x4b8] sm:$0xff] }
  0x3c   :  { %577 = vmatmul.mubr.f32.gmra.mrb[12].mxu0 %v132_v33  ;;  %617 = vmatmul.mubr.f32.gmra.mrb[12].mxu1 %v244_v35  ;;  %v95_v33 = vld [vmem:[%s4172_s0 + $0x178] sm:$0xff]  ;;  %v2431_v35 = vpack.c.bf16 %v391_v25, %v390_v24  ;;  %v2401_v38 = vpack.c.bf16 %v377_v27, %v376_v26  ;;  %v2433_v39 = vpack.c.bf16 %v409_v29, %v408_v28  ;;  %v412_v60 = vld [vmem:[%s4171_s1 + $0x4d0] sm:$0xff]  ;;  %v382_v10 = vld [vmem:[%s4171_s1 + $0x3e0] sm:$0xff] }
  0x3d   :  { %2352 = vmatpush3.bf16.msra.mxu1 %v2351_v32  ;;  %2384 = vmatpush3.bf16.msra.mxu0 %v2383_v34  ;;  %v93_v32 = vld [vmem:[%s4172_s0 + $0x168] sm:$0xff]  ;;  %v2399_v34 = vpack.c.bf16 %v359_v21, %v358_v20  ;;  %v413_v61 = vld [vmem:[%s4171_s1 + $0x4d8] sm:$0xff]  ;;  %v364_v4 = vld [vmem:[%s4171_s1 + $0x350] sm:$0xff] }
  0x3e   :  { %2354 = vmatprep.subr.bf16.mxu1 %v2353_v37  ;;  %581 = vmatprep.mubr.f32.mxu0 %v147_v41  ;;  %v361_v37 = vld [vmem:[%s4171_s1 + $0x338] sm:$0xff]  ;;  %v396_v8 = vld [vmem:[%s4171_s1 + $0x450] sm:$0xff]  ;;  %v383_v11 = vld [vmem:[%s4171_s1 + $0x3e8] sm:$0xff] }
  0x3f   :  { %2386 = vmatprep.subr.bf16.mxu0 %v2385_v42  ;;  %686 = vmatprep.mubr.f32.mxu1 %v51_v45  ;;  %v393_v41 = vld [vmem:[%s4171_s1 + $0x438] sm:$0xff]  ;;  %v378_v42 = vld [vmem:[%s4171_s1 + $0x3c0] sm:$0xff]  ;;  %v411_v45 = vld [vmem:[%s4171_s1 + $0x4c8] sm:$0xff] }
  0x40   :  { %582 = vmatmul.mubr.f32.gmra.mrb[14].mxu0 %v146_v49  ;;  %v109_v49 = vld [vmem:[%s4172_s0 + $0x1e8] sm:$0xff]  ;;  %v2405_v54 = vpack.c.bf16 %v379_v43, %v378_v42  ;;  %v365_v5 = vld [vmem:[%s4171_s1 + $0x358] sm:$0xff]  ;;  %v414_v12 = vld [vmem:[%s4171_s1 + $0x4e0] sm:$0xff] }
  0x41   :  { %2356 = vmatpush3.bf16.msra.mxu1 %v2355_v48  ;;  %2388 = vmatpush3.bf16.msra.mxu0 %v2387_v50  ;;  %v107_v48 = vld [vmem:[%s4172_s0 + $0x1d8] sm:$0xff]  ;;  %v2403_v50 = vpack.c.bf16 %v361_v37, %v360_v36  ;;  %v415_v13 = vld [vmem:[%s4171_s1 + $0x4e8] sm:$0xff]  ;;  %v366_v20 = vld [vmem:[%s4171_s1 + $0x360] sm:$0xff] }
  0x42   :  { %2390 = vmatprep.subr.bf16.mxu1 %v2389_v51  ;;  %826 = vmatprep.mubr.f32.mxu0 %v53_v52  ;;  %v2435_v51 = vpack.c.bf16 %v393_v41, %v392_v40  ;;  %v362_v52 = vld [vmem:[%s4171_s1 + $0x340] sm:$0xff]  ;;  %v397_v9 = vld [vmem:[%s4171_s1 + $0x458] sm:$0xff]  ;;  %v367_v21 = vld [vmem:[%s4171_s1 + $0x368] sm:$0xff] }
  0x43   :  { %2422 = vmatprep.subr.bf16.mxu0 %v2421_v55  ;;  %v2437_v55 = vpack.c.bf16 %v411_v45, %v410_v44  ;;  %v398_v24 = vld [vmem:[%s4171_s1 + $0x460] sm:$0xff]  ;;  %v399_v25 = vld [vmem:[%s4171_s1 + $0x468] sm:$0xff]  ;;  %v384_v26 = vld [vmem:[%s4171_s1 + $0x3f0] sm:$0xff] }
  0x44   :  { %687 = vmatmul.mubr.f32.vlgmr.msra.gmra.mrb[14].mxu1 %v50_v62  ;;  %827 = vmatmul.mubr.f32.vlgmr.msra.gmra.mrb[16].mxu0 %v52_v0  ;;  %v106_v62 = vld [vmem:[%s4172_s0 + $0x1d0] sm:$0xff]  ;;  %v121_v0 = vld [vmem:[%s4172_s0 + $0x248] sm:$0xff]  ;;  %v385_v27 = vld [vmem:[%s4171_s1 + $0x3f8] sm:$0xff] }
  0x45   :  { %2392 = vmatpush3.bf16.msra.mxu1 %v2391_v63  ;;  %691 = vmatprep.mubr.f32.mxu1 %v65_v1  ;;  %v108_v63 = vld [vmem:[%s4172_s0 + $0x1e0] sm:$0xff]  ;;  %v123_v1 = vld [vmem:[%s4172_s0 + $0x258] sm:$0xff]  ;;  %v416_v28 = vld [vmem:[%s4171_s1 + $0x4f0] sm:$0xff] }
  0x46   :  { %2424 = vmatpush3.bf16.msra.mxu0 %v2423_v2  ;;  %831 = vmatprep.mubr.f32.mxu0 %v67_v3  ;;  %v2407_v2 = vpack.c.bf16 %v363_v53, %v362_v52  ;;  %v2439_v3 = vpack.c.bf16 %v395_v57, %v394_v56  ;;  %v417_v29 = vld [vmem:[%s4171_s1 + $0x4f8] sm:$0xff]  ;;  %v368_v36 = vld [vmem:[%s4171_s1 + $0x370] sm:$0xff]  ;;  %v434_v42 = vld [vmem:[%s4171_s1 + $0x580] sm:$0xff] }
  0x47   :  { %2394 = vmatprep.subr.bf16.mxu1 %v2393_v6  ;;  %2426 = vmatprep.subr.bf16.mxu0 %v2425_v7  ;;  %v2409_v6 = vpack.c.bf16 %v381_v59, %v380_v58  ;;  %v2441_v7 = vpack.c.bf16 %v413_v61, %v412_v60  ;;  %v369_v37 = vld [vmem:[%s4171_s1 + $0x378] sm:$0xff]  ;;  %v400_v40 = vld [vmem:[%s4171_s1 + $0x470] sm:$0xff]  ;;  %v435_v43 = vld [vmem:[%s4171_s1 + $0x588] sm:$0xff] }
  0x48   :  { %692 = vmatmul.mubr.f32.gmra.mrb[16].mxu1 %v64_v14  ;;  %832 = vmatmul.mubr.f32.gmra.mrb[18].mxu0 %v66_v15  ;;  %v120_v14 = vld [vmem:[%s4172_s0 + $0x240] sm:$0xff]  ;;  %v122_v15 = vld [vmem:[%s4172_s0 + $0x250] sm:$0xff]  ;;  %v401_v41 = vld [vmem:[%s4171_s1 + $0x478] sm:$0xff]  ;;  %v2453_v52 = vpack.c.bf16 %v435_v43, %v434_v42 }
  0x49   :  { %696 = vmatprep.mubr.f32.mxu1 %v79_v16  ;;  %836 = vmatprep.mubr.f32.mxu0 %v81_v17  ;;  %v135_v16 = vld [vmem:[%s4172_s0 + $0x2b8] sm:$0xff]  ;;  %v137_v17 = vld [vmem:[%s4172_s0 + $0x2c8] sm:$0xff]  ;;  %v466_v44 = vld [vmem:[%s4171_s1 + $0x680] sm:$0xff] }
  0x4a   :  { %2396 = vmatpush3.bf16.msra.mxu1 %v2395_v18  ;;  %2428 = vmatpush3.bf16.msra.mxu0 %v2427_v19  ;;  %v2411_v18 = vpack.c.bf16 %v365_v5, %v364_v4  ;;  %v2443_v19 = vpack.c.bf16 %v397_v9, %v396_v8  ;;  %v467_v45 = vld [vmem:[%s4171_s1 + $0x688] sm:$0xff]  ;;  %v179_v57 = vld [vmem:[%s4172_s0 + $0x418] sm:$0xff]  ;;  %v176_v58 = vld [vmem:[%s4172_s0 + $0x400] sm:$0xff] }
  0x4b   :  { %2398 = vmatprep.subr.bf16.mxu1 %v2397_v22  ;;  %2430 = vmatprep.subr.bf16.mxu0 %v2429_v23  ;;  %v2413_v22 = vpack.c.bf16 %v383_v11, %v382_v10  ;;  %v2445_v23 = vpack.c.bf16 %v415_v13, %v414_v12  ;;  %v2485_v53 = vpack.c.bf16 %v467_v45, %v466_v44  ;;  %v177_v56 = vld [vmem:[%s4172_s0 + $0x408] sm:$0xff]  ;;  %v178_v59 = vld [vmem:[%s4172_s0 + $0x410] sm:$0xff]  ;;  %v191_v60 = vld [vmem:[%s4172_s0 + $0x478] sm:$0xff] }
  0x4c   :  { %697 = vmatmul.mubr.f32.gmra.mrb[18].mxu1 %v78_v30  ;;  %837 = vmatmul.mubr.f32.gmra.mrb[20].mxu0 %v80_v31  ;;  %v134_v30 = vld [vmem:[%s4172_s0 + $0x2b0] sm:$0xff]  ;;  %v136_v31 = vld [vmem:[%s4172_s0 + $0x2c0] sm:$0xff]  ;;  %v193_v61 = vld [vmem:[%s4172_s0 + $0x488] sm:$0xff] }
  0x4d   :  { %701 = vmatprep.mubr.f32.mxu1 %v93_v32  ;;  %841 = vmatprep.mubr.f32.mxu0 %v95_v33  ;;  %v149_v32 = vld [vmem:[%s4172_s0 + $0x328] sm:$0xff]  ;;  %v151_v33 = vld [vmem:[%s4172_s0 + $0x338] sm:$0xff]  ;;  %v232_v10 = vld [vmem:[%s4172_s0 + $0x5c0] sm:$0xff] }
  0x4e   :  { %2400 = vmatpush3.bf16.msra.mxu1 %v2399_v34  ;;  %2432 = vmatpush3.bf16.msra.mxu0 %v2431_v35  ;;  %v2415_v34 = vpack.c.bf16 %v367_v21, %v366_v20  ;;  %v2447_v35 = vpack.c.bf16 %v399_v25, %v398_v24  ;;  %v219_v4 = vld [vmem:[%s4172_s0 + $0x558] sm:$0xff]  ;;  %v221_v5 = vld [vmem:[%s4172_s0 + $0x568] sm:$0xff]  ;;  %v234_v11 = vld [vmem:[%s4172_s0 + $0x5d0] sm:$0xff] }
  0x4f   :  { %2402 = vmatprep.subr.bf16.mxu1 %v2401_v38  ;;  %2434 = vmatprep.subr.bf16.mxu0 %v2433_v39  ;;  %v2417_v38 = vpack.c.bf16 %v385_v27, %v384_v26  ;;  %v2449_v39 = vpack.c.bf16 %v417_v29, %v416_v28  ;;  %v233_v8 = vld [vmem:[%s4172_s0 + $0x5c8] sm:$0xff]  ;;  %v235_v9 = vld [vmem:[%s4172_s0 + $0x5d8] sm:$0xff]  ;;  %v450_v20 = vld [vmem:[%s4171_s1 + $0x600] sm:$0xff] }
  0x50   :  { %702 = vmatmul.mubr.f32.gmra.mrb[20].mxu1 %v92_v46  ;;  %842 = vmatmul.mubr.f32.gmra.mrb[22].mxu0 %v94_v47  ;;  %v148_v46 = vld [vmem:[%s4172_s0 + $0x320] sm:$0xff]  ;;  %v150_v47 = vld [vmem:[%s4172_s0 + $0x330] sm:$0xff]  ;;  %v247_v12 = vld [vmem:[%s4172_s0 + $0x638] sm:$0xff] }
  0x51   :  { %706 = vmatprep.mubr.f32.mxu1 %v107_v48  ;;  %846 = vmatprep.mubr.f32.mxu0 %v109_v49  ;;  %v163_v48 = vld [vmem:[%s4172_s0 + $0x398] sm:$0xff]  ;;  %v165_v49 = vld [vmem:[%s4172_s0 + $0x3a8] sm:$0xff]  ;;  %v468_v24 = vld [vmem:[%s4171_s1 + $0x690] sm:$0xff] }
  0x52   :  { %2404 = vmatpush3.bf16.msra.mxu1 %v2403_v50  ;;  %2436 = vmatpush3.bf16.msra.mxu0 %v2435_v51  ;;  %v2419_v50 = vpack.c.bf16 %v369_v37, %v368_v36  ;;  %v2451_v51 = vpack.c.bf16 %v401_v41, %v400_v40  ;;  %v249_v13 = vld [vmem:[%s4172_s0 + $0x648] sm:$0xff]  ;;  %v469_v25 = vld [vmem:[%s4171_s1 + $0x698] sm:$0xff]  ;;  %v54_v26 = vld [vmem:[%s4172_s0 + $0x30] sm:$0xff] }
  0x53   :  { %2406 = vmatprep.subr.bf16.mxu1 %v2405_v54  ;;  %2438 = vmatprep.subr.bf16.mxu0 %v2437_v55  ;;  %v162_v54 = vld [vmem:[%s4172_s0 + $0x390] sm:$0xff]  ;;  %v164_v55 = vld [vmem:[%s4172_s0 + $0x3a0] sm:$0xff]  ;;  %v451_v21 = vld [vmem:[%s4171_s1 + $0x608] sm:$0xff] }
  0x54   :  { %707 = vmatmul.mubr.f32.gmra.mrb[22].mxu1 %v106_v62  ;;  %847 = vmatmul.mubr.f32.gmra.mrb[24].mxu0 %v108_v63  ;;  %v190_v62 = vld [vmem:[%s4172_s0 + $0x470] sm:$0xff]  ;;  %v192_v63 = vld [vmem:[%s4172_s0 + $0x480] sm:$0xff]  ;;  %v69_v29 = vld [vmem:[%s4172_s0 + $0xa8] sm:$0xff] }
  0x55   :  { %711 = vmatprep.mubr.f32.mxu1 %v121_v0  ;;  %851 = vmatprep.mubr.f32.mxu0 %v123_v1  ;;  %v205_v0 = vld [vmem:[%s4172_s0 + $0x4e8] sm:$0xff]  ;;  %v207_v1 = vld [vmem:[%s4172_s0 + $0x4f8] sm:$0xff]  ;;  %v56_v28 = vld [vmem:[%s4172_s0 + $0x40] sm:$0xff] }
  0x56   :  { %2408 = vmatpush3.bf16.msra.mxu1 %v2407_v2  ;;  %2440 = vmatpush3.bf16.msra.mxu0 %v2439_v3  ;;  %v204_v2 = vld [vmem:[%s4172_s0 + $0x4e0] sm:$0xff]  ;;  %v206_v3 = vld [vmem:[%s4172_s0 + $0x4f0] sm:$0xff]  ;;  %v453_v37 = vld [vmem:[%s4171_s1 + $0x618] sm:$0xff] }
  0x57   :  { %2410 = vmatprep.subr.bf16.mxu1 %v2409_v6  ;;  %2442 = vmatprep.subr.bf16.mxu0 %v2441_v7  ;;  %v218_v6 = vld [vmem:[%s4172_s0 + $0x550] sm:$0xff]  ;;  %v220_v7 = vld [vmem:[%s4172_s0 + $0x560] sm:$0xff]  ;;  %v471_v41 = vld [vmem:[%s4171_s1 + $0x6a8] sm:$0xff] }
  0x58   :  { %712 = vmatmul.mubr.f32.gmra.mrb[24].mxu1 %v120_v14  ;;  %852 = vmatmul.mubr.f32.gmra.mrb[26].mxu0 %v122_v15  ;;  %v246_v14 = vld [vmem:[%s4172_s0 + $0x630] sm:$0xff]  ;;  %v248_v15 = vld [vmem:[%s4172_s0 + $0x640] sm:$0xff]  ;;  %v83_v44 = vld [vmem:[%s4172_s0 + $0x118] sm:$0xff] }
  0x59   :  { %716 = vmatprep.mubr.f32.mxu1 %v135_v16  ;;  %856 = vmatprep.mubr.f32.mxu0 %v137_v17  ;;  %v55_v16 = vld [vmem:[%s4172_s0 + $0x38] sm:$0xff]  ;;  %v57_v17 = vld [vmem:[%s4172_s0 + $0x48] sm:$0xff]  ;;  %v452_v36 = vld [vmem:[%s4171_s1 + $0x610] sm:$0xff] }
  0x5a   :  { %2412 = vmatpush3.bf16.msra.mxu1 %v2411_v18  ;;  %2444 = vmatpush3.bf16.msra.mxu0 %v2443_v19  ;;  %v418_v18 = vld [vmem:[%s4171_s1 + $0x500] sm:$0xff]  ;;  %v419_v19 = vld [vmem:[%s4171_s1 + $0x508] sm:$0xff]  ;;  %v70_v43 = vld [vmem:[%s4172_s0 + $0xb0] sm:$0xff] }
  0x5b   :  { %2414 = vmatprep.subr.bf16.mxu1 %v2413_v22  ;;  %2446 = vmatprep.subr.bf16.mxu0 %v2445_v23  ;;  %v436_v22 = vld [vmem:[%s4171_s1 + $0x590] sm:$0xff]  ;;  %v437_v23 = vld [vmem:[%s4171_s1 + $0x598] sm:$0xff]  ;;  %v2455_v27 = vpack.c.bf16 %v419_v19, %v418_v18  ;;  %v470_v40 = vld [vmem:[%s4171_s1 + $0x6a0] sm:$0xff] }
  0x5c   :  { %717 = vmatmul.mubr.f32.gmra.mrb[26].mxu1 %v134_v30  ;;  %857 = vmatmul.mubr.f32.gmra.mrb[28].mxu0 %v136_v31  ;;  %v2487_v30 = vpack.c.bf16 %v451_v21, %v450_v20  ;;  %v71_v31 = vld [vmem:[%s4172_s0 + $0xb8] sm:$0xff]  ;;  %v68_v42 = vld [vmem:[%s4172_s0 + $0xa0] sm:$0xff]  ;;  %v85_v45 = vld [vmem:[%s4172_s0 + $0x128] sm:$0xff] }
  0x5d   :  { %721 = vmatprep.mubr.f32.mxu1 %v149_v32  ;;  %861 = vmatprep.mubr.f32.mxu0 %v151_v33  ;;  %v420_v32 = vld [vmem:[%s4171_s1 + $0x510] sm:$0xff]  ;;  %v421_v33 = vld [vmem:[%s4171_s1 + $0x518] sm:$0xff]  ;;  %v458_v20 = vld [vmem:[%s4171_s1 + $0x640] sm:$0xff] }
  0x5e   :  { %2416 = vmatpush3.bf16.msra.mxu1 %v2415_v34  ;;  %2448 = vmatpush3.bf16.msra.mxu0 %v2447_v35  ;;  %v2457_v34 = vpack.c.bf16 %v437_v23, %v436_v22  ;;  %v2489_v35 = vpack.c.bf16 %v469_v25, %v468_v24  ;;  %v459_v21 = vld [vmem:[%s4171_s1 + $0x648] sm:$0xff]  ;;  %v444_v22 = vld [vmem:[%s4171_s1 + $0x5d0] sm:$0xff]  ;;  %v445_v23 = vld [vmem:[%s4171_s1 + $0x5d8] sm:$0xff] }
  0x5f   :  { %2418 = vmatprep.subr.bf16.mxu1 %v2417_v38  ;;  %2450 = vmatprep.subr.bf16.mxu0 %v2449_v39  ;;  %v438_v38 = vld [vmem:[%s4171_s1 + $0x5a0] sm:$0xff]  ;;  %v439_v39 = vld [vmem:[%s4171_s1 + $0x5a8] sm:$0xff]  ;;  %v476_v24 = vld [vmem:[%s4171_s1 + $0x6d0] sm:$0xff] }
  0x60   :  { %722 = vmatmul.mubr.f32.gmra.mrb[28].mxu1 %v148_v46  ;;  %862 = vmatmul.mubr.f32.gmra.mrb[30].mxu0 %v150_v47  ;;  %v2459_v46 = vpack.c.bf16 %v421_v33, %v420_v32  ;;  %v2491_v47 = vpack.c.bf16 %v453_v37, %v452_v36  ;;  %v477_v25 = vld [vmem:[%s4171_s1 + $0x6d8] sm:$0xff]  ;;  %v428_v32 = vld [vmem:[%s4171_s1 + $0x550] sm:$0xff] }
  0x61   :  { %726 = vmatprep.mubr.f32.mxu1 %v163_v48  ;;  %866 = vmatprep.mubr.f32.mxu0 %v165_v49  ;;  %v422_v48 = vld [vmem:[%s4171_s1 + $0x520] sm:$0xff]  ;;  %v423_v49 = vld [vmem:[%s4171_s1 + $0x528] sm:$0xff]  ;;  %v429_v33 = vld [vmem:[%s4171_s1 + $0x558] sm:$0xff] }
  0x62   :  { %2420 = vmatpush3.bf16.msra.mxu1 %v2419_v50  ;;  %2452 = vmatpush3.bf16.msra.mxu0 %v2451_v51  ;;  %v2461_v50 = vpack.c.bf16 %v439_v39, %v438_v38  ;;  %v2493_v51 = vpack.c.bf16 %v471_v41, %v470_v40  ;;  %v460_v36 = vld [vmem:[%s4171_s1 + $0x650] sm:$0xff]  ;;  %v461_v37 = vld [vmem:[%s4171_s1 + $0x658] sm:$0xff]  ;;  %v446_v38 = vld [vmem:[%s4171_s1 + $0x5e0] sm:$0xff] }
  0x63   :  { %2454 = vmatprep.subr.bf16.mxu1 %v2453_v52  ;;  %2486 = vmatprep.subr.bf16.mxu0 %v2485_v53  ;;  %v454_v52 = vld [vmem:[%s4171_s1 + $0x620] sm:$0xff]  ;;  %v455_v53 = vld [vmem:[%s4171_s1 + $0x628] sm:$0xff] }
  0x64   :  { %727 = vmatmul.mubr.f32.gmra.mrb[30].mxu1 %v162_v54  ;;  %867 = vmatmul.mubr.f32.gmra.mrb[32].mxu0 %v164_v55  ;;  %v440_v54 = vld [vmem:[%s4171_s1 + $0x5b0] sm:$0xff]  ;;  %v441_v55 = vld [vmem:[%s4171_s1 + $0x5b8] sm:$0xff]  ;;  %v447_v39 = vld [vmem:[%s4171_s1 + $0x5e8] sm:$0xff] }
  0x65   :  { %731 = vmatprep.mubr.f32.mxu1 %v177_v56  ;;  %871 = vmatprep.mubr.f32.mxu0 %v179_v57  ;;  %v472_v56 = vld [vmem:[%s4171_s1 + $0x6b0] sm:$0xff]  ;;  %v473_v57 = vld [vmem:[%s4171_s1 + $0x6b8] sm:$0xff]  ;;  %v478_v40 = vld [vmem:[%s4171_s1 + $0x6e0] sm:$0xff] }
  0x66   :  { %v479_v41 = vld [vmem:[%s4171_s1 + $0x6e8] sm:$0xff] }
  0x68   :  { %732 = vmatmul.mubr.f32.gmra.mrb[32].mxu1 %v176_v58  ;;  %872 = vmatmul.mubr.f32.gmra.mrb[34].mxu0 %v178_v59  ;;  %v82_v58 = vld [vmem:[%s4172_s0 + $0x110] sm:$0xff]  ;;  %v84_v59 = vld [vmem:[%s4172_s0 + $0x120] sm:$0xff] }
  0x69   :  { %736 = vmatprep.mubr.f32.mxu1 %v191_v60  ;;  %876 = vmatprep.mubr.f32.mxu0 %v193_v61  ;;  %v97_v60 = vld [vmem:[%s4172_s0 + $0x188] sm:$0xff]  ;;  %v99_v61 = vld [vmem:[%s4172_s0 + $0x198] sm:$0xff] }
  0x6c   :  { %737 = vmatmul.mubr.f32.gmra.mrb[34].mxu1 %v190_v62  ;;  %877 = vmatmul.mubr.f32.gmra.mrb[36].mxu0 %v192_v63  ;;  %v2463_v62 = vpack.c.bf16 %v423_v49, %v422_v48  ;;  %v2495_v63 = vpack.c.bf16 %v455_v53, %v454_v52  ;;  %v430_v48 = vld [vmem:[%s4171_s1 + $0x560] sm:$0xff]  ;;  %v431_v49 = vld [vmem:[%s4171_s1 + $0x568] sm:$0xff] }
  0x6d   :  { %741 = vmatprep.mubr.f32.mxu1 %v205_v0  ;;  %881 = vmatprep.mubr.f32.mxu0 %v207_v1  ;;  %v424_v0 = vld [vmem:[%s4171_s1 + $0x530] sm:$0xff]  ;;  %v425_v1 = vld [vmem:[%s4171_s1 + $0x538] sm:$0xff]  ;;  %v462_v52 = vld [vmem:[%s4171_s1 + $0x660] sm:$0xff] }
  0x6e   :  { %v463_v53 = vld [vmem:[%s4171_s1 + $0x668] sm:$0xff] }
  0x70   :  { %742 = vmatmul.mubr.f32.gmra.mrb[36].mxu1 %v204_v2  ;;  %882 = vmatmul.mubr.f32.gmra.mrb[38].mxu0 %v206_v3  ;;  %v2465_v2 = vpack.c.bf16 %v441_v55, %v440_v54  ;;  %v2497_v3 = vpack.c.bf16 %v473_v57, %v472_v56  ;;  %v448_v54 = vld [vmem:[%s4171_s1 + $0x5f0] sm:$0xff]  ;;  %v449_v55 = vld [vmem:[%s4171_s1 + $0x5f8] sm:$0xff] }
  0x71   :  { %746 = vmatprep.mubr.f32.mxu1 %v219_v4  ;;  %886 = vmatprep.mubr.f32.mxu0 %v221_v5  ;;  %v456_v4 = vld [vmem:[%s4171_s1 + $0x630] sm:$0xff]  ;;  %v457_v5 = vld [vmem:[%s4171_s1 + $0x638] sm:$0xff] }
  0x72   :  { %v480_v56 = vld [vmem:[%s4171_s1 + $0x6f0] sm:$0xff]  ;;  %v481_v57 = vld [vmem:[%s4171_s1 + $0x6f8] sm:$0xff] }
  0x74   :  { %747 = vmatmul.mubr.f32.gmra.mrb[38].mxu1 %v218_v6  ;;  %887 = vmatmul.mubr.f32.gmra.mrb[40].mxu0 %v220_v7  ;;  %v442_v6 = vld [vmem:[%s4171_s1 + $0x5c0] sm:$0xff]  ;;  %v443_v7 = vld [vmem:[%s4171_s1 + $0x5c8] sm:$0xff] }
  0x75   :  { %751 = vmatprep.mubr.f32.mxu1 %v233_v8  ;;  %891 = vmatprep.mubr.f32.mxu0 %v235_v9  ;;  %v474_v8 = vld [vmem:[%s4171_s1 + $0x6c0] sm:$0xff]  ;;  %v475_v9 = vld [vmem:[%s4171_s1 + $0x6c8] sm:$0xff]  ;;  %v2469_v18 = vpack.c.bf16 %v443_v7, %v442_v6  ;;  %v154_v7 = vld [vmem:[%s4172_s0 + $0x350] sm:$0xff] }
  0x76   :  { %v2501_v19 = vpack.c.bf16 %v475_v9, %v474_v8  ;;  %v152_v6 = vld [vmem:[%s4172_s0 + $0x340] sm:$0xff]  ;;  %v167_v8 = vld [vmem:[%s4172_s0 + $0x3b8] sm:$0xff]  ;;  %v169_v9 = vld [vmem:[%s4172_s0 + $0x3c8] sm:$0xff] }
  0x78   :  { %752 = vmatmul.mubr.f32.gmra.mrb[40].mxu1 %v232_v10  ;;  %892 = vmatmul.mubr.f32.gmra.mrb[42].mxu0 %v234_v11  ;;  %v96_v10 = vld [vmem:[%s4172_s0 + $0x180] sm:$0xff]  ;;  %v98_v11 = vld [vmem:[%s4172_s0 + $0x190] sm:$0xff] }
  0x79   :  { %756 = vmatprep.mubr.f32.mxu1 %v247_v12  ;;  %896 = vmatprep.mubr.f32.mxu0 %v249_v13  ;;  %v111_v12 = vld [vmem:[%s4172_s0 + $0x1f8] sm:$0xff]  ;;  %v113_v13 = vld [vmem:[%s4172_s0 + $0x208] sm:$0xff] }
  0x7c   :  { %757 = vmatmul.mubr.f32.gmra.mrb[42].mxu1 %v246_v14  ;;  %897 = vmatmul.mubr.f32.gmra.mrb[44].mxu0 %v248_v15  ;;  %v2467_v14 = vpack.c.bf16 %v425_v1, %v424_v0  ;;  %v2499_v15 = vpack.c.bf16 %v457_v5, %v456_v4  ;;  %v432_v0 = vld [vmem:[%s4171_s1 + $0x570] sm:$0xff]  ;;  %v2481_v1 = vpack.c.bf16 %v449_v55, %v448_v54  ;;  %v465_v5 = vld [vmem:[%s4171_s1 + $0x678] sm:$0xff]  ;;  %v1523_v54 = vld [vmem:[%s4173_s2 + $0x68] sm:$0xff] }
  0x7d   :  { %966 = vmatprep.mubr.f32.mxu1 %v55_v16  ;;  %1106 = vmatprep.mubr.f32.mxu0 %v57_v17  ;;  %v426_v16 = vld [vmem:[%s4171_s1 + $0x540] sm:$0xff]  ;;  %v427_v17 = vld [vmem:[%s4171_s1 + $0x548] sm:$0xff]  ;;  %v464_v4 = vld [vmem:[%s4171_s1 + $0x670] sm:$0xff] }
  0x7e   :  { %v58_v55 = vld [vmem:[%s4172_s0 + $0x50] sm:$0xff] }
  0x80   :  { %967 = vmatmul.mubr.f32.vlgmr.msra.gmra.mrb[44].mxu1 %v54_v26  ;;  %1107 = vmatmul.mubr.f32.vlgmr.msra.gmra.mrb[46].mxu0 %v56_v28  ;;  %v110_v26 = vld [vmem:[%s4172_s0 + $0x1f0] sm:$0xff]  ;;  %v125_v28 = vld [vmem:[%s4172_s0 + $0x268] sm:$0xff] }
  0x81   :  { %2456 = vmatpush3.bf16.msra.mxu1 %v2455_v27  ;;  %971 = vmatprep.mubr.f32.mxu1 %v69_v29  ;;  %v112_v27 = vld [vmem:[%s4172_s0 + $0x200] sm:$0xff]  ;;  %v127_v29 = vld [vmem:[%s4172_s0 + $0x278] sm:$0xff] }
  0x82   :  { %2488 = vmatpush3.bf16.msra.mxu0 %v2487_v30  ;;  %1111 = vmatprep.mubr.f32.mxu0 %v71_v31  ;;  %v2471_v30 = vpack.c.bf16 %v427_v17, %v426_v16  ;;  %v2503_v31 = vpack.c.bf16 %v459_v21, %v458_v20  ;;  %v2596_v16 = vmov 0   ;;  %v1510_v17 = vld [vmem:[%s4173_s2] sm:$0xff]  ;;  %v182_v20 = vld [vmem:[%s4172_s0 + $0x430] sm:$0xff]  ;;  %v195_v21 = vld [vmem:[%s4172_s0 + $0x498] sm:$0xff] }
  0x83   :  { %2458 = vmatprep.subr.bf16.mxu1 %v2457_v34  ;;  %2490 = vmatprep.subr.bf16.mxu0 %v2489_v35  ;;  %v2473_v34 = vpack.c.bf16 %v445_v23, %v444_v22  ;;  %v2505_v35 = vpack.c.bf16 %v477_v25, %v476_v24  ;;  %v197_v22 = vld [vmem:[%s4172_s0 + $0x4a8] sm:$0xff]  ;;  %v1513_v24 = vld [vmem:[%s4173_s2 + $0x18] sm:$0xff]  ;;  %v194_v25 = vld [vmem:[%s4172_s0 + $0x490] sm:$0xff] }
  0x84   :  { %972 = vmatmul.mubr.f32.gmra.mrb[46].mxu1 %v68_v42  ;;  %1112 = vmatmul.mubr.f32.gmra.mrb[48].mxu0 %v70_v43  ;;  %v124_v42 = vld [vmem:[%s4172_s0 + $0x260] sm:$0xff]  ;;  %v126_v43 = vld [vmem:[%s4172_s0 + $0x270] sm:$0xff]  ;;  %v1511_v23 = vld [vmem:[%s4173_s2 + $0x8] sm:$0xff] }
  0x85   :  { %976 = vmatprep.mubr.f32.mxu1 %v83_v44  ;;  %1116 = vmatprep.mubr.f32.mxu0 %v85_v45  ;;  %v139_v44 = vld [vmem:[%s4172_s0 + $0x2d8] sm:$0xff]  ;;  %v141_v45 = vld [vmem:[%s4172_s0 + $0x2e8] sm:$0xff] }
  0x86   :  { %2460 = vmatpush3.bf16.msra.mxu1 %v2459_v46  ;;  %2492 = vmatpush3.bf16.msra.mxu0 %v2491_v47  ;;  %v2475_v46 = vpack.c.bf16 %v429_v33, %v428_v32  ;;  %v2507_v47 = vpack.c.bf16 %v461_v37, %v460_v36  ;;  %v210_v32 = vld [vmem:[%s4172_s0 + $0x510] sm:$0xff]  ;;  %v223_v33 = vld [vmem:[%s4172_s0 + $0x578] sm:$0xff] }
  0x87   :  { %2462 = vmatprep.subr.bf16.mxu1 %v2461_v50  ;;  %2494 = vmatprep.subr.bf16.mxu0 %v2493_v51  ;;  %v2477_v50 = vpack.c.bf16 %v447_v39, %v446_v38  ;;  %v2509_v51 = vpack.c.bf16 %v479_v41, %v478_v40  ;;  %v1517_v36 = vld [vmem:[%s4173_s2 + $0x38] sm:$0xff]  ;;  %v222_v37 = vld [vmem:[%s4172_s0 + $0x570] sm:$0xff]  ;;  %v224_v38 = vld [vmem:[%s4172_s0 + $0x580] sm:$0xff] }
  0x88   :  { %977 = vmatmul.mubr.f32.gmra.mrb[48].mxu1 %v82_v58  ;;  %1117 = vmatmul.mubr.f32.gmra.mrb[50].mxu0 %v84_v59  ;;  %v138_v58 = vld [vmem:[%s4172_s0 + $0x2d0] sm:$0xff]  ;;  %v140_v59 = vld [vmem:[%s4172_s0 + $0x2e0] sm:$0xff]  ;;  %v237_v39 = vld [vmem:[%s4172_s0 + $0x5e8] sm:$0xff] }
  0x89   :  { %981 = vmatprep.mubr.f32.mxu1 %v97_v60  ;;  %1121 = vmatprep.mubr.f32.mxu0 %v99_v61  ;;  %v153_v60 = vld [vmem:[%s4172_s0 + $0x348] sm:$0xff]  ;;  %v155_v61 = vld [vmem:[%s4172_s0 + $0x358] sm:$0xff]  ;;  %v1518_v41 = vld [vmem:[%s4173_s2 + $0x40] sm:$0xff] }
  0x8a   :  { %2464 = vmatpush3.bf16.msra.mxu1 %v2463_v62  ;;  %2496 = vmatpush3.bf16.msra.mxu0 %v2495_v63  ;;  %v2479_v62 = vpack.c.bf16 %v431_v49, %v430_v48  ;;  %v2511_v63 = vpack.c.bf16 %v463_v53, %v462_v52  ;;  %v239_v40 = vld [vmem:[%s4172_s0 + $0x5f8] sm:$0xff]  ;;  %v250_v49 = vld [vmem:[%s4172_s0 + $0x650] sm:$0xff]  ;;  %v61_v52 = vld [vmem:[%s4172_s0 + $0x68] sm:$0xff] }
  0x8b   :  { %2466 = vmatprep.subr.bf16.mxu1 %v2465_v2  ;;  %2498 = vmatprep.subr.bf16.mxu0 %v2497_v3  ;;  %v433_v2 = vld [vmem:[%s4171_s1 + $0x578] sm:$0xff]  ;;  %v2513_v3 = vpack.c.bf16 %v481_v57, %v480_v56  ;;  %v1522_v53 = vld [vmem:[%s4173_s2 + $0x60] sm:$0xff]  ;;  %v73_v57 = vld [vmem:[%s4172_s0 + $0xc8] sm:$0xff] }
  0x8c   :  { %982 = vmatmul.mubr.f32.gmra.mrb[50].mxu1 %v96_v10  ;;  %1122 = vmatmul.mubr.f32.gmra.mrb[52].mxu0 %v98_v11  ;;  %v2483_v10 = vpack.c.bf16 %v433_v2, %v432_v0  ;;  %v2515_v11 = vpack.c.bf16 %v465_v5, %v464_v4  ;;  %v1521_v48 = vld [vmem:[%s4173_s2 + $0x58] sm:$0xff]  ;;  %v60_v56 = vld [vmem:[%s4172_s0 + $0x60] sm:$0xff]  ;;  %v86_v0 = vld [vmem:[%s4172_s0 + $0x130] sm:$0xff] }
  0x8d   :  { %986 = vmatprep.mubr.f32.mxu1 %v111_v12  ;;  %1126 = vmatprep.mubr.f32.mxu0 %v113_v13  ;;  %v166_v12 = vld [vmem:[%s4172_s0 + $0x3b0] sm:$0xff]  ;;  %v168_v13 = vld [vmem:[%s4172_s0 + $0x3c0] sm:$0xff]  ;;  %v101_v2 = vld [vmem:[%s4172_s0 + $0x1a8] sm:$0xff] }
  0x8e   :  { %2468 = vmatpush3.bf16.msra.mxu1 %v2467_v14  ;;  %2500 = vmatpush3.bf16.msra.mxu0 %v2499_v15  ;;  %v181_v14 = vld [vmem:[%s4172_s0 + $0x428] sm:$0xff]  ;;  %v183_v15 = vld [vmem:[%s4172_s0 + $0x438] sm:$0xff]  ;;  %v100_v4 = vld [vmem:[%s4172_s0 + $0x1a0] sm:$0xff] }
  0x8f   :  { %2470 = vmatprep.subr.bf16.mxu1 %v2469_v18  ;;  %2502 = vmatprep.subr.bf16.mxu0 %v2501_v19  ;;  %v1512_v18 = vld [vmem:[%s4173_s2 + $0x10] sm:$0xff]  ;;  %v180_v19 = vld [vmem:[%s4172_s0 + $0x420] sm:$0xff] }
  0x90   :  { %987 = vmatmul.mubr.f32.gmra.mrb[52].mxu1 %v110_v26  ;;  %1127 = vmatmul.mubr.f32.gmra.mrb[54].mxu0 %v112_v27  ;;  %v196_v26 = vld [vmem:[%s4172_s0 + $0x4a0] sm:$0xff]  ;;  %v209_v27 = vld [vmem:[%s4172_s0 + $0x508] sm:$0xff]  ;;  %v102_v5 = vld [vmem:[%s4172_s0 + $0x1b0] sm:$0xff] }
  0x91   :  { %991 = vmatprep.mubr.f32.mxu1 %v125_v28  ;;  %1131 = vmatprep.mubr.f32.mxu0 %v127_v29  ;;  %v211_v28 = vld [vmem:[%s4172_s0 + $0x518] sm:$0xff]  ;;  %v1514_v29 = vld [vmem:[%s4173_s2 + $0x20] sm:$0xff] }
  0x92   :  { %2472 = vmatpush3.bf16.msra.mxu1 %v2471_v30  ;;  %2504 = vmatpush3.bf16.msra.mxu0 %v2503_v31  ;;  %v1515_v30 = vld [vmem:[%s4173_s2 + $0x28] sm:$0xff]  ;;  %v208_v31 = vld [vmem:[%s4172_s0 + $0x500] sm:$0xff] }
  0x93   :  { %2474 = vmatprep.subr.bf16.mxu1 %v2473_v34  ;;  %2506 = vmatprep.subr.bf16.mxu0 %v2505_v35  ;;  %v225_v34 = vld [vmem:[%s4172_s0 + $0x588] sm:$0xff]  ;;  %v1516_v35 = vld [vmem:[%s4173_s2 + $0x30] sm:$0xff] }
  0x94   :  { %992 = vmatmul.mubr.f32.gmra.mrb[54].mxu1 %v124_v42  ;;  %1132 = vmatmul.mubr.f32.gmra.mrb[56].mxu0 %v126_v43  ;;  %v1519_v42 = vld [vmem:[%s4173_s2 + $0x48] sm:$0xff]  ;;  %v236_v43 = vld [vmem:[%s4172_s0 + $0x5e0] sm:$0xff] }
  0x95   :  { %996 = vmatprep.mubr.f32.mxu1 %v139_v44  ;;  %1136 = vmatprep.mubr.f32.mxu0 %v141_v45  ;;  %v238_v44 = vld [vmem:[%s4172_s0 + $0x5f0] sm:$0xff]  ;;  %v251_v45 = vld [vmem:[%s4172_s0 + $0x658] sm:$0xff] }
  0x96   :  { %2476 = vmatpush3.bf16.msra.mxu1 %v2475_v46  ;;  %2508 = vmatpush3.bf16.msra.mxu0 %v2507_v47  ;;  %v253_v46 = vld [vmem:[%s4172_s0 + $0x668] sm:$0xff]  ;;  %v1520_v47 = vld [vmem:[%s4173_s2 + $0x50] sm:$0xff] }
  0x97   :  { %2478 = vmatprep.subr.bf16.mxu1 %v2477_v50  ;;  %2510 = vmatprep.subr.bf16.mxu0 %v2509_v51  ;;  %v252_v50 = vld [vmem:[%s4172_s0 + $0x660] sm:$0xff]  ;;  %v59_v51 = vld [vmem:[%s4172_s0 + $0x58] sm:$0xff] }
  0x98   :  { %997 = vmatmul.mubr.f32.gmra.mrb[56].mxu1 %v138_v58  ;;  %1137 = vmatmul.mubr.f32.gmra.mrb[58].mxu0 %v140_v59  ;;  %v75_v58 = vld [vmem:[%s4172_s0 + $0xd8] sm:$0xff]  ;;  %v1524_v59 = vld [vmem:[%s4173_s2 + $0x70] sm:$0xff] }
  0x99   :  { %1001 = vmatprep.mubr.f32.mxu1 %v153_v60  ;;  %1141 = vmatprep.mubr.f32.mxu0 %v155_v61  ;;  %v72_v60 = vld [vmem:[%s4172_s0 + $0xc0] sm:$0xff]  ;;  %v74_v61 = vld [vmem:[%s4172_s0 + $0xd0] sm:$0xff] }
  0x9a   :  { %2480 = vmatpush3.bf16.msra.mxu1 %v2479_v62  ;;  %2512 = vmatpush3.bf16.msra.mxu0 %v2511_v63  ;;  %v87_v62 = vld [vmem:[%s4172_s0 + $0x138] sm:$0xff]  ;;  %v89_v63 = vld [vmem:[%s4172_s0 + $0x148] sm:$0xff] }
  0x9b   :  { %2482 = vmatprep.subr.bf16.mxu1 %v2481_v1  ;;  %2514 = vmatprep.subr.bf16.mxu0 %v2513_v3  ;;  %v88_v1 = vld [vmem:[%s4172_s0 + $0x140] sm:$0xff]  ;;  %v103_v3 = vld [vmem:[%s4172_s0 + $0x1b8] sm:$0xff] }
  0x9c   :  { %1002 = vmatmul.mubr.f32.gmra.mrb[58].mxu1 %v152_v6  ;;  %1142 = vmatmul.mubr.f32.gmra.mrb[60].mxu0 %v154_v7  ;;  %v115_v6 = vld [vmem:[%s4172_s0 + $0x218] sm:$0xff]  ;;  %v117_v7 = vld [vmem:[%s4172_s0 + $0x228] sm:$0xff] }
  0x9d   :  { %1006 = vmatprep.mubr.f32.mxu1 %v167_v8  ;;  %1146 = vmatprep.mubr.f32.mxu0 %v169_v9  ;;  %v114_v8 = vld [vmem:[%s4172_s0 + $0x210] sm:$0xff]  ;;  %v116_v9 = vld [vmem:[%s4172_s0 + $0x220] sm:$0xff] }
  0x9e   :  { %2484 = vmatpush3.bf16.msra.mxu1 %v2483_v10  ;;  %2516 = vmatpush3.bf16.msra.mxu0 %v2515_v11  ;;  %v129_v10 = vld [vmem:[%s4172_s0 + $0x288] sm:$0xff]  ;;  %v131_v11 = vld [vmem:[%s4172_s0 + $0x298] sm:$0xff] }
  0x9f   :  { %2534 = vset.pattern.permute.xlu0 %v2596_v16  ;;  %2535 = vset.pattern.permute.xlu1 %v2596_v16  ;;  %v142_v16 = vld [vmem:[%s4172_s0 + $0x2f0] sm:$0xff] }
  0xa0   :  { %1007 = vmatmul.mubr.f32.gmra.mrb[60].mxu1 %v166_v12  ;;  %1147 = vmatmul.mubr.f32.gmra.mrb[62].mxu0 %v168_v13  ;;  %v128_v12 = vld [vmem:[%s4172_s0 + $0x280] sm:$0xff]  ;;  %v130_v13 = vld [vmem:[%s4172_s0 + $0x290] sm:$0xff] }
  0xa1   :  { %1011 = vmatprep.mubr.f32.mxu1 %v181_v14  ;;  %1151 = vmatprep.mubr.f32.mxu0 %v183_v15  ;;  %v143_v14 = vld [vmem:[%s4172_s0 + $0x2f8] sm:$0xff]  ;;  %v145_v15 = vld [vmem:[%s4172_s0 + $0x308] sm:$0xff] }
  0xa2   :  { %1527 = vperm.xlu0 %2534, %v1510_v17   ;;  %1537 = vperm.xlu1 %2535, %v1512_v18   ;;  %v144_v17 = vld [vmem:[%s4172_s0 + $0x300] sm:$0xff]  ;;  %v157_v18 = vld [vmem:[%s4172_s0 + $0x368] sm:$0xff] }
  0xa4   :  { %1012 = vmatmul.mubr.f32.gmra.mrb[62].mxu1 %v180_v19  ;;  %1152 = vmatmul.mubr.f32.gmra.mrb[64].mxu0 %v182_v20  ;;  %v159_v19 = vld [vmem:[%s4172_s0 + $0x378] sm:$0xff]  ;;  %v156_v20 = vld [vmem:[%s4172_s0 + $0x360] sm:$0xff] }
  0xa5   :  { %1016 = vmatprep.mubr.f32.mxu1 %v195_v21  ;;  %1156 = vmatprep.mubr.f32.mxu0 %v197_v22  ;;  %v158_v21 = vld [vmem:[%s4172_s0 + $0x370] sm:$0xff]  ;;  %v171_v22 = vld [vmem:[%s4172_s0 + $0x3d8] sm:$0xff] }
  0xa6   :  { %1532 = vperm.xlu0 %2534, %v1511_v23   ;;  %1542 = vperm.xlu1 %2535, %v1513_v24   ;;  %v173_v23 = vld [vmem:[%s4172_s0 + $0x3e8] sm:$0xff]  ;;  %v170_v24 = vld [vmem:[%s4172_s0 + $0x3d0] sm:$0xff] }
  0xa8   :  { %1017 = vmatmul.mubr.f32.gmra.mrb[64].mxu1 %v194_v25  ;;  %1157 = vmatmul.mubr.f32.gmra.mrb[66].mxu0 %v196_v26  ;;  %v172_v25 = vld [vmem:[%s4172_s0 + $0x3e0] sm:$0xff]  ;;  %v185_v26 = vld [vmem:[%s4172_s0 + $0x448] sm:$0xff] }
  0xa9   :  { %1021 = vmatprep.mubr.f32.mxu1 %v209_v27  ;;  %1161 = vmatprep.mubr.f32.mxu0 %v211_v28  ;;  %v187_v27 = vld [vmem:[%s4172_s0 + $0x458] sm:$0xff]  ;;  %v184_v28 = vld [vmem:[%s4172_s0 + $0x440] sm:$0xff] }
  0xaa   :  { %1547 = vperm.xlu0 %2534, %v1514_v29   ;;  %1552 = vperm.xlu1 %2535, %v1515_v30   ;;  %v186_v29 = vld [vmem:[%s4172_s0 + $0x450] sm:$0xff]  ;;  %v199_v30 = vld [vmem:[%s4172_s0 + $0x4b8] sm:$0xff] }
  0xac   :  { %1022 = vmatmul.mubr.f32.gmra.mrb[66].mxu1 %v208_v31  ;;  %1162 = vmatmul.mubr.f32.gmra.mrb[68].mxu0 %v210_v32  ;;  %v201_v31 = vld [vmem:[%s4172_s0 + $0x4c8] sm:$0xff]  ;;  %v198_v32 = vld [vmem:[%s4172_s0 + $0x4b0] sm:$0xff] }
  0xad   :  { %1026 = vmatprep.mubr.f32.mxu1 %v223_v33  ;;  %1166 = vmatprep.mubr.f32.mxu0 %v225_v34  ;;  %v200_v33 = vld [vmem:[%s4172_s0 + $0x4c0] sm:$0xff]  ;;  %v213_v34 = vld [vmem:[%s4172_s0 + $0x528] sm:$0xff] }
  0xae   :  { %1557 = vperm.xlu0 %2534, %v1516_v35   ;;  %1562 = vperm.xlu1 %2535, %v1517_v36   ;;  %v215_v35 = vld [vmem:[%s4172_s0 + $0x538] sm:$0xff]  ;;  %v212_v36 = vld [vmem:[%s4172_s0 + $0x520] sm:$0xff] }
  0xb0   :  { %1027 = vmatmul.mubr.f32.gmra.mrb[68].mxu1 %v222_v37  ;;  %1167 = vmatmul.mubr.f32.gmra.mrb[70].mxu0 %v224_v38  ;;  %v214_v37 = vld [vmem:[%s4172_s0 + $0x530] sm:$0xff]  ;;  %v227_v38 = vld [vmem:[%s4172_s0 + $0x598] sm:$0xff] }
  0xb1   :  { %1031 = vmatprep.mubr.f32.mxu1 %v237_v39  ;;  %1171 = vmatprep.mubr.f32.mxu0 %v239_v40  ;;  %v229_v39 = vld [vmem:[%s4172_s0 + $0x5a8] sm:$0xff]  ;;  %v226_v40 = vld [vmem:[%s4172_s0 + $0x590] sm:$0xff] }
  0xb2   :  { %1567 = vperm.xlu0 %2534, %v1518_v41   ;;  %1572 = vperm.xlu1 %2535, %v1519_v42   ;;  %v228_v41 = vld [vmem:[%s4172_s0 + $0x5a0] sm:$0xff]  ;;  %v241_v42 = vld [vmem:[%s4172_s0 + $0x608] sm:$0xff] }
  0xb4   :  { %1032 = vmatmul.mubr.f32.gmra.mrb[70].mxu1 %v236_v43  ;;  %1172 = vmatmul.mubr.f32.gmra.mrb[72].mxu0 %v238_v44  ;;  %v243_v43 = vld [vmem:[%s4172_s0 + $0x618] sm:$0xff]  ;;  %v240_v44 = vld [vmem:[%s4172_s0 + $0x600] sm:$0xff] }
  0xb5   :  { %1036 = vmatprep.mubr.f32.mxu1 %v251_v45  ;;  %1176 = vmatprep.mubr.f32.mxu0 %v253_v46  ;;  %v242_v45 = vld [vmem:[%s4172_s0 + $0x610] sm:$0xff]  ;;  %v255_v46 = vld [vmem:[%s4172_s0 + $0x678] sm:$0xff] }
  0xb6   :  { %1577 = vperm.xlu0 %2534, %v1520_v47   ;;  %1582 = vperm.xlu1 %2535, %v1521_v48   ;;  %v257_v47 = vld [vmem:[%s4172_s0 + $0x688] sm:$0xff]  ;;  %v254_v48 = vld [vmem:[%s4172_s0 + $0x670] sm:$0xff] }
  0xb8   :  { %1037 = vmatmul.mubr.f32.gmra.mrb[72].mxu1 %v250_v49  ;;  %1177 = vmatmul.mubr.f32.gmra.mrb[74].mxu0 %v252_v50  ;;  %v256_v49 = vld [vmem:[%s4172_s0 + $0x680] sm:$0xff] }
  0xb9   :  { %1246 = vmatprep.mubr.f32.mxu1 %v59_v51  ;;  %1386 = vmatprep.mubr.f32.mxu0 %v61_v52 }
  0xba   :  { %1587 = vperm.xlu0 %2534, %v1522_v53   ;;  %1592 = vperm.xlu1 %2535, %v1523_v54  }
  0xbc   :  { %1247 = vmatmul.mubr.f32.vlgmr.msra.gmra.mrb[74].mxu1 %v58_v55  ;;  %1387 = vmatmul.mubr.f32.vlgmr.msra.gmra.mrb[76].mxu0 %v60_v56 }
  0xbd   :  { %1251 = vmatprep.mubr.f32.mxu1 %v73_v57  ;;  %1391 = vmatprep.mubr.f32.mxu0 %v75_v58 }
  0xbe   :  { %1597 = vperm.xlu0 %2534, %v1524_v59  }
  0xc0   :  { %1252 = vmatmul.mubr.f32.gmra.mrb[76].mxu1 %v72_v60  ;;  %1392 = vmatmul.mubr.f32.gmra.mrb[78].mxu0 %v74_v61 }
  0xc1   :  { %1256 = vmatprep.mubr.f32.mxu1 %v87_v62  ;;  %1396 = vmatprep.mubr.f32.mxu0 %v89_v63 }
  0xc4   :  { %1257 = vmatmul.mubr.f32.gmra.mrb[78].mxu1 %v86_v0  ;;  %1397 = vmatmul.mubr.f32.gmra.mrb[80].mxu0 %v88_v1 }
  0xc5   :  { %1261 = vmatprep.mubr.f32.mxu1 %v101_v2  ;;  %1401 = vmatprep.mubr.f32.mxu0 %v103_v3 }
  0xc8   :  { %1262 = vmatmul.mubr.f32.gmra.mrb[80].mxu1 %v100_v4  ;;  %1402 = vmatmul.mubr.f32.gmra.mrb[82].mxu0 %v102_v5 }
  0xc9   :  { %1266 = vmatprep.mubr.f32.mxu1 %v115_v6  ;;  %1406 = vmatprep.mubr.f32.mxu0 %v117_v7 }
  0xcc   :  { %1267 = vmatmul.mubr.f32.gmra.mrb[82].mxu1 %v114_v8  ;;  %1407 = vmatmul.mubr.f32.gmra.mrb[84].mxu0 %v116_v9 }
  0xcd   :  { %1271 = vmatprep.mubr.f32.mxu1 %v129_v10  ;;  %1411 = vmatprep.mubr.f32.mxu0 %v131_v11 }
  0xd0   :  { %1272 = vmatmul.mubr.f32.gmra.mrb[84].mxu1 %v128_v12  ;;  %1412 = vmatmul.mubr.f32.gmra.mrb[86].mxu0 %v130_v13 }
  0xd1   :  { %1276 = vmatprep.mubr.f32.mxu1 %v143_v14  ;;  %1416 = vmatprep.mubr.f32.mxu0 %v145_v15 }
  0xd4   :  { %1277 = vmatmul.mubr.f32.gmra.mrb[86].mxu1 %v142_v16  ;;  %1417 = vmatmul.mubr.f32.gmra.mrb[88].mxu0 %v144_v17 }
  0xd5   :  { %1281 = vmatprep.mubr.f32.mxu1 %v157_v18  ;;  %1421 = vmatprep.mubr.f32.mxu0 %v159_v19 }
  0xd8   :  { %1282 = vmatmul.mubr.f32.gmra.mrb[88].mxu1 %v156_v20  ;;  %1422 = vmatmul.mubr.f32.gmra.mrb[90].mxu0 %v158_v21 }
  0xd9   :  { %1286 = vmatprep.mubr.f32.mxu1 %v171_v22  ;;  %1426 = vmatprep.mubr.f32.mxu0 %v173_v23 }
  0xdc   :  { %1287 = vmatmul.mubr.f32.gmra.mrb[90].mxu1 %v170_v24  ;;  %1427 = vmatmul.mubr.f32.gmra.mrb[92].mxu0 %v172_v25 }
  0xdd   :  { %1291 = vmatprep.mubr.f32.mxu1 %v185_v26  ;;  %1431 = vmatprep.mubr.f32.mxu0 %v187_v27 }
  0xe0   :  { %1292 = vmatmul.mubr.f32.gmra.mrb[92].mxu1 %v184_v28  ;;  %1432 = vmatmul.mubr.f32.gmra.mrb[94].mxu0 %v186_v29 }
  0xe1   :  { %1296 = vmatprep.mubr.f32.mxu1 %v199_v30  ;;  %1436 = vmatprep.mubr.f32.mxu0 %v201_v31 }
  0xe4   :  { %1297 = vmatmul.mubr.f32.gmra.mrb[94].mxu1 %v198_v32  ;;  %1437 = vmatmul.mubr.f32.gmra.mrb[96].mxu0 %v200_v33 }
  0xe5   :  { %1301 = vmatprep.mubr.f32.mxu1 %v213_v34  ;;  %1441 = vmatprep.mubr.f32.mxu0 %v215_v35 }
  0xe8   :  { %1302 = vmatmul.mubr.f32.gmra.mrb[96].mxu1 %v212_v36  ;;  %1442 = vmatmul.mubr.f32.gmra.mrb[98].mxu0 %v214_v37 }
  0xe9   :  { %1306 = vmatprep.mubr.f32.mxu1 %v227_v38  ;;  %1446 = vmatprep.mubr.f32.mxu0 %v229_v39 }
  0xec   :  { %1307 = vmatmul.mubr.f32.gmra.mrb[98].mxu1 %v226_v40  ;;  %1447 = vmatmul.mubr.f32.gmra.mrb[100].mxu0 %v228_v41 }
  0xed   :  { %1311 = vmatprep.mubr.f32.mxu1 %v241_v42  ;;  %1451 = vmatprep.mubr.f32.mxu0 %v243_v43 }
  0xf0   :  { %1312 = vmatmul.mubr.f32.gmra.mrb[100].mxu1 %v240_v44  ;;  %1452 = vmatmul.mubr.f32.gmra.mrb[102].mxu0 %v242_v45 }
  0xf1   :  { %1316 = vmatprep.mubr.f32.mxu1 %v255_v46  ;;  %1456 = vmatprep.mubr.f32.mxu0 %v257_v47 }
  0xf4   :  { %1317 = vmatmul.mubr.f32.gmra.mrb[102].mxu1 %v254_v48  ;;  %1457 = vmatmul.mubr.f32.gmra.mrb[104].mxu0 %v256_v49 }
  0xf7   :  { %v1810_v50 = vpop.f32.mrb[0].mxu1  ;;  %v1786_v51 = vpop.f32.mrb[0].mxu0 }
  0xf8   :  { %v1811_v52 = vpop.f32.mrb[1].mxu1  ;;  %v1787_v53 = vpop.f32.mrb[1].mxu0 }
  0xf9   :  { %v3964_v54 = vadd.f32 %v1811_v52, %v1810_v50  ;;  %v1788_v55 = vadd.f32 %v1787_v53, %v1786_v51 }
  0xfb   :  { %v1789_v56 = vpop.f32.mrb[2].mxu0  ;;  %v1813_v57 = vpop.f32.mrb[2].mxu1 }
  0xfc   :  { %v1790_v58 = vpop.f32.mrb[3].mxu0  ;;  %v1814_v59 = vpop.f32.mrb[3].mxu1 }
  0xfd   :  { %v1791_v60 = vadd.f32 %v1790_v58, %v1789_v56  ;;  %v3966_v61 = vadd.f32 %v1814_v59, %v1813_v57 }
  0xff   :  { %v1792_v62 = vpop.f32.mrb[4].mxu0  ;;  %v1816_v63 = vpop.f32.mrb[4].mxu1 }
 0x100   :  { %v1793_v0 = vpop.f32.mrb[5].mxu0  ;;  %v1817_v1 = vpop.f32.mrb[5].mxu1 }
 0x101   :  { %v1794_v2 = vadd.f32 %v1793_v0, %v1792_v62  ;;  %v3968_v3 = vadd.f32 %v1817_v1, %v1816_v63 }
 0x103   :  { %v1795_v4 = vpop.f32.mrb[6].mxu0  ;;  %v1819_v5 = vpop.f32.mrb[6].mxu1 }
 0x104   :  { %v1796_v6 = vpop.f32.mrb[7].mxu0  ;;  %v1820_v7 = vpop.f32.mrb[7].mxu1 }
 0x105   :  { %v1797_v8 = vadd.f32 %v1796_v6, %v1795_v4  ;;  %v3970_v9 = vadd.f32 %v1820_v7, %v1819_v5 }
 0x107   :  { %v1798_v10 = vpop.f32.mrb[8].mxu0  ;;  %v1822_v11 = vpop.f32.mrb[8].mxu1 }
 0x108   :  { %v1799_v12 = vpop.f32.mrb[9].mxu0  ;;  %v1823_v13 = vpop.f32.mrb[9].mxu1 }
 0x109   :  { %v1800_v14 = vadd.f32 %v1799_v12, %v1798_v10  ;;  %v3972_v15 = vadd.f32 %v1823_v13, %v1822_v11 }
 0x10b   :  { %v1801_v16 = vpop.f32.mrb[10].mxu0  ;;  %v1825_v17 = vpop.f32.mrb[10].mxu1 }
 0x10c   :  { %v1802_v18 = vpop.f32.mrb[11].mxu0  ;;  %v1826_v19 = vpop.f32.mrb[11].mxu1 }
 0x10d   :  { %v1803_v20 = vadd.f32 %v1802_v18, %v1801_v16  ;;  %v3974_v21 = vadd.f32 %v1826_v19, %v1825_v17 }
 0x10f   :  { %v1804_v22 = vpop.f32.mrb[12].mxu0  ;;  %v1828_v23 = vpop.f32.mrb[12].mxu1 }
 0x110   :  { %v1805_v24 = vpop.f32.mrb[13].mxu0  ;;  %v1829_v25 = vpop.f32.mrb[13].mxu1 }
 0x111   :  { %v1806_v26 = vadd.f32 %v1805_v24, %v1804_v22  ;;  %v3976_v27 = vadd.f32 %v1829_v25, %v1828_v23 }
 0x113   :  { %v1807_v28 = vpop.f32.mrb[14].mxu0 }
 0x114   :  { %v1808_v29 = vpop.f32.mrb[15].mxu0 }
 0x115   :  { %v3978_v30 = vadd.f32 %v1808_v29, %v1807_v28 }
 0x117   :  { %v1863_v31 = vpop.f32.mrb[14].mxu1  ;;  %v1940_v32 = vpop.f32.mrb[16].mxu0 }
 0x118   :  { %v1864_v33 = vpop.f32.mrb[15].mxu1  ;;  %v1941_v34 = vpop.f32.mrb[17].mxu0 }
 0x119   :  { %v1865_v35 = vadd.f32 %v1864_v33, %v1863_v31  ;;  %v1942_v36 = vadd.f32 %v1941_v34, %v1940_v32 }
 0x11b   :  { %v689_v37 = vadd.f32 %v1865_v35, %v1788_v55  ;;  %v1866_v38 = vpop.f32.mrb[16].mxu1  ;;  %v1943_v39 = vpop.f32.mrb[18].mxu0 }
 0x11c   :  { %v1867_v40 = vpop.f32.mrb[17].mxu1  ;;  %v1944_v41 = vpop.f32.mrb[19].mxu0 }
 0x11d   :  { %v3980_v42 = vadd.f32 %v1942_v36, %v689_v37  ;;  %v1868_v43 = vadd.f32 %v1867_v40, %v1866_v38  ;;  %v1945_v44 = vadd.f32 %v1944_v41, %v1943_v39 }
 0x11f   :  { %v694_v45 = vadd.f32 %v1868_v43, %v1791_v60  ;;  %v1869_v46 = vpop.f32.mrb[18].mxu1  ;;  %v1946_v47 = vpop.f32.mrb[20].mxu0 }
 0x120   :  { %v1870_v48 = vpop.f32.mrb[19].mxu1  ;;  %v1947_v49 = vpop.f32.mrb[21].mxu0 }
 0x121   :  { %v3982_v50 = vadd.f32 %v1945_v44, %v694_v45  ;;  %v1871_v51 = vadd.f32 %v1870_v48, %v1869_v46  ;;  %v1948_v52 = vadd.f32 %v1947_v49, %v1946_v47 }
 0x123   :  { %v699_v53 = vadd.f32 %v1871_v51, %v1794_v2  ;;  %v1872_v56 = vpop.f32.mrb[20].mxu1  ;;  %v1949_v55 = vpop.f32.mrb[22].mxu0 }
 0x124   :  { %v1873_v57 = vpop.f32.mrb[21].mxu1  ;;  %v1950_v58 = vpop.f32.mrb[23].mxu0 }
 0x125   :  { %v3984_v59 = vadd.f32 %v1948_v52, %v699_v53  ;;  %v1874_v62 = vadd.f32 %v1873_v57, %v1872_v56  ;;  %v1951_v63 = vadd.f32 %v1950_v58, %v1949_v55 }
 0x127   :  { %v704_v0 = vadd.f32 %v1874_v62, %v1797_v8  ;;  %v1875_v1 = vpop.f32.mrb[22].mxu1  ;;  %v1952_v60 = vpop.f32.mrb[24].mxu0 }
 0x128   :  { %v1876_v4 = vpop.f32.mrb[23].mxu1  ;;  %v1953_v5 = vpop.f32.mrb[25].mxu0 }
 0x129   :  { %v3986_v6 = vadd.f32 %v1951_v63, %v704_v0  ;;  %v1877_v7 = vadd.f32 %v1876_v4, %v1875_v1  ;;  %v1954_v10 = vadd.f32 %v1953_v5, %v1952_v60 }
 0x12b   :  { %v709_v11 = vadd.f32 %v1877_v7, %v1800_v14  ;;  %v1878_v12 = vpop.f32.mrb[24].mxu1  ;;  %v1955_v2 = vpop.f32.mrb[26].mxu0 }
 0x12c   :  { %v1879_v13 = vpop.f32.mrb[25].mxu1  ;;  %v1956_v16 = vpop.f32.mrb[27].mxu0 }
 0x12d   :  { %v3988_v17 = vadd.f32 %v1954_v10, %v709_v11  ;;  %v1880_v18 = vadd.f32 %v1879_v13, %v1878_v12  ;;  %v1957_v19 = vadd.f32 %v1956_v16, %v1955_v2 }
 0x12f   :  { %v714_v22 = vadd.f32 %v1880_v18, %v1803_v20  ;;  %v1881_v23 = vpop.f32.mrb[26].mxu1  ;;  %v1958_v8 = vpop.f32.mrb[28].mxu0 }
 0x130   :  { %v1882_v24 = vpop.f32.mrb[27].mxu1  ;;  %v1959_v25 = vpop.f32.mrb[29].mxu0 }
 0x131   :  { %v3990_v28 = vadd.f32 %v1957_v19, %v714_v22  ;;  %v1883_v29 = vadd.f32 %v1882_v24, %v1881_v23  ;;  %v1960_v31 = vadd.f32 %v1959_v25, %v1958_v8 }
 0x133   :  { %v719_v32 = vadd.f32 %v1883_v29, %v1806_v26  ;;  %v1884_v33 = vpop.f32.mrb[28].mxu1  ;;  %v1961_v14 = vpop.f32.mrb[30].mxu0 }
 0x134   :  { %v1885_v34 = vpop.f32.mrb[29].mxu1  ;;  %v1962_v35 = vpop.f32.mrb[31].mxu0 }
 0x135   :  { %v3992_v36 = vadd.f32 %v1960_v31, %v719_v32  ;;  %v1886_v37 = vadd.f32 %v1885_v34, %v1884_v33  ;;  %v1963_v38 = vadd.f32 %v1962_v35, %v1961_v14 }
 0x137   :  { %v724_v39 = vadd.f32 %v1886_v37, %v3978_v30  ;;  %v1887_v20 = vpop.f32.mrb[30].mxu1  ;;  %v1964_v40 = vpop.f32.mrb[32].mxu0 }
 0x138   :  { %v1888_v41 = vpop.f32.mrb[31].mxu1  ;;  %v1965_v43 = vpop.f32.mrb[33].mxu0 }
 0x139   :  { %v3995_v44 = vadd.f32 %v1963_v38, %v724_v39  ;;  %v1889_v45 = vadd.f32 %v1888_v41, %v1887_v20  ;;  %v1966_v46 = vadd.f32 %v1965_v43, %v1964_v40 }
 0x13b   :  { %v729_v26 = vadd.f32 %v1889_v45, %v3964_v54  ;;  %v1890_v47 = vpop.f32.mrb[32].mxu1  ;;  %v1967_v48 = vpop.f32.mrb[34].mxu0 }
 0x13c   :  { %v1891_v49 = vpop.f32.mrb[33].mxu1  ;;  %v1968_v51 = vpop.f32.mrb[35].mxu0 }
 0x13d   :  { %v3998_v52 = vadd.f32 %v1966_v46, %v729_v26  ;;  %v1892_v53 = vadd.f32 %v1891_v49, %v1890_v47  ;;  %v1969_v56 = vadd.f32 %v1968_v51, %v1967_v48 }
 0x13f   :  { %v734_v30 = vadd.f32 %v1892_v53, %v3966_v61  ;;  %v1893_v55 = vpop.f32.mrb[34].mxu1  ;;  %v1970_v57 = vpop.f32.mrb[36].mxu0 }
 0x140   :  { %v1894_v58 = vpop.f32.mrb[35].mxu1  ;;  %v1971_v62 = vpop.f32.mrb[37].mxu0 }
 0x141   :  { %v4001_v63 = vadd.f32 %v1969_v56, %v734_v30  ;;  %v1895_v0 = vadd.f32 %v1894_v58, %v1893_v55  ;;  %v1972_v1 = vadd.f32 %v1971_v62, %v1970_v57 }
 0x143   :  { %v739_v54 = vadd.f32 %v1895_v0, %v3968_v3  ;;  %v1896_v60 = vpop.f32.mrb[36].mxu1  ;;  %v1973_v4 = vpop.f32.mrb[38].mxu0 }
 0x144   :  { %v1897_v5 = vpop.f32.mrb[37].mxu1  ;;  %v1974_v7 = vpop.f32.mrb[39].mxu0 }
 0x145   :  { %v4004_v10 = vadd.f32 %v1972_v1, %v739_v54  ;;  %v1898_v11 = vadd.f32 %v1897_v5, %v1896_v60  ;;  %v1975_v12 = vadd.f32 %v1974_v7, %v1973_v4 }
 0x147   :  { %v744_v61 = vadd.f32 %v1898_v11, %v3970_v9  ;;  %v1899_v2 = vpop.f32.mrb[38].mxu1  ;;  %v1976_v13 = vpop.f32.mrb[40].mxu0 }
 0x148   :  { %v1900_v16 = vpop.f32.mrb[39].mxu1  ;;  %v1977_v18 = vpop.f32.mrb[41].mxu0 }
 0x149   :  { %v4007_v19 = vadd.f32 %v1975_v12, %v744_v61  ;;  %v1901_v22 = vadd.f32 %v1900_v16, %v1899_v2  ;;  %v1978_v23 = vadd.f32 %v1977_v18, %v1976_v13 }
 0x14b   :  { %v749_v3 = vadd.f32 %v1901_v22, %v3972_v15  ;;  %v1902_v8 = vpop.f32.mrb[40].mxu1  ;;  %v1979_v24 = vpop.f32.mrb[42].mxu0 }
 0x14c   :  { %v1903_v25 = vpop.f32.mrb[41].mxu1  ;;  %v1980_v29 = vpop.f32.mrb[43].mxu0 }
 0x14d   :  { %v4010_v31 = vadd.f32 %v1978_v23, %v749_v3  ;;  %v1904_v32 = vadd.f32 %v1903_v25, %v1902_v8  ;;  %v1981_v33 = vadd.f32 %v1980_v29, %v1979_v24 }
 0x14f   :  { %v754_v9 = vadd.f32 %v1904_v32, %v3974_v21  ;;  %v1905_v14 = vpop.f32.mrb[42].mxu1  ;;  %v1982_v34 = vpop.f32.mrb[44].mxu0 }
 0x150   :  { %v1906_v35 = vpop.f32.mrb[43].mxu1  ;;  %v1983_v37 = vpop.f32.mrb[45].mxu0 }
 0x151   :  { %v4013_v38 = vadd.f32 %v1981_v33, %v754_v9  ;;  %v1907_v39 = vadd.f32 %v1906_v35, %v1905_v14  ;;  %v1984_v20 = vadd.f32 %v1983_v37, %v1982_v34 }
 0x153   :  { %v759_v15 = vadd.f32 %v1907_v39, %v3976_v27  ;;  %v2017_v40 = vpop.f32.mrb[44].mxu1  ;;  %v2094_v41 = vpop.f32.mrb[46].mxu0 }
 0x154   :  { %v2018_v43 = vpop.f32.mrb[45].mxu1  ;;  %v2095_v45 = vpop.f32.mrb[47].mxu0 }
 0x155   :  { %v4016_v46 = vadd.f32 %v1984_v20, %v759_v15  ;;  %v2019_v26 = vadd.f32 %v2018_v43, %v2017_v40  ;;  %v2096_v47 = vadd.f32 %v2095_v45, %v2094_v41 }
 0x157   :  { %v969_v21 = vadd.f32 %v2019_v26, %v3980_v42  ;;  %v2020_v48 = vpop.f32.mrb[46].mxu1  ;;  %v2097_v49 = vpop.f32.mrb[48].mxu0 }
 0x158   :  { %v2021_v51 = vpop.f32.mrb[47].mxu1  ;;  %v2098_v53 = vpop.f32.mrb[49].mxu0 }
 0x159   :  { %v4019_v56 = vadd.f32 %v2096_v47, %v969_v21  ;;  %v2022_v30 = vadd.f32 %v2021_v51, %v2020_v48  ;;  %v2099_v55 = vadd.f32 %v2098_v53, %v2097_v49 }
 0x15b   :  { %v974_v27 = vadd.f32 %v2022_v30, %v3982_v50  ;;  %v2023_v57 = vpop.f32.mrb[48].mxu1  ;;  %v2100_v58 = vpop.f32.mrb[50].mxu0 }
 0x15c   :  { %v2024_v62 = vpop.f32.mrb[49].mxu1  ;;  %v2101_v0 = vpop.f32.mrb[51].mxu0 }
 0x15d   :  { %v4022_v1 = vadd.f32 %v2099_v55, %v974_v27  ;;  %v2025_v54 = vadd.f32 %v2024_v62, %v2023_v57  ;;  %v2102_v60 = vadd.f32 %v2101_v0, %v2100_v58 }
 0x15f   :  { %v979_v42 = vadd.f32 %v2025_v54, %v3984_v59  ;;  %v2026_v4 = vpop.f32.mrb[50].mxu1  ;;  %v2103_v5 = vpop.f32.mrb[52].mxu0 }
 0x160   :  { %v2027_v7 = vpop.f32.mrb[51].mxu1  ;;  %v2104_v11 = vpop.f32.mrb[53].mxu0 }
 0x161   :  { %v4025_v12 = vadd.f32 %v2102_v60, %v979_v42  ;;  %v2028_v61 = vadd.f32 %v2027_v7, %v2026_v4  ;;  %v2105_v2 = vadd.f32 %v2104_v11, %v2103_v5 }
 0x163   :  { %v984_v50 = vadd.f32 %v2028_v61, %v3986_v6  ;;  %v2029_v13 = vpop.f32.mrb[52].mxu1  ;;  %v2106_v16 = vpop.f32.mrb[54].mxu0 }
 0x164   :  { %v2030_v18 = vpop.f32.mrb[53].mxu1  ;;  %v2107_v22 = vpop.f32.mrb[55].mxu0 }
 0x165   :  { %v4028_v23 = vadd.f32 %v2105_v2, %v984_v50  ;;  %v2031_v3 = vadd.f32 %v2030_v18, %v2029_v13  ;;  %v2108_v8 = vadd.f32 %v2107_v22, %v2106_v16 }
 0x167   :  { %v989_v59 = vadd.f32 %v2031_v3, %v3988_v17  ;;  %v2032_v24 = vpop.f32.mrb[54].mxu1  ;;  %v2109_v25 = vpop.f32.mrb[56].mxu0 }
 0x168   :  { %v2033_v29 = vpop.f32.mrb[55].mxu1  ;;  %v2110_v32 = vpop.f32.mrb[57].mxu0 }
 0x169   :  { %v4031_v33 = vadd.f32 %v2108_v8, %v989_v59  ;;  %v2034_v9 = vadd.f32 %v2033_v29, %v2032_v24  ;;  %v2111_v14 = vadd.f32 %v2110_v32, %v2109_v25 }
 0x16b   :  { %v994_v6 = vadd.f32 %v2034_v9, %v3990_v28  ;;  %v2035_v34 = vpop.f32.mrb[56].mxu1  ;;  %v2112_v35 = vpop.f32.mrb[58].mxu0 }
 0x16c   :  { %v2036_v37 = vpop.f32.mrb[57].mxu1  ;;  %v2113_v39 = vpop.f32.mrb[59].mxu0 }
 0x16d   :  { %v4034_v20 = vadd.f32 %v2111_v14, %v994_v6  ;;  %v2037_v15 = vadd.f32 %v2036_v37, %v2035_v34  ;;  %v2114_v40 = vadd.f32 %v2113_v39, %v2112_v35 }
 0x16f   :  { %v999_v17 = vadd.f32 %v2037_v15, %v3992_v36  ;;  %v2038_v41 = vpop.f32.mrb[58].mxu1  ;;  %v2115_v43 = vpop.f32.mrb[60].mxu0 }
 0x170   :  { %v2039_v45 = vpop.f32.mrb[59].mxu1  ;;  %v2116_v26 = vpop.f32.mrb[61].mxu0 }
 0x171   :  { %v4037_v47 = vadd.f32 %v2114_v40, %v999_v17  ;;  %v2040_v21 = vadd.f32 %v2039_v45, %v2038_v41  ;;  %v2117_v48 = vadd.f32 %v2116_v26, %v2115_v43 }
 0x173   :  { %v1004_v28 = vadd.f32 %v2040_v21, %v3995_v44  ;;  %v2041_v49 = vpop.f32.mrb[60].mxu1  ;;  %v2118_v51 = vpop.f32.mrb[62].mxu0 }
 0x174   :  { %v2042_v53 = vpop.f32.mrb[61].mxu1  ;;  %v2119_v30 = vpop.f32.mrb[63].mxu0 }
 0x175   :  { %v4040_v55 = vadd.f32 %v2117_v48, %v1004_v28  ;;  %v2043_v27 = vadd.f32 %v2042_v53, %v2041_v49  ;;  %v2120_v57 = vadd.f32 %v2119_v30, %v2118_v51  ;;  %v1528_v51 = vpop.permute.xlu0 %1527 }
 0x177   :  { %v1009_v36 = vadd.f32 %v2043_v27, %v3998_v52  ;;  %v2044_v58 = vpop.f32.mrb[62].mxu1  ;;  %v2121_v62 = vpop.f32.mrb[64].mxu0 }
 0x178   :  { %v2045_v0 = vpop.f32.mrb[63].mxu1  ;;  %v2122_v54 = vpop.f32.mrb[65].mxu0 }
 0x179   :  { %v4043_v60 = vadd.f32 %v2120_v57, %v1009_v36  ;;  %v2046_v42 = vadd.f32 %v2045_v0, %v2044_v58  ;;  %v2123_v4 = vadd.f32 %v2122_v54, %v2121_v62 }
 0x17b   :  { %v1014_v44 = vadd.f32 %v2046_v42, %v4001_v63  ;;  %v2047_v5 = vpop.f32.mrb[64].mxu1  ;;  %v2124_v7 = vpop.f32.mrb[66].mxu0 }
 0x17c   :  { %v2048_v11 = vpop.f32.mrb[65].mxu1  ;;  %v2125_v61 = vpop.f32.mrb[67].mxu0 }
 0x17d   :  { %v4046_v2 = vadd.f32 %v2123_v4, %v1014_v44  ;;  %v2049_v50 = vadd.f32 %v2048_v11, %v2047_v5  ;;  %v2126_v13 = vadd.f32 %v2125_v61, %v2124_v7  ;;  %v1533_v11 = vpop.permute.xlu0 %1532  ;;  %v1538_v61 = vpop.permute.xlu1 %1537 }
 0x17f   :  { %v1019_v52 = vadd.f32 %v2049_v50, %v4004_v10  ;;  %v2050_v16 = vpop.f32.mrb[66].mxu1  ;;  %v2127_v18 = vpop.f32.mrb[68].mxu0 }
 0x180   :  { %v2051_v22 = vpop.f32.mrb[67].mxu1  ;;  %v2128_v3 = vpop.f32.mrb[69].mxu0 }
 0x181   :  { %v4049_v8 = vadd.f32 %v2126_v13, %v1019_v52  ;;  %v2052_v59 = vadd.f32 %v2051_v22, %v2050_v16  ;;  %v2129_v24 = vadd.f32 %v2128_v3, %v2127_v18 }
 0x183   :  { %v1024_v63 = vadd.f32 %v2052_v59, %v4007_v19  ;;  %v2053_v25 = vpop.f32.mrb[68].mxu1  ;;  %v2130_v29 = vpop.f32.mrb[70].mxu0 }
 0x184   :  { %v2054_v32 = vpop.f32.mrb[69].mxu1  ;;  %v2131_v9 = vpop.f32.mrb[71].mxu0 }
 0x185   :  { %v4052_v14 = vadd.f32 %v2129_v24, %v1024_v63  ;;  %v2055_v6 = vadd.f32 %v2054_v32, %v2053_v25  ;;  %v2132_v34 = vadd.f32 %v2131_v9, %v2130_v29 }
 0x187   :  { %v1029_v10 = vadd.f32 %v2055_v6, %v4010_v31  ;;  %v2056_v35 = vpop.f32.mrb[70].mxu1  ;;  %v2133_v37 = vpop.f32.mrb[72].mxu0 }
 0x188   :  { %v2057_v39 = vpop.f32.mrb[71].mxu1  ;;  %v2134_v15 = vpop.f32.mrb[73].mxu0 }
 0x189   :  { %v4055_v40 = vadd.f32 %v2132_v34, %v1029_v10  ;;  %v2058_v17 = vadd.f32 %v2057_v39, %v2056_v35  ;;  %v2135_v41 = vadd.f32 %v2134_v15, %v2133_v37  ;;  %v1543_v35 = vpop.permute.xlu1 %1542 }
 0x18b   :  { %v1034_v19 = vadd.f32 %v2058_v17, %v4013_v38  ;;  %v2059_v43 = vpop.f32.mrb[72].mxu1  ;;  %v2136_v45 = vpop.f32.mrb[74].mxu0 }
 0x18c   :  { %v2060_v26 = vpop.f32.mrb[73].mxu1  ;;  %v2137_v21 = vpop.f32.mrb[75].mxu0 }
 0x18d   :  { %v4058_v48 = vadd.f32 %v2135_v41, %v1034_v19  ;;  %v2061_v28 = vadd.f32 %v2060_v26, %v2059_v43  ;;  %v2138_v49 = vadd.f32 %v2137_v21, %v2136_v45 }
 0x18f   :  { %v1039_v31 = vadd.f32 %v2061_v28, %v4016_v46  ;;  %v2171_v53 = vpop.f32.mrb[74].mxu1  ;;  %v2248_v30 = vpop.f32.mrb[76].mxu0 }
 0x190   :  { %v2172_v27 = vpop.f32.mrb[75].mxu1  ;;  %v2249_v57 = vpop.f32.mrb[77].mxu0 }
 0x191   :  { %v4061_v36 = vadd.f32 %v2138_v49, %v1039_v31  ;;  %v2173_v58 = vadd.f32 %v2172_v27, %v2171_v53  ;;  %v2250_v62 = vadd.f32 %v2249_v57, %v2248_v30 }
 0x193   :  { %v1249_v38 = vadd.f32 %v2173_v58, %v4019_v56  ;;  %v2174_v0 = vpop.f32.mrb[76].mxu1  ;;  %v2251_v54 = vpop.f32.mrb[78].mxu0 }
 0x194   :  { %v2175_v42 = vpop.f32.mrb[77].mxu1  ;;  %v2252_v4 = vpop.f32.mrb[79].mxu0 }
 0x195   :  { %v2176_v44 = vadd.f32 %v2175_v42, %v2174_v0  ;;  %v1389_v5 = vadd.f32 %v2250_v62, %v1249_v38  ;;  %v2253_v7 = vadd.f32 %v2252_v4, %v2251_v54  ;;  %v1548_v38 = vpop.permute.xlu0 %1547 }
 0x197   :  { %v1254_v46 = vadd.f32 %v2176_v44, %v4022_v1  ;;  %v4065_v50 = vadd.f32 %v1528_v51, %v1389_v5  ;;  %v2177_v13 = vpop.f32.mrb[78].mxu1  ;;  %v2254_v52 = vpop.f32.mrb[80].mxu0 }
 0x198   :  { %v2178_v16 = vpop.f32.mrb[79].mxu1  ;;  %v2255_v18 = vpop.f32.mrb[81].mxu0 }
 0x199   :  { %v1739_v22 = vmul.f32 -1.442695, %v4065_v50  ;;  %v2179_v56 = vadd.f32 %v2178_v16, %v2177_v13  ;;  %v1394_v3 = vadd.f32 %v2253_v7, %v1254_v46  ;;  %v2256_v59 = vadd.f32 %v2255_v18, %v2254_v52  ;;  %v1553_v52 = vpop.permute.xlu1 %1552 }
 0x19b   :  { %2536 = vpow2.f32 %v1739_v22  ;;  %v1259_v24 = vadd.f32 %v2179_v56, %v4025_v12  ;;  %v4069_v63 = vadd.f32 %v1533_v11, %v1394_v3  ;;  %v2180_v25 = vpop.f32.mrb[80].mxu1  ;;  %v2257_v29 = vpop.f32.mrb[82].mxu0 }
 0x19c   :  { %v2181_v32 = vpop.f32.mrb[81].mxu1  ;;  %v2258_v1 = vpop.f32.mrb[83].mxu0 }
 0x19d   :  { %v1740_v9 = vmul.f32 -1.442695, %v4069_v63  ;;  %v2182_v6 = vadd.f32 %v2181_v32, %v2180_v25  ;;  %v1399_v34 = vadd.f32 %v2256_v59, %v1259_v24  ;;  %v2259_v10 = vadd.f32 %v2258_v1, %v2257_v29 }
 0x19f   :  { %2538 = vpow2.f32 %v1740_v9  ;;  %v1264_v37 = vadd.f32 %v2182_v6, %v4028_v23  ;;  %v4073_v39 = vadd.f32 %v1538_v61, %v1399_v34  ;;  %v2183_v15 = vpop.f32.mrb[82].mxu1  ;;  %v2260_v17 = vpop.f32.mrb[84].mxu0 }
 0x1a0   :  { %v2184_v12 = vpop.f32.mrb[83].mxu1  ;;  %v2261_v41 = vpop.f32.mrb[85].mxu0 }
 0x1a1   :  { %v1741_v19 = vmul.f32 -1.442695, %v4073_v39  ;;  %v2185_v43 = vadd.f32 %v2184_v12, %v2183_v15  ;;  %v1404_v45 = vadd.f32 %v2259_v10, %v1264_v37  ;;  %v2262_v26 = vadd.f32 %v2261_v41, %v2260_v17  ;;  %v1558_v9 = vpop.permute.xlu0 %1557 }
 0x1a3   :  { %2540 = vpow2.f32 %v1741_v19  ;;  %v1269_v21 = vadd.f32 %v2185_v43, %v4031_v33  ;;  %v4077_v28 = vadd.f32 %v1543_v35, %v1404_v45  ;;  %v2186_v49 = vpop.f32.mrb[84].mxu1  ;;  %v2263_v51 = vpop.f32.mrb[86].mxu0 }
 0x1a4   :  { %v2187_v31 = vpop.f32.mrb[85].mxu1  ;;  %v2264_v23 = vpop.f32.mrb[87].mxu0 }
 0x1a5   :  { %v2537_v53 = vpop.eup %2536  ;;  %v1742_v30 = vmul.f32 -1.442695, %v4077_v28  ;;  %v1409_v27 = vadd.f32 %v2262_v26, %v1269_v21  ;;  %v2188_v57 = vadd.f32 %v2187_v31, %v2186_v49  ;;  %v2265_v58 = vadd.f32 %v2264_v23, %v2263_v51  ;;  %v1563_v26 = vpop.permute.xlu1 %1562 }
 0x1a6   :  { %v1660_v62 = vadd.f32 1.0, %v2537_v53 }
 0x1a7   :  { %2542 = vpow2.f32 %v1742_v30  ;;  %v4080_v0 = vadd.f32 %v1548_v38, %v1409_v27  ;;  %v1274_v54 = vadd.f32 %v2188_v57, %v4034_v20  ;;  %v2189_v33 = vpop.f32.mrb[86].mxu1  ;;  %v2266_v42 = vpop.f32.mrb[88].mxu0 }
 0x1a8   :  { %2544 = vrcp.f32 %v1660_v62  ;;  %v2190_v4 = vpop.f32.mrb[87].mxu1  ;;  %v2267_v44 = vpop.f32.mrb[89].mxu0 }
 0x1a9   :  { %v2539_v5 = vpop.eup %2538  ;;  %v1743_v7 = vmul.f32 -1.442695, %v4080_v0  ;;  %v1414_v11 = vadd.f32 %v2265_v58, %v1274_v54  ;;  %v2191_v61 = vadd.f32 %v2190_v4, %v2189_v33  ;;  %v2268_v46 = vadd.f32 %v2267_v44, %v2266_v42  ;;  %v1568_v54 = vpop.permute.xlu0 %1567 }
 0x1aa   :  { %v1661_v13 = vadd.f32 1.0, %v2539_v5 }
 0x1ab   :  { %2546 = vpow2.f32 %v1743_v7  ;;  %v4084_v16 = vadd.f32 %v1553_v52, %v1414_v11  ;;  %v1279_v18 = vadd.f32 %v2191_v61, %v4037_v47  ;;  %v2192_v22 = vpop.f32.mrb[88].mxu1  ;;  %v2269_v20 = vpop.f32.mrb[90].mxu0 }
 0x1ac   :  { %2548 = vrcp.f32 %v1661_v13  ;;  %v2193_v56 = vpop.f32.mrb[89].mxu1  ;;  %v2270_v3 = vpop.f32.mrb[91].mxu0 }
 0x1ad   :  { %v2541_v59 = vpop.eup %2540  ;;  %v1744_v24 = vmul.f32 -1.442695, %v4084_v16  ;;  %v1419_v25 = vadd.f32 %v2268_v46, %v1279_v18  ;;  %v2194_v29 = vadd.f32 %v2193_v56, %v2192_v22  ;;  %v2271_v32 = vadd.f32 %v2270_v3, %v2269_v20  ;;  %v1573_v22 = vpop.permute.xlu1 %1572 }
 0x1ae   :  { %v1662_v1 = vadd.f32 1.0, %v2541_v59 }
 0x1af   :  { %2550 = vpow2.f32 %v1744_v24  ;;  %v4088_v6 = vadd.f32 %v1558_v9, %v1419_v25  ;;  %v1284_v34 = vadd.f32 %v2194_v29, %v4040_v55  ;;  %v2195_v10 = vpop.f32.mrb[90].mxu1  ;;  %v2272_v47 = vpop.f32.mrb[92].mxu0 }
 0x1b0   :  { %2552 = vrcp.f32 %v1662_v1  ;;  %v2196_v35 = vpop.f32.mrb[91].mxu1  ;;  %v2273_v37 = vpop.f32.mrb[93].mxu0 }
 0x1b1   :  { %v2543_v15 = vpop.eup %2542  ;;  %v1745_v17 = vmul.f32 -1.442695, %v4088_v6  ;;  %v1424_v12 = vadd.f32 %v2271_v32, %v1284_v34  ;;  %v2197_v41 = vadd.f32 %v2196_v35, %v2195_v10  ;;  %v2274_v19 = vadd.f32 %v2273_v37, %v2272_v47  ;;  %v1578_v47 = vpop.permute.xlu0 %1577 }
 0x1b2   :  { %v2545_v43 = vpop.eup %2544  ;;  %v1663_v45 = vadd.f32 1.0, %v2543_v15 }
 0x1b3   :  { %v1705_v21 = vmul.f32 %v2545_v43, %v4065_v50  ;;  %2554 = vpow2.f32 %v1745_v17  ;;  %v4093_v49 = vadd.f32 %v1563_v26, %v1424_v12  ;;  %v1289_v55 = vadd.f32 %v2197_v41, %v4043_v60  ;;  %v2198_v51 = vpop.f32.mrb[92].mxu1  ;;  %v2275_v31 = vpop.f32.mrb[94].mxu0 }
 0x1b4   :  { %2556 = vrcp.f32 %v1663_v45  ;;  %v2199_v23 = vpop.f32.mrb[93].mxu1  ;;  %v2276_v53 = vpop.f32.mrb[95].mxu0 }
 0x1b5   :  { %v2547_v30 = vpop.eup %2546  ;;  %1720 = vst [vmem:[%s4174_s3] sm:$0xff] %v1705_v21  ;;  %v1746_v27 = vmul.f32 -1.442695, %v4093_v49  ;;  %v1429_v57 = vadd.f32 %v2274_v19, %v1289_v55  ;;  %v2200_v58 = vadd.f32 %v2199_v23, %v2198_v51  ;;  %v2277_v50 = vadd.f32 %v2276_v53, %v2275_v31  ;;  %v1583_v51 = vpop.permute.xlu1 %1582 }
 0x1b6   :  { %v2549_v62 = vpop.eup %2548  ;;  %v1664_v38 = vadd.f32 1.0, %v2547_v30 }
 0x1b7   :  { %v1706_v60 = vmul.f32 %v2549_v62, %v4069_v63  ;;  %2558 = vpow2.f32 %v1746_v27  ;;  %v4101_v33 = vadd.f32 %v1568_v54, %v1429_v57  ;;  %v1294_v42 = vadd.f32 %v2200_v58, %v4046_v2  ;;  %v2201_v4 = vpop.f32.mrb[94].mxu1  ;;  %v2278_v44 = vpop.f32.mrb[96].mxu0 }
 0x1b8   :  { %2560 = vrcp.f32 %v1664_v38  ;;  %v2202_v5 = vpop.f32.mrb[95].mxu1  ;;  %v2279_v7 = vpop.f32.mrb[97].mxu0 }
 0x1b9   :  { %v2551_v11 = vpop.eup %2550  ;;  %1721 = vst [vmem:[%s4174_s3 + $0x8] sm:$0xff] %v1706_v60  ;;  %v1747_v61 = vmul.f32 -1.442695, %v4101_v33  ;;  %v1434_v46 = vadd.f32 %v2277_v50, %v1294_v42  ;;  %v2203_v13 = vadd.f32 %v2202_v5, %v2201_v4  ;;  %v2280_v63 = vadd.f32 %v2279_v7, %v2278_v44  ;;  %v1588_v60 = vpop.permute.xlu0 %1587 }
 0x1ba   :  { %v2553_v52 = vpop.eup %2552  ;;  %v1665_v18 = vadd.f32 1.0, %v2551_v11 }
 0x1bb   :  { %v1707_v2 = vmul.f32 %v2553_v52, %v4073_v39  ;;  %2562 = vpow2.f32 %v1747_v61  ;;  %v4109_v20 = vadd.f32 %v1573_v22, %v1434_v46  ;;  %v1299_v56 = vadd.f32 %v2203_v13, %v4049_v8  ;;  %v2204_v3 = vpop.f32.mrb[96].mxu1  ;;  %v2281_v59 = vpop.f32.mrb[98].mxu0 }
 0x1bc   :  { %2564 = vrcp.f32 %v1665_v18  ;;  %v2205_v24 = vpop.f32.mrb[97].mxu1  ;;  %v2282_v25 = vpop.f32.mrb[99].mxu0 }
 0x1bd   :  { %v2555_v29 = vpop.eup %2554  ;;  %1722 = vst [vmem:[%s4174_s3 + $0x10] sm:$0xff] %v1707_v2  ;;  %v1748_v32 = vmul.f32 -1.442695, %v4109_v20  ;;  %v1439_v1 = vadd.f32 %v2280_v63, %v1299_v56  ;;  %v2206_v9 = vadd.f32 %v2205_v24, %v2204_v3  ;;  %v2283_v39 = vadd.f32 %v2282_v25, %v2281_v59  ;;  %v1593_v2 = vpop.permute.xlu1 %1592 }
 0x1be   :  { %v2557_v34 = vpop.eup %2556  ;;  %v1666_v10 = vadd.f32 1.0, %v2555_v29 }
 0x1bf   :  { %v1708_v8 = vmul.f32 %v2557_v34, %v4077_v28  ;;  %2566 = vpow2.f32 %v1748_v32  ;;  %v4117_v35 = vadd.f32 %v1578_v47, %v1439_v1  ;;  %v1304_v37 = vadd.f32 %v2206_v9, %v4052_v14  ;;  %v2207_v15 = vpop.f32.mrb[98].mxu1  ;;  %v2284_v17 = vpop.f32.mrb[100].mxu0 }
 0x1c0   :  { %2568 = vrcp.f32 %v1666_v10  ;;  %v2208_v12 = vpop.f32.mrb[99].mxu1  ;;  %v2285_v41 = vpop.f32.mrb[101].mxu0 }
 0x1c1   :  { %v2559_v19 = vpop.eup %2558  ;;  %1723 = vst [vmem:[%s4174_s3 + $0x18] sm:$0xff] %v1708_v8  ;;  %v1749_v43 = vmul.f32 -1.442695, %v4117_v35  ;;  %v1444_v45 = vadd.f32 %v2283_v39, %v1304_v37  ;;  %v2209_v26 = vadd.f32 %v2208_v12, %v2207_v15  ;;  %v2286_v28 = vadd.f32 %v2285_v41, %v2284_v17  ;;  %v1598_v32 = vpop.permute.xlu0 %1597 }
 0x1c2   :  { %v2561_v21 = vpop.eup %2560  ;;  %v1667_v55 = vadd.f32 1.0, %v2559_v19 }
 0x1c3   :  { %v1709_v14 = vmul.f32 %v2561_v21, %v4080_v0  ;;  %2570 = vpow2.f32 %v1749_v43  ;;  %v4125_v31 = vadd.f32 %v1583_v51, %v1444_v45  ;;  %v1309_v23 = vadd.f32 %v2209_v26, %v4055_v40  ;;  %v2210_v53 = vpop.f32.mrb[100].mxu1  ;;  %v2287_v30 = vpop.f32.mrb[102].mxu0 }
 0x1c4   :  { %2572 = vrcp.f32 %v1667_v55  ;;  %v2211_v27 = vpop.f32.mrb[101].mxu1  ;;  %v2288_v57 = vpop.f32.mrb[103].mxu0 }
 0x1c5   :  { %v2563_v58 = vpop.eup %2562  ;;  %1724 = vst [vmem:[%s4174_s3 + $0x20] sm:$0xff] %v1709_v14  ;;  %v1750_v50 = vmul.f32 -1.442695, %v4125_v31  ;;  %v1449_v62 = vadd.f32 %v2286_v28, %v1309_v23  ;;  %v2212_v38 = vadd.f32 %v2211_v27, %v2210_v53  ;;  %v2289_v0 = vadd.f32 %v2288_v57, %v2287_v30 }
 0x1c6   :  { %v2565_v54 = vpop.eup %2564  ;;  %v1668_v42 = vadd.f32 1.0, %v2563_v58 }
 0x1c7   :  { %v1710_v40 = vmul.f32 %v2565_v54, %v4084_v16  ;;  %2574 = vpow2.f32 %v1750_v50  ;;  %v1612_v4 = vadd.f32 %v1588_v60, %v1449_v62  ;;  %v1314_v44 = vadd.f32 %v2212_v38, %v4058_v48  ;;  %v2213_v5 = vpop.f32.mrb[102].mxu1  ;;  %v2290_v7 = vpop.f32.mrb[104].mxu0 }
 0x1c8   :  { %2576 = vrcp.f32 %v1668_v42  ;;  %v2214_v11 = vpop.f32.mrb[103].mxu1  ;;  %v2291_v61 = vpop.f32.mrb[105].mxu0 }
 0x1c9   :  { %v2567_v46 = vpop.eup %2566  ;;  %1725 = vst [vmem:[%s4174_s3 + $0x28] sm:$0xff] %v1710_v40  ;;  %v1751_v13 = vmul.f32 -1.442695, %v1612_v4  ;;  %v1454_v63 = vadd.f32 %v2289_v0, %v1314_v44  ;;  %v2215_v52 = vadd.f32 %v2214_v11, %v2213_v5  ;;  %v2292_v18 = vadd.f32 %v2291_v61, %v2290_v7 }
 0x1ca   :  { %v2569_v22 = vpop.eup %2568  ;;  %v1669_v16 = vadd.f32 1.0, %v2567_v46 }
 0x1cb   :  { %v1711_v56 = vmul.f32 %v2569_v22, %v4088_v6  ;;  %2578 = vpow2.f32 %v1751_v13  ;;  %v1613_v48 = vadd.f32 %v1593_v2, %v1454_v63  ;;  %v1319_v3 = vadd.f32 %v2215_v52, %v4061_v36 }
 0x1cc   :  { %2580 = vrcp.f32 %v1669_v16 }
 0x1cd   :  { %v2571_v59 = vpop.eup %2570  ;;  %1726 = vst [vmem:[%s4174_s3 + $0x30] sm:$0xff] %v1711_v56  ;;  %v1752_v24 = vmul.f32 -1.442695, %v1613_v48  ;;  %v1459_v25 = vadd.f32 %v2292_v18, %v1319_v3 }
 0x1ce   :  { %v2573_v29 = vpop.eup %2572  ;;  %v1670_v1 = vadd.f32 1.0, %v2571_v59 }
 0x1cf   :  { %v1712_v9 = vmul.f32 %v2573_v29, %v4093_v49  ;;  %2582 = vpow2.f32 %v1752_v24  ;;  %v1614_v39 = vadd.f32 %v1598_v32, %v1459_v25 }
 0x1d0   :  { %2584 = vrcp.f32 %v1670_v1 }
 0x1d1   :  { %v2575_v6 = vpop.eup %2574  ;;  %1727 = vst [vmem:[%s4174_s3 + $0x38] sm:$0xff] %v1712_v9  ;;  %v1753_v36 = vmul.f32 -1.442695, %v1614_v39 }
 0x1d2   :  { %v2577_v34 = vpop.eup %2576  ;;  %v1671_v10 = vadd.f32 1.0, %v2575_v6 }
 0x1d3   :  { %v1713_v47 = vmul.f32 %v2577_v34, %v4101_v33  ;;  %2586 = vpow2.f32 %v1753_v36 }
 0x1d4   :  { %2588 = vrcp.f32 %v1671_v10 }
 0x1d5   :  { %v2579_v8 = vpop.eup %2578  ;;  %1728 = vst [vmem:[%s4174_s3 + $0x40] sm:$0xff] %v1713_v47 }
 0x1d6   :  { %v2581_v49 = vpop.eup %2580  ;;  %v1672_v37 = vadd.f32 1.0, %v2579_v8 }
 0x1d7   :  { %v1714_v15 = vmul.f32 %v2581_v49, %v4109_v20 }
 0x1d8   :  { %2590 = vrcp.f32 %v1672_v37 }
 0x1d9   :  { %v2583_v17 = vpop.eup %2582  ;;  %1729 = vst [vmem:[%s4174_s3 + $0x48] sm:$0xff] %v1714_v15 }
 0x1da   :  { %v2585_v12 = vpop.eup %2584  ;;  %v1673_v41 = vadd.f32 1.0, %v2583_v17 }
 0x1db   :  { %v1715_v33 = vmul.f32 %v2585_v12, %v4117_v35 }
 0x1dc   :  { %2592 = vrcp.f32 %v1673_v41 }
 0x1dd   :  { %v2587_v19 = vpop.eup %2586  ;;  %1730 = vst [vmem:[%s4174_s3 + $0x50] sm:$0xff] %v1715_v33 }
 0x1de   :  { %v2589_v43 = vpop.eup %2588  ;;  %v1674_v45 = vadd.f32 1.0, %v2587_v19 }
 0x1df   :  { %v1716_v20 = vmul.f32 %v2589_v43, %v4125_v31 }
 0x1e0   :  { %2594 = vrcp.f32 %v1674_v45 }
 0x1e1   :  { %1731 = vst [vmem:[%s4174_s3 + $0x58] sm:$0xff] %v1716_v20 }
 0x1e2   :  { %v2591_v26 = vpop.eup %2590 }
 0x1e3   :  { %v1717_v28 = vmul.f32 %v2591_v26, %v1612_v4 }
 0x1e5   :  { %1732 = vst [vmem:[%s4174_s3 + $0x60] sm:$0xff] %v1717_v28 }
 0x1e6   :  { %v2593_v35 = vpop.eup %2592 }
 0x1e7   :  { %v1718_v21 = vmul.f32 %v2593_v35, %v1613_v48 }
 0x1e9   :  { %1733 = vst [vmem:[%s4174_s3 + $0x68] sm:$0xff] %v1718_v21 }
 0x1ea   :  { %v2595_v55 = vpop.eup %2594 }
 0x1eb   :  { %v1719_v51 = vmul.f32 %v2595_v55, %v1614_v39 }
 0x1ed   :  { %1734 = vst [vmem:[%s4174_s3 + $0x70] sm:$0xff] %v1719_v51 }

// kernel: model_forward.4
= control target key start
LH: loop header
LB: loop body
LE: loop exit
PB: predicated region body
PF: predicated region fallthrough
CT: control target
= control target key end

     0   :  { %s7464_s0 = inlined_call_operand.vmem [shape: f32[24,7424], index: 0, kind: input, shape index: {}]   ;;  %s7465_s1 = inlined_call_operand.vmem [shape: f32[7424,384], index: 1, kind: input, shape index: {}]   ;;  %s7466_s2 = inlined_call_operand.vmem [shape: f32[24,1], index: 2, kind: input, shape index: {}]   ;;  %s7467_s3 = inlined_call_operand.vmem [shape: f32[24,384], index: 3, kind: output, shape index: {}]  }
   0x1   :  { %7468 = sst [smem:[#allocation6_spill]] %s7464_s0 }
   0x2   :  { %s5603_s12 = smov 0   ;;  %s5605_s13 = smov 0  }
   0x3   :  { %s5607_s14 = smov 0   ;;  %s5609_s15 = smov 0  }
   0x4   :  { %s5611_s16 = smov 0   ;;  %s5613_s17 = smov 0  }
   0x5   :  { %s5615_s18 = smov 0   ;;  %s5617_s19 = smov 0  }
   0x6   :  { %s5619_s20 = smov 0   ;;  %s5621_s21 = smov 0  }
   0x7   :  { %s5623_s22 = smov 0  }
   0x8 LB: > { %s4238_s23 = sadd.s32 4294967295, %s5576_s22   ;;  %s22_s24 = sadd.s32 1, %s5568_s20  ;;  %s5576_s22 = sphi %s5623_s22, %s13_s22   ;;  %s5572_s21 = sphi %s5621_s21, %s7482_s21   ;;  %s5568_s20 = sphi %s5619_s20, %s7481_s20   ;;  %s5564_s19 = sphi %s5617_s19, %s7480_s19   ;;  %s5560_s18 = sphi %s5615_s18, %s7479_s18   ;;  %s5556_s17 = sphi %s5613_s17, %s7478_s17   ;;  %s5552_s16 = sphi %s5611_s16, %s7477_s16   ;;  %s5548_s15 = sphi %s5609_s15, %s7476_s15   ;;  %s5544_s14 = sphi %s5607_s14, %s7475_s14   ;;  %s5540_s13 = sphi %s5605_s13, %s7474_s13   ;;  %s5536_s12 = sphi %s5603_s12, %s7473_s12  }
   0x9   : > { %p23_p0 = scmp.ge.s32.totalorder %s22_s24, 2  ;;  %s25_s25 = sadd.s32 1, %s5572_s21 }
   0xa   : > { %s32_s26 = sadd.s32 1, %s5556_s17  ;;  %p39_p1 = scmp.ne.s32.totalorder %s5556_s17, %s5552_s16 }
   0xb   : > { %s7484_s24 = smov (%p23_p0, %s22_s24), 0  ;;  %s7486_s25 = smov (!%p23_p0, %s25_s25), %s5572_s21 }
   0xc   : > { %s29_s27 = ssub.s32 %s5568_s20, %s7484_s24  ;;  %p40_p2 = scmp.eq.s32.totalorder %s5576_s22, 0 }
   0xd   : > { %p27_p3 = scmp.ge.s32.totalorder %s7486_s25, 3  ;;  %p30_p4 = scmp.eq.s32.totalorder %s29_s27, 0 }
   0xe   : > { %p5670_p5 = por %p40_p2, %p39_p1  ;;  %s60_s29 = sadd.s32 1, %s5548_s15 }
   0xf   : > { %s7488_s25 = smov (%p27_p3, %s7486_s25), 0  ;;  %p67_p6 = scmp.ne.s32.totalorder %s5548_s15, %s5544_s14 }
  0x10   : > { %s5678_s30 = scalar_select %p30_p4, %s5556_s17, %s32_s26  }
  0x11   : > { %s56_s4 = ssub.s32 %s5572_s21, %s7488_s25  ;;  %p5684_p9 = por %p67_p6, %p40_p2 }
  0x12   : > { %s57_s5 = sor.u32 %s56_s4, %s29_s27  ;;  %p105_p7 = scmp.eq.s32.totalorder %s56_s4, 0 }
  0x13   : > { %p58_p8 = scmp.eq.s32.totalorder %s57_s5, 0  ;;  %s107_s7 = sadd.s32 1, %s5540_s13 }
  0x14   : > { %p117_p10 = scmp.ne.s32.totalorder %s5540_s13, %s5536_s12  ;;  %p118_p11 = scmp.eq.s32.totalorder %s4238_s23, 5 }
  0x15   : > { %s5692_s8 = scalar_select %p58_p8, %s5548_s15, %s60_s29  }
  0x16   : > { %s5695_s9 = scalar_select %p105_p7, %s5540_s13, %s107_s7  }
  0x17   : > { %p5697_p12 = por %p118_p11, %p117_p10  ;;  %p4241_p13 = scmp.ge.s32.totalorder %s5576_s22, 6 }
  0x19   : > { %143 = sbr.rel (%p4241_p13) target bundleno = 325 (0x145), region = 20 }
  0x20   : > { %146 = sbr.rel (!%p5670_p5) target bundleno = 85 (0x55), region = 24  ;;  %s148_s11 = sand.u32 (%p5670_p5), 1, %s5556_s17  }
  0x21   : > { %s4253_s26 = smul.u32 (%p5670_p5), 232, %s5568_s20  ;;  %s7472_s0 = sld [smem:[#allocation6_spill]] (%p5670_p5) }
  0x22   : > { %s5376_s27 = smul.u32 (%p5670_p5), 696, %s148_s11 }
  0x24   : > { %s5714_s23 = scalar_lea.vmem (%p5670_p5), [#allocation3], %s5376_s27 }
  0x27   : > { %s5709_s5 = scalar_lea.vmem %s7472_s0, %s4253_s26 }
  0x28   : > { %v166_v0 = vld [vmem:[%s5709_s5] sm:$0xff]  ;;  %v168_v1 = vld [vmem:[%s5709_s5 + $0x8] sm:$0xff]  ;;  %v170_v2 = vld [vmem:[%s5709_s5 + $0x10] sm:$0xff] }
  0x29   : > { %167 = vst [vmem:[%s5714_s23] sm:$0xff] %v166_v0  ;;  %169 = vst [vmem:[%s5714_s23 + $0x8] sm:$0xff] %v168_v1  ;;  %v172_v3 = vld [vmem:[%s5709_s5 + $0x18] sm:$0xff]  ;;  %v174_v4 = vld [vmem:[%s5709_s5 + $0x20] sm:$0xff] }
  0x2a   : > { %171 = vst [vmem:[%s5714_s23 + $0x10] sm:$0xff] %v170_v2  ;;  %v176_v5 = vld [vmem:[%s5709_s5 + $0x28] sm:$0xff]  ;;  %173 = vst [vmem:[%s5714_s23 + $0x18] sm:$0xff] %v172_v3  ;;  %v178_v6 = vld [vmem:[%s5709_s5 + $0x30] sm:$0xff] }
  0x2b   : > { %175 = vst [vmem:[%s5714_s23 + $0x20] sm:$0xff] %v174_v4  ;;  %177 = vst [vmem:[%s5714_s23 + $0x28] sm:$0xff] %v176_v5  ;;  %v180_v7 = vld [vmem:[%s5709_s5 + $0x38] sm:$0xff]  ;;  %v182_v8 = vld [vmem:[%s5709_s5 + $0x40] sm:$0xff] }
  0x2c   : > { %179 = vst [vmem:[%s5714_s23 + $0x30] sm:$0xff] %v178_v6  ;;  %181 = vst [vmem:[%s5714_s23 + $0x38] sm:$0xff] %v180_v7  ;;  %v184_v9 = vld [vmem:[%s5709_s5 + $0x48] sm:$0xff]  ;;  %v186_v10 = vld [vmem:[%s5709_s5 + $0x50] sm:$0xff] }
  0x2d   : > { %183 = vst [vmem:[%s5714_s23 + $0x40] sm:$0xff] %v182_v8  ;;  %v188_v11 = vld [vmem:[%s5709_s5 + $0x58] sm:$0xff]  ;;  %185 = vst [vmem:[%s5714_s23 + $0x48] sm:$0xff] %v184_v9  ;;  %v190_v12 = vld [vmem:[%s5709_s5 + $0x60] sm:$0xff] }
  0x2e   : > { %187 = vst [vmem:[%s5714_s23 + $0x50] sm:$0xff] %v186_v10  ;;  %189 = vst [vmem:[%s5714_s23 + $0x58] sm:$0xff] %v188_v11  ;;  %v192_v13 = vld [vmem:[%s5709_s5 + $0x68] sm:$0xff]  ;;  %v194_v14 = vld [vmem:[%s5709_s5 + $0x70] sm:$0xff] }
  0x2f   : > { %191 = vst [vmem:[%s5714_s23 + $0x60] sm:$0xff] %v190_v12  ;;  %193 = vst [vmem:[%s5714_s23 + $0x68] sm:$0xff] %v192_v13  ;;  %v196_v15 = vld [vmem:[%s5709_s5 + $0x78] sm:$0xff]  ;;  %v198_v16 = vld [vmem:[%s5709_s5 + $0x80] sm:$0xff] }
  0x30   : > { %195 = vst [vmem:[%s5714_s23 + $0x70] sm:$0xff] %v194_v14  ;;  %v200_v17 = vld [vmem:[%s5709_s5 + $0x88] sm:$0xff]  ;;  %197 = vst [vmem:[%s5714_s23 + $0x78] sm:$0xff] %v196_v15  ;;  %v202_v18 = vld [vmem:[%s5709_s5 + $0x90] sm:$0xff] }
  0x31   : > { %199 = vst [vmem:[%s5714_s23 + $0x80] sm:$0xff] %v198_v16  ;;  %201 = vst [vmem:[%s5714_s23 + $0x88] sm:$0xff] %v200_v17  ;;  %v204_v19 = vld [vmem:[%s5709_s5 + $0x98] sm:$0xff]  ;;  %v206_v20 = vld [vmem:[%s5709_s5 + $0xa0] sm:$0xff] }
  0x32   : > { %203 = vst [vmem:[%s5714_s23 + $0x90] sm:$0xff] %v202_v18  ;;  %205 = vst [vmem:[%s5714_s23 + $0x98] sm:$0xff] %v204_v19  ;;  %v208_v21 = vld [vmem:[%s5709_s5 + $0xa8] sm:$0xff]  ;;  %v210_v22 = vld [vmem:[%s5709_s5 + $0xb0] sm:$0xff] }
  0x33   : > { %207 = vst [vmem:[%s5714_s23 + $0xa0] sm:$0xff] %v206_v20  ;;  %v212_v23 = vld [vmem:[%s5709_s5 + $0xb8] sm:$0xff]  ;;  %209 = vst [vmem:[%s5714_s23 + $0xa8] sm:$0xff] %v208_v21  ;;  %v214_v24 = vld [vmem:[%s5709_s5 + $0xc0] sm:$0xff] }
  0x34   : > { %211 = vst [vmem:[%s5714_s23 + $0xb0] sm:$0xff] %v210_v22  ;;  %213 = vst [vmem:[%s5714_s23 + $0xb8] sm:$0xff] %v212_v23  ;;  %v216_v25 = vld [vmem:[%s5709_s5 + $0xc8] sm:$0xff]  ;;  %v218_v26 = vld [vmem:[%s5709_s5 + $0xd0] sm:$0xff] }
  0x35   : > { %215 = vst [vmem:[%s5714_s23 + $0xc0] sm:$0xff] %v214_v24  ;;  %217 = vst [vmem:[%s5714_s23 + $0xc8] sm:$0xff] %v216_v25  ;;  %v220_v27 = vld [vmem:[%s5709_s5 + $0xd8] sm:$0xff]  ;;  %v222_v28 = vld [vmem:[%s5709_s5 + $0xe0] sm:$0xff] }
  0x36   : > { %219 = vst [vmem:[%s5714_s23 + $0xd0] sm:$0xff] %v218_v26  ;;  %v224_v29 = vld [vmem:[%s5709_s5 + $0x1d0] sm:$0xff]  ;;  %221 = vst [vmem:[%s5714_s23 + $0xd8] sm:$0xff] %v220_v27  ;;  %v226_v30 = vld [vmem:[%s5709_s5 + $0x1d8] sm:$0xff] }
  0x37   : > { %223 = vst [vmem:[%s5714_s23 + $0xe0] sm:$0xff] %v222_v28  ;;  %225 = vst [vmem:[%s5714_s23 + $0xe8] sm:$0xff] %v224_v29  ;;  %v228_v31 = vld [vmem:[%s5709_s5 + $0x1e0] sm:$0xff]  ;;  %v230_v32 = vld [vmem:[%s5709_s5 + $0x1e8] sm:$0xff] }
  0x38   : > { %227 = vst [vmem:[%s5714_s23 + $0xf0] sm:$0xff] %v226_v30  ;;  %229 = vst [vmem:[%s5714_s23 + $0xf8] sm:$0xff] %v228_v31  ;;  %v232_v33 = vld [vmem:[%s5709_s5 + $0x1f0] sm:$0xff]  ;;  %v234_v34 = vld [vmem:[%s5709_s5 + $0x1f8] sm:$0xff] }
  0x39   : > { %231 = vst [vmem:[%s5714_s23 + $0x100] sm:$0xff] %v230_v32  ;;  %v236_v35 = vld [vmem:[%s5709_s5 + $0x200] sm:$0xff]  ;;  %233 = vst [vmem:[%s5714_s23 + $0x108] sm:$0xff] %v232_v33  ;;  %v238_v36 = vld [vmem:[%s5709_s5 + $0x208] sm:$0xff] }
  0x3a   : > { %235 = vst [vmem:[%s5714_s23 + $0x110] sm:$0xff] %v234_v34  ;;  %237 = vst [vmem:[%s5714_s23 + $0x118] sm:$0xff] %v236_v35  ;;  %v240_v37 = vld [vmem:[%s5709_s5 + $0x210] sm:$0xff]  ;;  %v242_v38 = vld [vmem:[%s5709_s5 + $0x218] sm:$0xff] }
  0x3b   : > { %239 = vst [vmem:[%s5714_s23 + $0x120] sm:$0xff] %v238_v36  ;;  %241 = vst [vmem:[%s5714_s23 + $0x128] sm:$0xff] %v240_v37  ;;  %v244_v39 = vld [vmem:[%s5709_s5 + $0x220] sm:$0xff]  ;;  %v246_v40 = vld [vmem:[%s5709_s5 + $0x228] sm:$0xff] }
  0x3c   : > { %243 = vst [vmem:[%s5714_s23 + $0x130] sm:$0xff] %v242_v38  ;;  %v248_v41 = vld [vmem:[%s5709_s5 + $0x230] sm:$0xff]  ;;  %245 = vst [vmem:[%s5714_s23 + $0x138] sm:$0xff] %v244_v39  ;;  %v250_v42 = vld [vmem:[%s5709_s5 + $0x238] sm:$0xff] }
  0x3d   : > { %247 = vst [vmem:[%s5714_s23 + $0x140] sm:$0xff] %v246_v40  ;;  %249 = vst [vmem:[%s5714_s23 + $0x148] sm:$0xff] %v248_v41  ;;  %v252_v43 = vld [vmem:[%s5709_s5 + $0x240] sm:$0xff]  ;;  %v254_v44 = vld [vmem:[%s5709_s5 + $0x248] sm:$0xff] }
  0x3e   : > { %251 = vst [vmem:[%s5714_s23 + $0x150] sm:$0xff] %v250_v42  ;;  %253 = vst [vmem:[%s5714_s23 + $0x158] sm:$0xff] %v252_v43  ;;  %v256_v45 = vld [vmem:[%s5709_s5 + $0x250] sm:$0xff]  ;;  %v258_v46 = vld [vmem:[%s5709_s5 + $0x258] sm:$0xff] }
  0x3f   : > { %255 = vst [vmem:[%s5714_s23 + $0x160] sm:$0xff] %v254_v44  ;;  %v260_v47 = vld [vmem:[%s5709_s5 + $0x260] sm:$0xff]  ;;  %257 = vst [vmem:[%s5714_s23 + $0x168] sm:$0xff] %v256_v45  ;;  %v262_v48 = vld [vmem:[%s5709_s5 + $0x268] sm:$0xff] }
  0x40   : > { %259 = vst [vmem:[%s5714_s23 + $0x170] sm:$0xff] %v258_v46  ;;  %261 = vst [vmem:[%s5714_s23 + $0x178] sm:$0xff] %v260_v47  ;;  %v264_v49 = vld [vmem:[%s5709_s5 + $0x270] sm:$0xff]  ;;  %v266_v50 = vld [vmem:[%s5709_s5 + $0x278] sm:$0xff] }
  0x41   : > { %263 = vst [vmem:[%s5714_s23 + $0x180] sm:$0xff] %v262_v48  ;;  %265 = vst [vmem:[%s5714_s23 + $0x188] sm:$0xff] %v264_v49  ;;  %v268_v51 = vld [vmem:[%s5709_s5 + $0x280] sm:$0xff]  ;;  %v270_v52 = vld [vmem:[%s5709_s5 + $0x288] sm:$0xff] }
  0x42   : > { %267 = vst [vmem:[%s5714_s23 + $0x190] sm:$0xff] %v266_v50  ;;  %v272_v53 = vld [vmem:[%s5709_s5 + $0x290] sm:$0xff]  ;;  %269 = vst [vmem:[%s5714_s23 + $0x198] sm:$0xff] %v268_v51  ;;  %v274_v54 = vld [vmem:[%s5709_s5 + $0x298] sm:$0xff] }
  0x43   : > { %271 = vst [vmem:[%s5714_s23 + $0x1a0] sm:$0xff] %v270_v52  ;;  %273 = vst [vmem:[%s5714_s23 + $0x1a8] sm:$0xff] %v272_v53  ;;  %v276_v55 = vld [vmem:[%s5709_s5 + $0x2a0] sm:$0xff]  ;;  %v278_v56 = vld [vmem:[%s5709_s5 + $0x2a8] sm:$0xff] }
  0x44   : > { %275 = vst [vmem:[%s5714_s23 + $0x1b0] sm:$0xff] %v274_v54  ;;  %277 = vst [vmem:[%s5714_s23 + $0x1b8] sm:$0xff] %v276_v55  ;;  %v280_v57 = vld [vmem:[%s5709_s5 + $0x2b0] sm:$0xff]  ;;  %v282_v58 = vld [vmem:[%s5709_s5 + $0x3a0] sm:$0xff] }
  0x45   : > { %279 = vst [vmem:[%s5714_s23 + $0x1c0] sm:$0xff] %v278_v56  ;;  %v284_v59 = vld [vmem:[%s5709_s5 + $0x3a8] sm:$0xff]  ;;  %281 = vst [vmem:[%s5714_s23 + $0x1c8] sm:$0xff] %v280_v57  ;;  %v286_v60 = vld [vmem:[%s5709_s5 + $0x3b0] sm:$0xff] }
  0x46   : > { %283 = vst [vmem:[%s5714_s23 + $0x1d0] sm:$0xff] %v282_v58  ;;  %285 = vst [vmem:[%s5714_s23 + $0x1d8] sm:$0xff] %v284_v59  ;;  %v288_v61 = vld [vmem:[%s5709_s5 + $0x3b8] sm:$0xff]  ;;  %v290_v62 = vld [vmem:[%s5709_s5 + $0x3c0] sm:$0xff] }
  0x47   : > { %287 = vst [vmem:[%s5714_s23 + $0x1e0] sm:$0xff] %v286_v60  ;;  %289 = vst [vmem:[%s5714_s23 + $0x1e8] sm:$0xff] %v288_v61  ;;  %v292_v63 = vld [vmem:[%s5709_s5 + $0x3c8] sm:$0xff]  ;;  %v294_v0 = vld [vmem:[%s5709_s5 + $0x3d0] sm:$0xff] }
  0x48   : > { %291 = vst [vmem:[%s5714_s23 + $0x1f0] sm:$0xff] %v290_v62  ;;  %v296_v1 = vld [vmem:[%s5709_s5 + $0x3d8] sm:$0xff]  ;;  %293 = vst [vmem:[%s5714_s23 + $0x1f8] sm:$0xff] %v292_v63  ;;  %v298_v2 = vld [vmem:[%s5709_s5 + $0x3e0] sm:$0xff] }
  0x49   : > { %295 = vst [vmem:[%s5714_s23 + $0x200] sm:$0xff] %v294_v0  ;;  %297 = vst [vmem:[%s5714_s23 + $0x208] sm:$0xff] %v296_v1  ;;  %v300_v3 = vld [vmem:[%s5709_s5 + $0x3e8] sm:$0xff]  ;;  %v302_v4 = vld [vmem:[%s5709_s5 + $0x3f0] sm:$0xff] }
  0x4a   : > { %299 = vst [vmem:[%s5714_s23 + $0x210] sm:$0xff] %v298_v2  ;;  %301 = vst [vmem:[%s5714_s23 + $0x218] sm:$0xff] %v300_v3  ;;  %v304_v5 = vld [vmem:[%s5709_s5 + $0x3f8] sm:$0xff]  ;;  %v306_v6 = vld [vmem:[%s5709_s5 + $0x400] sm:$0xff] }
  0x4b   : > { %303 = vst [vmem:[%s5714_s23 + $0x220] sm:$0xff] %v302_v4  ;;  %v308_v7 = vld [vmem:[%s5709_s5 + $0x408] sm:$0xff]  ;;  %305 = vst [vmem:[%s5714_s23 + $0x228] sm:$0xff] %v304_v5  ;;  %v310_v8 = vld [vmem:[%s5709_s5 + $0x410] sm:$0xff] }
  0x4c   : > { %307 = vst [vmem:[%s5714_s23 + $0x230] sm:$0xff] %v306_v6  ;;  %309 = vst [vmem:[%s5714_s23 + $0x238] sm:$0xff] %v308_v7  ;;  %v312_v9 = vld [vmem:[%s5709_s5 + $0x418] sm:$0xff]  ;;  %v314_v10 = vld [vmem:[%s5709_s5 + $0x420] sm:$0xff] }
  0x4d   : > { %311 = vst [vmem:[%s5714_s23 + $0x240] sm:$0xff] %v310_v8  ;;  %313 = vst [vmem:[%s5714_s23 + $0x248] sm:$0xff] %v312_v9  ;;  %v316_v11 = vld [vmem:[%s5709_s5 + $0x428] sm:$0xff]  ;;  %v318_v12 = vld [vmem:[%s5709_s5 + $0x430] sm:$0xff] }
  0x4e   : > { %315 = vst [vmem:[%s5714_s23 + $0x250] sm:$0xff] %v314_v10  ;;  %v320_v13 = vld [vmem:[%s5709_s5 + $0x438] sm:$0xff]  ;;  %317 = vst [vmem:[%s5714_s23 + $0x258] sm:$0xff] %v316_v11  ;;  %v322_v14 = vld [vmem:[%s5709_s5 + $0x440] sm:$0xff] }
  0x4f   : > { %319 = vst [vmem:[%s5714_s23 + $0x260] sm:$0xff] %v318_v12  ;;  %321 = vst [vmem:[%s5714_s23 + $0x268] sm:$0xff] %v320_v13  ;;  %v324_v15 = vld [vmem:[%s5709_s5 + $0x448] sm:$0xff]  ;;  %v326_v16 = vld [vmem:[%s5709_s5 + $0x450] sm:$0xff] }
  0x50   : > { %323 = vst [vmem:[%s5714_s23 + $0x270] sm:$0xff] %v322_v14  ;;  %325 = vst [vmem:[%s5714_s23 + $0x278] sm:$0xff] %v324_v15  ;;  %v328_v17 = vld [vmem:[%s5709_s5 + $0x458] sm:$0xff]  ;;  %v330_v18 = vld [vmem:[%s5709_s5 + $0x460] sm:$0xff] }
  0x51   : > { %327 = vst [vmem:[%s5714_s23 + $0x280] sm:$0xff] %v326_v16  ;;  %v332_v19 = vld [vmem:[%s5709_s5 + $0x468] sm:$0xff]  ;;  %329 = vst [vmem:[%s5714_s23 + $0x288] sm:$0xff] %v328_v17  ;;  %v334_v20 = vld [vmem:[%s5709_s5 + $0x470] sm:$0xff] }
  0x52   : > { %331 = vst [vmem:[%s5714_s23 + $0x290] sm:$0xff] %v330_v18  ;;  %333 = vst [vmem:[%s5714_s23 + $0x298] sm:$0xff] %v332_v19  ;;  %v336_v21 = vld [vmem:[%s5709_s5 + $0x478] sm:$0xff]  ;;  %v338_v22 = vld [vmem:[%s5709_s5 + $0x480] sm:$0xff] }
  0x53   : > { %335 = vst [vmem:[%s5714_s23 + $0x2a0] sm:$0xff] %v334_v20  ;;  %337 = vst [vmem:[%s5714_s23 + $0x2a8] sm:$0xff] %v336_v21 }
  0x54   : > { %339 = vst [vmem:[%s5714_s23 + $0x2b0] sm:$0xff] %v338_v22 }
  0x55 PF: > { %345 = sbr.rel (!%p5684_p9) target bundleno = 325 (0x145), region = 47  ;;  %s347_s28 = sand.u32 (%p5684_p9), 1, %s5548_s15  }
  0x56   : > { %s5377_s7 = smul.u32 (%p5684_p9), 3712, %s347_s28 }
  0x57   : > { %s5382_s11 = smul.u32 (%p5684_p9), 1392, %s5568_s20 }
  0x58   : > { %s5900_s6 = scalar_lea.vmem (%p5684_p9), [#allocation4], %s5377_s7 }
  0x59   : > { %s352_s26 = sadd.s32 (%p5684_p9), %s5572_s21, %s5382_s11 }
  0x5a   : > { %s4243_s27 = sshll.u32 (%p5684_p9), %s352_s26, 3 }
  0x5b   : > { %s5895_s0 = scalar_lea.vmem (%p5684_p9), %s7465_s1, %s4243_s27 }
  0x5c   : > { %v1308_v23 = vld [vmem:[%s5895_s0] sm:$0xff]  ;;  %v1310_v24 = vld [vmem:[%s5895_s0 + $0x18] sm:$0xff]  ;;  %v1312_v25 = vld [vmem:[%s5895_s0 + $0x30] sm:$0xff] }
  0x5d   : > { %1309 = vst [vmem:[%s5900_s6] sm:$0xff] %v1308_v23  ;;  %1311 = vst [vmem:[%s5900_s6 + $0x8] sm:$0xff] %v1310_v24  ;;  %v1314_v26 = vld [vmem:[%s5895_s0 + $0x48] sm:$0xff]  ;;  %v1316_v27 = vld [vmem:[%s5895_s0 + $0x60] sm:$0xff] }
  0x5e   : > { %1313 = vst [vmem:[%s5900_s6 + $0x10] sm:$0xff] %v1312_v25  ;;  %v1318_v28 = vld [vmem:[%s5895_s0 + $0x78] sm:$0xff]  ;;  %1315 = vst [vmem:[%s5900_s6 + $0x18] sm:$0xff] %v1314_v26  ;;  %v1320_v29 = vld [vmem:[%s5895_s0 + $0x90] sm:$0xff] }
  0x5f   : > { %1317 = vst [vmem:[%s5900_s6 + $0x20] sm:$0xff] %v1316_v27  ;;  %1319 = vst [vmem:[%s5900_s6 + $0x28] sm:$0xff] %v1318_v28  ;;  %v1322_v30 = vld [vmem:[%s5895_s0 + $0xa8] sm:$0xff]  ;;  %v1324_v31 = vld [vmem:[%s5895_s0 + $0xc0] sm:$0xff] }
  0x60   : > { %1321 = vst [vmem:[%s5900_s6 + $0x30] sm:$0xff] %v1320_v29  ;;  %1323 = vst [vmem:[%s5900_s6 + $0x38] sm:$0xff] %v1322_v30  ;;  %v1326_v32 = vld [vmem:[%s5895_s0 + $0xd8] sm:$0xff]  ;;  %v1328_v33 = vld [vmem:[%s5895_s0 + $0xf0] sm:$0xff] }
  0x61   : > { %1325 = vst [vmem:[%s5900_s6 + $0x40] sm:$0xff] %v1324_v31  ;;  %v1330_v34 = vld [vmem:[%s5895_s0 + $0x108] sm:$0xff]  ;;  %1327 = vst [vmem:[%s5900_s6 + $0x48] sm:$0xff] %v1326_v32  ;;  %v1332_v35 = vld [vmem:[%s5895_s0 + $0x120] sm:$0xff] }
  0x62   : > { %1329 = vst [vmem:[%s5900_s6 + $0x50] sm:$0xff] %v1328_v33  ;;  %1331 = vst [vmem:[%s5900_s6 + $0x58] sm:$0xff] %v1330_v34  ;;  %v1334_v36 = vld [vmem:[%s5895_s0 + $0x138] sm:$0xff]  ;;  %v1336_v37 = vld [vmem:[%s5895_s0 + $0x150] sm:$0xff] }
  0x63   : > { %1333 = vst [vmem:[%s5900_s6 + $0x60] sm:$0xff] %v1332_v35  ;;  %1335 = vst [vmem:[%s5900_s6 + $0x68] sm:$0xff] %v1334_v36  ;;  %v1338_v38 = vld [vmem:[%s5895_s0 + $0x168] sm:$0xff]  ;;  %v1340_v39 = vld [vmem:[%s5895_s0 + $0x180] sm:$0xff] }
  0x64   : > { %1337 = vst [vmem:[%s5900_s6 + $0x70] sm:$0xff] %v1336_v37  ;;  %v1342_v40 = vld [vmem:[%s5895_s0 + $0x198] sm:$0xff]  ;;  %1339 = vst [vmem:[%s5900_s6 + $0x78] sm:$0xff] %v1338_v38  ;;  %v1344_v41 = vld [vmem:[%s5895_s0 + $0x1b0] sm:$0xff] }
  0x65   : > { %1341 = vst [vmem:[%s5900_s6 + $0x80] sm:$0xff] %v1340_v39  ;;  %1343 = vst [vmem:[%s5900_s6 + $0x88] sm:$0xff] %v1342_v40  ;;  %v1346_v42 = vld [vmem:[%s5895_s0 + $0x1c8] sm:$0xff]  ;;  %v1348_v43 = vld [vmem:[%s5895_s0 + $0x1e0] sm:$0xff] }
  0x66   : > { %1345 = vst [vmem:[%s5900_s6 + $0x90] sm:$0xff] %v1344_v41  ;;  %1347 = vst [vmem:[%s5900_s6 + $0x98] sm:$0xff] %v1346_v42  ;;  %v1350_v44 = vld [vmem:[%s5895_s0 + $0x1f8] sm:$0xff]  ;;  %v1352_v45 = vld [vmem:[%s5895_s0 + $0x210] sm:$0xff] }
  0x67   : > { %1349 = vst [vmem:[%s5900_s6 + $0xa0] sm:$0xff] %v1348_v43  ;;  %v1354_v46 = vld [vmem:[%s5895_s0 + $0x228] sm:$0xff]  ;;  %1351 = vst [vmem:[%s5900_s6 + $0xa8] sm:$0xff] %v1350_v44  ;;  %v1356_v47 = vld [vmem:[%s5895_s0 + $0x240] sm:$0xff] }
  0x68   : > { %1353 = vst [vmem:[%s5900_s6 + $0xb0] sm:$0xff] %v1352_v45  ;;  %1355 = vst [vmem:[%s5900_s6 + $0xb8] sm:$0xff] %v1354_v46  ;;  %v1358_v48 = vld [vmem:[%s5895_s0 + $0x258] sm:$0xff]  ;;  %v1360_v49 = vld [vmem:[%s5895_s0 + $0x270] sm:$0xff] }
  0x69   : > { %1357 = vst [vmem:[%s5900_s6 + $0xc0] sm:$0xff] %v1356_v47  ;;  %1359 = vst [vmem:[%s5900_s6 + $0xc8] sm:$0xff] %v1358_v48  ;;  %v1362_v50 = vld [vmem:[%s5895_s0 + $0x288] sm:$0xff]  ;;  %v1364_v51 = vld [vmem:[%s5895_s0 + $0x2a0] sm:$0xff] }
  0x6a   : > { %1361 = vst [vmem:[%s5900_s6 + $0xd0] sm:$0xff] %v1360_v49  ;;  %v1366_v52 = vld [vmem:[%s5895_s0 + $0x2b8] sm:$0xff]  ;;  %1363 = vst [vmem:[%s5900_s6 + $0xd8] sm:$0xff] %v1362_v50  ;;  %v1368_v53 = vld [vmem:[%s5895_s0 + $0x2d0] sm:$0xff] }
  0x6b   : > { %1365 = vst [vmem:[%s5900_s6 + $0xe0] sm:$0xff] %v1364_v51  ;;  %1367 = vst [vmem:[%s5900_s6 + $0xe8] sm:$0xff] %v1366_v52  ;;  %v1370_v54 = vld [vmem:[%s5895_s0 + $0x2e8] sm:$0xff]  ;;  %v1372_v55 = vld [vmem:[%s5895_s0 + $0x300] sm:$0xff] }
  0x6c   : > { %1369 = vst [vmem:[%s5900_s6 + $0xf0] sm:$0xff] %v1368_v53  ;;  %1371 = vst [vmem:[%s5900_s6 + $0xf8] sm:$0xff] %v1370_v54  ;;  %v1374_v56 = vld [vmem:[%s5895_s0 + $0x318] sm:$0xff]  ;;  %v1376_v57 = vld [vmem:[%s5895_s0 + $0x330] sm:$0xff] }
  0x6d   : > { %1373 = vst [vmem:[%s5900_s6 + $0x100] sm:$0xff] %v1372_v55  ;;  %v1378_v58 = vld [vmem:[%s5895_s0 + $0x348] sm:$0xff]  ;;  %1375 = vst [vmem:[%s5900_s6 + $0x108] sm:$0xff] %v1374_v56  ;;  %v1380_v59 = vld [vmem:[%s5895_s0 + $0x360] sm:$0xff] }
  0x6e   : > { %1377 = vst [vmem:[%s5900_s6 + $0x110] sm:$0xff] %v1376_v57  ;;  %1379 = vst [vmem:[%s5900_s6 + $0x118] sm:$0xff] %v1378_v58  ;;  %v1382_v60 = vld [vmem:[%s5895_s0 + $0x378] sm:$0xff]  ;;  %v1384_v61 = vld [vmem:[%s5895_s0 + $0x390] sm:$0xff] }
  0x6f   : > { %1381 = vst [vmem:[%s5900_s6 + $0x120] sm:$0xff] %v1380_v59  ;;  %1383 = vst [vmem:[%s5900_s6 + $0x128] sm:$0xff] %v1382_v60  ;;  %v1386_v62 = vld [vmem:[%s5895_s0 + $0x3a8] sm:$0xff]  ;;  %v1388_v63 = vld [vmem:[%s5895_s0 + $0x3c0] sm:$0xff] }
  0x70   : > { %1385 = vst [vmem:[%s5900_s6 + $0x130] sm:$0xff] %v1384_v61  ;;  %v1390_v0 = vld [vmem:[%s5895_s0 + $0x3d8] sm:$0xff]  ;;  %1387 = vst [vmem:[%s5900_s6 + $0x138] sm:$0xff] %v1386_v62  ;;  %v1392_v1 = vld [vmem:[%s5895_s0 + $0x3f0] sm:$0xff] }
  0x71   : > { %1389 = vst [vmem:[%s5900_s6 + $0x140] sm:$0xff] %v1388_v63  ;;  %1391 = vst [vmem:[%s5900_s6 + $0x148] sm:$0xff] %v1390_v0  ;;  %v1394_v2 = vld [vmem:[%s5895_s0 + $0x408] sm:$0xff]  ;;  %v1396_v3 = vld [vmem:[%s5895_s0 + $0x420] sm:$0xff] }
  0x72   : > { %1393 = vst [vmem:[%s5900_s6 + $0x150] sm:$0xff] %v1392_v1  ;;  %1395 = vst [vmem:[%s5900_s6 + $0x158] sm:$0xff] %v1394_v2  ;;  %v1398_v4 = vld [vmem:[%s5895_s0 + $0x438] sm:$0xff]  ;;  %v1400_v5 = vld [vmem:[%s5895_s0 + $0x450] sm:$0xff] }
  0x73   : > { %1397 = vst [vmem:[%s5900_s6 + $0x160] sm:$0xff] %v1396_v3  ;;  %v1402_v6 = vld [vmem:[%s5895_s0 + $0x468] sm:$0xff]  ;;  %1399 = vst [vmem:[%s5900_s6 + $0x168] sm:$0xff] %v1398_v4  ;;  %v1404_v7 = vld [vmem:[%s5895_s0 + $0x480] sm:$0xff] }
  0x74   : > { %1401 = vst [vmem:[%s5900_s6 + $0x170] sm:$0xff] %v1400_v5  ;;  %1403 = vst [vmem:[%s5900_s6 + $0x178] sm:$0xff] %v1402_v6  ;;  %v1406_v8 = vld [vmem:[%s5895_s0 + $0x498] sm:$0xff]  ;;  %v1408_v9 = vld [vmem:[%s5895_s0 + $0x4b0] sm:$0xff] }
  0x75   : > { %1405 = vst [vmem:[%s5900_s6 + $0x180] sm:$0xff] %v1404_v7  ;;  %1407 = vst [vmem:[%s5900_s6 + $0x188] sm:$0xff] %v1406_v8  ;;  %v1410_v10 = vld [vmem:[%s5895_s0 + $0x4c8] sm:$0xff]  ;;  %v1412_v11 = vld [vmem:[%s5895_s0 + $0x4e0] sm:$0xff] }
  0x76   : > { %1409 = vst [vmem:[%s5900_s6 + $0x190] sm:$0xff] %v1408_v9  ;;  %v1414_v12 = vld [vmem:[%s5895_s0 + $0x4f8] sm:$0xff]  ;;  %1411 = vst [vmem:[%s5900_s6 + $0x198] sm:$0xff] %v1410_v10  ;;  %v1416_v13 = vld [vmem:[%s5895_s0 + $0x510] sm:$0xff] }
  0x77   : > { %1413 = vst [vmem:[%s5900_s6 + $0x1a0] sm:$0xff] %v1412_v11  ;;  %1415 = vst [vmem:[%s5900_s6 + $0x1a8] sm:$0xff] %v1414_v12  ;;  %v1418_v14 = vld [vmem:[%s5895_s0 + $0x528] sm:$0xff]  ;;  %v1420_v15 = vld [vmem:[%s5895_s0 + $0x540] sm:$0xff] }
  0x78   : > { %1417 = vst [vmem:[%s5900_s6 + $0x1b0] sm:$0xff] %v1416_v13  ;;  %1419 = vst [vmem:[%s5900_s6 + $0x1b8] sm:$0xff] %v1418_v14  ;;  %v1422_v16 = vld [vmem:[%s5895_s0 + $0x558] sm:$0xff]  ;;  %v1424_v17 = vld [vmem:[%s5895_s0 + $0x570] sm:$0xff] }
  0x79   : > { %1421 = vst [vmem:[%s5900_s6 + $0x1c0] sm:$0xff] %v1420_v15  ;;  %v1426_v18 = vld [vmem:[%s5895_s0 + $0x588] sm:$0xff]  ;;  %1423 = vst [vmem:[%s5900_s6 + $0x1c8] sm:$0xff] %v1422_v16  ;;  %v1428_v19 = vld [vmem:[%s5895_s0 + $0x5a0] sm:$0xff] }
  0x7a   : > { %1425 = vst [vmem:[%s5900_s6 + $0x1d0] sm:$0xff] %v1424_v17  ;;  %1427 = vst [vmem:[%s5900_s6 + $0x1d8] sm:$0xff] %v1426_v18  ;;  %v1430_v20 = vld [vmem:[%s5895_s0 + $0x5b8] sm:$0xff]  ;;  %v1432_v21 = vld [vmem:[%s5895_s0 + $0x5d0] sm:$0xff] }
  0x7b   : > { %1429 = vst [vmem:[%s5900_s6 + $0x1e0] sm:$0xff] %v1428_v19  ;;  %1431 = vst [vmem:[%s5900_s6 + $0x1e8] sm:$0xff] %v1430_v20  ;;  %v1434_v22 = vld [vmem:[%s5895_s0 + $0x5e8] sm:$0xff]  ;;  %v1436_v23 = vld [vmem:[%s5895_s0 + $0x600] sm:$0xff] }
  0x7c   : > { %1433 = vst [vmem:[%s5900_s6 + $0x1f0] sm:$0xff] %v1432_v21  ;;  %v1438_v24 = vld [vmem:[%s5895_s0 + $0x618] sm:$0xff]  ;;  %1435 = vst [vmem:[%s5900_s6 + $0x1f8] sm:$0xff] %v1434_v22  ;;  %v1440_v25 = vld [vmem:[%s5895_s0 + $0x630] sm:$0xff] }
  0x7d   : > { %1437 = vst [vmem:[%s5900_s6 + $0x200] sm:$0xff] %v1436_v23  ;;  %1439 = vst [vmem:[%s5900_s6 + $0x208] sm:$0xff] %v1438_v24  ;;  %v1442_v26 = vld [vmem:[%s5895_s0 + $0x648] sm:$0xff]  ;;  %v1444_v27 = vld [vmem:[%s5895_s0 + $0x660] sm:$0xff] }
  0x7e   : > { %1441 = vst [vmem:[%s5900_s6 + $0x210] sm:$0xff] %v1440_v25  ;;  %1443 = vst [vmem:[%s5900_s6 + $0x218] sm:$0xff] %v1442_v26  ;;  %v1446_v28 = vld [vmem:[%s5895_s0 + $0x678] sm:$0xff]  ;;  %v1448_v29 = vld [vmem:[%s5895_s0 + $0x690] sm:$0xff] }
  0x7f   : > { %1445 = vst [vmem:[%s5900_s6 + $0x220] sm:$0xff] %v1444_v27  ;;  %v1450_v30 = vld [vmem:[%s5895_s0 + $0x6a8] sm:$0xff]  ;;  %1447 = vst [vmem:[%s5900_s6 + $0x228] sm:$0xff] %v1446_v28  ;;  %v1452_v31 = vld [vmem:[%s5895_s0 + $0x6c0] sm:$0xff] }
  0x80   : > { %1449 = vst [vmem:[%s5900_s6 + $0x230] sm:$0xff] %v1448_v29  ;;  %1451 = vst [vmem:[%s5900_s6 + $0x238] sm:$0xff] %v1450_v30  ;;  %v1454_v32 = vld [vmem:[%s5895_s0 + $0x6d8] sm:$0xff]  ;;  %v1456_v33 = vld [vmem:[%s5895_s0 + $0x6f0] sm:$0xff] }
  0x81   : > { %1453 = vst [vmem:[%s5900_s6 + $0x240] sm:$0xff] %v1452_v31  ;;  %1455 = vst [vmem:[%s5900_s6 + $0x248] sm:$0xff] %v1454_v32  ;;  %v1458_v34 = vld [vmem:[%s5895_s0 + $0x708] sm:$0xff]  ;;  %v1460_v35 = vld [vmem:[%s5895_s0 + $0x720] sm:$0xff] }
  0x82   : > { %1457 = vst [vmem:[%s5900_s6 + $0x250] sm:$0xff] %v1456_v33  ;;  %v1462_v36 = vld [vmem:[%s5895_s0 + $0x738] sm:$0xff]  ;;  %1459 = vst [vmem:[%s5900_s6 + $0x258] sm:$0xff] %v1458_v34  ;;  %v1464_v37 = vld [vmem:[%s5895_s0 + $0x750] sm:$0xff] }
  0x83   : > { %1461 = vst [vmem:[%s5900_s6 + $0x260] sm:$0xff] %v1460_v35  ;;  %1463 = vst [vmem:[%s5900_s6 + $0x268] sm:$0xff] %v1462_v36  ;;  %v1466_v38 = vld [vmem:[%s5895_s0 + $0x768] sm:$0xff]  ;;  %v1468_v39 = vld [vmem:[%s5895_s0 + $0x780] sm:$0xff] }
  0x84   : > { %1465 = vst [vmem:[%s5900_s6 + $0x270] sm:$0xff] %v1464_v37  ;;  %1467 = vst [vmem:[%s5900_s6 + $0x278] sm:$0xff] %v1466_v38  ;;  %v1470_v40 = vld [vmem:[%s5895_s0 + $0x798] sm:$0xff]  ;;  %v1472_v41 = vld [vmem:[%s5895_s0 + $0x7b0] sm:$0xff] }
  0x85   : > { %1469 = vst [vmem:[%s5900_s6 + $0x280] sm:$0xff] %v1468_v39  ;;  %v1474_v42 = vld [vmem:[%s5895_s0 + $0x7c8] sm:$0xff]  ;;  %1471 = vst [vmem:[%s5900_s6 + $0x288] sm:$0xff] %v1470_v40  ;;  %v1476_v43 = vld [vmem:[%s5895_s0 + $0x7e0] sm:$0xff] }
  0x86   : > { %1473 = vst [vmem:[%s5900_s6 + $0x290] sm:$0xff] %v1472_v41  ;;  %1475 = vst [vmem:[%s5900_s6 + $0x298] sm:$0xff] %v1474_v42  ;;  %v1478_v44 = vld [vmem:[%s5895_s0 + $0x7f8] sm:$0xff]  ;;  %v1480_v45 = vld [vmem:[%s5895_s0 + $0x810] sm:$0xff] }
  0x87   : > { %1477 = vst [vmem:[%s5900_s6 + $0x2a0] sm:$0xff] %v1476_v43  ;;  %1479 = vst [vmem:[%s5900_s6 + $0x2a8] sm:$0xff] %v1478_v44  ;;  %v1482_v46 = vld [vmem:[%s5895_s0 + $0x828] sm:$0xff]  ;;  %v1484_v47 = vld [vmem:[%s5895_s0 + $0x840] sm:$0xff] }
  0x88   : > { %1481 = vst [vmem:[%s5900_s6 + $0x2b0] sm:$0xff] %v1480_v45  ;;  %v1486_v48 = vld [vmem:[%s5895_s0 + $0x858] sm:$0xff]  ;;  %1483 = vst [vmem:[%s5900_s6 + $0x2b8] sm:$0xff] %v1482_v46  ;;  %v1488_v49 = vld [vmem:[%s5895_s0 + $0x870] sm:$0xff] }
  0x89   : > { %1485 = vst [vmem:[%s5900_s6 + $0x2c0] sm:$0xff] %v1484_v47  ;;  %1487 = vst [vmem:[%s5900_s6 + $0x2c8] sm:$0xff] %v1486_v48  ;;  %v1490_v50 = vld [vmem:[%s5895_s0 + $0x888] sm:$0xff]  ;;  %v1492_v51 = vld [vmem:[%s5895_s0 + $0x8a0] sm:$0xff] }
  0x8a   : > { %1489 = vst [vmem:[%s5900_s6 + $0x2d0] sm:$0xff] %v1488_v49  ;;  %1491 = vst [vmem:[%s5900_s6 + $0x2d8] sm:$0xff] %v1490_v50  ;;  %v1494_v52 = vld [vmem:[%s5895_s0 + $0x8b8] sm:$0xff]  ;;  %v1496_v53 = vld [vmem:[%s5895_s0 + $0x8d0] sm:$0xff] }
  0x8b   : > { %1493 = vst [vmem:[%s5900_s6 + $0x2e0] sm:$0xff] %v1492_v51  ;;  %v1498_v54 = vld [vmem:[%s5895_s0 + $0x8e8] sm:$0xff]  ;;  %1495 = vst [vmem:[%s5900_s6 + $0x2e8] sm:$0xff] %v1494_v52  ;;  %v1500_v55 = vld [vmem:[%s5895_s0 + $0x900] sm:$0xff] }
  0x8c   : > { %1497 = vst [vmem:[%s5900_s6 + $0x2f0] sm:$0xff] %v1496_v53  ;;  %1499 = vst [vmem:[%s5900_s6 + $0x2f8] sm:$0xff] %v1498_v54  ;;  %v1502_v56 = vld [vmem:[%s5895_s0 + $0x918] sm:$0xff]  ;;  %v1504_v57 = vld [vmem:[%s5895_s0 + $0x930] sm:$0xff] }
  0x8d   : > { %1501 = vst [vmem:[%s5900_s6 + $0x300] sm:$0xff] %v1500_v55  ;;  %1503 = vst [vmem:[%s5900_s6 + $0x308] sm:$0xff] %v1502_v56  ;;  %v1506_v58 = vld [vmem:[%s5895_s0 + $0x948] sm:$0xff]  ;;  %v1508_v59 = vld [vmem:[%s5895_s0 + $0x960] sm:$0xff] }
  0x8e   : > { %1505 = vst [vmem:[%s5900_s6 + $0x310] sm:$0xff] %v1504_v57  ;;  %v1510_v60 = vld [vmem:[%s5895_s0 + $0x978] sm:$0xff]  ;;  %1507 = vst [vmem:[%s5900_s6 + $0x318] sm:$0xff] %v1506_v58  ;;  %v1512_v61 = vld [vmem:[%s5895_s0 + $0x990] sm:$0xff] }
  0x8f   : > { %1509 = vst [vmem:[%s5900_s6 + $0x320] sm:$0xff] %v1508_v59  ;;  %1511 = vst [vmem:[%s5900_s6 + $0x328] sm:$0xff] %v1510_v60  ;;  %v1514_v62 = vld [vmem:[%s5895_s0 + $0x9a8] sm:$0xff]  ;;  %v1516_v63 = vld [vmem:[%s5895_s0 + $0x9c0] sm:$0xff] }
  0x90   : > { %1513 = vst [vmem:[%s5900_s6 + $0x330] sm:$0xff] %v1512_v61  ;;  %1515 = vst [vmem:[%s5900_s6 + $0x338] sm:$0xff] %v1514_v62  ;;  %v1518_v0 = vld [vmem:[%s5895_s0 + $0x9d8] sm:$0xff]  ;;  %v1520_v1 = vld [vmem:[%s5895_s0 + $0x9f0] sm:$0xff] }
  0x91   : > { %1517 = vst [vmem:[%s5900_s6 + $0x340] sm:$0xff] %v1516_v63  ;;  %v1522_v2 = vld [vmem:[%s5895_s0 + $0xa08] sm:$0xff]  ;;  %1519 = vst [vmem:[%s5900_s6 + $0x348] sm:$0xff] %v1518_v0  ;;  %v1524_v3 = vld [vmem:[%s5895_s0 + $0xa20] sm:$0xff] }
  0x92   : > { %1521 = vst [vmem:[%s5900_s6 + $0x350] sm:$0xff] %v1520_v1  ;;  %1523 = vst [vmem:[%s5900_s6 + $0x358] sm:$0xff] %v1522_v2  ;;  %v1526_v4 = vld [vmem:[%s5895_s0 + $0xa38] sm:$0xff]  ;;  %v1528_v5 = vld [vmem:[%s5895_s0 + $0xa50] sm:$0xff] }
  0x93   : > { %1525 = vst [vmem:[%s5900_s6 + $0x360] sm:$0xff] %v1524_v3  ;;  %1527 = vst [vmem:[%s5900_s6 + $0x368] sm:$0xff] %v1526_v4  ;;  %v1530_v6 = vld [vmem:[%s5895_s0 + $0xa68] sm:$0xff]  ;;  %v1532_v7 = vld [vmem:[%s5895_s0 + $0xa80] sm:$0xff] }
  0x94   : > { %1529 = vst [vmem:[%s5900_s6 + $0x370] sm:$0xff] %v1528_v5  ;;  %v1534_v8 = vld [vmem:[%s5895_s0 + $0xa98] sm:$0xff]  ;;  %1531 = vst [vmem:[%s5900_s6 + $0x378] sm:$0xff] %v1530_v6  ;;  %v1536_v9 = vld [vmem:[%s5895_s0 + $0xab0] sm:$0xff] }
  0x95   : > { %1533 = vst [vmem:[%s5900_s6 + $0x380] sm:$0xff] %v1532_v7  ;;  %1535 = vst [vmem:[%s5900_s6 + $0x388] sm:$0xff] %v1534_v8  ;;  %v1538_v10 = vld [vmem:[%s5895_s0 + $0xac8] sm:$0xff]  ;;  %v1540_v11 = vld [vmem:[%s5895_s0 + $0xae0] sm:$0xff] }
  0x96   : > { %1537 = vst [vmem:[%s5900_s6 + $0x390] sm:$0xff] %v1536_v9  ;;  %1539 = vst [vmem:[%s5900_s6 + $0x398] sm:$0xff] %v1538_v10  ;;  %v1542_v12 = vld [vmem:[%s5895_s0 + $0xaf8] sm:$0xff]  ;;  %v1544_v13 = vld [vmem:[%s5895_s0 + $0xb10] sm:$0xff] }
  0x97   : > { %1541 = vst [vmem:[%s5900_s6 + $0x3a0] sm:$0xff] %v1540_v11  ;;  %v1546_v14 = vld [vmem:[%s5895_s0 + $0xb28] sm:$0xff]  ;;  %1543 = vst [vmem:[%s5900_s6 + $0x3a8] sm:$0xff] %v1542_v12  ;;  %v1548_v15 = vld [vmem:[%s5895_s0 + $0xb40] sm:$0xff] }
  0x98   : > { %1545 = vst [vmem:[%s5900_s6 + $0x3b0] sm:$0xff] %v1544_v13  ;;  %1547 = vst [vmem:[%s5900_s6 + $0x3b8] sm:$0xff] %v1546_v14  ;;  %v1550_v16 = vld [vmem:[%s5895_s0 + $0xb58] sm:$0xff]  ;;  %v1552_v17 = vld [vmem:[%s5895_s0 + $0xb70] sm:$0xff] }
  0x99   : > { %1549 = vst [vmem:[%s5900_s6 + $0x3c0] sm:$0xff] %v1548_v15  ;;  %1551 = vst [vmem:[%s5900_s6 + $0x3c8] sm:$0xff] %v1550_v16  ;;  %v1554_v18 = vld [vmem:[%s5895_s0 + $0xb88] sm:$0xff]  ;;  %v1556_v19 = vld [vmem:[%s5895_s0 + $0xba0] sm:$0xff] }
  0x9a   : > { %1553 = vst [vmem:[%s5900_s6 + $0x3d0] sm:$0xff] %v1552_v17  ;;  %v1558_v20 = vld [vmem:[%s5895_s0 + $0xbb8] sm:$0xff]  ;;  %1555 = vst [vmem:[%s5900_s6 + $0x3d8] sm:$0xff] %v1554_v18  ;;  %v1560_v21 = vld [vmem:[%s5895_s0 + $0xbd0] sm:$0xff] }
  0x9b   : > { %1557 = vst [vmem:[%s5900_s6 + $0x3e0] sm:$0xff] %v1556_v19  ;;  %1559 = vst [vmem:[%s5900_s6 + $0x3e8] sm:$0xff] %v1558_v20  ;;  %v1562_v22 = vld [vmem:[%s5895_s0 + $0xbe8] sm:$0xff]  ;;  %v1564_v23 = vld [vmem:[%s5895_s0 + $0xc00] sm:$0xff] }
  0x9c   : > { %1561 = vst [vmem:[%s5900_s6 + $0x3f0] sm:$0xff] %v1560_v21  ;;  %1563 = vst [vmem:[%s5900_s6 + $0x3f8] sm:$0xff] %v1562_v22  ;;  %v1566_v24 = vld [vmem:[%s5895_s0 + $0xc18] sm:$0xff]  ;;  %v1568_v25 = vld [vmem:[%s5895_s0 + $0xc30] sm:$0xff] }
  0x9d   : > { %1565 = vst [vmem:[%s5900_s6 + $0x400] sm:$0xff] %v1564_v23  ;;  %v1570_v26 = vld [vmem:[%s5895_s0 + $0xc48] sm:$0xff]  ;;  %1567 = vst [vmem:[%s5900_s6 + $0x408] sm:$0xff] %v1566_v24  ;;  %v1572_v27 = vld [vmem:[%s5895_s0 + $0xc60] sm:$0xff] }
  0x9e   : > { %1569 = vst [vmem:[%s5900_s6 + $0x410] sm:$0xff] %v1568_v25  ;;  %1571 = vst [vmem:[%s5900_s6 + $0x418] sm:$0xff] %v1570_v26  ;;  %v1574_v28 = vld [vmem:[%s5895_s0 + $0xc78] sm:$0xff]  ;;  %v1576_v29 = vld [vmem:[%s5895_s0 + $0xc90] sm:$0xff] }
  0x9f   : > { %1573 = vst [vmem:[%s5900_s6 + $0x420] sm:$0xff] %v1572_v27  ;;  %1575 = vst [vmem:[%s5900_s6 + $0x428] sm:$0xff] %v1574_v28  ;;  %v1578_v30 = vld [vmem:[%s5895_s0 + $0xca8] sm:$0xff]  ;;  %v1580_v31 = vld [vmem:[%s5895_s0 + $0xcc0] sm:$0xff] }
  0xa0   : > { %1577 = vst [vmem:[%s5900_s6 + $0x430] sm:$0xff] %v1576_v29  ;;  %v1582_v32 = vld [vmem:[%s5895_s0 + $0xcd8] sm:$0xff]  ;;  %1579 = vst [vmem:[%s5900_s6 + $0x438] sm:$0xff] %v1578_v30  ;;  %v1584_v33 = vld [vmem:[%s5895_s0 + $0xcf0] sm:$0xff] }
  0xa1   : > { %1581 = vst [vmem:[%s5900_s6 + $0x440] sm:$0xff] %v1580_v31  ;;  %1583 = vst [vmem:[%s5900_s6 + $0x448] sm:$0xff] %v1582_v32  ;;  %v1586_v34 = vld [vmem:[%s5895_s0 + $0xd08] sm:$0xff]  ;;  %v1588_v35 = vld [vmem:[%s5895_s0 + $0xd20] sm:$0xff] }
  0xa2   : > { %1585 = vst [vmem:[%s5900_s6 + $0x450] sm:$0xff] %v1584_v33  ;;  %1587 = vst [vmem:[%s5900_s6 + $0x458] sm:$0xff] %v1586_v34  ;;  %v1590_v36 = vld [vmem:[%s5895_s0 + $0xd38] sm:$0xff]  ;;  %v1592_v37 = vld [vmem:[%s5895_s0 + $0xd50] sm:$0xff] }
  0xa3   : > { %1589 = vst [vmem:[%s5900_s6 + $0x460] sm:$0xff] %v1588_v35  ;;  %v1594_v38 = vld [vmem:[%s5895_s0 + $0xd68] sm:$0xff]  ;;  %1591 = vst [vmem:[%s5900_s6 + $0x468] sm:$0xff] %v1590_v36  ;;  %v1596_v39 = vld [vmem:[%s5895_s0 + $0xd80] sm:$0xff] }
  0xa4   : > { %1593 = vst [vmem:[%s5900_s6 + $0x470] sm:$0xff] %v1592_v37  ;;  %1595 = vst [vmem:[%s5900_s6 + $0x478] sm:$0xff] %v1594_v38  ;;  %v1598_v40 = vld [vmem:[%s5895_s0 + $0xd98] sm:$0xff]  ;;  %v1600_v41 = vld [vmem:[%s5895_s0 + $0xdb0] sm:$0xff] }
  0xa5   : > { %1597 = vst [vmem:[%s5900_s6 + $0x480] sm:$0xff] %v1596_v39  ;;  %1599 = vst [vmem:[%s5900_s6 + $0x488] sm:$0xff] %v1598_v40  ;;  %v1602_v42 = vld [vmem:[%s5895_s0 + $0xdc8] sm:$0xff]  ;;  %v1604_v43 = vld [vmem:[%s5895_s0 + $0xde0] sm:$0xff] }
  0xa6   : > { %1601 = vst [vmem:[%s5900_s6 + $0x490] sm:$0xff] %v1600_v41  ;;  %v1606_v44 = vld [vmem:[%s5895_s0 + $0xdf8] sm:$0xff]  ;;  %1603 = vst [vmem:[%s5900_s6 + $0x498] sm:$0xff] %v1602_v42  ;;  %v1608_v45 = vld [vmem:[%s5895_s0 + $0xe10] sm:$0xff] }
  0xa7   : > { %1605 = vst [vmem:[%s5900_s6 + $0x4a0] sm:$0xff] %v1604_v43  ;;  %1607 = vst [vmem:[%s5900_s6 + $0x4a8] sm:$0xff] %v1606_v44  ;;  %v1610_v46 = vld [vmem:[%s5895_s0 + $0xe28] sm:$0xff]  ;;  %v1612_v47 = vld [vmem:[%s5895_s0 + $0xe40] sm:$0xff] }
  0xa8   : > { %1609 = vst [vmem:[%s5900_s6 + $0x4b0] sm:$0xff] %v1608_v45  ;;  %1611 = vst [vmem:[%s5900_s6 + $0x4b8] sm:$0xff] %v1610_v46  ;;  %v1614_v48 = vld [vmem:[%s5895_s0 + $0xe58] sm:$0xff]  ;;  %v1616_v49 = vld [vmem:[%s5895_s0 + $0xe70] sm:$0xff] }
  0xa9   : > { %1613 = vst [vmem:[%s5900_s6 + $0x4c0] sm:$0xff] %v1612_v47  ;;  %v1618_v50 = vld [vmem:[%s5895_s0 + $0xe88] sm:$0xff]  ;;  %1615 = vst [vmem:[%s5900_s6 + $0x4c8] sm:$0xff] %v1614_v48  ;;  %v1620_v51 = vld [vmem:[%s5895_s0 + $0xea0] sm:$0xff] }
  0xaa   : > { %1617 = vst [vmem:[%s5900_s6 + $0x4d0] sm:$0xff] %v1616_v49  ;;  %1619 = vst [vmem:[%s5900_s6 + $0x4d8] sm:$0xff] %v1618_v50  ;;  %v1622_v52 = vld [vmem:[%s5895_s0 + $0xeb8] sm:$0xff]  ;;  %v1624_v53 = vld [vmem:[%s5895_s0 + $0xed0] sm:$0xff] }
  0xab   : > { %1621 = vst [vmem:[%s5900_s6 + $0x4e0] sm:$0xff] %v1620_v51  ;;  %1623 = vst [vmem:[%s5900_s6 + $0x4e8] sm:$0xff] %v1622_v52  ;;  %v1626_v54 = vld [vmem:[%s5895_s0 + $0xee8] sm:$0xff]  ;;  %v1628_v55 = vld [vmem:[%s5895_s0 + $0xf00] sm:$0xff] }
  0xac   : > { %1625 = vst [vmem:[%s5900_s6 + $0x4f0] sm:$0xff] %v1624_v53  ;;  %v1630_v56 = vld [vmem:[%s5895_s0 + $0xf18] sm:$0xff]  ;;  %1627 = vst [vmem:[%s5900_s6 + $0x4f8] sm:$0xff] %v1626_v54  ;;  %v1632_v57 = vld [vmem:[%s5895_s0 + $0xf30] sm:$0xff] }
  0xad   : > { %1629 = vst [vmem:[%s5900_s6 + $0x500] sm:$0xff] %v1628_v55  ;;  %1631 = vst [vmem:[%s5900_s6 + $0x508] sm:$0xff] %v1630_v56  ;;  %v1634_v58 = vld [vmem:[%s5895_s0 + $0xf48] sm:$0xff]  ;;  %v1636_v59 = vld [vmem:[%s5895_s0 + $0xf60] sm:$0xff] }
  0xae   : > { %1633 = vst [vmem:[%s5900_s6 + $0x510] sm:$0xff] %v1632_v57  ;;  %1635 = vst [vmem:[%s5900_s6 + $0x518] sm:$0xff] %v1634_v58  ;;  %v1638_v60 = vld [vmem:[%s5895_s0 + $0xf78] sm:$0xff]  ;;  %v1640_v61 = vld [vmem:[%s5895_s0 + $0xf90] sm:$0xff] }
  0xaf   : > { %1637 = vst [vmem:[%s5900_s6 + $0x520] sm:$0xff] %v1636_v59  ;;  %v1642_v62 = vld [vmem:[%s5895_s0 + $0xfa8] sm:$0xff]  ;;  %1639 = vst [vmem:[%s5900_s6 + $0x528] sm:$0xff] %v1638_v60  ;;  %v1644_v63 = vld [vmem:[%s5895_s0 + $0xfc0] sm:$0xff] }
  0xb0   : > { %1641 = vst [vmem:[%s5900_s6 + $0x530] sm:$0xff] %v1640_v61  ;;  %1643 = vst [vmem:[%s5900_s6 + $0x538] sm:$0xff] %v1642_v62  ;;  %v1646_v0 = vld [vmem:[%s5895_s0 + $0xfd8] sm:$0xff]  ;;  %v1648_v1 = vld [vmem:[%s5895_s0 + $0xff0] sm:$0xff] }
  0xb1   : > { %1645 = vst [vmem:[%s5900_s6 + $0x540] sm:$0xff] %v1644_v63  ;;  %1647 = vst [vmem:[%s5900_s6 + $0x548] sm:$0xff] %v1646_v0  ;;  %v1650_v2 = vld [vmem:[%s5895_s0 + $0x1008] sm:$0xff]  ;;  %v1652_v3 = vld [vmem:[%s5895_s0 + $0x1020] sm:$0xff] }
  0xb2   : > { %1649 = vst [vmem:[%s5900_s6 + $0x550] sm:$0xff] %v1648_v1  ;;  %v1654_v4 = vld [vmem:[%s5895_s0 + $0x1038] sm:$0xff]  ;;  %1651 = vst [vmem:[%s5900_s6 + $0x558] sm:$0xff] %v1650_v2  ;;  %v1656_v5 = vld [vmem:[%s5895_s0 + $0x1050] sm:$0xff] }
  0xb3   : > { %1653 = vst [vmem:[%s5900_s6 + $0x560] sm:$0xff] %v1652_v3  ;;  %1655 = vst [vmem:[%s5900_s6 + $0x568] sm:$0xff] %v1654_v4  ;;  %v1658_v6 = vld [vmem:[%s5895_s0 + $0x1068] sm:$0xff]  ;;  %v1660_v7 = vld [vmem:[%s5895_s0 + $0x1080] sm:$0xff] }
  0xb4   : > { %1657 = vst [vmem:[%s5900_s6 + $0x570] sm:$0xff] %v1656_v5  ;;  %1659 = vst [vmem:[%s5900_s6 + $0x578] sm:$0xff] %v1658_v6  ;;  %v1662_v8 = vld [vmem:[%s5895_s0 + $0x1098] sm:$0xff]  ;;  %v1664_v9 = vld [vmem:[%s5895_s0 + $0x10b0] sm:$0xff] }
  0xb5   : > { %1661 = vst [vmem:[%s5900_s6 + $0x580] sm:$0xff] %v1660_v7  ;;  %v1666_v10 = vld [vmem:[%s5895_s0 + $0x10c8] sm:$0xff]  ;;  %1663 = vst [vmem:[%s5900_s6 + $0x588] sm:$0xff] %v1662_v8  ;;  %v1668_v11 = vld [vmem:[%s5895_s0 + $0x10e0] sm:$0xff] }
  0xb6   : > { %1665 = vst [vmem:[%s5900_s6 + $0x590] sm:$0xff] %v1664_v9  ;;  %1667 = vst [vmem:[%s5900_s6 + $0x598] sm:$0xff] %v1666_v10  ;;  %v1670_v12 = vld [vmem:[%s5895_s0 + $0x10f8] sm:$0xff]  ;;  %v1672_v13 = vld [vmem:[%s5895_s0 + $0x1110] sm:$0xff] }
  0xb7   : > { %1669 = vst [vmem:[%s5900_s6 + $0x5a0] sm:$0xff] %v1668_v11  ;;  %1671 = vst [vmem:[%s5900_s6 + $0x5a8] sm:$0xff] %v1670_v12  ;;  %v1674_v14 = vld [vmem:[%s5895_s0 + $0x1128] sm:$0xff]  ;;  %v1676_v15 = vld [vmem:[%s5895_s0 + $0x1140] sm:$0xff] }
  0xb8   : > { %1673 = vst [vmem:[%s5900_s6 + $0x5b0] sm:$0xff] %v1672_v13  ;;  %v1678_v16 = vld [vmem:[%s5895_s0 + $0x1158] sm:$0xff]  ;;  %1675 = vst [vmem:[%s5900_s6 + $0x5b8] sm:$0xff] %v1674_v14  ;;  %v1680_v17 = vld [vmem:[%s5895_s0 + $0x1170] sm:$0xff] }
  0xb9   : > { %1677 = vst [vmem:[%s5900_s6 + $0x5c0] sm:$0xff] %v1676_v15  ;;  %1679 = vst [vmem:[%s5900_s6 + $0x5c8] sm:$0xff] %v1678_v16  ;;  %v1682_v18 = vld [vmem:[%s5895_s0 + $0x1188] sm:$0xff]  ;;  %v1684_v19 = vld [vmem:[%s5895_s0 + $0x11a0] sm:$0xff] }
  0xba   : > { %1681 = vst [vmem:[%s5900_s6 + $0x5d0] sm:$0xff] %v1680_v17  ;;  %1683 = vst [vmem:[%s5900_s6 + $0x5d8] sm:$0xff] %v1682_v18  ;;  %v1686_v20 = vld [vmem:[%s5895_s0 + $0x11b8] sm:$0xff]  ;;  %v1688_v21 = vld [vmem:[%s5895_s0 + $0x11d0] sm:$0xff] }
  0xbb   : > { %1685 = vst [vmem:[%s5900_s6 + $0x5e0] sm:$0xff] %v1684_v19  ;;  %v1690_v22 = vld [vmem:[%s5895_s0 + $0x11e8] sm:$0xff]  ;;  %1687 = vst [vmem:[%s5900_s6 + $0x5e8] sm:$0xff] %v1686_v20  ;;  %v1692_v23 = vld [vmem:[%s5895_s0 + $0x1200] sm:$0xff] }
  0xbc   : > { %1689 = vst [vmem:[%s5900_s6 + $0x5f0] sm:$0xff] %v1688_v21  ;;  %1691 = vst [vmem:[%s5900_s6 + $0x5f8] sm:$0xff] %v1690_v22  ;;  %v1694_v24 = vld [vmem:[%s5895_s0 + $0x1218] sm:$0xff]  ;;  %v1696_v25 = vld [vmem:[%s5895_s0 + $0x1230] sm:$0xff] }
  0xbd   : > { %1693 = vst [vmem:[%s5900_s6 + $0x600] sm:$0xff] %v1692_v23  ;;  %1695 = vst [vmem:[%s5900_s6 + $0x608] sm:$0xff] %v1694_v24  ;;  %v1698_v26 = vld [vmem:[%s5895_s0 + $0x1248] sm:$0xff]  ;;  %v1700_v27 = vld [vmem:[%s5895_s0 + $0x1260] sm:$0xff] }
  0xbe   : > { %1697 = vst [vmem:[%s5900_s6 + $0x610] sm:$0xff] %v1696_v25  ;;  %v1702_v28 = vld [vmem:[%s5895_s0 + $0x1278] sm:$0xff]  ;;  %1699 = vst [vmem:[%s5900_s6 + $0x618] sm:$0xff] %v1698_v26  ;;  %v1704_v29 = vld [vmem:[%s5895_s0 + $0x1290] sm:$0xff] }
  0xbf   : > { %1701 = vst [vmem:[%s5900_s6 + $0x620] sm:$0xff] %v1700_v27  ;;  %1703 = vst [vmem:[%s5900_s6 + $0x628] sm:$0xff] %v1702_v28  ;;  %v1706_v30 = vld [vmem:[%s5895_s0 + $0x12a8] sm:$0xff]  ;;  %v1708_v31 = vld [vmem:[%s5895_s0 + $0x12c0] sm:$0xff] }
  0xc0   : > { %1705 = vst [vmem:[%s5900_s6 + $0x630] sm:$0xff] %v1704_v29  ;;  %1707 = vst [vmem:[%s5900_s6 + $0x638] sm:$0xff] %v1706_v30  ;;  %v1710_v32 = vld [vmem:[%s5895_s0 + $0x12d8] sm:$0xff]  ;;  %v1712_v33 = vld [vmem:[%s5895_s0 + $0x12f0] sm:$0xff] }
  0xc1   : > { %1709 = vst [vmem:[%s5900_s6 + $0x640] sm:$0xff] %v1708_v31  ;;  %v1714_v34 = vld [vmem:[%s5895_s0 + $0x1308] sm:$0xff]  ;;  %1711 = vst [vmem:[%s5900_s6 + $0x648] sm:$0xff] %v1710_v32  ;;  %v1716_v35 = vld [vmem:[%s5895_s0 + $0x1320] sm:$0xff] }
  0xc2   : > { %1713 = vst [vmem:[%s5900_s6 + $0x650] sm:$0xff] %v1712_v33  ;;  %1715 = vst [vmem:[%s5900_s6 + $0x658] sm:$0xff] %v1714_v34  ;;  %v1718_v36 = vld [vmem:[%s5895_s0 + $0x1338] sm:$0xff]  ;;  %v1720_v37 = vld [vmem:[%s5895_s0 + $0x1350] sm:$0xff] }
  0xc3   : > { %1717 = vst [vmem:[%s5900_s6 + $0x660] sm:$0xff] %v1716_v35  ;;  %1719 = vst [vmem:[%s5900_s6 + $0x668] sm:$0xff] %v1718_v36  ;;  %v1722_v38 = vld [vmem:[%s5895_s0 + $0x1368] sm:$0xff]  ;;  %v1724_v39 = vld [vmem:[%s5895_s0 + $0x1380] sm:$0xff] }
  0xc4   : > { %1721 = vst [vmem:[%s5900_s6 + $0x670] sm:$0xff] %v1720_v37  ;;  %v1726_v40 = vld [vmem:[%s5895_s0 + $0x1398] sm:$0xff]  ;;  %1723 = vst [vmem:[%s5900_s6 + $0x678] sm:$0xff] %v1722_v38  ;;  %v1728_v41 = vld [vmem:[%s5895_s0 + $0x13b0] sm:$0xff] }
  0xc5   : > { %1725 = vst [vmem:[%s5900_s6 + $0x680] sm:$0xff] %v1724_v39  ;;  %1727 = vst [vmem:[%s5900_s6 + $0x688] sm:$0xff] %v1726_v40  ;;  %v1730_v42 = vld [vmem:[%s5895_s0 + $0x13c8] sm:$0xff]  ;;  %v1732_v43 = vld [vmem:[%s5895_s0 + $0x13e0] sm:$0xff] }
  0xc6   : > { %1729 = vst [vmem:[%s5900_s6 + $0x690] sm:$0xff] %v1728_v41  ;;  %1731 = vst [vmem:[%s5900_s6 + $0x698] sm:$0xff] %v1730_v42  ;;  %v1734_v44 = vld [vmem:[%s5895_s0 + $0x13f8] sm:$0xff]  ;;  %v1736_v45 = vld [vmem:[%s5895_s0 + $0x1410] sm:$0xff] }
  0xc7   : > { %1733 = vst [vmem:[%s5900_s6 + $0x6a0] sm:$0xff] %v1732_v43  ;;  %v1738_v46 = vld [vmem:[%s5895_s0 + $0x1428] sm:$0xff]  ;;  %1735 = vst [vmem:[%s5900_s6 + $0x6a8] sm:$0xff] %v1734_v44  ;;  %v1740_v47 = vld [vmem:[%s5895_s0 + $0x1440] sm:$0xff] }
  0xc8   : > { %1737 = vst [vmem:[%s5900_s6 + $0x6b0] sm:$0xff] %v1736_v45  ;;  %1739 = vst [vmem:[%s5900_s6 + $0x6b8] sm:$0xff] %v1738_v46  ;;  %v1742_v48 = vld [vmem:[%s5895_s0 + $0x1458] sm:$0xff]  ;;  %v1744_v49 = vld [vmem:[%s5895_s0 + $0x1470] sm:$0xff] }
  0xc9   : > { %1741 = vst [vmem:[%s5900_s6 + $0x6c0] sm:$0xff] %v1740_v47  ;;  %1743 = vst [vmem:[%s5900_s6 + $0x6c8] sm:$0xff] %v1742_v48  ;;  %v1746_v50 = vld [vmem:[%s5895_s0 + $0x1488] sm:$0xff]  ;;  %v1748_v51 = vld [vmem:[%s5895_s0 + $0x14a0] sm:$0xff] }
  0xca   : > { %1745 = vst [vmem:[%s5900_s6 + $0x6d0] sm:$0xff] %v1744_v49  ;;  %v1750_v52 = vld [vmem:[%s5895_s0 + $0x14b8] sm:$0xff]  ;;  %1747 = vst [vmem:[%s5900_s6 + $0x6d8] sm:$0xff] %v1746_v50  ;;  %v1752_v53 = vld [vmem:[%s5895_s0 + $0x14d0] sm:$0xff] }
  0xcb   : > { %1749 = vst [vmem:[%s5900_s6 + $0x6e0] sm:$0xff] %v1748_v51  ;;  %1751 = vst [vmem:[%s5900_s6 + $0x6e8] sm:$0xff] %v1750_v52  ;;  %v1754_v54 = vld [vmem:[%s5895_s0 + $0x14e8] sm:$0xff]  ;;  %v1756_v55 = vld [vmem:[%s5895_s0 + $0x1500] sm:$0xff] }
  0xcc   : > { %1753 = vst [vmem:[%s5900_s6 + $0x6f0] sm:$0xff] %v1752_v53  ;;  %1755 = vst [vmem:[%s5900_s6 + $0x6f8] sm:$0xff] %v1754_v54  ;;  %v1758_v56 = vld [vmem:[%s5895_s0 + $0x1518] sm:$0xff]  ;;  %v1760_v57 = vld [vmem:[%s5895_s0 + $0x1530] sm:$0xff] }
  0xcd   : > { %1757 = vst [vmem:[%s5900_s6 + $0x700] sm:$0xff] %v1756_v55  ;;  %v1762_v58 = vld [vmem:[%s5895_s0 + $0x1548] sm:$0xff]  ;;  %1759 = vst [vmem:[%s5900_s6 + $0x708] sm:$0xff] %v1758_v56  ;;  %v1764_v59 = vld [vmem:[%s5895_s0 + $0x1560] sm:$0xff] }
  0xce   : > { %1761 = vst [vmem:[%s5900_s6 + $0x710] sm:$0xff] %v1760_v57  ;;  %1763 = vst [vmem:[%s5900_s6 + $0x718] sm:$0xff] %v1762_v58  ;;  %v1766_v60 = vld [vmem:[%s5895_s0 + $0x1578] sm:$0xff]  ;;  %v1768_v61 = vld [vmem:[%s5895_s0 + $0x1590] sm:$0xff] }
  0xcf   : > { %1765 = vst [vmem:[%s5900_s6 + $0x720] sm:$0xff] %v1764_v59  ;;  %1767 = vst [vmem:[%s5900_s6 + $0x728] sm:$0xff] %v1766_v60  ;;  %v1770_v62 = vld [vmem:[%s5895_s0 + $0x15a8] sm:$0xff]  ;;  %v1772_v63 = vld [vmem:[%s5895_s0 + $0x15c0] sm:$0xff] }
  0xd0   : > { %1769 = vst [vmem:[%s5900_s6 + $0x730] sm:$0xff] %v1768_v61  ;;  %v1774_v0 = vld [vmem:[%s5895_s0 + $0x15d8] sm:$0xff]  ;;  %1771 = vst [vmem:[%s5900_s6 + $0x738] sm:$0xff] %v1770_v62  ;;  %v1776_v1 = vld [vmem:[%s5895_s0 + $0x15f0] sm:$0xff] }
  0xd1   : > { %1773 = vst [vmem:[%s5900_s6 + $0x740] sm:$0xff] %v1772_v63  ;;  %1775 = vst [vmem:[%s5900_s6 + $0x748] sm:$0xff] %v1774_v0  ;;  %v1778_v2 = vld [vmem:[%s5895_s0 + $0x1608] sm:$0xff]  ;;  %v1780_v3 = vld [vmem:[%s5895_s0 + $0x1620] sm:$0xff] }
  0xd2   : > { %1777 = vst [vmem:[%s5900_s6 + $0x750] sm:$0xff] %v1776_v1  ;;  %1779 = vst [vmem:[%s5900_s6 + $0x758] sm:$0xff] %v1778_v2  ;;  %v1782_v4 = vld [vmem:[%s5895_s0 + $0x1638] sm:$0xff]  ;;  %v1784_v5 = vld [vmem:[%s5895_s0 + $0x1650] sm:$0xff] }
  0xd3   : > { %1781 = vst [vmem:[%s5900_s6 + $0x760] sm:$0xff] %v1780_v3  ;;  %v1786_v6 = vld [vmem:[%s5895_s0 + $0x1668] sm:$0xff]  ;;  %1783 = vst [vmem:[%s5900_s6 + $0x768] sm:$0xff] %v1782_v4  ;;  %v1788_v7 = vld [vmem:[%s5895_s0 + $0x1680] sm:$0xff] }
  0xd4   : > { %1785 = vst [vmem:[%s5900_s6 + $0x770] sm:$0xff] %v1784_v5  ;;  %1787 = vst [vmem:[%s5900_s6 + $0x778] sm:$0xff] %v1786_v6  ;;  %v1790_v8 = vld [vmem:[%s5895_s0 + $0x1698] sm:$0xff]  ;;  %v1792_v9 = vld [vmem:[%s5895_s0 + $0x16b0] sm:$0xff] }
  0xd5   : > { %1789 = vst [vmem:[%s5900_s6 + $0x780] sm:$0xff] %v1788_v7  ;;  %1791 = vst [vmem:[%s5900_s6 + $0x788] sm:$0xff] %v1790_v8  ;;  %v1794_v10 = vld [vmem:[%s5895_s0 + $0x16c8] sm:$0xff]  ;;  %v1796_v11 = vld [vmem:[%s5895_s0 + $0x16e0] sm:$0xff] }
  0xd6   : > { %1793 = vst [vmem:[%s5900_s6 + $0x790] sm:$0xff] %v1792_v9  ;;  %v1798_v12 = vld [vmem:[%s5895_s0 + $0x16f8] sm:$0xff]  ;;  %1795 = vst [vmem:[%s5900_s6 + $0x798] sm:$0xff] %v1794_v10  ;;  %v1800_v13 = vld [vmem:[%s5895_s0 + $0x1710] sm:$0xff] }
  0xd7   : > { %1797 = vst [vmem:[%s5900_s6 + $0x7a0] sm:$0xff] %v1796_v11  ;;  %1799 = vst [vmem:[%s5900_s6 + $0x7a8] sm:$0xff] %v1798_v12  ;;  %v1802_v14 = vld [vmem:[%s5895_s0 + $0x1728] sm:$0xff]  ;;  %v1804_v15 = vld [vmem:[%s5895_s0 + $0x1740] sm:$0xff] }
  0xd8   : > { %1801 = vst [vmem:[%s5900_s6 + $0x7b0] sm:$0xff] %v1800_v13  ;;  %1803 = vst [vmem:[%s5900_s6 + $0x7b8] sm:$0xff] %v1802_v14  ;;  %v1806_v16 = vld [vmem:[%s5895_s0 + $0x1758] sm:$0xff]  ;;  %v1808_v17 = vld [vmem:[%s5895_s0 + $0x1770] sm:$0xff] }
  0xd9   : > { %1805 = vst [vmem:[%s5900_s6 + $0x7c0] sm:$0xff] %v1804_v15  ;;  %v1810_v18 = vld [vmem:[%s5895_s0 + $0x1788] sm:$0xff]  ;;  %1807 = vst [vmem:[%s5900_s6 + $0x7c8] sm:$0xff] %v1806_v16  ;;  %v1812_v19 = vld [vmem:[%s5895_s0 + $0x17a0] sm:$0xff] }
  0xda   : > { %1809 = vst [vmem:[%s5900_s6 + $0x7d0] sm:$0xff] %v1808_v17  ;;  %1811 = vst [vmem:[%s5900_s6 + $0x7d8] sm:$0xff] %v1810_v18  ;;  %v1814_v20 = vld [vmem:[%s5895_s0 + $0x17b8] sm:$0xff]  ;;  %v1816_v21 = vld [vmem:[%s5895_s0 + $0x17d0] sm:$0xff] }
  0xdb   : > { %1813 = vst [vmem:[%s5900_s6 + $0x7e0] sm:$0xff] %v1812_v19  ;;  %1815 = vst [vmem:[%s5900_s6 + $0x7e8] sm:$0xff] %v1814_v20  ;;  %v1818_v22 = vld [vmem:[%s5895_s0 + $0x17e8] sm:$0xff]  ;;  %v1820_v23 = vld [vmem:[%s5895_s0 + $0x1800] sm:$0xff] }
  0xdc   : > { %1817 = vst [vmem:[%s5900_s6 + $0x7f0] sm:$0xff] %v1816_v21  ;;  %v1822_v24 = vld [vmem:[%s5895_s0 + $0x1818] sm:$0xff]  ;;  %1819 = vst [vmem:[%s5900_s6 + $0x7f8] sm:$0xff] %v1818_v22  ;;  %v1824_v25 = vld [vmem:[%s5895_s0 + $0x1830] sm:$0xff] }
  0xdd   : > { %1821 = vst [vmem:[%s5900_s6 + $0x800] sm:$0xff] %v1820_v23  ;;  %1823 = vst [vmem:[%s5900_s6 + $0x808] sm:$0xff] %v1822_v24  ;;  %v1826_v26 = vld [vmem:[%s5895_s0 + $0x1848] sm:$0xff]  ;;  %v1828_v27 = vld [vmem:[%s5895_s0 + $0x1860] sm:$0xff] }
  0xde   : > { %1825 = vst [vmem:[%s5900_s6 + $0x810] sm:$0xff] %v1824_v25  ;;  %1827 = vst [vmem:[%s5900_s6 + $0x818] sm:$0xff] %v1826_v26  ;;  %v1830_v28 = vld [vmem:[%s5895_s0 + $0x1878] sm:$0xff]  ;;  %v1832_v29 = vld [vmem:[%s5895_s0 + $0x1890] sm:$0xff] }
  0xdf   : > { %1829 = vst [vmem:[%s5900_s6 + $0x820] sm:$0xff] %v1828_v27  ;;  %v1834_v30 = vld [vmem:[%s5895_s0 + $0x18a8] sm:$0xff]  ;;  %1831 = vst [vmem:[%s5900_s6 + $0x828] sm:$0xff] %v1830_v28  ;;  %v1836_v31 = vld [vmem:[%s5895_s0 + $0x18c0] sm:$0xff] }
  0xe0   : > { %1833 = vst [vmem:[%s5900_s6 + $0x830] sm:$0xff] %v1832_v29  ;;  %1835 = vst [vmem:[%s5900_s6 + $0x838] sm:$0xff] %v1834_v30  ;;  %v1838_v32 = vld [vmem:[%s5895_s0 + $0x18d8] sm:$0xff]  ;;  %v1840_v33 = vld [vmem:[%s5895_s0 + $0x18f0] sm:$0xff] }
  0xe1   : > { %1837 = vst [vmem:[%s5900_s6 + $0x840] sm:$0xff] %v1836_v31  ;;  %1839 = vst [vmem:[%s5900_s6 + $0x848] sm:$0xff] %v1838_v32  ;;  %v1842_v34 = vld [vmem:[%s5895_s0 + $0x1908] sm:$0xff]  ;;  %v1844_v35 = vld [vmem:[%s5895_s0 + $0x1920] sm:$0xff] }
  0xe2   : > { %1841 = vst [vmem:[%s5900_s6 + $0x850] sm:$0xff] %v1840_v33  ;;  %v1846_v36 = vld [vmem:[%s5895_s0 + $0x1938] sm:$0xff]  ;;  %1843 = vst [vmem:[%s5900_s6 + $0x858] sm:$0xff] %v1842_v34  ;;  %v1848_v37 = vld [vmem:[%s5895_s0 + $0x1950] sm:$0xff] }
  0xe3   : > { %1845 = vst [vmem:[%s5900_s6 + $0x860] sm:$0xff] %v1844_v35  ;;  %1847 = vst [vmem:[%s5900_s6 + $0x868] sm:$0xff] %v1846_v36  ;;  %v1850_v38 = vld [vmem:[%s5895_s0 + $0x1968] sm:$0xff]  ;;  %v1852_v39 = vld [vmem:[%s5895_s0 + $0x1980] sm:$0xff] }
  0xe4   : > { %1849 = vst [vmem:[%s5900_s6 + $0x870] sm:$0xff] %v1848_v37  ;;  %1851 = vst [vmem:[%s5900_s6 + $0x878] sm:$0xff] %v1850_v38  ;;  %v1854_v40 = vld [vmem:[%s5895_s0 + $0x1998] sm:$0xff]  ;;  %v1856_v41 = vld [vmem:[%s5895_s0 + $0x19b0] sm:$0xff] }
  0xe5   : > { %1853 = vst [vmem:[%s5900_s6 + $0x880] sm:$0xff] %v1852_v39  ;;  %v1858_v42 = vld [vmem:[%s5895_s0 + $0x19c8] sm:$0xff]  ;;  %1855 = vst [vmem:[%s5900_s6 + $0x888] sm:$0xff] %v1854_v40  ;;  %v1860_v43 = vld [vmem:[%s5895_s0 + $0x19e0] sm:$0xff] }
  0xe6   : > { %1857 = vst [vmem:[%s5900_s6 + $0x890] sm:$0xff] %v1856_v41  ;;  %1859 = vst [vmem:[%s5900_s6 + $0x898] sm:$0xff] %v1858_v42  ;;  %v1862_v44 = vld [vmem:[%s5895_s0 + $0x19f8] sm:$0xff]  ;;  %v1864_v45 = vld [vmem:[%s5895_s0 + $0x1a10] sm:$0xff] }
  0xe7   : > { %1861 = vst [vmem:[%s5900_s6 + $0x8a0] sm:$0xff] %v1860_v43  ;;  %1863 = vst [vmem:[%s5900_s6 + $0x8a8] sm:$0xff] %v1862_v44  ;;  %v1866_v46 = vld [vmem:[%s5895_s0 + $0x1a28] sm:$0xff]  ;;  %v1868_v47 = vld [vmem:[%s5895_s0 + $0x1a40] sm:$0xff] }
  0xe8   : > { %1865 = vst [vmem:[%s5900_s6 + $0x8b0] sm:$0xff] %v1864_v45  ;;  %v1870_v48 = vld [vmem:[%s5895_s0 + $0x1a58] sm:$0xff]  ;;  %1867 = vst [vmem:[%s5900_s6 + $0x8b8] sm:$0xff] %v1866_v46  ;;  %v1872_v49 = vld [vmem:[%s5895_s0 + $0x1a70] sm:$0xff] }
  0xe9   : > { %1869 = vst [vmem:[%s5900_s6 + $0x8c0] sm:$0xff] %v1868_v47  ;;  %1871 = vst [vmem:[%s5900_s6 + $0x8c8] sm:$0xff] %v1870_v48  ;;  %v1874_v50 = vld [vmem:[%s5895_s0 + $0x1a88] sm:$0xff]  ;;  %v1876_v51 = vld [vmem:[%s5895_s0 + $0x1aa0] sm:$0xff] }
  0xea   : > { %1873 = vst [vmem:[%s5900_s6 + $0x8d0] sm:$0xff] %v1872_v49  ;;  %1875 = vst [vmem:[%s5900_s6 + $0x8d8] sm:$0xff] %v1874_v50  ;;  %v1878_v52 = vld [vmem:[%s5895_s0 + $0x1ab8] sm:$0xff]  ;;  %v1880_v53 = vld [vmem:[%s5895_s0 + $0x1ad0] sm:$0xff] }
  0xeb   : > { %1877 = vst [vmem:[%s5900_s6 + $0x8e0] sm:$0xff] %v1876_v51  ;;  %v1882_v54 = vld [vmem:[%s5895_s0 + $0x1ae8] sm:$0xff]  ;;  %1879 = vst [vmem:[%s5900_s6 + $0x8e8] sm:$0xff] %v1878_v52  ;;  %v1884_v55 = vld [vmem:[%s5895_s0 + $0x1b00] sm:$0xff] }
  0xec   : > { %1881 = vst [vmem:[%s5900_s6 + $0x8f0] sm:$0xff] %v1880_v53  ;;  %1883 = vst [vmem:[%s5900_s6 + $0x8f8] sm:$0xff] %v1882_v54  ;;  %v1886_v56 = vld [vmem:[%s5895_s0 + $0x1b18] sm:$0xff]  ;;  %v1888_v57 = vld [vmem:[%s5895_s0 + $0x1b30] sm:$0xff] }
  0xed   : > { %1885 = vst [vmem:[%s5900_s6 + $0x900] sm:$0xff] %v1884_v55  ;;  %1887 = vst [vmem:[%s5900_s6 + $0x908] sm:$0xff] %v1886_v56  ;;  %v1890_v58 = vld [vmem:[%s5895_s0 + $0x1b48] sm:$0xff]  ;;  %v1892_v59 = vld [vmem:[%s5895_s0 + $0x1b60] sm:$0xff] }
  0xee   : > { %1889 = vst [vmem:[%s5900_s6 + $0x910] sm:$0xff] %v1888_v57  ;;  %v1894_v60 = vld [vmem:[%s5895_s0 + $0x1b78] sm:$0xff]  ;;  %1891 = vst [vmem:[%s5900_s6 + $0x918] sm:$0xff] %v1890_v58  ;;  %v1896_v61 = vld [vmem:[%s5895_s0 + $0x1b90] sm:$0xff] }
  0xef   : > { %1893 = vst [vmem:[%s5900_s6 + $0x920] sm:$0xff] %v1892_v59  ;;  %1895 = vst [vmem:[%s5900_s6 + $0x928] sm:$0xff] %v1894_v60  ;;  %v1898_v62 = vld [vmem:[%s5895_s0 + $0x1ba8] sm:$0xff]  ;;  %v1900_v63 = vld [vmem:[%s5895_s0 + $0x1bc0] sm:$0xff] }
  0xf0   : > { %1897 = vst [vmem:[%s5900_s6 + $0x930] sm:$0xff] %v1896_v61  ;;  %1899 = vst [vmem:[%s5900_s6 + $0x938] sm:$0xff] %v1898_v62  ;;  %v1902_v0 = vld [vmem:[%s5895_s0 + $0x1bd8] sm:$0xff]  ;;  %v1904_v1 = vld [vmem:[%s5895_s0 + $0x1bf0] sm:$0xff] }
  0xf1   : > { %1901 = vst [vmem:[%s5900_s6 + $0x940] sm:$0xff] %v1900_v63  ;;  %v1906_v2 = vld [vmem:[%s5895_s0 + $0x1c08] sm:$0xff]  ;;  %1903 = vst [vmem:[%s5900_s6 + $0x948] sm:$0xff] %v1902_v0  ;;  %v1908_v3 = vld [vmem:[%s5895_s0 + $0x1c20] sm:$0xff] }
  0xf2   : > { %1905 = vst [vmem:[%s5900_s6 + $0x950] sm:$0xff] %v1904_v1  ;;  %1907 = vst [vmem:[%s5900_s6 + $0x958] sm:$0xff] %v1906_v2  ;;  %v1910_v4 = vld [vmem:[%s5895_s0 + $0x1c38] sm:$0xff]  ;;  %v1912_v5 = vld [vmem:[%s5895_s0 + $0x1c50] sm:$0xff] }
  0xf3   : > { %1909 = vst [vmem:[%s5900_s6 + $0x960] sm:$0xff] %v1908_v3  ;;  %1911 = vst [vmem:[%s5900_s6 + $0x968] sm:$0xff] %v1910_v4  ;;  %v1914_v6 = vld [vmem:[%s5895_s0 + $0x1c68] sm:$0xff]  ;;  %v1916_v7 = vld [vmem:[%s5895_s0 + $0x1c80] sm:$0xff] }
  0xf4   : > { %1913 = vst [vmem:[%s5900_s6 + $0x970] sm:$0xff] %v1912_v5  ;;  %v1918_v8 = vld [vmem:[%s5895_s0 + $0x1c98] sm:$0xff]  ;;  %1915 = vst [vmem:[%s5900_s6 + $0x978] sm:$0xff] %v1914_v6  ;;  %v1920_v9 = vld [vmem:[%s5895_s0 + $0x1cb0] sm:$0xff] }
  0xf5   : > { %1917 = vst [vmem:[%s5900_s6 + $0x980] sm:$0xff] %v1916_v7  ;;  %1919 = vst [vmem:[%s5900_s6 + $0x988] sm:$0xff] %v1918_v8  ;;  %v1922_v10 = vld [vmem:[%s5895_s0 + $0x1cc8] sm:$0xff]  ;;  %v1924_v11 = vld [vmem:[%s5895_s0 + $0x1ce0] sm:$0xff] }
  0xf6   : > { %1921 = vst [vmem:[%s5900_s6 + $0x990] sm:$0xff] %v1920_v9  ;;  %1923 = vst [vmem:[%s5900_s6 + $0x998] sm:$0xff] %v1922_v10  ;;  %v1926_v12 = vld [vmem:[%s5895_s0 + $0x1cf8] sm:$0xff]  ;;  %v1928_v13 = vld [vmem:[%s5895_s0 + $0x1d10] sm:$0xff] }
  0xf7   : > { %1925 = vst [vmem:[%s5900_s6 + $0x9a0] sm:$0xff] %v1924_v11  ;;  %v1930_v14 = vld [vmem:[%s5895_s0 + $0x1d28] sm:$0xff]  ;;  %1927 = vst [vmem:[%s5900_s6 + $0x9a8] sm:$0xff] %v1926_v12  ;;  %v1932_v15 = vld [vmem:[%s5895_s0 + $0x1d40] sm:$0xff] }
  0xf8   : > { %1929 = vst [vmem:[%s5900_s6 + $0x9b0] sm:$0xff] %v1928_v13  ;;  %1931 = vst [vmem:[%s5900_s6 + $0x9b8] sm:$0xff] %v1930_v14  ;;  %v1934_v16 = vld [vmem:[%s5895_s0 + $0x1d58] sm:$0xff]  ;;  %v1936_v17 = vld [vmem:[%s5895_s0 + $0x1d70] sm:$0xff] }
  0xf9   : > { %1933 = vst [vmem:[%s5900_s6 + $0x9c0] sm:$0xff] %v1932_v15  ;;  %1935 = vst [vmem:[%s5900_s6 + $0x9c8] sm:$0xff] %v1934_v16  ;;  %v1938_v18 = vld [vmem:[%s5895_s0 + $0x1d88] sm:$0xff]  ;;  %v1940_v19 = vld [vmem:[%s5895_s0 + $0x1da0] sm:$0xff] }
  0xfa   : > { %1937 = vst [vmem:[%s5900_s6 + $0x9d0] sm:$0xff] %v1936_v17  ;;  %v1942_v20 = vld [vmem:[%s5895_s0 + $0x1db8] sm:$0xff]  ;;  %1939 = vst [vmem:[%s5900_s6 + $0x9d8] sm:$0xff] %v1938_v18  ;;  %v1944_v21 = vld [vmem:[%s5895_s0 + $0x1dd0] sm:$0xff] }
  0xfb   : > { %1941 = vst [vmem:[%s5900_s6 + $0x9e0] sm:$0xff] %v1940_v19  ;;  %1943 = vst [vmem:[%s5900_s6 + $0x9e8] sm:$0xff] %v1942_v20  ;;  %v1946_v22 = vld [vmem:[%s5895_s0 + $0x1de8] sm:$0xff]  ;;  %v1948_v23 = vld [vmem:[%s5895_s0 + $0x1e00] sm:$0xff] }
  0xfc   : > { %1945 = vst [vmem:[%s5900_s6 + $0x9f0] sm:$0xff] %v1944_v21  ;;  %1947 = vst [vmem:[%s5900_s6 + $0x9f8] sm:$0xff] %v1946_v22  ;;  %v1950_v24 = vld [vmem:[%s5895_s0 + $0x1e18] sm:$0xff]  ;;  %v1952_v25 = vld [vmem:[%s5895_s0 + $0x1e30] sm:$0xff] }
  0xfd   : > { %1949 = vst [vmem:[%s5900_s6 + $0xa00] sm:$0xff] %v1948_v23  ;;  %v1954_v26 = vld [vmem:[%s5895_s0 + $0x1e48] sm:$0xff]  ;;  %1951 = vst [vmem:[%s5900_s6 + $0xa08] sm:$0xff] %v1950_v24  ;;  %v1956_v27 = vld [vmem:[%s5895_s0 + $0x1e60] sm:$0xff] }
  0xfe   : > { %1953 = vst [vmem:[%s5900_s6 + $0xa10] sm:$0xff] %v1952_v25  ;;  %1955 = vst [vmem:[%s5900_s6 + $0xa18] sm:$0xff] %v1954_v26  ;;  %v1958_v28 = vld [vmem:[%s5895_s0 + $0x1e78] sm:$0xff]  ;;  %v1960_v29 = vld [vmem:[%s5895_s0 + $0x1e90] sm:$0xff] }
  0xff   : > { %1957 = vst [vmem:[%s5900_s6 + $0xa20] sm:$0xff] %v1956_v27  ;;  %1959 = vst [vmem:[%s5900_s6 + $0xa28] sm:$0xff] %v1958_v28  ;;  %v1962_v30 = vld [vmem:[%s5895_s0 + $0x1ea8] sm:$0xff]  ;;  %v1964_v31 = vld [vmem:[%s5895_s0 + $0x1ec0] sm:$0xff] }
 0x100   : > { %1961 = vst [vmem:[%s5900_s6 + $0xa30] sm:$0xff] %v1960_v29  ;;  %v1966_v32 = vld [vmem:[%s5895_s0 + $0x1ed8] sm:$0xff]  ;;  %1963 = vst [vmem:[%s5900_s6 + $0xa38] sm:$0xff] %v1962_v30  ;;  %v1968_v33 = vld [vmem:[%s5895_s0 + $0x1ef0] sm:$0xff] }
 0x101   : > { %1965 = vst [vmem:[%s5900_s6 + $0xa40] sm:$0xff] %v1964_v31  ;;  %1967 = vst [vmem:[%s5900_s6 + $0xa48] sm:$0xff] %v1966_v32  ;;  %v1970_v34 = vld [vmem:[%s5895_s0 + $0x1f08] sm:$0xff]  ;;  %v1972_v35 = vld [vmem:[%s5895_s0 + $0x1f20] sm:$0xff] }
 0x102   : > { %1969 = vst [vmem:[%s5900_s6 + $0xa50] sm:$0xff] %v1968_v33  ;;  %1971 = vst [vmem:[%s5900_s6 + $0xa58] sm:$0xff] %v1970_v34  ;;  %v1974_v36 = vld [vmem:[%s5895_s0 + $0x1f38] sm:$0xff]  ;;  %v1976_v37 = vld [vmem:[%s5895_s0 + $0x1f50] sm:$0xff] }
 0x103   : > { %1973 = vst [vmem:[%s5900_s6 + $0xa60] sm:$0xff] %v1972_v35  ;;  %v1978_v38 = vld [vmem:[%s5895_s0 + $0x1f68] sm:$0xff]  ;;  %1975 = vst [vmem:[%s5900_s6 + $0xa68] sm:$0xff] %v1974_v36  ;;  %v1980_v39 = vld [vmem:[%s5895_s0 + $0x1f80] sm:$0xff] }
 0x104   : > { %1977 = vst [vmem:[%s5900_s6 + $0xa70] sm:$0xff] %v1976_v37  ;;  %1979 = vst [vmem:[%s5900_s6 + $0xa78] sm:$0xff] %v1978_v38  ;;  %v1982_v40 = vld [vmem:[%s5895_s0 + $0x1f98] sm:$0xff]  ;;  %v1984_v41 = vld [vmem:[%s5895_s0 + $0x1fb0] sm:$0xff] }
 0x105   : > { %1981 = vst [vmem:[%s5900_s6 + $0xa80] sm:$0xff] %v1980_v39  ;;  %1983 = vst [vmem:[%s5900_s6 + $0xa88] sm:$0xff] %v1982_v40  ;;  %v1986_v42 = vld [vmem:[%s5895_s0 + $0x1fc8] sm:$0xff]  ;;  %v1988_v43 = vld [vmem:[%s5895_s0 + $0x1fe0] sm:$0xff] }
 0x106   : > { %1985 = vst [vmem:[%s5900_s6 + $0xa90] sm:$0xff] %v1984_v41  ;;  %v1990_v44 = vld [vmem:[%s5895_s0 + $0x1ff8] sm:$0xff]  ;;  %1987 = vst [vmem:[%s5900_s6 + $0xa98] sm:$0xff] %v1986_v42  ;;  %v1992_v45 = vld [vmem:[%s5895_s0 + $0x2010] sm:$0xff] }
 0x107   : > { %1989 = vst [vmem:[%s5900_s6 + $0xaa0] sm:$0xff] %v1988_v43  ;;  %1991 = vst [vmem:[%s5900_s6 + $0xaa8] sm:$0xff] %v1990_v44  ;;  %v1994_v46 = vld [vmem:[%s5895_s0 + $0x2028] sm:$0xff]  ;;  %v1996_v47 = vld [vmem:[%s5895_s0 + $0x2040] sm:$0xff] }
 0x108   : > { %1993 = vst [vmem:[%s5900_s6 + $0xab0] sm:$0xff] %v1992_v45  ;;  %1995 = vst [vmem:[%s5900_s6 + $0xab8] sm:$0xff] %v1994_v46  ;;  %v1998_v48 = vld [vmem:[%s5895_s0 + $0x2058] sm:$0xff]  ;;  %v2000_v49 = vld [vmem:[%s5895_s0 + $0x2070] sm:$0xff] }
 0x109   : > { %1997 = vst [vmem:[%s5900_s6 + $0xac0] sm:$0xff] %v1996_v47  ;;  %v2002_v50 = vld [vmem:[%s5895_s0 + $0x2088] sm:$0xff]  ;;  %1999 = vst [vmem:[%s5900_s6 + $0xac8] sm:$0xff] %v1998_v48  ;;  %v2004_v51 = vld [vmem:[%s5895_s0 + $0x20a0] sm:$0xff] }
 0x10a   : > { %2001 = vst [vmem:[%s5900_s6 + $0xad0] sm:$0xff] %v2000_v49  ;;  %2003 = vst [vmem:[%s5900_s6 + $0xad8] sm:$0xff] %v2002_v50  ;;  %v2006_v52 = vld [vmem:[%s5895_s0 + $0x20b8] sm:$0xff]  ;;  %v2008_v53 = vld [vmem:[%s5895_s0 + $0x20d0] sm:$0xff] }
 0x10b   : > { %2005 = vst [vmem:[%s5900_s6 + $0xae0] sm:$0xff] %v2004_v51  ;;  %2007 = vst [vmem:[%s5900_s6 + $0xae8] sm:$0xff] %v2006_v52  ;;  %v2010_v54 = vld [vmem:[%s5895_s0 + $0x20e8] sm:$0xff]  ;;  %v2012_v55 = vld [vmem:[%s5895_s0 + $0x2100] sm:$0xff] }
 0x10c   : > { %2009 = vst [vmem:[%s5900_s6 + $0xaf0] sm:$0xff] %v2008_v53  ;;  %v2014_v56 = vld [vmem:[%s5895_s0 + $0x2118] sm:$0xff]  ;;  %2011 = vst [vmem:[%s5900_s6 + $0xaf8] sm:$0xff] %v2010_v54  ;;  %v2016_v57 = vld [vmem:[%s5895_s0 + $0x2130] sm:$0xff] }
 0x10d   : > { %2013 = vst [vmem:[%s5900_s6 + $0xb00] sm:$0xff] %v2012_v55  ;;  %2015 = vst [vmem:[%s5900_s6 + $0xb08] sm:$0xff] %v2014_v56  ;;  %v2018_v58 = vld [vmem:[%s5895_s0 + $0x2148] sm:$0xff]  ;;  %v2020_v59 = vld [vmem:[%s5895_s0 + $0x2160] sm:$0xff] }
 0x10e   : > { %2017 = vst [vmem:[%s5900_s6 + $0xb10] sm:$0xff] %v2016_v57  ;;  %2019 = vst [vmem:[%s5900_s6 + $0xb18] sm:$0xff] %v2018_v58  ;;  %v2022_v60 = vld [vmem:[%s5895_s0 + $0x2178] sm:$0xff]  ;;  %v2024_v61 = vld [vmem:[%s5895_s0 + $0x2190] sm:$0xff] }
 0x10f   : > { %2021 = vst [vmem:[%s5900_s6 + $0xb20] sm:$0xff] %v2020_v59  ;;  %v2026_v62 = vld [vmem:[%s5895_s0 + $0x21a8] sm:$0xff]  ;;  %2023 = vst [vmem:[%s5900_s6 + $0xb28] sm:$0xff] %v2022_v60  ;;  %v2028_v63 = vld [vmem:[%s5895_s0 + $0x21c0] sm:$0xff] }
 0x110   : > { %2025 = vst [vmem:[%s5900_s6 + $0xb30] sm:$0xff] %v2024_v61  ;;  %2027 = vst [vmem:[%s5900_s6 + $0xb38] sm:$0xff] %v2026_v62  ;;  %v2030_v0 = vld [vmem:[%s5895_s0 + $0x21d8] sm:$0xff]  ;;  %v2032_v1 = vld [vmem:[%s5895_s0 + $0x21f0] sm:$0xff] }
 0x111   : > { %2029 = vst [vmem:[%s5900_s6 + $0xb40] sm:$0xff] %v2028_v63  ;;  %2031 = vst [vmem:[%s5900_s6 + $0xb48] sm:$0xff] %v2030_v0  ;;  %v2034_v2 = vld [vmem:[%s5895_s0 + $0x2208] sm:$0xff]  ;;  %v2036_v3 = vld [vmem:[%s5895_s0 + $0x2220] sm:$0xff] }
 0x112   : > { %2033 = vst [vmem:[%s5900_s6 + $0xb50] sm:$0xff] %v2032_v1  ;;  %v2038_v4 = vld [vmem:[%s5895_s0 + $0x2238] sm:$0xff]  ;;  %2035 = vst [vmem:[%s5900_s6 + $0xb58] sm:$0xff] %v2034_v2  ;;  %v2040_v5 = vld [vmem:[%s5895_s0 + $0x2250] sm:$0xff] }
 0x113   : > { %2037 = vst [vmem:[%s5900_s6 + $0xb60] sm:$0xff] %v2036_v3  ;;  %2039 = vst [vmem:[%s5900_s6 + $0xb68] sm:$0xff] %v2038_v4  ;;  %v2042_v6 = vld [vmem:[%s5895_s0 + $0x2268] sm:$0xff]  ;;  %v2044_v7 = vld [vmem:[%s5895_s0 + $0x2280] sm:$0xff] }
 0x114   : > { %2041 = vst [vmem:[%s5900_s6 + $0xb70] sm:$0xff] %v2040_v5  ;;  %2043 = vst [vmem:[%s5900_s6 + $0xb78] sm:$0xff] %v2042_v6  ;;  %v2046_v8 = vld [vmem:[%s5895_s0 + $0x2298] sm:$0xff]  ;;  %v2048_v9 = vld [vmem:[%s5895_s0 + $0x22b0] sm:$0xff] }
 0x115   : > { %2045 = vst [vmem:[%s5900_s6 + $0xb80] sm:$0xff] %v2044_v7  ;;  %v2050_v10 = vld [vmem:[%s5895_s0 + $0x22c8] sm:$0xff]  ;;  %2047 = vst [vmem:[%s5900_s6 + $0xb88] sm:$0xff] %v2046_v8  ;;  %v2052_v11 = vld [vmem:[%s5895_s0 + $0x22e0] sm:$0xff] }
 0x116   : > { %2049 = vst [vmem:[%s5900_s6 + $0xb90] sm:$0xff] %v2048_v9  ;;  %2051 = vst [vmem:[%s5900_s6 + $0xb98] sm:$0xff] %v2050_v10  ;;  %v2054_v12 = vld [vmem:[%s5895_s0 + $0x22f8] sm:$0xff]  ;;  %v2056_v13 = vld [vmem:[%s5895_s0 + $0x2310] sm:$0xff] }
 0x117   : > { %2053 = vst [vmem:[%s5900_s6 + $0xba0] sm:$0xff] %v2052_v11  ;;  %2055 = vst [vmem:[%s5900_s6 + $0xba8] sm:$0xff] %v2054_v12  ;;  %v2058_v14 = vld [vmem:[%s5895_s0 + $0x2328] sm:$0xff]  ;;  %v2060_v15 = vld [vmem:[%s5895_s0 + $0x2340] sm:$0xff] }
 0x118   : > { %2057 = vst [vmem:[%s5900_s6 + $0xbb0] sm:$0xff] %v2056_v13  ;;  %v2062_v16 = vld [vmem:[%s5895_s0 + $0x2358] sm:$0xff]  ;;  %2059 = vst [vmem:[%s5900_s6 + $0xbb8] sm:$0xff] %v2058_v14  ;;  %v2064_v17 = vld [vmem:[%s5895_s0 + $0x2370] sm:$0xff] }
 0x119   : > { %2061 = vst [vmem:[%s5900_s6 + $0xbc0] sm:$0xff] %v2060_v15  ;;  %2063 = vst [vmem:[%s5900_s6 + $0xbc8] sm:$0xff] %v2062_v16  ;;  %v2066_v18 = vld [vmem:[%s5895_s0 + $0x2388] sm:$0xff]  ;;  %v2068_v19 = vld [vmem:[%s5895_s0 + $0x23a0] sm:$0xff] }
 0x11a   : > { %2065 = vst [vmem:[%s5900_s6 + $0xbd0] sm:$0xff] %v2064_v17  ;;  %2067 = vst [vmem:[%s5900_s6 + $0xbd8] sm:$0xff] %v2066_v18  ;;  %v2070_v20 = vld [vmem:[%s5895_s0 + $0x23b8] sm:$0xff]  ;;  %v2072_v21 = vld [vmem:[%s5895_s0 + $0x23d0] sm:$0xff] }
 0x11b   : > { %2069 = vst [vmem:[%s5900_s6 + $0xbe0] sm:$0xff] %v2068_v19  ;;  %v2074_v22 = vld [vmem:[%s5895_s0 + $0x23e8] sm:$0xff]  ;;  %2071 = vst [vmem:[%s5900_s6 + $0xbe8] sm:$0xff] %v2070_v20  ;;  %v2076_v23 = vld [vmem:[%s5895_s0 + $0x2400] sm:$0xff] }
 0x11c   : > { %2073 = vst [vmem:[%s5900_s6 + $0xbf0] sm:$0xff] %v2072_v21  ;;  %2075 = vst [vmem:[%s5900_s6 + $0xbf8] sm:$0xff] %v2074_v22  ;;  %v2078_v24 = vld [vmem:[%s5895_s0 + $0x2418] sm:$0xff]  ;;  %v2080_v25 = vld [vmem:[%s5895_s0 + $0x2430] sm:$0xff] }
 0x11d   : > { %2077 = vst [vmem:[%s5900_s6 + $0xc00] sm:$0xff] %v2076_v23  ;;  %2079 = vst [vmem:[%s5900_s6 + $0xc08] sm:$0xff] %v2078_v24  ;;  %v2082_v26 = vld [vmem:[%s5895_s0 + $0x2448] sm:$0xff]  ;;  %v2084_v27 = vld [vmem:[%s5895_s0 + $0x2460] sm:$0xff] }
 0x11e   : > { %2081 = vst [vmem:[%s5900_s6 + $0xc10] sm:$0xff] %v2080_v25  ;;  %v2086_v28 = vld [vmem:[%s5895_s0 + $0x2478] sm:$0xff]  ;;  %2083 = vst [vmem:[%s5900_s6 + $0xc18] sm:$0xff] %v2082_v26  ;;  %v2088_v29 = vld [vmem:[%s5895_s0 + $0x2490] sm:$0xff] }
 0x11f   : > { %2085 = vst [vmem:[%s5900_s6 + $0xc20] sm:$0xff] %v2084_v27  ;;  %2087 = vst [vmem:[%s5900_s6 + $0xc28] sm:$0xff] %v2086_v28  ;;  %v2090_v30 = vld [vmem:[%s5895_s0 + $0x24a8] sm:$0xff]  ;;  %v2092_v31 = vld [vmem:[%s5895_s0 + $0x24c0] sm:$0xff] }
 0x120   : > { %2089 = vst [vmem:[%s5900_s6 + $0xc30] sm:$0xff] %v2088_v29  ;;  %2091 = vst [vmem:[%s5900_s6 + $0xc38] sm:$0xff] %v2090_v30  ;;  %v2094_v32 = vld [vmem:[%s5895_s0 + $0x24d8] sm:$0xff]  ;;  %v2096_v33 = vld [vmem:[%s5895_s0 + $0x24f0] sm:$0xff] }
 0x121   : > { %2093 = vst [vmem:[%s5900_s6 + $0xc40] sm:$0xff] %v2092_v31  ;;  %v2098_v34 = vld [vmem:[%s5895_s0 + $0x2508] sm:$0xff]  ;;  %2095 = vst [vmem:[%s5900_s6 + $0xc48] sm:$0xff] %v2094_v32  ;;  %v2100_v35 = vld [vmem:[%s5895_s0 + $0x2520] sm:$0xff] }
 0x122   : > { %2097 = vst [vmem:[%s5900_s6 + $0xc50] sm:$0xff] %v2096_v33  ;;  %2099 = vst [vmem:[%s5900_s6 + $0xc58] sm:$0xff] %v2098_v34  ;;  %v2102_v36 = vld [vmem:[%s5895_s0 + $0x2538] sm:$0xff]  ;;  %v2104_v37 = vld [vmem:[%s5895_s0 + $0x2550] sm:$0xff] }
 0x123   : > { %2101 = vst [vmem:[%s5900_s6 + $0xc60] sm:$0xff] %v2100_v35  ;;  %2103 = vst [vmem:[%s5900_s6 + $0xc68] sm:$0xff] %v2102_v36  ;;  %v2106_v38 = vld [vmem:[%s5895_s0 + $0x2568] sm:$0xff]  ;;  %v2108_v39 = vld [vmem:[%s5895_s0 + $0x2580] sm:$0xff] }
 0x124   : > { %2105 = vst [vmem:[%s5900_s6 + $0xc70] sm:$0xff] %v2104_v37  ;;  %v2110_v40 = vld [vmem:[%s5895_s0 + $0x2598] sm:$0xff]  ;;  %2107 = vst [vmem:[%s5900_s6 + $0xc78] sm:$0xff] %v2106_v38  ;;  %v2112_v41 = vld [vmem:[%s5895_s0 + $0x25b0] sm:$0xff] }
 0x125   : > { %2109 = vst [vmem:[%s5900_s6 + $0xc80] sm:$0xff] %v2108_v39  ;;  %2111 = vst [vmem:[%s5900_s6 + $0xc88] sm:$0xff] %v2110_v40  ;;  %v2114_v42 = vld [vmem:[%s5895_s0 + $0x25c8] sm:$0xff]  ;;  %v2116_v43 = vld [vmem:[%s5895_s0 + $0x25e0] sm:$0xff] }
 0x126   : > { %2113 = vst [vmem:[%s5900_s6 + $0xc90] sm:$0xff] %v2112_v41  ;;  %2115 = vst [vmem:[%s5900_s6 + $0xc98] sm:$0xff] %v2114_v42  ;;  %v2118_v44 = vld [vmem:[%s5895_s0 + $0x25f8] sm:$0xff]  ;;  %v2120_v45 = vld [vmem:[%s5895_s0 + $0x2610] sm:$0xff] }
 0x127   : > { %2117 = vst [vmem:[%s5900_s6 + $0xca0] sm:$0xff] %v2116_v43  ;;  %v2122_v46 = vld [vmem:[%s5895_s0 + $0x2628] sm:$0xff]  ;;  %2119 = vst [vmem:[%s5900_s6 + $0xca8] sm:$0xff] %v2118_v44  ;;  %v2124_v47 = vld [vmem:[%s5895_s0 + $0x2640] sm:$0xff] }
 0x128   : > { %2121 = vst [vmem:[%s5900_s6 + $0xcb0] sm:$0xff] %v2120_v45  ;;  %2123 = vst [vmem:[%s5900_s6 + $0xcb8] sm:$0xff] %v2122_v46  ;;  %v2126_v48 = vld [vmem:[%s5895_s0 + $0x2658] sm:$0xff]  ;;  %v2128_v49 = vld [vmem:[%s5895_s0 + $0x2670] sm:$0xff] }
 0x129   : > { %2125 = vst [vmem:[%s5900_s6 + $0xcc0] sm:$0xff] %v2124_v47  ;;  %2127 = vst [vmem:[%s5900_s6 + $0xcc8] sm:$0xff] %v2126_v48  ;;  %v2130_v50 = vld [vmem:[%s5895_s0 + $0x2688] sm:$0xff]  ;;  %v2132_v51 = vld [vmem:[%s5895_s0 + $0x26a0] sm:$0xff] }
 0x12a   : > { %2129 = vst [vmem:[%s5900_s6 + $0xcd0] sm:$0xff] %v2128_v49  ;;  %v2134_v52 = vld [vmem:[%s5895_s0 + $0x26b8] sm:$0xff]  ;;  %2131 = vst [vmem:[%s5900_s6 + $0xcd8] sm:$0xff] %v2130_v50  ;;  %v2136_v53 = vld [vmem:[%s5895_s0 + $0x26d0] sm:$0xff] }
 0x12b   : > { %2133 = vst [vmem:[%s5900_s6 + $0xce0] sm:$0xff] %v2132_v51  ;;  %2135 = vst [vmem:[%s5900_s6 + $0xce8] sm:$0xff] %v2134_v52  ;;  %v2138_v54 = vld [vmem:[%s5895_s0 + $0x26e8] sm:$0xff]  ;;  %v2140_v55 = vld [vmem:[%s5895_s0 + $0x2700] sm:$0xff] }
 0x12c   : > { %2137 = vst [vmem:[%s5900_s6 + $0xcf0] sm:$0xff] %v2136_v53  ;;  %2139 = vst [vmem:[%s5900_s6 + $0xcf8] sm:$0xff] %v2138_v54  ;;  %v2142_v56 = vld [vmem:[%s5895_s0 + $0x2718] sm:$0xff]  ;;  %v2144_v57 = vld [vmem:[%s5895_s0 + $0x2730] sm:$0xff] }
 0x12d   : > { %2141 = vst [vmem:[%s5900_s6 + $0xd00] sm:$0xff] %v2140_v55  ;;  %v2146_v58 = vld [vmem:[%s5895_s0 + $0x2748] sm:$0xff]  ;;  %2143 = vst [vmem:[%s5900_s6 + $0xd08] sm:$0xff] %v2142_v56  ;;  %v2148_v59 = vld [vmem:[%s5895_s0 + $0x2760] sm:$0xff] }
 0x12e   : > { %2145 = vst [vmem:[%s5900_s6 + $0xd10] sm:$0xff] %v2144_v57  ;;  %2147 = vst [vmem:[%s5900_s6 + $0xd18] sm:$0xff] %v2146_v58  ;;  %v2150_v60 = vld [vmem:[%s5895_s0 + $0x2778] sm:$0xff]  ;;  %v2152_v61 = vld [vmem:[%s5895_s0 + $0x2790] sm:$0xff] }
 0x12f   : > { %2149 = vst [vmem:[%s5900_s6 + $0xd20] sm:$0xff] %v2148_v59  ;;  %2151 = vst [vmem:[%s5900_s6 + $0xd28] sm:$0xff] %v2150_v60  ;;  %v2154_v62 = vld [vmem:[%s5895_s0 + $0x27a8] sm:$0xff]  ;;  %v2156_v63 = vld [vmem:[%s5895_s0 + $0x27c0] sm:$0xff] }
 0x130   : > { %2153 = vst [vmem:[%s5900_s6 + $0xd30] sm:$0xff] %v2152_v61  ;;  %v2158_v0 = vld [vmem:[%s5895_s0 + $0x27d8] sm:$0xff]  ;;  %2155 = vst [vmem:[%s5900_s6 + $0xd38] sm:$0xff] %v2154_v62  ;;  %v2160_v1 = vld [vmem:[%s5895_s0 + $0x27f0] sm:$0xff] }
 0x131   : > { %2157 = vst [vmem:[%s5900_s6 + $0xd40] sm:$0xff] %v2156_v63  ;;  %2159 = vst [vmem:[%s5900_s6 + $0xd48] sm:$0xff] %v2158_v0  ;;  %v2162_v2 = vld [vmem:[%s5895_s0 + $0x2808] sm:$0xff]  ;;  %v2164_v3 = vld [vmem:[%s5895_s0 + $0x2820] sm:$0xff] }
 0x132   : > { %2161 = vst [vmem:[%s5900_s6 + $0xd50] sm:$0xff] %v2160_v1  ;;  %2163 = vst [vmem:[%s5900_s6 + $0xd58] sm:$0xff] %v2162_v2  ;;  %v2166_v4 = vld [vmem:[%s5895_s0 + $0x2838] sm:$0xff]  ;;  %v2168_v5 = vld [vmem:[%s5895_s0 + $0x2850] sm:$0xff] }
 0x133   : > { %2165 = vst [vmem:[%s5900_s6 + $0xd60] sm:$0xff] %v2164_v3  ;;  %v2170_v6 = vld [vmem:[%s5895_s0 + $0x2868] sm:$0xff]  ;;  %2167 = vst [vmem:[%s5900_s6 + $0xd68] sm:$0xff] %v2166_v4  ;;  %v2172_v7 = vld [vmem:[%s5895_s0 + $0x2880] sm:$0xff] }
 0x134   : > { %2169 = vst [vmem:[%s5900_s6 + $0xd70] sm:$0xff] %v2168_v5  ;;  %2171 = vst [vmem:[%s5900_s6 + $0xd78] sm:$0xff] %v2170_v6  ;;  %v2174_v8 = vld [vmem:[%s5895_s0 + $0x2898] sm:$0xff]  ;;  %v2176_v9 = vld [vmem:[%s5895_s0 + $0x28b0] sm:$0xff] }
 0x135   : > { %2173 = vst [vmem:[%s5900_s6 + $0xd80] sm:$0xff] %v2172_v7  ;;  %2175 = vst [vmem:[%s5900_s6 + $0xd88] sm:$0xff] %v2174_v8  ;;  %v2178_v10 = vld [vmem:[%s5895_s0 + $0x28c8] sm:$0xff]  ;;  %v2180_v11 = vld [vmem:[%s5895_s0 + $0x28e0] sm:$0xff] }
 0x136   : > { %2177 = vst [vmem:[%s5900_s6 + $0xd90] sm:$0xff] %v2176_v9  ;;  %v2182_v12 = vld [vmem:[%s5895_s0 + $0x28f8] sm:$0xff]  ;;  %2179 = vst [vmem:[%s5900_s6 + $0xd98] sm:$0xff] %v2178_v10  ;;  %v2184_v13 = vld [vmem:[%s5895_s0 + $0x2910] sm:$0xff] }
 0x137   : > { %2181 = vst [vmem:[%s5900_s6 + $0xda0] sm:$0xff] %v2180_v11  ;;  %2183 = vst [vmem:[%s5900_s6 + $0xda8] sm:$0xff] %v2182_v12  ;;  %v2186_v14 = vld [vmem:[%s5895_s0 + $0x2928] sm:$0xff]  ;;  %v2188_v15 = vld [vmem:[%s5895_s0 + $0x2940] sm:$0xff] }
 0x138   : > { %2185 = vst [vmem:[%s5900_s6 + $0xdb0] sm:$0xff] %v2184_v13  ;;  %2187 = vst [vmem:[%s5900_s6 + $0xdb8] sm:$0xff] %v2186_v14  ;;  %v2190_v16 = vld [vmem:[%s5895_s0 + $0x2958] sm:$0xff]  ;;  %v2192_v17 = vld [vmem:[%s5895_s0 + $0x2970] sm:$0xff] }
 0x139   : > { %2189 = vst [vmem:[%s5900_s6 + $0xdc0] sm:$0xff] %v2188_v15  ;;  %v2194_v18 = vld [vmem:[%s5895_s0 + $0x2988] sm:$0xff]  ;;  %2191 = vst [vmem:[%s5900_s6 + $0xdc8] sm:$0xff] %v2190_v16  ;;  %v2196_v19 = vld [vmem:[%s5895_s0 + $0x29a0] sm:$0xff] }
 0x13a   : > { %2193 = vst [vmem:[%s5900_s6 + $0xdd0] sm:$0xff] %v2192_v17  ;;  %2195 = vst [vmem:[%s5900_s6 + $0xdd8] sm:$0xff] %v2194_v18  ;;  %v2198_v20 = vld [vmem:[%s5895_s0 + $0x29b8] sm:$0xff]  ;;  %v2200_v21 = vld [vmem:[%s5895_s0 + $0x29d0] sm:$0xff] }
 0x13b   : > { %2197 = vst [vmem:[%s5900_s6 + $0xde0] sm:$0xff] %v2196_v19  ;;  %2199 = vst [vmem:[%s5900_s6 + $0xde8] sm:$0xff] %v2198_v20  ;;  %v2202_v22 = vld [vmem:[%s5895_s0 + $0x29e8] sm:$0xff]  ;;  %v2204_v23 = vld [vmem:[%s5895_s0 + $0x2a00] sm:$0xff] }
 0x13c   : > { %2201 = vst [vmem:[%s5900_s6 + $0xdf0] sm:$0xff] %v2200_v21  ;;  %v2206_v24 = vld [vmem:[%s5895_s0 + $0x2a18] sm:$0xff]  ;;  %2203 = vst [vmem:[%s5900_s6 + $0xdf8] sm:$0xff] %v2202_v22  ;;  %v2208_v25 = vld [vmem:[%s5895_s0 + $0x2a30] sm:$0xff] }
 0x13d   : > { %2205 = vst [vmem:[%s5900_s6 + $0xe00] sm:$0xff] %v2204_v23  ;;  %2207 = vst [vmem:[%s5900_s6 + $0xe08] sm:$0xff] %v2206_v24  ;;  %v2210_v26 = vld [vmem:[%s5895_s0 + $0x2a48] sm:$0xff]  ;;  %v2212_v27 = vld [vmem:[%s5895_s0 + $0x2a60] sm:$0xff] }
 0x13e   : > { %2209 = vst [vmem:[%s5900_s6 + $0xe10] sm:$0xff] %v2208_v25  ;;  %2211 = vst [vmem:[%s5900_s6 + $0xe18] sm:$0xff] %v2210_v26  ;;  %v2214_v28 = vld [vmem:[%s5895_s0 + $0x2a78] sm:$0xff]  ;;  %v2216_v29 = vld [vmem:[%s5895_s0 + $0x2a90] sm:$0xff] }
 0x13f   : > { %2213 = vst [vmem:[%s5900_s6 + $0xe20] sm:$0xff] %v2212_v27  ;;  %v2218_v30 = vld [vmem:[%s5895_s0 + $0x2aa8] sm:$0xff]  ;;  %2215 = vst [vmem:[%s5900_s6 + $0xe28] sm:$0xff] %v2214_v28  ;;  %v2220_v31 = vld [vmem:[%s5895_s0 + $0x2ac0] sm:$0xff] }
 0x140   : > { %2217 = vst [vmem:[%s5900_s6 + $0xe30] sm:$0xff] %v2216_v29  ;;  %2219 = vst [vmem:[%s5900_s6 + $0xe38] sm:$0xff] %v2218_v30  ;;  %v2222_v32 = vld [vmem:[%s5895_s0 + $0x2ad8] sm:$0xff]  ;;  %v2224_v33 = vld [vmem:[%s5895_s0 + $0x2af0] sm:$0xff] }
 0x141   : > { %2221 = vst [vmem:[%s5900_s6 + $0xe40] sm:$0xff] %v2220_v31  ;;  %2223 = vst [vmem:[%s5900_s6 + $0xe48] sm:$0xff] %v2222_v32  ;;  %v2226_v34 = vld [vmem:[%s5895_s0 + $0x2b08] sm:$0xff]  ;;  %v2228_v35 = vld [vmem:[%s5895_s0 + $0x2b20] sm:$0xff] }
 0x142   : > { %2225 = vst [vmem:[%s5900_s6 + $0xe50] sm:$0xff] %v2224_v33  ;;  %v2230_v36 = vld [vmem:[%s5895_s0 + $0x2b38] sm:$0xff]  ;;  %2227 = vst [vmem:[%s5900_s6 + $0xe58] sm:$0xff] %v2226_v34  ;;  %v2232_v37 = vld [vmem:[%s5895_s0 + $0x2b50] sm:$0xff] }
 0x143   : > { %2229 = vst [vmem:[%s5900_s6 + $0xe60] sm:$0xff] %v2228_v35  ;;  %2231 = vst [vmem:[%s5900_s6 + $0xe68] sm:$0xff] %v2230_v36  ;;  %v2234_v38 = vld [vmem:[%s5895_s0 + $0x2b68] sm:$0xff] }
 0x144   : > { %2233 = vst [vmem:[%s5900_s6 + $0xe70] sm:$0xff] %v2232_v37  ;;  %2235 = vst [vmem:[%s5900_s6 + $0xe78] sm:$0xff] %v2234_v38 }
 0x145 PF: > { %p4244_p0 = scmp.ge.s32.totalorder %s5576_s22, 1  ;;  %p2240_p1 = scmp.lt.s32.totalorder %s5576_s22, 7 }
 0x147   : > { %p2241_p2 = pnand %p4244_p0, %p2240_p1 }
 0x148   : > { %s2247_s5 = sand.u32 (!%p2241_p2), 1, %s5552_s16   ;;  %s2254_s23 = sand.u32 (!%p2241_p2), 1, %s5544_s14  }
 0x149   : > { %2244 = sbr.rel (%p2241_p2) target bundleno = 932 (0x3a4), region = 85  ;;  %s2277_s7 = sand.u32 (!%p2241_p2), 1, %s5536_s12  }
 0x14a   : > { %s5379_s28 = smul.u32 (!%p2241_p2), 696, %s2247_s5  ;;  %p4245_p3 = scmp.ne.s32.totalorder (!%p2241_p2), %s5560_s18, 0 }
 0x14b   : > { %s5380_s11 = smul.u32 (!%p2241_p2), 3712, %s2254_s23 }
 0x14c   : > { %s5381_s26 = smul.u32 (!%p2241_p2), 24, %s2277_s7  ;;  %s6832_s0 = scalar_lea.vmem (!%p2241_p2), [#allocation3], %s5379_s28 }
 0x14d   : > { %s6834_s27 = scalar_lea.vmem (!%p2241_p2), [#allocation4], %s5380_s11 }
 0x14e   : > { %s6836_s29 = scalar_lea.vmem (!%p2241_p2), [#allocation5], %s5381_s26 }
 0x150   : > { %2285 = sbr.rel (%p4245_p3) target bundleno = 343 (0x157), region = 97  ;;  %v5578_v39 = vmov (!%p4245_p3), 0.0  }
 0x151   : > { %2286 = vst [vmem:[#allocation2] sm:$0xff] (!%p4245_p3), %v5578_v39  ;;  %2287 = vst [vmem:[#allocation2 + $0x8] sm:$0xff] (!%p4245_p3), %v5578_v39 }
 0x152   : > { %2288 = vst [vmem:[#allocation2 + $0x10] sm:$0xff] (!%p4245_p3), %v5578_v39 }
 0x157 PF: > { %v2395_v40 = vld [vmem:[%s6834_s27 + $0x80] sm:$0xff]  ;;  %v2396_v41 = vld [vmem:[%s6834_s27 + $0x88] sm:$0xff]  ;;  %v2397_v51 = vld [vmem:[%s6834_s27 + $0x90] sm:$0xff]  ;;  %vm5580_vm0 = vmmov 0   ;;  %p4246_p4 = scmp.ne.s32.totalorder %s5560_s18, 1 }
 0x158   : > { %v2427_v42 = vld [vmem:[%s6834_s27 + $0x180] sm:$0xff]  ;;  %v4888_v43 = vpack.c.bf16 %v2396_v41, %v2395_v40  ;;  %v2428_v44 = vld [vmem:[%s6834_s27 + $0x188] sm:$0xff]  ;;  %v2398_v53 = vld [vmem:[%s6834_s27 + $0x98] sm:$0xff] }
 0x159   : > { %v2379_v45 = vld [vmem:[%s6834_s27] sm:$0xff]  ;;  %v2380_v46 = vld [vmem:[%s6834_s27 + $0x8] sm:$0xff]  ;;  %v4920_v47 = vpack.c.bf16 %v2428_v44, %v2427_v42  ;;  %v2429_v54 = vld [vmem:[%s6834_s27 + $0x190] sm:$0xff]  ;;  %v4892_v56 = vpack.c.bf16 %v2398_v53, %v2397_v51 }
 0x15a   : > { %v4890_v48 = vpack.c.bf16 %v2380_v46, %v2379_v45  ;;  %v2411_v49 = vld [vmem:[%s6834_s27 + $0x100] sm:$0xff]  ;;  %v2412_v50 = vld [vmem:[%s6834_s27 + $0x108] sm:$0xff]  ;;  %4889 = vmatprep.subr.bf16.mxu0 %v4888_v43  ;;  %v2430_v55 = vld [vmem:[%s6834_s27 + $0x198] sm:$0xff] }
 0x15b   : > { %v4922_v52 = vpack.c.bf16 %v2412_v50, %v2411_v49  ;;  %4921 = vmatprep.subr.bf16.mxu1 %v4920_v47  ;;  %v4924_v57 = vpack.c.bf16 %v2430_v55, %v2429_v54  ;;  %v2381_v58 = vld [vmem:[%s6834_s27 + $0x10] sm:$0xff]  ;;  %v2382_v59 = vld [vmem:[%s6834_s27 + $0x18] sm:$0xff]  ;;  %v2399_v63 = vld [vmem:[%s6834_s27 + $0xa0] sm:$0xff] }
 0x15c   : > { %4891 = vmatpush3.bf16.msra.mxu0 %v4890_v48  ;;  %v2413_v60 = vld [vmem:[%s6834_s27 + $0x110] sm:$0xff]  ;;  %v4894_v61 = vpack.c.bf16 %v2382_v59, %v2381_v58  ;;  %v2414_v62 = vld [vmem:[%s6834_s27 + $0x118] sm:$0xff]  ;;  %v2400_v0 = vld [vmem:[%s6834_s27 + $0xa8] sm:$0xff] }
 0x15d   : > { %4923 = vmatpush3.bf16.msra.mxu1 %v4922_v52  ;;  %4893 = vmatprep.subr.bf16.mxu0 %v4892_v56  ;;  %v4926_v1 = vpack.c.bf16 %v2414_v62, %v2413_v60  ;;  %v4896_v2 = vpack.c.bf16 %v2400_v0, %v2399_v63  ;;  %v2431_v3 = vld [vmem:[%s6834_s27 + $0x1a0] sm:$0xff]  ;;  %v2432_v4 = vld [vmem:[%s6834_s27 + $0x1a8] sm:$0xff]  ;;  %v2401_v11 = vld [vmem:[%s6834_s27 + $0xb0] sm:$0xff] }
 0x15e   : > { %4925 = vmatprep.subr.bf16.mxu1 %v4924_v57  ;;  %v2383_v5 = vld [vmem:[%s6834_s27 + $0x20] sm:$0xff]  ;;  %v4928_v6 = vpack.c.bf16 %v2432_v4, %v2431_v3  ;;  %v2384_v7 = vld [vmem:[%s6834_s27 + $0x28] sm:$0xff]  ;;  %v2402_v12 = vld [vmem:[%s6834_s27 + $0xb8] sm:$0xff] }
 0x15f   : > { %v2415_v8 = vld [vmem:[%s6834_s27 + $0x120] sm:$0xff]  ;;  %v2416_v9 = vld [vmem:[%s6834_s27 + $0x128] sm:$0xff]  ;;  %v4898_v10 = vpack.c.bf16 %v2384_v7, %v2383_v5  ;;  %v2433_v13 = vld [vmem:[%s6834_s27 + $0x1b0] sm:$0xff]  ;;  %v4900_v15 = vpack.c.bf16 %v2402_v12, %v2401_v11 }
 0x160   : > { %4895 = vmatpush3.bf16.msra.mxu0 %v4894_v61  ;;  %v4930_v14 = vpack.c.bf16 %v2416_v9, %v2415_v8  ;;  %v2434_v16 = vld [vmem:[%s6834_s27 + $0x1b8] sm:$0xff]  ;;  %v2385_v17 = vld [vmem:[%s6834_s27 + $0x30] sm:$0xff]  ;;  %v2403_v22 = vld [vmem:[%s6834_s27 + $0xc0] sm:$0xff] }
 0x161   : > { %4927 = vmatpush3.bf16.msra.mxu1 %v4926_v1  ;;  %4897 = vmatprep.subr.bf16.mxu0 %v4896_v2  ;;  %v2386_v18 = vld [vmem:[%s6834_s27 + $0x38] sm:$0xff]  ;;  %v4932_v19 = vpack.c.bf16 %v2434_v16, %v2433_v13  ;;  %v2417_v20 = vld [vmem:[%s6834_s27 + $0x130] sm:$0xff]  ;;  %v2404_v23 = vld [vmem:[%s6834_s27 + $0xc8] sm:$0xff] }
 0x162   : > { %4929 = vmatprep.subr.bf16.mxu1 %v4928_v6  ;;  %v2418_v21 = vld [vmem:[%s6834_s27 + $0x138] sm:$0xff]  ;;  %v2435_v24 = vld [vmem:[%s6834_s27 + $0x1c0] sm:$0xff]  ;;  %v2436_v25 = vld [vmem:[%s6834_s27 + $0x1c8] sm:$0xff]  ;;  %v4902_v26 = vpack.c.bf16 %v2386_v18, %v2385_v17  ;;  %v4904_v28 = vpack.c.bf16 %v2404_v23, %v2403_v22 }
 0x163   : > { %v4934_v27 = vpack.c.bf16 %v2418_v21, %v2417_v20  ;;  %v2387_v29 = vld [vmem:[%s6834_s27 + $0x40] sm:$0xff]  ;;  %v2388_v30 = vld [vmem:[%s6834_s27 + $0x48] sm:$0xff]  ;;  %v4936_v32 = vpack.c.bf16 %v2436_v25, %v2435_v24  ;;  %v2405_v34 = vld [vmem:[%s6834_s27 + $0xd0] sm:$0xff] }
 0x164   : > { %4899 = vmatpush3.bf16.msra.mxu0 %v4898_v10  ;;  %v2419_v31 = vld [vmem:[%s6834_s27 + $0x140] sm:$0xff]  ;;  %v2420_v33 = vld [vmem:[%s6834_s27 + $0x148] sm:$0xff]  ;;  %v2406_v35 = vld [vmem:[%s6834_s27 + $0xd8] sm:$0xff]  ;;  %v4906_v38 = vpack.c.bf16 %v2388_v30, %v2387_v29 }
 0x165   : > { %4931 = vmatpush3.bf16.msra.mxu1 %v4930_v14  ;;  %4901 = vmatprep.subr.bf16.mxu0 %v4900_v15  ;;  %v2437_v36 = vld [vmem:[%s6834_s27 + $0x1d0] sm:$0xff]  ;;  %v2438_v37 = vld [vmem:[%s6834_s27 + $0x1d8] sm:$0xff]  ;;  %v4938_v39 = vpack.c.bf16 %v2420_v33, %v2419_v31  ;;  %v4908_v40 = vpack.c.bf16 %v2406_v35, %v2405_v34  ;;  %v2407_v46 = vld [vmem:[%s6834_s27 + $0xe0] sm:$0xff] }
 0x166   : > { %4933 = vmatprep.subr.bf16.mxu1 %v4932_v19  ;;  %v2389_v41 = vld [vmem:[%s6834_s27 + $0x50] sm:$0xff]  ;;  %v2390_v42 = vld [vmem:[%s6834_s27 + $0x58] sm:$0xff]  ;;  %v4940_v44 = vpack.c.bf16 %v2438_v37, %v2437_v36  ;;  %v2408_v47 = vld [vmem:[%s6834_s27 + $0xe8] sm:$0xff] }
 0x167   : > { %v2421_v43 = vld [vmem:[%s6834_s27 + $0x150] sm:$0xff]  ;;  %v2422_v45 = vld [vmem:[%s6834_s27 + $0x158] sm:$0xff]  ;;  %v2439_v48 = vld [vmem:[%s6834_s27 + $0x1e0] sm:$0xff]  ;;  %v4910_v50 = vpack.c.bf16 %v2390_v42, %v2389_v41  ;;  %v4912_v54 = vpack.c.bf16 %v2408_v47, %v2407_v46 }
 0x168   : > { %4903 = vmatpush3.bf16.msra.mxu0 %v4902_v26  ;;  %v2440_v49 = vld [vmem:[%s6834_s27 + $0x1e8] sm:$0xff]  ;;  %v2391_v51 = vld [vmem:[%s6834_s27 + $0x60] sm:$0xff]  ;;  %v4942_v53 = vpack.c.bf16 %v2422_v45, %v2421_v43  ;;  %v2293_v56 = vld [vmem:[%s6832_s0 + $0x8] sm:$0xff] }
 0x169   : > { %4935 = vmatpush3.bf16.msra.mxu1 %v4934_v27  ;;  %4905 = vmatprep.subr.bf16.mxu0 %v4904_v28  ;;  %v2392_v52 = vld [vmem:[%s6834_s27 + $0x68] sm:$0xff]  ;;  %v2423_v55 = vld [vmem:[%s6834_s27 + $0x160] sm:$0xff]  ;;  %v4944_v58 = vpack.c.bf16 %v2440_v49, %v2439_v48  ;;  %v2409_v60 = vld [vmem:[%s6834_s27 + $0xf0] sm:$0xff] }
 0x16a   : > { %4937 = vmatprep.subr.bf16.mxu1 %v4936_v32  ;;  %v2295_v57 = vld [vmem:[%s6832_s0 + $0x18] sm:$0xff]  ;;  %v2410_v61 = vld [vmem:[%s6834_s27 + $0xf8] sm:$0xff]  ;;  %2907 = vmatprep.mubr.f32.mxu0 %v2293_v56  ;;  %v2441_v62 = vld [vmem:[%s6834_s27 + $0x1f0] sm:$0xff]  ;;  %v4914_v0 = vpack.c.bf16 %v2392_v52, %v2391_v51 }
 0x16b   : > { %v2424_v59 = vld [vmem:[%s6834_s27 + $0x168] sm:$0xff]  ;;  %v2442_v63 = vld [vmem:[%s6834_s27 + $0x1f8] sm:$0xff]  ;;  %2987 = vmatprep.mubr.f32.mxu1 %v2295_v57  ;;  %v4916_v2 = vpack.c.bf16 %v2410_v61, %v2409_v60  ;;  %v2393_v3 = vld [vmem:[%s6834_s27 + $0x70] sm:$0xff] }
 0x16c   : > { %4907 = vmatpush3.bf16.msra.mxu0 %v4906_v38  ;;  %v4946_v1 = vpack.c.bf16 %v2424_v59, %v2423_v55  ;;  %v2394_v4 = vld [vmem:[%s6834_s27 + $0x78] sm:$0xff]  ;;  %v2425_v5 = vld [vmem:[%s6834_s27 + $0x170] sm:$0xff]  ;;  %v4948_v6 = vpack.c.bf16 %v2442_v63, %v2441_v62  ;;  %v2459_v8 = vld [vmem:[%s6834_s27 + $0x280] sm:$0xff] }
 0x16d   : > { %4939 = vmatpush3.bf16.msra.mxu1 %v4938_v39  ;;  %4909 = vmatprep.subr.bf16.mxu0 %v4908_v40  ;;  %v2426_v7 = vld [vmem:[%s6834_s27 + $0x178] sm:$0xff]  ;;  %v2460_v9 = vld [vmem:[%s6834_s27 + $0x288] sm:$0xff]  ;;  %v2491_v10 = vld [vmem:[%s6834_s27 + $0x380] sm:$0xff]  ;;  %v4918_v12 = vpack.c.bf16 %v2394_v4, %v2393_v3 }
 0x16e   : > { %4941 = vmatprep.subr.bf16.mxu1 %v4940_v44  ;;  %v2492_v11 = vld [vmem:[%s6834_s27 + $0x388] sm:$0xff]  ;;  %v4950_v13 = vpack.c.bf16 %v2426_v7, %v2425_v5  ;;  %v4952_v14 = vpack.c.bf16 %v2460_v9, %v2459_v8  ;;  %v2443_v15 = vld [vmem:[%s6834_s27 + $0x200] sm:$0xff]  ;;  %v2461_v20 = vld [vmem:[%s6834_s27 + $0x290] sm:$0xff] }
 0x16f   : > { %v2444_v16 = vld [vmem:[%s6834_s27 + $0x208] sm:$0xff]  ;;  %v2475_v17 = vld [vmem:[%s6834_s27 + $0x300] sm:$0xff]  ;;  %v4984_v18 = vpack.c.bf16 %v2492_v11, %v2491_v10  ;;  %v2462_v21 = vld [vmem:[%s6834_s27 + $0x298] sm:$0xff] }
 0x170   : > { %4911 = vmatpush3.bf16.msra.mxu0 %v4910_v50  ;;  %v2476_v19 = vld [vmem:[%s6834_s27 + $0x308] sm:$0xff]  ;;  %v2493_v22 = vld [vmem:[%s6834_s27 + $0x390] sm:$0xff]  ;;  %v2494_v23 = vld [vmem:[%s6834_s27 + $0x398] sm:$0xff]  ;;  %v4954_v26 = vpack.c.bf16 %v2444_v16, %v2443_v15  ;;  %v4956_v28 = vpack.c.bf16 %v2462_v21, %v2461_v20 }
 0x171   : > { %4943 = vmatpush3.bf16.msra.mxu1 %v4942_v53  ;;  %4913 = vmatprep.subr.bf16.mxu0 %v4912_v54  ;;  %v2292_v24 = vld [vmem:[%s6832_s0] sm:$0xff]  ;;  %v2294_v25 = vld [vmem:[%s6832_s0 + $0x10] sm:$0xff]  ;;  %v4986_v27 = vpack.c.bf16 %v2476_v19, %v2475_v17  ;;  %v4988_v32 = vpack.c.bf16 %v2494_v23, %v2493_v22  ;;  %v2321_v52 = vld [vmem:[%s6832_s0 + $0xe8] sm:$0xff] }
 0x172   : > { %4945 = vmatprep.subr.bf16.mxu1 %v4944_v58  ;;  %v2445_v29 = vld [vmem:[%s6834_s27 + $0x210] sm:$0xff]  ;;  %v2446_v30 = vld [vmem:[%s6834_s27 + $0x218] sm:$0xff]  ;;  %v2463_v34 = vld [vmem:[%s6834_s27 + $0x2a0] sm:$0xff] }
 0x173   : > { %v2477_v31 = vld [vmem:[%s6834_s27 + $0x310] sm:$0xff]  ;;  %v2478_v33 = vld [vmem:[%s6834_s27 + $0x318] sm:$0xff]  ;;  %v2464_v35 = vld [vmem:[%s6834_s27 + $0x2a8] sm:$0xff]  ;;  %v4958_v38 = vpack.c.bf16 %v2446_v30, %v2445_v29 }
 0x174   : > { %4915 = vmatpush3.bf16.msra.mxu0 %v4914_v0  ;;  %v2495_v36 = vld [vmem:[%s6834_s27 + $0x3a0] sm:$0xff]  ;;  %v2496_v37 = vld [vmem:[%s6834_s27 + $0x3a8] sm:$0xff]  ;;  %v4990_v41 = vpack.c.bf16 %v2478_v33, %v2477_v31  ;;  %v4960_v42 = vpack.c.bf16 %v2464_v35, %v2463_v34  ;;  %v2465_v45 = vld [vmem:[%s6834_s27 + $0x2b0] sm:$0xff] }
 0x175   : > { %4947 = vmatpush3.bf16.msra.mxu1 %v4946_v1  ;;  %4917 = vmatprep.subr.bf16.mxu0 %v4916_v2  ;;  %v2447_v39 = vld [vmem:[%s6834_s27 + $0x220] sm:$0xff]  ;;  %v2448_v40 = vld [vmem:[%s6834_s27 + $0x228] sm:$0xff]  ;;  %v4992_v46 = vpack.c.bf16 %v2496_v37, %v2495_v36  ;;  %v2466_v47 = vld [vmem:[%s6834_s27 + $0x2b8] sm:$0xff] }
 0x176   : > { %4949 = vmatprep.subr.bf16.mxu1 %v4948_v6  ;;  %v2479_v43 = vld [vmem:[%s6834_s27 + $0x320] sm:$0xff]  ;;  %v2480_v44 = vld [vmem:[%s6834_s27 + $0x328] sm:$0xff]  ;;  %v2497_v48 = vld [vmem:[%s6834_s27 + $0x3b0] sm:$0xff]  ;;  %v4962_v53 = vpack.c.bf16 %v2448_v40, %v2447_v39  ;;  %v4964_v58 = vpack.c.bf16 %v2466_v47, %v2465_v45 }
 0x177   : > { %v2322_v49 = vld [vmem:[%s6832_s0 + $0xf0] sm:$0xff]  ;;  %v2324_v51 = vld [vmem:[%s6832_s0 + $0x100] sm:$0xff]  ;;  %v2323_v56 = vld [vmem:[%s6832_s0 + $0xf8] sm:$0xff]  ;;  %v4994_v57 = vpack.c.bf16 %v2480_v44, %v2479_v43 }
 0x178   : > { %4919 = vmatpush3.bf16.msra.mxu0 %v4918_v12  ;;  %v2498_v50 = vld [vmem:[%s6834_s27 + $0x3b8] sm:$0xff]  ;;  %v2449_v54 = vld [vmem:[%s6834_s27 + $0x230] sm:$0xff]  ;;  %v2467_v61 = vld [vmem:[%s6834_s27 + $0x2c0] sm:$0xff] }
 0x179   : > { %4951 = vmatpush3.bf16.msra.mxu1 %v4950_v13  ;;  %4953 = vmatprep.subr.bf16.mxu0 %v4952_v14  ;;  %v2450_v55 = vld [vmem:[%s6834_s27 + $0x238] sm:$0xff]  ;;  %v2481_v59 = vld [vmem:[%s6834_s27 + $0x330] sm:$0xff]  ;;  %v4996_v62 = vpack.c.bf16 %v2498_v50, %v2497_v48  ;;  %v2468_v63 = vld [vmem:[%s6834_s27 + $0x2c8] sm:$0xff] }
 0x17a   : > { %4985 = vmatprep.subr.bf16.mxu1 %v4984_v18  ;;  %v2482_v60 = vld [vmem:[%s6834_s27 + $0x338] sm:$0xff]  ;;  %v2499_v0 = vld [vmem:[%s6834_s27 + $0x3c0] sm:$0xff]  ;;  %v2500_v2 = vld [vmem:[%s6834_s27 + $0x3c8] sm:$0xff]  ;;  %v4966_v5 = vpack.c.bf16 %v2450_v55, %v2449_v54  ;;  %v4968_v9 = vpack.c.bf16 %v2468_v63, %v2467_v61 }
 0x17b   : > { %2908 = vmatmul.mubr.f32.vlgmr.msra.gmra.mrb[0].mxu0 %v2292_v24  ;;  %v2351_v1 = vld [vmem:[%s6832_s0 + $0x1d8] sm:$0xff]  ;;  %v2353_v3 = vld [vmem:[%s6832_s0 + $0x1e8] sm:$0xff]  ;;  %v2350_v4 = vld [vmem:[%s6832_s0 + $0x1d0] sm:$0xff]  ;;  %v4998_v8 = vpack.c.bf16 %v2482_v60, %v2481_v59  ;;  %v5000_v13 = vpack.c.bf16 %v2500_v2, %v2499_v0 }
 0x17c   : > { %2988 = vmatmul.mubr.f32.vlgmr.msra.gmra.mrb[0].mxu1 %v2294_v25  ;;  %4955 = vmatpush3.bf16.msra.mxu0 %v4954_v26  ;;  %v2451_v6 = vld [vmem:[%s6834_s27 + $0x240] sm:$0xff]  ;;  %v2352_v7 = vld [vmem:[%s6832_s0 + $0x1e0] sm:$0xff]  ;;  %v2470_v15 = vld [vmem:[%s6834_s27 + $0x2d8] sm:$0xff] }
 0x17d   : > { %4987 = vmatpush3.bf16.msra.mxu1 %v4986_v27  ;;  %4957 = vmatprep.subr.bf16.mxu0 %v4956_v28  ;;  %v2452_v10 = vld [vmem:[%s6834_s27 + $0x248] sm:$0xff]  ;;  %v2483_v11 = vld [vmem:[%s6834_s27 + $0x340] sm:$0xff]  ;;  %v2469_v14 = vld [vmem:[%s6834_s27 + $0x2d0] sm:$0xff] }
 0x17e   : > { %4989 = vmatprep.subr.bf16.mxu1 %v4988_v32  ;;  %2912 = vmatprep.mubr.f32.mxu0 %v2322_v49  ;;  %v2484_v12 = vld [vmem:[%s6834_s27 + $0x348] sm:$0xff]  ;;  %v2297_v16 = vld [vmem:[%s6832_s0 + $0x28] sm:$0xff]  ;;  %v4970_v20 = vpack.c.bf16 %v2452_v10, %v2451_v6  ;;  %v4972_v22 = vpack.c.bf16 %v2470_v15, %v2469_v14  ;;  %v2471_v28 = vld [vmem:[%s6834_s27 + $0x2e0] sm:$0xff] }
 0x17f   : > { %2992 = vmatprep.mubr.f32.mxu1 %v2324_v51  ;;  %2913 = vmatmul.mubr.f32.gmra.mrb[2].mxu0 %v2321_v52  ;;  %v2501_v17 = vld [vmem:[%s6834_s27 + $0x3d0] sm:$0xff]  ;;  %v2502_v18 = vld [vmem:[%s6834_s27 + $0x3d8] sm:$0xff]  ;;  %v2299_v19 = vld [vmem:[%s6832_s0 + $0x38] sm:$0xff]  ;;  %v5002_v21 = vpack.c.bf16 %v2484_v12, %v2483_v11 }
 0x180   : > { %4959 = vmatpush3.bf16.msra.mxu0 %v4958_v38  ;;  %2993 = vmatmul.mubr.f32.gmra.mrb[2].mxu1 %v2323_v56  ;;  %v2453_v23 = vld [vmem:[%s6834_s27 + $0x250] sm:$0xff]  ;;  %v2454_v24 = vld [vmem:[%s6834_s27 + $0x258] sm:$0xff]  ;;  %v5004_v26 = vpack.c.bf16 %v2502_v18, %v2501_v17  ;;  %v2472_v29 = vld [vmem:[%s6834_s27 + $0x2e8] sm:$0xff] }
 0x181   : > { %4991 = vmatpush3.bf16.msra.mxu1 %v4990_v41  ;;  %4961 = vmatprep.subr.bf16.mxu0 %v4960_v42  ;;  %v2485_v25 = vld [vmem:[%s6834_s27 + $0x350] sm:$0xff]  ;;  %v2486_v27 = vld [vmem:[%s6834_s27 + $0x358] sm:$0xff]  ;;  %v2503_v30 = vld [vmem:[%s6834_s27 + $0x3e0] sm:$0xff]  ;;  %v4974_v32 = vpack.c.bf16 %v2454_v24, %v2453_v23  ;;  %v4976_v34 = vpack.c.bf16 %v2472_v29, %v2471_v28 }
 0x182   : > { %4993 = vmatprep.subr.bf16.mxu1 %v4992_v46  ;;  %2917 = vmatprep.mubr.f32.mxu0 %v2351_v1  ;;  %v2504_v31 = vld [vmem:[%s6834_s27 + $0x3e8] sm:$0xff]  ;;  %v5006_v33 = vpack.c.bf16 %v2486_v27, %v2485_v25  ;;  %v2455_v35 = vld [vmem:[%s6834_s27 + $0x260] sm:$0xff]  ;;  %v2473_v40 = vld [vmem:[%s6834_s27 + $0x2f0] sm:$0xff] }
 0x183   : > { %2997 = vmatprep.mubr.f32.mxu1 %v2353_v3  ;;  %2918 = vmatmul.mubr.f32.gmra.mrb[4].mxu0 %v2350_v4  ;;  %v2456_v36 = vld [vmem:[%s6834_s27 + $0x268] sm:$0xff]  ;;  %v2487_v37 = vld [vmem:[%s6834_s27 + $0x360] sm:$0xff]  ;;  %v5008_v38 = vpack.c.bf16 %v2504_v31, %v2503_v30  ;;  %v2474_v41 = vld [vmem:[%s6834_s27 + $0x2f8] sm:$0xff] }
 0x184   : > { %4963 = vmatpush3.bf16.msra.mxu0 %v4962_v53  ;;  %2998 = vmatmul.mubr.f32.gmra.mrb[4].mxu1 %v2352_v7  ;;  %v2488_v39 = vld [vmem:[%s6834_s27 + $0x368] sm:$0xff]  ;;  %v2505_v42 = vld [vmem:[%s6834_s27 + $0x3f0] sm:$0xff]  ;;  %v2506_v43 = vld [vmem:[%s6834_s27 + $0x3f8] sm:$0xff]  ;;  %v4978_v44 = vpack.c.bf16 %v2456_v36, %v2455_v35  ;;  %v4980_v46 = vpack.c.bf16 %v2474_v41, %v2473_v40 }
 0x185   : > { %4995 = vmatpush3.bf16.msra.mxu1 %v4994_v57  ;;  %4965 = vmatprep.subr.bf16.mxu0 %v4964_v58  ;;  %v5010_v45 = vpack.c.bf16 %v2488_v39, %v2487_v37  ;;  %v2457_v47 = vld [vmem:[%s6834_s27 + $0x270] sm:$0xff]  ;;  %v2458_v48 = vld [vmem:[%s6834_s27 + $0x278] sm:$0xff]  ;;  %v5012_v50 = vpack.c.bf16 %v2506_v43, %v2505_v42  ;;  %v2523_v52 = vld [vmem:[%s6834_s27 + $0x480] sm:$0xff] }
 0x186   : > { %4997 = vmatprep.subr.bf16.mxu1 %v4996_v62  ;;  %3067 = vmatprep.mubr.f32.mxu0 %v2297_v16  ;;  %v2489_v49 = vld [vmem:[%s6834_s27 + $0x370] sm:$0xff]  ;;  %v2490_v51 = vld [vmem:[%s6834_s27 + $0x378] sm:$0xff]  ;;  %v2524_v53 = vld [vmem:[%s6834_s27 + $0x488] sm:$0xff]  ;;  %v4982_v56 = vpack.c.bf16 %v2458_v48, %v2457_v47 }
 0x187   : > { %3147 = vmatprep.mubr.f32.mxu1 %v2299_v19  ;;  %v2555_v54 = vld [vmem:[%s6834_s27 + $0x580] sm:$0xff]  ;;  %v2556_v55 = vld [vmem:[%s6834_s27 + $0x588] sm:$0xff]  ;;  %v5014_v57 = vpack.c.bf16 %v2490_v51, %v2489_v49  ;;  %v5016_v58 = vpack.c.bf16 %v2524_v53, %v2523_v52  ;;  %v2525_v0 = vld [vmem:[%s6834_s27 + $0x490] sm:$0xff] }
 0x188   : > { %4967 = vmatpush3.bf16.msra.mxu0 %v4966_v5  ;;  %v2507_v59 = vld [vmem:[%s6834_s27 + $0x400] sm:$0xff]  ;;  %v2508_v60 = vld [vmem:[%s6834_s27 + $0x408] sm:$0xff]  ;;  %v5048_v61 = vpack.c.bf16 %v2556_v55, %v2555_v54  ;;  %v2526_v1 = vld [vmem:[%s6834_s27 + $0x498] sm:$0xff] }
 0x189   : > { %4999 = vmatpush3.bf16.msra.mxu1 %v4998_v8  ;;  %4969 = vmatprep.subr.bf16.mxu0 %v4968_v9  ;;  %v2539_v62 = vld [vmem:[%s6834_s27 + $0x500] sm:$0xff]  ;;  %v2540_v63 = vld [vmem:[%s6834_s27 + $0x508] sm:$0xff]  ;;  %v2557_v2 = vld [vmem:[%s6834_s27 + $0x590] sm:$0xff]  ;;  %v5018_v6 = vpack.c.bf16 %v2508_v60, %v2507_v59  ;;  %v5020_v12 = vpack.c.bf16 %v2526_v1, %v2525_v0 }
 0x18a   : > { %5001 = vmatprep.subr.bf16.mxu1 %v5000_v13  ;;  %v2558_v3 = vld [vmem:[%s6834_s27 + $0x598] sm:$0xff]  ;;  %v2296_v4 = vld [vmem:[%s6832_s0 + $0x20] sm:$0xff]  ;;  %v5050_v7 = vpack.c.bf16 %v2540_v63, %v2539_v62  ;;  %v2527_v16 = vld [vmem:[%s6834_s27 + $0x4a0] sm:$0xff] }
 0x18b   : > { %v2298_v5 = vld [vmem:[%s6832_s0 + $0x30] sm:$0xff]  ;;  %v2509_v9 = vld [vmem:[%s6834_s27 + $0x410] sm:$0xff]  ;;  %v5052_v13 = vpack.c.bf16 %v2558_v3, %v2557_v2  ;;  %v2528_v17 = vld [vmem:[%s6834_s27 + $0x4a8] sm:$0xff] }
 0x18c   : > { %4971 = vmatpush3.bf16.msra.mxu0 %v4970_v20  ;;  %v2326_v8 = vld [vmem:[%s6832_s0 + $0x110] sm:$0xff]  ;;  %v2325_v11 = vld [vmem:[%s6832_s0 + $0x108] sm:$0xff]  ;;  %v2560_v19 = vld [vmem:[%s6834_s27 + $0x5a8] sm:$0xff]  ;;  %v5024_v28 = vpack.c.bf16 %v2528_v17, %v2527_v16 }
 0x18d   : > { %5003 = vmatpush3.bf16.msra.mxu1 %v5002_v21  ;;  %4973 = vmatprep.subr.bf16.mxu0 %v4972_v22  ;;  %v2510_v10 = vld [vmem:[%s6834_s27 + $0x418] sm:$0xff]  ;;  %v2541_v14 = vld [vmem:[%s6834_s27 + $0x510] sm:$0xff]  ;;  %v2559_v18 = vld [vmem:[%s6834_s27 + $0x5a0] sm:$0xff] }
 0x18e   : > { %5005 = vmatprep.subr.bf16.mxu1 %v5004_v26  ;;  %v2542_v15 = vld [vmem:[%s6834_s27 + $0x518] sm:$0xff]  ;;  %v2328_v20 = vld [vmem:[%s6832_s0 + $0x120] sm:$0xff]  ;;  %v5022_v21 = vpack.c.bf16 %v2510_v10, %v2509_v9  ;;  %v2327_v22 = vld [vmem:[%s6832_s0 + $0x118] sm:$0xff]  ;;  %v5056_v29 = vpack.c.bf16 %v2560_v19, %v2559_v18 }
 0x18f   : > { %v2355_v23 = vld [vmem:[%s6832_s0 + $0x1f8] sm:$0xff]  ;;  %v5054_v24 = vpack.c.bf16 %v2542_v15, %v2541_v14  ;;  %v2529_v31 = vld [vmem:[%s6834_s27 + $0x4b0] sm:$0xff]  ;;  %v2354_v35 = vld [vmem:[%s6832_s0 + $0x1f0] sm:$0xff] }
 0x190   : > { %4975 = vmatpush3.bf16.msra.mxu0 %v4974_v32  ;;  %v2511_v25 = vld [vmem:[%s6834_s27 + $0x420] sm:$0xff]  ;;  %v2512_v26 = vld [vmem:[%s6834_s27 + $0x428] sm:$0xff]  ;;  %v2530_v32 = vld [vmem:[%s6834_s27 + $0x4b8] sm:$0xff] }
 0x191   : > { %5007 = vmatpush3.bf16.msra.mxu1 %v5006_v33  ;;  %4977 = vmatprep.subr.bf16.mxu0 %v4976_v34  ;;  %v2543_v27 = vld [vmem:[%s6834_s27 + $0x520] sm:$0xff]  ;;  %v2544_v30 = vld [vmem:[%s6834_s27 + $0x528] sm:$0xff]  ;;  %v2561_v33 = vld [vmem:[%s6834_s27 + $0x5b0] sm:$0xff]  ;;  %v5026_v37 = vpack.c.bf16 %v2512_v26, %v2511_v25  ;;  %v5028_v40 = vpack.c.bf16 %v2530_v32, %v2529_v31 }
 0x192   : > { %5009 = vmatprep.subr.bf16.mxu1 %v5008_v38  ;;  %v2562_v34 = vld [vmem:[%s6834_s27 + $0x5b8] sm:$0xff]  ;;  %v2356_v38 = vld [vmem:[%s6832_s0 + $0x200] sm:$0xff]  ;;  %v5058_v39 = vpack.c.bf16 %v2544_v30, %v2543_v27  ;;  %v2563_v48 = vld [vmem:[%s6834_s27 + $0x5c0] sm:$0xff] }
 0x193   : > { %v2357_v36 = vld [vmem:[%s6832_s0 + $0x208] sm:$0xff]  ;;  %v2532_v47 = vld [vmem:[%s6834_s27 + $0x4c8] sm:$0xff]  ;;  %v2515_v55 = vld [vmem:[%s6834_s27 + $0x440] sm:$0xff] }
 0x194   : > { %4979 = vmatpush3.bf16.msra.mxu0 %v4978_v44  ;;  %v2513_v41 = vld [vmem:[%s6834_s27 + $0x430] sm:$0xff]  ;;  %v2514_v42 = vld [vmem:[%s6834_s27 + $0x438] sm:$0xff]  ;;  %v5060_v44 = vpack.c.bf16 %v2562_v34, %v2561_v33  ;;  %v2564_v49 = vld [vmem:[%s6834_s27 + $0x5c8] sm:$0xff] }
 0x195   : > { %5011 = vmatpush3.bf16.msra.mxu1 %v5010_v45  ;;  %4981 = vmatprep.subr.bf16.mxu0 %v4980_v46  ;;  %v2545_v43 = vld [vmem:[%s6834_s27 + $0x530] sm:$0xff]  ;;  %v2546_v45 = vld [vmem:[%s6834_s27 + $0x538] sm:$0xff]  ;;  %v2531_v46 = vld [vmem:[%s6834_s27 + $0x4c0] sm:$0xff]  ;;  %v5030_v51 = vpack.c.bf16 %v2514_v42, %v2513_v41 }
 0x196   : > { %5013 = vmatprep.subr.bf16.mxu1 %v5012_v50  ;;  %v2301_v50 = vld [vmem:[%s6832_s0 + $0x48] sm:$0xff]  ;;  %v2303_v52 = vld [vmem:[%s6832_s0 + $0x58] sm:$0xff]  ;;  %v5062_v53 = vpack.c.bf16 %v2546_v45, %v2545_v43  ;;  %v5032_v54 = vpack.c.bf16 %v2532_v47, %v2531_v46 }
 0x197   : > { %v2548_v59 = vld [vmem:[%s6834_s27 + $0x548] sm:$0xff]  ;;  %v2533_v60 = vld [vmem:[%s6834_s27 + $0x4d0] sm:$0xff]  ;;  %v2566_v63 = vld [vmem:[%s6834_s27 + $0x5d8] sm:$0xff] }
 0x198   : > { %4983 = vmatpush3.bf16.msra.mxu0 %v4982_v56  ;;  %v2516_v56 = vld [vmem:[%s6834_s27 + $0x448] sm:$0xff]  ;;  %v2565_v62 = vld [vmem:[%s6834_s27 + $0x5d0] sm:$0xff]  ;;  %v2567_v10 = vld [vmem:[%s6834_s27 + $0x5e0] sm:$0xff] }
 0x199   : > { %5015 = vmatpush3.bf16.msra.mxu1 %v5014_v57  ;;  %5017 = vmatprep.subr.bf16.mxu0 %v5016_v58  ;;  %v2547_v57 = vld [vmem:[%s6834_s27 + $0x540] sm:$0xff]  ;;  %v5064_v58 = vpack.c.bf16 %v2564_v49, %v2563_v48  ;;  %v5034_v0 = vpack.c.bf16 %v2516_v56, %v2515_v55  ;;  %v2517_v3 = vld [vmem:[%s6834_s27 + $0x450] sm:$0xff]  ;;  %v2536_v9 = vld [vmem:[%s6834_s27 + $0x4e8] sm:$0xff] }
 0x19a   : > { %5049 = vmatprep.subr.bf16.mxu1 %v5048_v61  ;;  %v2534_v61 = vld [vmem:[%s6834_s27 + $0x4d8] sm:$0xff]  ;;  %v5066_v1 = vpack.c.bf16 %v2548_v59, %v2547_v57  ;;  %v2519_v15 = vld [vmem:[%s6834_s27 + $0x460] sm:$0xff]  ;;  %v2520_v16 = vld [vmem:[%s6834_s27 + $0x468] sm:$0xff] }
 0x19b   : > { %3068 = vmatmul.mubr.f32.vlgmr.msra.gmra.mrb[6].mxu0 %v2296_v4  ;;  %v5036_v2 = vpack.c.bf16 %v2534_v61, %v2533_v60  ;;  %v2518_v4 = vld [vmem:[%s6834_s27 + $0x458] sm:$0xff]  ;;  %v2551_v17 = vld [vmem:[%s6834_s27 + $0x560] sm:$0xff]  ;;  %v2552_v19 = vld [vmem:[%s6834_s27 + $0x568] sm:$0xff] }
 0x19c   : > { %3148 = vmatmul.mubr.f32.vlgmr.msra.gmra.mrb[6].mxu1 %v2298_v5  ;;  %5019 = vmatpush3.bf16.msra.mxu0 %v5018_v6  ;;  %v2549_v5 = vld [vmem:[%s6834_s27 + $0x550] sm:$0xff]  ;;  %v5068_v6 = vpack.c.bf16 %v2566_v63, %v2565_v62  ;;  %v5074_v25 = vpack.c.bf16 %v2552_v19, %v2551_v17  ;;  %v2554_v31 = vld [vmem:[%s6834_s27 + $0x578] sm:$0xff]  ;;  %v2587_v32 = vld [vmem:[%s6834_s27 + $0x680] sm:$0xff] }
 0x19d   : > { %5051 = vmatpush3.bf16.msra.mxu1 %v5050_v7  ;;  %3072 = vmatprep.mubr.f32.mxu0 %v2326_v8  ;;  %v2550_v7 = vld [vmem:[%s6834_s27 + $0x558] sm:$0xff]  ;;  %v2535_v8 = vld [vmem:[%s6834_s27 + $0x4e0] sm:$0xff]  ;;  %v2521_v27 = vld [vmem:[%s6834_s27 + $0x470] sm:$0xff] }
 0x19e   : > { %5021 = vmatprep.subr.bf16.mxu0 %v5020_v12  ;;  %5053 = vmatprep.subr.bf16.mxu1 %v5052_v13  ;;  %v5038_v12 = vpack.c.bf16 %v2518_v4, %v2517_v3  ;;  %v5070_v13 = vpack.c.bf16 %v2550_v7, %v2549_v5  ;;  %v5040_v14 = vpack.c.bf16 %v2536_v9, %v2535_v8  ;;  %v2588_v33 = vld [vmem:[%s6834_s27 + $0x688] sm:$0xff]  ;;  %v2619_v34 = vld [vmem:[%s6834_s27 + $0x780] sm:$0xff]  ;;  %v2590_v45 = vld [vmem:[%s6834_s27 + $0x698] sm:$0xff] }
 0x19f   : > { %3073 = vmatmul.mubr.f32.gmra.mrb[8].mxu0 %v2325_v11  ;;  %3152 = vmatprep.mubr.f32.mxu1 %v2328_v20  ;;  %v2568_v11 = vld [vmem:[%s6834_s27 + $0x5e8] sm:$0xff]  ;;  %v2537_v20 = vld [vmem:[%s6834_s27 + $0x4f0] sm:$0xff]  ;;  %v2603_v42 = vld [vmem:[%s6834_s27 + $0x700] sm:$0xff] }
 0x1a0   : > { %5023 = vmatpush3.bf16.msra.mxu0 %v5022_v21  ;;  %3153 = vmatmul.mubr.f32.gmra.mrb[8].mxu1 %v2327_v22  ;;  %v5072_v18 = vpack.c.bf16 %v2568_v11, %v2567_v10  ;;  %v2538_v21 = vld [vmem:[%s6834_s27 + $0x4f8] sm:$0xff]  ;;  %v2569_v22 = vld [vmem:[%s6834_s27 + $0x5f0] sm:$0xff]  ;;  %v2604_v43 = vld [vmem:[%s6834_s27 + $0x708] sm:$0xff] }
 0x1a1   : > { %5055 = vmatpush3.bf16.msra.mxu1 %v5054_v24  ;;  %3077 = vmatprep.mubr.f32.mxu0 %v2355_v23  ;;  %v2570_v23 = vld [vmem:[%s6834_s27 + $0x5f8] sm:$0xff]  ;;  %v5042_v24 = vpack.c.bf16 %v2520_v16, %v2519_v15  ;;  %v5044_v26 = vpack.c.bf16 %v2538_v21, %v2537_v20  ;;  %v2621_v46 = vld [vmem:[%s6834_s27 + $0x790] sm:$0xff]  ;;  %v2591_v60 = vld [vmem:[%s6834_s27 + $0x6a0] sm:$0xff] }
 0x1a2   : > { %5025 = vmatprep.subr.bf16.mxu0 %v5024_v28  ;;  %5057 = vmatprep.subr.bf16.mxu1 %v5056_v29  ;;  %v2522_v28 = vld [vmem:[%s6834_s27 + $0x478] sm:$0xff]  ;;  %v2553_v29 = vld [vmem:[%s6834_s27 + $0x570] sm:$0xff]  ;;  %v5076_v30 = vpack.c.bf16 %v2570_v23, %v2569_v22  ;;  %v2592_v61 = vld [vmem:[%s6834_s27 + $0x6a8] sm:$0xff] }
 0x1a3   : > { %3078 = vmatmul.mubr.f32.gmra.mrb[10].mxu0 %v2354_v35  ;;  %3157 = vmatprep.mubr.f32.mxu1 %v2357_v36  ;;  %v2620_v35 = vld [vmem:[%s6834_s27 + $0x788] sm:$0xff]  ;;  %v5046_v36 = vpack.c.bf16 %v2522_v28, %v2521_v27  ;;  %v2622_v47 = vld [vmem:[%s6834_s27 + $0x798] sm:$0xff]  ;;  %v2623_v62 = vld [vmem:[%s6834_s27 + $0x7a0] sm:$0xff]  ;;  %v5088_v8 = vpack.c.bf16 %v2592_v61, %v2591_v60 }
 0x1a4   : > { %5027 = vmatpush3.bf16.msra.mxu0 %v5026_v37  ;;  %3158 = vmatmul.mubr.f32.gmra.mrb[10].mxu1 %v2356_v38  ;;  %v5078_v37 = vpack.c.bf16 %v2554_v31, %v2553_v29  ;;  %v5080_v38 = vpack.c.bf16 %v2588_v33, %v2587_v32  ;;  %v5112_v41 = vpack.c.bf16 %v2620_v35, %v2619_v34  ;;  %v2300_v48 = vld [vmem:[%s6832_s0 + $0x40] sm:$0xff]  ;;  %v2302_v49 = vld [vmem:[%s6832_s0 + $0x50] sm:$0xff]  ;;  %v2329_v55 = vld [vmem:[%s6832_s0 + $0x128] sm:$0xff] }
 0x1a5   : > { %5059 = vmatpush3.bf16.msra.mxu1 %v5058_v39  ;;  %5029 = vmatprep.subr.bf16.mxu0 %v5028_v40  ;;  %v2571_v39 = vld [vmem:[%s6834_s27 + $0x600] sm:$0xff]  ;;  %v2572_v40 = vld [vmem:[%s6834_s27 + $0x608] sm:$0xff]  ;;  %v5116_v57 = vpack.c.bf16 %v2622_v47, %v2621_v46  ;;  %v2606_v59 = vld [vmem:[%s6834_s27 + $0x718] sm:$0xff] }
 0x1a6   : > { %5061 = vmatprep.subr.bf16.mxu1 %v5060_v44  ;;  %3227 = vmatprep.mubr.f32.mxu0 %v2301_v50  ;;  %v2589_v44 = vld [vmem:[%s6834_s27 + $0x690] sm:$0xff]  ;;  %v5082_v50 = vpack.c.bf16 %v2572_v40, %v2571_v39  ;;  %v2624_v63 = vld [vmem:[%s6834_s27 + $0x7a8] sm:$0xff]  ;;  %v2575_v5 = vld [vmem:[%s6834_s27 + $0x620] sm:$0xff] }
 0x1a7   : > { %3307 = vmatprep.mubr.f32.mxu1 %v2303_v52  ;;  %v2330_v52 = vld [vmem:[%s6832_s0 + $0x130] sm:$0xff]  ;;  %v5084_v56 = vpack.c.bf16 %v2590_v45, %v2589_v44  ;;  %v2359_v3 = vld [vmem:[%s6832_s0 + $0x218] sm:$0xff]  ;;  %v5120_v9 = vpack.c.bf16 %v2624_v63, %v2623_v62  ;;  %v2593_v11 = vld [vmem:[%s6834_s27 + $0x6b0] sm:$0xff] }
 0x1a8   : > { %5031 = vmatpush3.bf16.msra.mxu0 %v5030_v51  ;;  %v5114_v51 = vpack.c.bf16 %v2604_v43, %v2603_v42  ;;  %v2607_v7 = vld [vmem:[%s6834_s27 + $0x720] sm:$0xff]  ;;  %v2608_v10 = vld [vmem:[%s6834_s27 + $0x728] sm:$0xff]  ;;  %v2361_v16 = vld [vmem:[%s6832_s0 + $0x228] sm:$0xff] }
 0x1a9   : > { %5063 = vmatpush3.bf16.msra.mxu1 %v5062_v53  ;;  %5033 = vmatprep.subr.bf16.mxu0 %v5032_v54  ;;  %v2573_v53 = vld [vmem:[%s6834_s27 + $0x610] sm:$0xff]  ;;  %v2574_v54 = vld [vmem:[%s6834_s27 + $0x618] sm:$0xff]  ;;  %v5122_v19 = vpack.c.bf16 %v2608_v10, %v2607_v7  ;;  %v2596_v27 = vld [vmem:[%s6834_s27 + $0x6c8] sm:$0xff] }
 0x1aa   : > { %5065 = vmatprep.subr.bf16.mxu1 %v5064_v58  ;;  %v2605_v58 = vld [vmem:[%s6834_s27 + $0x710] sm:$0xff]  ;;  %v2358_v15 = vld [vmem:[%s6832_s0 + $0x210] sm:$0xff]  ;;  %v2628_v29 = vld [vmem:[%s6834_s27 + $0x7c8] sm:$0xff] }
 0x1ab   : > { %v5118_v4 = vpack.c.bf16 %v2606_v59, %v2605_v58  ;;  %v2577_v21 = vld [vmem:[%s6834_s27 + $0x630] sm:$0xff]  ;;  %v2578_v22 = vld [vmem:[%s6834_s27 + $0x638] sm:$0xff]  ;;  %v2627_v28 = vld [vmem:[%s6834_s27 + $0x7c0] sm:$0xff] }
 0x1ac   : > { %5035 = vmatpush3.bf16.msra.mxu0 %v5034_v0  ;;  %v2332_v0 = vld [vmem:[%s6832_s0 + $0x140] sm:$0xff]  ;;  %v5094_v31 = vpack.c.bf16 %v2578_v22, %v2577_v21  ;;  %v2307_v32 = vld [vmem:[%s6832_s0 + $0x78] sm:$0xff]  ;;  %v2630_v43 = vld [vmem:[%s6834_s27 + $0x7d8] sm:$0xff] }
 0x1ad   : > { %5067 = vmatpush3.bf16.msra.mxu1 %v5066_v1  ;;  %5037 = vmatprep.subr.bf16.mxu0 %v5036_v2  ;;  %v5086_v1 = vpack.c.bf16 %v2574_v54, %v2573_v53  ;;  %v2331_v2 = vld [vmem:[%s6832_s0 + $0x138] sm:$0xff]  ;;  %v2609_v23 = vld [vmem:[%s6834_s27 + $0x730] sm:$0xff] }
 0x1ae   : > { %5069 = vmatprep.subr.bf16.mxu1 %v5068_v6  ;;  %v2576_v6 = vld [vmem:[%s6834_s27 + $0x628] sm:$0xff]  ;;  %v2579_v35 = vld [vmem:[%s6834_s27 + $0x640] sm:$0xff]  ;;  %v2597_v40 = vld [vmem:[%s6834_s27 + $0x6d0] sm:$0xff] }
 0x1af   : > { %v5090_v17 = vpack.c.bf16 %v2576_v6, %v2575_v5  ;;  %v2612_v39 = vld [vmem:[%s6834_s27 + $0x748] sm:$0xff]  ;;  %v2629_v42 = vld [vmem:[%s6834_s27 + $0x7d0] sm:$0xff]  ;;  %v2631_v54 = vld [vmem:[%s6834_s27 + $0x7e0] sm:$0xff] }
 0x1b0   : > { %5039 = vmatpush3.bf16.msra.mxu0 %v5038_v12  ;;  %v2594_v12 = vld [vmem:[%s6834_s27 + $0x6b8] sm:$0xff]  ;;  %v2581_v47 = vld [vmem:[%s6834_s27 + $0x650] sm:$0xff]  ;;  %v2600_v53 = vld [vmem:[%s6834_s27 + $0x6e8] sm:$0xff] }
 0x1b1   : > { %5071 = vmatpush3.bf16.msra.mxu1 %v5070_v13  ;;  %5041 = vmatprep.subr.bf16.mxu0 %v5040_v14  ;;  %v2625_v13 = vld [vmem:[%s6834_s27 + $0x7b0] sm:$0xff]  ;;  %v2626_v14 = vld [vmem:[%s6834_s27 + $0x7b8] sm:$0xff]  ;;  %v5092_v20 = vpack.c.bf16 %v2594_v12, %v2593_v11  ;;  %v2583_v59 = vld [vmem:[%s6834_s27 + $0x660] sm:$0xff] }
 0x1b2   : > { %5073 = vmatprep.subr.bf16.mxu1 %v5072_v18  ;;  %v2360_v18 = vld [vmem:[%s6832_s0 + $0x220] sm:$0xff]  ;;  %v2615_v61 = vld [vmem:[%s6834_s27 + $0x760] sm:$0xff]  ;;  %v2618_v11 = vld [vmem:[%s6834_s27 + $0x778] sm:$0xff] }
 0x1b3   : > { %v2584_v60 = vld [vmem:[%s6834_s27 + $0x668] sm:$0xff]  ;;  %v2585_v7 = vld [vmem:[%s6834_s27 + $0x670] sm:$0xff]  ;;  %v2651_v12 = vld [vmem:[%s6834_s27 + $0x880] sm:$0xff] }
 0x1b4   : > { %5043 = vmatpush3.bf16.msra.mxu0 %v5042_v24  ;;  %v5124_v24 = vpack.c.bf16 %v2626_v14, %v2625_v13  ;;  %v2616_v63 = vld [vmem:[%s6834_s27 + $0x768] sm:$0xff]  ;;  %v2683_v14 = vld [vmem:[%s6834_s27 + $0x980] sm:$0xff] }
 0x1b5   : > { %5075 = vmatpush3.bf16.msra.mxu1 %v5074_v25  ;;  %5045 = vmatprep.subr.bf16.mxu0 %v5044_v26  ;;  %v2610_v25 = vld [vmem:[%s6834_s27 + $0x738] sm:$0xff]  ;;  %v2595_v26 = vld [vmem:[%s6834_s27 + $0x6c0] sm:$0xff]  ;;  %v5138_v5 = vpack.c.bf16 %v2616_v63, %v2615_v61  ;;  %v2652_v13 = vld [vmem:[%s6834_s27 + $0x888] sm:$0xff] }
 0x1b6   : > { %5077 = vmatprep.subr.bf16.mxu1 %v5076_v30  ;;  %v2305_v30 = vld [vmem:[%s6832_s0 + $0x68] sm:$0xff]  ;;  %v5126_v33 = vpack.c.bf16 %v2610_v25, %v2609_v23  ;;  %v5096_v34 = vpack.c.bf16 %v2596_v27, %v2595_v26  ;;  %v2667_v22 = vld [vmem:[%s6834_s27 + $0x900] sm:$0xff]  ;;  %v2668_v23 = vld [vmem:[%s6834_s27 + $0x908] sm:$0xff] }
 0x1b7   : > { %v2654_v25 = vld [vmem:[%s6834_s27 + $0x898] sm:$0xff]  ;;  %v2685_v26 = vld [vmem:[%s6834_s27 + $0x990] sm:$0xff] }
 0x1b8   : > { %5047 = vmatpush3.bf16.msra.mxu0 %v5046_v36  ;;  %v2580_v36 = vld [vmem:[%s6834_s27 + $0x648] sm:$0xff]  ;;  %v2686_v27 = vld [vmem:[%s6834_s27 + $0x998] sm:$0xff] }
 0x1b9   : > { %5079 = vmatpush3.bf16.msra.mxu1 %v5078_v37  ;;  %5081 = vmatprep.subr.bf16.mxu0 %v5080_v38  ;;  %v2611_v37 = vld [vmem:[%s6834_s27 + $0x740] sm:$0xff]  ;;  %v5128_v38 = vpack.c.bf16 %v2628_v29, %v2627_v28  ;;  %v5098_v44 = vpack.c.bf16 %v2580_v36, %v2579_v35  ;;  %v2304_v28 = vld [vmem:[%s6832_s0 + $0x60] sm:$0xff]  ;;  %v2333_v35 = vld [vmem:[%s6832_s0 + $0x148] sm:$0xff] }
 0x1ba   : > { %5113 = vmatprep.subr.bf16.mxu1 %v5112_v41  ;;  %v2598_v41 = vld [vmem:[%s6834_s27 + $0x6d8] sm:$0xff]  ;;  %v5130_v45 = vpack.c.bf16 %v2612_v39, %v2611_v37  ;;  %v5180_v37 = vpack.c.bf16 %v2686_v27, %v2685_v26  ;;  %v2645_v27 = vld [vmem:[%s6834_s27 + $0x850] sm:$0xff] }
 0x1bb   : > { %3228 = vmatmul.mubr.f32.vlgmr.msra.gmra.mrb[12].mxu0 %v2300_v48  ;;  %v5100_v46 = vpack.c.bf16 %v2598_v41, %v2597_v40  ;;  %v2582_v48 = vld [vmem:[%s6834_s27 + $0x658] sm:$0xff]  ;;  %v2655_v40 = vld [vmem:[%s6834_s27 + $0x8a0] sm:$0xff]  ;;  %v2656_v41 = vld [vmem:[%s6834_s27 + $0x8a8] sm:$0xff] }
 0x1bc   : > { %3308 = vmatmul.mubr.f32.vlgmr.msra.gmra.mrb[12].mxu1 %v2302_v49  ;;  %5083 = vmatpush3.bf16.msra.mxu0 %v5082_v50  ;;  %v2613_v49 = vld [vmem:[%s6834_s27 + $0x750] sm:$0xff]  ;;  %v5132_v50 = vpack.c.bf16 %v2630_v43, %v2629_v42  ;;  %v2306_v29 = vld [vmem:[%s6832_s0 + $0x70] sm:$0xff]  ;;  %v2688_v43 = vld [vmem:[%s6834_s27 + $0x9a8] sm:$0xff] }
 0x1bd   : > { %5115 = vmatpush3.bf16.msra.mxu1 %v5114_v51  ;;  %3232 = vmatprep.mubr.f32.mxu0 %v2330_v52  ;;  %v2614_v51 = vld [vmem:[%s6834_s27 + $0x758] sm:$0xff]  ;;  %v2599_v52 = vld [vmem:[%s6834_s27 + $0x6e0] sm:$0xff] }
 0x1be   : > { %5085 = vmatprep.subr.bf16.mxu0 %v5084_v56  ;;  %5117 = vmatprep.subr.bf16.mxu1 %v5116_v57  ;;  %v5102_v56 = vpack.c.bf16 %v2582_v48, %v2581_v47  ;;  %v5134_v57 = vpack.c.bf16 %v2614_v51, %v2613_v49  ;;  %v5104_v58 = vpack.c.bf16 %v2600_v53, %v2599_v52  ;;  %v2670_v39 = vld [vmem:[%s6834_s27 + $0x918] sm:$0xff]  ;;  %v2687_v42 = vld [vmem:[%s6834_s27 + $0x9a0] sm:$0xff] }
 0x1bf   : > { %3233 = vmatmul.mubr.f32.gmra.mrb[14].mxu0 %v2329_v55  ;;  %3312 = vmatprep.mubr.f32.mxu1 %v2332_v0  ;;  %v2632_v55 = vld [vmem:[%s6834_s27 + $0x7e8] sm:$0xff]  ;;  %v2601_v0 = vld [vmem:[%s6834_s27 + $0x6f0] sm:$0xff]  ;;  %v2639_v49 = vld [vmem:[%s6834_s27 + $0x820] sm:$0xff]  ;;  %v5152_v52 = vpack.c.bf16 %v2656_v41, %v2655_v40  ;;  %v5184_v53 = vpack.c.bf16 %v2688_v43, %v2687_v42 }
 0x1c0   : > { %5087 = vmatpush3.bf16.msra.mxu0 %v5086_v1  ;;  %3313 = vmatmul.mubr.f32.gmra.mrb[14].mxu1 %v2331_v2  ;;  %v5136_v62 = vpack.c.bf16 %v2632_v55, %v2631_v54  ;;  %v2602_v1 = vld [vmem:[%s6834_s27 + $0x6f8] sm:$0xff]  ;;  %v2633_v2 = vld [vmem:[%s6834_s27 + $0x7f0] sm:$0xff]  ;;  %v2363_v47 = vld [vmem:[%s6832_s0 + $0x238] sm:$0xff] }
 0x1c1   : > { %5119 = vmatpush3.bf16.msra.mxu1 %v5118_v4  ;;  %3237 = vmatprep.mubr.f32.mxu0 %v2359_v3  ;;  %v2634_v3 = vld [vmem:[%s6834_s27 + $0x7f8] sm:$0xff]  ;;  %v5106_v4 = vpack.c.bf16 %v2584_v60, %v2583_v59  ;;  %v5108_v6 = vpack.c.bf16 %v2602_v1, %v2601_v0  ;;  %v2671_v51 = vld [vmem:[%s6834_s27 + $0x920] sm:$0xff]  ;;  %v2672_v54 = vld [vmem:[%s6834_s27 + $0x928] sm:$0xff] }
 0x1c2   : > { %5089 = vmatprep.subr.bf16.mxu0 %v5088_v8  ;;  %5121 = vmatprep.subr.bf16.mxu1 %v5120_v9  ;;  %v2586_v8 = vld [vmem:[%s6834_s27 + $0x678] sm:$0xff]  ;;  %v2617_v9 = vld [vmem:[%s6834_s27 + $0x770] sm:$0xff]  ;;  %v5140_v10 = vpack.c.bf16 %v2634_v3, %v2633_v2  ;;  %v5186_v63 = vpack.c.bf16 %v2672_v54, %v2671_v51  ;;  %v2648_v40 = vld [vmem:[%s6834_s27 + $0x868] sm:$0xff] }
 0x1c3   : > { %3238 = vmatmul.mubr.f32.gmra.mrb[16].mxu0 %v2358_v15  ;;  %3317 = vmatprep.mubr.f32.mxu1 %v2361_v16  ;;  %v2684_v15 = vld [vmem:[%s6834_s27 + $0x988] sm:$0xff]  ;;  %v5110_v16 = vpack.c.bf16 %v2586_v8, %v2585_v7  ;;  %v2657_v55 = vld [vmem:[%s6834_s27 + $0x8b0] sm:$0xff]  ;;  %v2362_v59 = vld [vmem:[%s6832_s0 + $0x230] sm:$0xff] }
 0x1c4   : > { %5091 = vmatpush3.bf16.msra.mxu0 %v5090_v17  ;;  %3318 = vmatmul.mubr.f32.gmra.mrb[16].mxu1 %v2360_v18  ;;  %v5142_v17 = vpack.c.bf16 %v2618_v11, %v2617_v9  ;;  %v5144_v18 = vpack.c.bf16 %v2652_v13, %v2651_v12  ;;  %v5176_v21 = vpack.c.bf16 %v2684_v15, %v2683_v14  ;;  %v2365_v60 = vld [vmem:[%s6832_s0 + $0x248] sm:$0xff]  ;;  %v2660_v7 = vld [vmem:[%s6834_s27 + $0x8c8] sm:$0xff]  ;;  %v2691_v8 = vld [vmem:[%s6834_s27 + $0x9c0] sm:$0xff] }
 0x1c5   : > { %5123 = vmatpush3.bf16.msra.mxu1 %v5122_v19  ;;  %5093 = vmatprep.subr.bf16.mxu0 %v5092_v20  ;;  %v2635_v19 = vld [vmem:[%s6834_s27 + $0x800] sm:$0xff]  ;;  %v2636_v20 = vld [vmem:[%s6834_s27 + $0x808] sm:$0xff]  ;;  %v2641_v1 = vld [vmem:[%s6834_s27 + $0x830] sm:$0xff] }
 0x1c6   : > { %5125 = vmatprep.subr.bf16.mxu1 %v5124_v24  ;;  %3387 = vmatprep.mubr.f32.mxu0 %v2305_v30  ;;  %v2653_v24 = vld [vmem:[%s6834_s27 + $0x890] sm:$0xff]  ;;  %v5146_v30 = vpack.c.bf16 %v2636_v20, %v2635_v19  ;;  %v2642_v2 = vld [vmem:[%s6834_s27 + $0x838] sm:$0xff]  ;;  %v2692_v9 = vld [vmem:[%s6834_s27 + $0x9c8] sm:$0xff] }
 0x1c7   : > { %3467 = vmatprep.mubr.f32.mxu1 %v2307_v32  ;;  %v2334_v32 = vld [vmem:[%s6832_s0 + $0x150] sm:$0xff]  ;;  %v5148_v36 = vpack.c.bf16 %v2654_v25, %v2653_v24  ;;  %v2673_v3 = vld [vmem:[%s6834_s27 + $0x930] sm:$0xff]  ;;  %v5158_v11 = vpack.c.bf16 %v2642_v2, %v2641_v1  ;;  %v2311_v12 = vld [vmem:[%s6832_s0 + $0x98] sm:$0xff] }
 0x1c8   : > { %5095 = vmatpush3.bf16.msra.mxu0 %v5094_v31  ;;  %v5178_v31 = vpack.c.bf16 %v2668_v23, %v2667_v22  ;;  %v2643_v15 = vld [vmem:[%s6834_s27 + $0x840] sm:$0xff]  ;;  %v2676_v19 = vld [vmem:[%s6834_s27 + $0x948] sm:$0xff]  ;;  %v2661_v20 = vld [vmem:[%s6834_s27 + $0x8d0] sm:$0xff] }
 0x1c9   : > { %5127 = vmatpush3.bf16.msra.mxu1 %v5126_v33  ;;  %5097 = vmatprep.subr.bf16.mxu0 %v5096_v34  ;;  %v2637_v33 = vld [vmem:[%s6834_s27 + $0x810] sm:$0xff]  ;;  %v2638_v34 = vld [vmem:[%s6834_s27 + $0x818] sm:$0xff]  ;;  %v2679_v41 = vld [vmem:[%s6834_s27 + $0x960] sm:$0xff] }
 0x1ca   : > { %5129 = vmatprep.subr.bf16.mxu1 %v5128_v38  ;;  %v2669_v38 = vld [vmem:[%s6834_s27 + $0x910] sm:$0xff]  ;;  %v2694_v23 = vld [vmem:[%s6834_s27 + $0x9d8] sm:$0xff]  ;;  %v2680_v43 = vld [vmem:[%s6834_s27 + $0x968] sm:$0xff] }
 0x1cb   : > { %v5182_v48 = vpack.c.bf16 %v2670_v39, %v2669_v38  ;;  %v2693_v22 = vld [vmem:[%s6834_s27 + $0x9d0] sm:$0xff]  ;;  %v2647_v39 = vld [vmem:[%s6834_s27 + $0x860] sm:$0xff] }
 0x1cc   : > { %5099 = vmatpush3.bf16.msra.mxu0 %v5098_v44  ;;  %v2336_v44 = vld [vmem:[%s6832_s0 + $0x160] sm:$0xff]  ;;  %v2731_v2 = vld [vmem:[%s6834_s27 + $0xb00] sm:$0xff] }
 0x1cd   : > { %5131 = vmatpush3.bf16.msra.mxu1 %v5130_v45  ;;  %5101 = vmatprep.subr.bf16.mxu0 %v5100_v46  ;;  %v5150_v45 = vpack.c.bf16 %v2638_v34, %v2637_v33  ;;  %v2335_v46 = vld [vmem:[%s6832_s0 + $0x158] sm:$0xff]  ;;  %v2649_v51 = vld [vmem:[%s6834_s27 + $0x870] sm:$0xff] }
 0x1ce   : > { %5133 = vmatprep.subr.bf16.mxu1 %v5132_v50  ;;  %v2640_v50 = vld [vmem:[%s6834_s27 + $0x828] sm:$0xff]  ;;  %v2695_v34 = vld [vmem:[%s6834_s27 + $0x9e0] sm:$0xff] }
 0x1cf   : > { %v5154_v61 = vpack.c.bf16 %v2640_v50, %v2639_v49  ;;  %v2664_v33 = vld [vmem:[%s6834_s27 + $0x8e8] sm:$0xff]  ;;  %v5202_v49 = vpack.c.bf16 %v2680_v43, %v2679_v41 }
 0x1d0   : > { %5103 = vmatpush3.bf16.msra.mxu0 %v5102_v56  ;;  %v2658_v56 = vld [vmem:[%s6834_s27 + $0x8b8] sm:$0xff] }
 0x1d1   : > { %5135 = vmatpush3.bf16.msra.mxu1 %v5134_v57  ;;  %5105 = vmatprep.subr.bf16.mxu0 %v5104_v58  ;;  %v2689_v57 = vld [vmem:[%s6834_s27 + $0x9b0] sm:$0xff]  ;;  %v2690_v58 = vld [vmem:[%s6834_s27 + $0x9b8] sm:$0xff]  ;;  %v5156_v0 = vpack.c.bf16 %v2658_v56, %v2657_v55  ;;  %v2715_v56 = vld [vmem:[%s6834_s27 + $0xa80] sm:$0xff] }
 0x1d2   : > { %5137 = vmatprep.subr.bf16.mxu1 %v5136_v62  ;;  %v2364_v62 = vld [vmem:[%s6832_s0 + $0x240] sm:$0xff]  ;;  %v2682_v55 = vld [vmem:[%s6834_s27 + $0x978] sm:$0xff] }
 0x1d4   : > { %5107 = vmatpush3.bf16.msra.mxu0 %v5106_v4  ;;  %v5188_v4 = vpack.c.bf16 %v2690_v58, %v2689_v57  ;;  %v2716_v57 = vld [vmem:[%s6834_s27 + $0xa88] sm:$0xff]  ;;  %v2747_v58 = vld [vmem:[%s6834_s27 + $0xb80] sm:$0xff] }
 0x1d5   : > { %5139 = vmatpush3.bf16.msra.mxu1 %v5138_v5  ;;  %5109 = vmatprep.subr.bf16.mxu0 %v5108_v6  ;;  %v2674_v5 = vld [vmem:[%s6834_s27 + $0x938] sm:$0xff]  ;;  %v2659_v6 = vld [vmem:[%s6834_s27 + $0x8c0] sm:$0xff] }
 0x1d6   : > { %5141 = vmatprep.subr.bf16.mxu1 %v5140_v10  ;;  %v2309_v10 = vld [vmem:[%s6832_s0 + $0x88] sm:$0xff]  ;;  %v5190_v13 = vpack.c.bf16 %v2674_v5, %v2673_v3  ;;  %v5160_v14 = vpack.c.bf16 %v2660_v7, %v2659_v6  ;;  %v2732_v3 = vld [vmem:[%s6834_s27 + $0xb08] sm:$0xff] }
 0x1d7   : > { %v2718_v5 = vld [vmem:[%s6834_s27 + $0xa98] sm:$0xff]  ;;  %v2749_v6 = vld [vmem:[%s6834_s27 + $0xb90] sm:$0xff] }
 0x1d8   : > { %5111 = vmatpush3.bf16.msra.mxu0 %v5110_v16  ;;  %v2644_v16 = vld [vmem:[%s6834_s27 + $0x848] sm:$0xff]  ;;  %v2750_v7 = vld [vmem:[%s6834_s27 + $0xb98] sm:$0xff] }
 0x1d9   : > { %5143 = vmatpush3.bf16.msra.mxu1 %v5142_v17  ;;  %5145 = vmatprep.subr.bf16.mxu0 %v5144_v18  ;;  %v2675_v17 = vld [vmem:[%s6834_s27 + $0x940] sm:$0xff]  ;;  %v5192_v18 = vpack.c.bf16 %v2692_v9, %v2691_v8  ;;  %v5162_v24 = vpack.c.bf16 %v2644_v16, %v2643_v15  ;;  %v2308_v8 = vld [vmem:[%s6832_s0 + $0x80] sm:$0xff]  ;;  %v2337_v15 = vld [vmem:[%s6832_s0 + $0x168] sm:$0xff] }
 0x1da   : > { %5177 = vmatprep.subr.bf16.mxu1 %v5176_v21  ;;  %v2662_v21 = vld [vmem:[%s6834_s27 + $0x8d8] sm:$0xff]  ;;  %v5194_v25 = vpack.c.bf16 %v2676_v19, %v2675_v17  ;;  %v5244_v17 = vpack.c.bf16 %v2750_v7, %v2749_v6  ;;  %v2709_v7 = vld [vmem:[%s6834_s27 + $0xa50] sm:$0xff] }
 0x1db   : > { %3388 = vmatmul.mubr.f32.vlgmr.msra.gmra.mrb[18].mxu0 %v2304_v28  ;;  %v5164_v26 = vpack.c.bf16 %v2662_v21, %v2661_v20  ;;  %v2646_v28 = vld [vmem:[%s6834_s27 + $0x858] sm:$0xff]  ;;  %v2719_v20 = vld [vmem:[%s6834_s27 + $0xaa0] sm:$0xff]  ;;  %v2720_v21 = vld [vmem:[%s6834_s27 + $0xaa8] sm:$0xff] }
 0x1dc   : > { %3468 = vmatmul.mubr.f32.vlgmr.msra.gmra.mrb[18].mxu1 %v2306_v29  ;;  %5147 = vmatpush3.bf16.msra.mxu0 %v5146_v30  ;;  %v2677_v29 = vld [vmem:[%s6834_s27 + $0x950] sm:$0xff]  ;;  %v5196_v30 = vpack.c.bf16 %v2694_v23, %v2693_v22  ;;  %v2310_v9 = vld [vmem:[%s6832_s0 + $0x90] sm:$0xff]  ;;  %v2752_v23 = vld [vmem:[%s6834_s27 + $0xba8] sm:$0xff] }
 0x1dd   : > { %5179 = vmatpush3.bf16.msra.mxu1 %v5178_v31  ;;  %3392 = vmatprep.mubr.f32.mxu0 %v2334_v32  ;;  %v2678_v31 = vld [vmem:[%s6834_s27 + $0x958] sm:$0xff]  ;;  %v2663_v32 = vld [vmem:[%s6834_s27 + $0x8e0] sm:$0xff] }
 0x1de   : > { %5149 = vmatprep.subr.bf16.mxu0 %v5148_v36  ;;  %5181 = vmatprep.subr.bf16.mxu1 %v5180_v37  ;;  %v5166_v36 = vpack.c.bf16 %v2646_v28, %v2645_v27  ;;  %v5198_v37 = vpack.c.bf16 %v2678_v31, %v2677_v29  ;;  %v5168_v38 = vpack.c.bf16 %v2664_v33, %v2663_v32  ;;  %v2734_v19 = vld [vmem:[%s6834_s27 + $0xb18] sm:$0xff]  ;;  %v2751_v22 = vld [vmem:[%s6834_s27 + $0xba0] sm:$0xff] }
 0x1df   : > { %3393 = vmatmul.mubr.f32.gmra.mrb[20].mxu0 %v2333_v35  ;;  %3472 = vmatprep.mubr.f32.mxu1 %v2336_v44  ;;  %v2696_v35 = vld [vmem:[%s6834_s27 + $0x9e8] sm:$0xff]  ;;  %v2665_v44 = vld [vmem:[%s6834_s27 + $0x8f0] sm:$0xff]  ;;  %v2703_v29 = vld [vmem:[%s6834_s27 + $0xa20] sm:$0xff]  ;;  %v5216_v32 = vpack.c.bf16 %v2720_v21, %v2719_v20  ;;  %v5248_v33 = vpack.c.bf16 %v2752_v23, %v2751_v22 }
 0x1e0   : > { %5151 = vmatpush3.bf16.msra.mxu0 %v5150_v45  ;;  %3473 = vmatmul.mubr.f32.gmra.mrb[20].mxu1 %v2335_v46  ;;  %v5200_v42 = vpack.c.bf16 %v2696_v35, %v2695_v34  ;;  %v2666_v45 = vld [vmem:[%s6834_s27 + $0x8f8] sm:$0xff]  ;;  %v2697_v46 = vld [vmem:[%s6834_s27 + $0x9f0] sm:$0xff]  ;;  %v2367_v27 = vld [vmem:[%s6832_s0 + $0x258] sm:$0xff] }
 0x1e1   : > { %5183 = vmatpush3.bf16.msra.mxu1 %v5182_v48  ;;  %3397 = vmatprep.mubr.f32.mxu0 %v2363_v47  ;;  %v2698_v47 = vld [vmem:[%s6834_s27 + $0x9f8] sm:$0xff]  ;;  %v5170_v48 = vpack.c.bf16 %v2648_v40, %v2647_v39  ;;  %v5172_v50 = vpack.c.bf16 %v2666_v45, %v2665_v44  ;;  %v2735_v31 = vld [vmem:[%s6834_s27 + $0xb20] sm:$0xff]  ;;  %v2736_v34 = vld [vmem:[%s6834_s27 + $0xb28] sm:$0xff] }
 0x1e2   : > { %5153 = vmatprep.subr.bf16.mxu0 %v5152_v52  ;;  %5185 = vmatprep.subr.bf16.mxu1 %v5184_v53  ;;  %v2650_v52 = vld [vmem:[%s6834_s27 + $0x878] sm:$0xff]  ;;  %v2681_v53 = vld [vmem:[%s6834_s27 + $0x970] sm:$0xff]  ;;  %v5204_v54 = vpack.c.bf16 %v2698_v47, %v2697_v46  ;;  %v5250_v43 = vpack.c.bf16 %v2736_v34, %v2735_v31  ;;  %v2712_v20 = vld [vmem:[%s6834_s27 + $0xa68] sm:$0xff] }
 0x1e3   : > { %3398 = vmatmul.mubr.f32.gmra.mrb[22].mxu0 %v2362_v59  ;;  %3477 = vmatprep.mubr.f32.mxu1 %v2365_v60  ;;  %v2748_v59 = vld [vmem:[%s6834_s27 + $0xb88] sm:$0xff]  ;;  %v5174_v60 = vpack.c.bf16 %v2650_v52, %v2649_v51  ;;  %v2721_v35 = vld [vmem:[%s6834_s27 + $0xab0] sm:$0xff]  ;;  %v2366_v39 = vld [vmem:[%s6832_s0 + $0x250] sm:$0xff] }
 0x1e4   : > { %5155 = vmatpush3.bf16.msra.mxu0 %v5154_v61  ;;  %3478 = vmatmul.mubr.f32.gmra.mrb[22].mxu1 %v2364_v62  ;;  %v5206_v61 = vpack.c.bf16 %v2682_v55, %v2681_v53  ;;  %v5208_v62 = vpack.c.bf16 %v2716_v57, %v2715_v56  ;;  %v5240_v1 = vpack.c.bf16 %v2748_v59, %v2747_v58  ;;  %v2369_v40 = vld [vmem:[%s6832_s0 + $0x268] sm:$0xff]  ;;  %v2724_v51 = vld [vmem:[%s6834_s27 + $0xac8] sm:$0xff]  ;;  %v2755_v52 = vld [vmem:[%s6834_s27 + $0xbc0] sm:$0xff] }
 0x1e5   : > { %5187 = vmatpush3.bf16.msra.mxu1 %v5186_v63  ;;  %5157 = vmatprep.subr.bf16.mxu0 %v5156_v0  ;;  %v2699_v63 = vld [vmem:[%s6834_s27 + $0xa00] sm:$0xff]  ;;  %v2700_v0 = vld [vmem:[%s6834_s27 + $0xa08] sm:$0xff]  ;;  %v2705_v45 = vld [vmem:[%s6834_s27 + $0xa30] sm:$0xff] }
 0x1e6   : > { %5189 = vmatprep.subr.bf16.mxu1 %v5188_v4  ;;  %3547 = vmatprep.mubr.f32.mxu0 %v2309_v10  ;;  %v2717_v4 = vld [vmem:[%s6834_s27 + $0xa90] sm:$0xff]  ;;  %v5210_v10 = vpack.c.bf16 %v2700_v0, %v2699_v63  ;;  %v2706_v46 = vld [vmem:[%s6834_s27 + $0xa38] sm:$0xff]  ;;  %v2756_v53 = vld [vmem:[%s6834_s27 + $0xbc8] sm:$0xff] }
 0x1e7   : > { %3627 = vmatprep.mubr.f32.mxu1 %v2311_v12  ;;  %v2338_v12 = vld [vmem:[%s6832_s0 + $0x170] sm:$0xff]  ;;  %v5212_v16 = vpack.c.bf16 %v2718_v5, %v2717_v4  ;;  %v2737_v47 = vld [vmem:[%s6834_s27 + $0xb30] sm:$0xff]  ;;  %v5222_v55 = vpack.c.bf16 %v2706_v46, %v2705_v45  ;;  %v2315_v56 = vld [vmem:[%s6832_s0 + $0xb8] sm:$0xff] }
 0x1e8   : > { %5159 = vmatpush3.bf16.msra.mxu0 %v5158_v11  ;;  %v5242_v11 = vpack.c.bf16 %v2732_v3, %v2731_v2  ;;  %v2707_v59 = vld [vmem:[%s6834_s27 + $0xa40] sm:$0xff]  ;;  %v2740_v63 = vld [vmem:[%s6834_s27 + $0xb48] sm:$0xff]  ;;  %v2725_v0 = vld [vmem:[%s6834_s27 + $0xad0] sm:$0xff] }
 0x1e9   : > { %5191 = vmatpush3.bf16.msra.mxu1 %v5190_v13  ;;  %5161 = vmatprep.subr.bf16.mxu0 %v5160_v14  ;;  %v2701_v13 = vld [vmem:[%s6834_s27 + $0xa10] sm:$0xff]  ;;  %v2702_v14 = vld [vmem:[%s6834_s27 + $0xa18] sm:$0xff]  ;;  %v2743_v21 = vld [vmem:[%s6834_s27 + $0xb60] sm:$0xff] }
 0x1ea   : > { %5193 = vmatprep.subr.bf16.mxu1 %v5192_v18  ;;  %v2733_v18 = vld [vmem:[%s6834_s27 + $0xb10] sm:$0xff]  ;;  %v2758_v3 = vld [vmem:[%s6834_s27 + $0xbd8] sm:$0xff]  ;;  %v2744_v23 = vld [vmem:[%s6834_s27 + $0xb68] sm:$0xff] }
 0x1eb   : > { %v5246_v28 = vpack.c.bf16 %v2734_v19, %v2733_v18  ;;  %v2757_v2 = vld [vmem:[%s6834_s27 + $0xbd0] sm:$0xff]  ;;  %v2711_v19 = vld [vmem:[%s6834_s27 + $0xa60] sm:$0xff] }
 0x1ec   : > { %5163 = vmatpush3.bf16.msra.mxu0 %v5162_v24  ;;  %v2340_v24 = vld [vmem:[%s6832_s0 + $0x180] sm:$0xff]  ;;  %v2795_v46 = vld [vmem:[%s6834_s27 + $0xd00] sm:$0xff] }
 0x1ed   : > { %5195 = vmatpush3.bf16.msra.mxu1 %v5194_v25  ;;  %5165 = vmatprep.subr.bf16.mxu0 %v5164_v26  ;;  %v5214_v25 = vpack.c.bf16 %v2702_v14, %v2701_v13  ;;  %v2339_v26 = vld [vmem:[%s6832_s0 + $0x178] sm:$0xff]  ;;  %v2713_v31 = vld [vmem:[%s6834_s27 + $0xa70] sm:$0xff] }
 0x1ee   : > { %5197 = vmatprep.subr.bf16.mxu1 %v5196_v30  ;;  %v2704_v30 = vld [vmem:[%s6834_s27 + $0xa28] sm:$0xff]  ;;  %v2759_v14 = vld [vmem:[%s6834_s27 + $0xbe0] sm:$0xff] }
 0x1ef   : > { %v5218_v41 = vpack.c.bf16 %v2704_v30, %v2703_v29  ;;  %v2728_v13 = vld [vmem:[%s6834_s27 + $0xae8] sm:$0xff]  ;;  %v5266_v29 = vpack.c.bf16 %v2744_v23, %v2743_v21 }
 0x1f0   : > { %5167 = vmatpush3.bf16.msra.mxu0 %v5166_v36  ;;  %v2722_v36 = vld [vmem:[%s6834_s27 + $0xab8] sm:$0xff] }
 0x1f1   : > { %5199 = vmatpush3.bf16.msra.mxu1 %v5198_v37  ;;  %5169 = vmatprep.subr.bf16.mxu0 %v5168_v38  ;;  %v2753_v37 = vld [vmem:[%s6834_s27 + $0xbb0] sm:$0xff]  ;;  %v2754_v38 = vld [vmem:[%s6834_s27 + $0xbb8] sm:$0xff]  ;;  %v5220_v44 = vpack.c.bf16 %v2722_v36, %v2721_v35  ;;  %v2779_v36 = vld [vmem:[%s6834_s27 + $0xc80] sm:$0xff] }
 0x1f2   : > { %5201 = vmatprep.subr.bf16.mxu1 %v5200_v42  ;;  %v2368_v42 = vld [vmem:[%s6832_s0 + $0x260] sm:$0xff]  ;;  %v2746_v35 = vld [vmem:[%s6834_s27 + $0xb78] sm:$0xff] }
 0x1f4   : > { %5171 = vmatpush3.bf16.msra.mxu0 %v5170_v48  ;;  %v5252_v48 = vpack.c.bf16 %v2754_v38, %v2753_v37  ;;  %v2780_v37 = vld [vmem:[%s6834_s27 + $0xc88] sm:$0xff]  ;;  %v2811_v38 = vld [vmem:[%s6834_s27 + $0xd80] sm:$0xff] }
 0x1f5   : > { %5203 = vmatpush3.bf16.msra.mxu1 %v5202_v49  ;;  %5173 = vmatprep.subr.bf16.mxu0 %v5172_v50  ;;  %v2738_v49 = vld [vmem:[%s6834_s27 + $0xb38] sm:$0xff]  ;;  %v2723_v50 = vld [vmem:[%s6834_s27 + $0xac0] sm:$0xff] }
 0x1f6   : > { %5205 = vmatprep.subr.bf16.mxu1 %v5204_v54  ;;  %v2313_v54 = vld [vmem:[%s6832_s0 + $0xa8] sm:$0xff]  ;;  %v5254_v57 = vpack.c.bf16 %v2738_v49, %v2737_v47  ;;  %v5224_v58 = vpack.c.bf16 %v2724_v51, %v2723_v50  ;;  %v2796_v47 = vld [vmem:[%s6834_s27 + $0xd08] sm:$0xff] }
 0x1f7   : > { %v2782_v49 = vld [vmem:[%s6834_s27 + $0xc98] sm:$0xff]  ;;  %v2813_v50 = vld [vmem:[%s6834_s27 + $0xd90] sm:$0xff] }
 0x1f8   : > { %5175 = vmatpush3.bf16.msra.mxu0 %v5174_v60  ;;  %v2708_v60 = vld [vmem:[%s6834_s27 + $0xa48] sm:$0xff]  ;;  %v2814_v51 = vld [vmem:[%s6834_s27 + $0xd98] sm:$0xff] }
 0x1f9   : > { %5207 = vmatpush3.bf16.msra.mxu1 %v5206_v61  ;;  %5209 = vmatprep.subr.bf16.mxu0 %v5208_v62  ;;  %v2739_v61 = vld [vmem:[%s6834_s27 + $0xb40] sm:$0xff]  ;;  %v5256_v62 = vpack.c.bf16 %v2756_v53, %v2755_v52  ;;  %v5226_v4 = vpack.c.bf16 %v2708_v60, %v2707_v59  ;;  %v2312_v52 = vld [vmem:[%s6832_s0 + $0xa0] sm:$0xff]  ;;  %v2341_v59 = vld [vmem:[%s6832_s0 + $0x188] sm:$0xff] }
 0x1fa   : > { %5241 = vmatprep.subr.bf16.mxu1 %v5240_v1  ;;  %v2726_v1 = vld [vmem:[%s6834_s27 + $0xad8] sm:$0xff]  ;;  %v5258_v5 = vpack.c.bf16 %v2740_v63, %v2739_v61  ;;  %v5308_v61 = vpack.c.bf16 %v2814_v51, %v2813_v50  ;;  %v2773_v51 = vld [vmem:[%s6834_s27 + $0xc50] sm:$0xff] }
 0x1fb   : > { %3548 = vmatmul.mubr.f32.vlgmr.msra.gmra.mrb[24].mxu0 %v2308_v8  ;;  %v5228_v6 = vpack.c.bf16 %v2726_v1, %v2725_v0  ;;  %v2710_v8 = vld [vmem:[%s6834_s27 + $0xa58] sm:$0xff]  ;;  %v2783_v0 = vld [vmem:[%s6834_s27 + $0xca0] sm:$0xff]  ;;  %v2784_v1 = vld [vmem:[%s6834_s27 + $0xca8] sm:$0xff] }
 0x1fc   : > { %3628 = vmatmul.mubr.f32.vlgmr.msra.gmra.mrb[24].mxu1 %v2310_v9  ;;  %5211 = vmatpush3.bf16.msra.mxu0 %v5210_v10  ;;  %v2741_v9 = vld [vmem:[%s6834_s27 + $0xb50] sm:$0xff]  ;;  %v5260_v10 = vpack.c.bf16 %v2758_v3, %v2757_v2  ;;  %v2314_v53 = vld [vmem:[%s6832_s0 + $0xb0] sm:$0xff]  ;;  %v2816_v3 = vld [vmem:[%s6834_s27 + $0xda8] sm:$0xff] }
 0x1fd   : > { %5243 = vmatpush3.bf16.msra.mxu1 %v5242_v11  ;;  %3552 = vmatprep.mubr.f32.mxu0 %v2338_v12  ;;  %v2742_v11 = vld [vmem:[%s6834_s27 + $0xb58] sm:$0xff]  ;;  %v2727_v12 = vld [vmem:[%s6834_s27 + $0xae0] sm:$0xff] }
 0x1fe   : > { %5213 = vmatprep.subr.bf16.mxu0 %v5212_v16  ;;  %5245 = vmatprep.subr.bf16.mxu1 %v5244_v17  ;;  %v5230_v16 = vpack.c.bf16 %v2710_v8, %v2709_v7  ;;  %v5262_v17 = vpack.c.bf16 %v2742_v11, %v2741_v9  ;;  %v5232_v18 = vpack.c.bf16 %v2728_v13, %v2727_v12  ;;  %v2798_v63 = vld [vmem:[%s6834_s27 + $0xd18] sm:$0xff]  ;;  %v2815_v2 = vld [vmem:[%s6834_s27 + $0xda0] sm:$0xff] }
 0x1ff   : > { %3553 = vmatmul.mubr.f32.gmra.mrb[26].mxu0 %v2337_v15  ;;  %3632 = vmatprep.mubr.f32.mxu1 %v2340_v24  ;;  %v2760_v15 = vld [vmem:[%s6834_s27 + $0xbe8] sm:$0xff]  ;;  %v2729_v24 = vld [vmem:[%s6834_s27 + $0xaf0] sm:$0xff]  ;;  %v2767_v9 = vld [vmem:[%s6834_s27 + $0xc20] sm:$0xff]  ;;  %v5280_v12 = vpack.c.bf16 %v2784_v1, %v2783_v0  ;;  %v5312_v13 = vpack.c.bf16 %v2816_v3, %v2815_v2 }
 0x200   : > { %5215 = vmatpush3.bf16.msra.mxu0 %v5214_v25  ;;  %3633 = vmatmul.mubr.f32.gmra.mrb[26].mxu1 %v2339_v26  ;;  %v5264_v22 = vpack.c.bf16 %v2760_v15, %v2759_v14  ;;  %v2730_v25 = vld [vmem:[%s6834_s27 + $0xaf8] sm:$0xff]  ;;  %v2761_v26 = vld [vmem:[%s6834_s27 + $0xbf0] sm:$0xff]  ;;  %v2371_v7 = vld [vmem:[%s6832_s0 + $0x278] sm:$0xff] }
 0x201   : > { %5247 = vmatpush3.bf16.msra.mxu1 %v5246_v28  ;;  %3557 = vmatprep.mubr.f32.mxu0 %v2367_v27  ;;  %v2762_v27 = vld [vmem:[%s6834_s27 + $0xbf8] sm:$0xff]  ;;  %v5234_v28 = vpack.c.bf16 %v2712_v20, %v2711_v19  ;;  %v5236_v30 = vpack.c.bf16 %v2730_v25, %v2729_v24  ;;  %v2799_v11 = vld [vmem:[%s6834_s27 + $0xd20] sm:$0xff]  ;;  %v2800_v14 = vld [vmem:[%s6834_s27 + $0xd28] sm:$0xff] }
 0x202   : > { %5217 = vmatprep.subr.bf16.mxu0 %v5216_v32  ;;  %5249 = vmatprep.subr.bf16.mxu1 %v5248_v33  ;;  %v2714_v32 = vld [vmem:[%s6834_s27 + $0xa78] sm:$0xff]  ;;  %v2745_v33 = vld [vmem:[%s6834_s27 + $0xb70] sm:$0xff]  ;;  %v5268_v34 = vpack.c.bf16 %v2762_v27, %v2761_v26  ;;  %v5314_v23 = vpack.c.bf16 %v2800_v14, %v2799_v11  ;;  %v2776_v0 = vld [vmem:[%s6834_s27 + $0xc68] sm:$0xff] }
 0x203   : > { %3558 = vmatmul.mubr.f32.gmra.mrb[28].mxu0 %v2366_v39  ;;  %3637 = vmatprep.mubr.f32.mxu1 %v2369_v40  ;;  %v2812_v39 = vld [vmem:[%s6834_s27 + $0xd88] sm:$0xff]  ;;  %v5238_v40 = vpack.c.bf16 %v2714_v32, %v2713_v31  ;;  %v2785_v15 = vld [vmem:[%s6834_s27 + $0xcb0] sm:$0xff]  ;;  %v2370_v19 = vld [vmem:[%s6832_s0 + $0x270] sm:$0xff] }
 0x204   : > { %5219 = vmatpush3.bf16.msra.mxu0 %v5218_v41  ;;  %3638 = vmatmul.mubr.f32.gmra.mrb[28].mxu1 %v2368_v42  ;;  %v5270_v41 = vpack.c.bf16 %v2746_v35, %v2745_v33  ;;  %v5272_v42 = vpack.c.bf16 %v2780_v37, %v2779_v36  ;;  %v5304_v45 = vpack.c.bf16 %v2812_v39, %v2811_v38  ;;  %v2373_v20 = vld [vmem:[%s6832_s0 + $0x288] sm:$0xff]  ;;  %v2788_v31 = vld [vmem:[%s6834_s27 + $0xcc8] sm:$0xff]  ;;  %v2819_v32 = vld [vmem:[%s6834_s27 + $0xdc0] sm:$0xff] }
 0x205   : > { %5251 = vmatpush3.bf16.msra.mxu1 %v5250_v43  ;;  %5221 = vmatprep.subr.bf16.mxu0 %v5220_v44  ;;  %v2763_v43 = vld [vmem:[%s6834_s27 + $0xc00] sm:$0xff]  ;;  %v2764_v44 = vld [vmem:[%s6834_s27 + $0xc08] sm:$0xff]  ;;  %v2769_v25 = vld [vmem:[%s6834_s27 + $0xc30] sm:$0xff] }
 0x206   : > { %5253 = vmatprep.subr.bf16.mxu1 %v5252_v48  ;;  %3707 = vmatprep.mubr.f32.mxu0 %v2313_v54  ;;  %v2781_v48 = vld [vmem:[%s6834_s27 + $0xc90] sm:$0xff]  ;;  %v5274_v54 = vpack.c.bf16 %v2764_v44, %v2763_v43  ;;  %v2770_v26 = vld [vmem:[%s6834_s27 + $0xc38] sm:$0xff]  ;;  %v2820_v33 = vld [vmem:[%s6834_s27 + $0xdc8] sm:$0xff] }
 0x207   : > { %3787 = vmatprep.mubr.f32.mxu1 %v2315_v56  ;;  %v2342_v56 = vld [vmem:[%s6832_s0 + $0x190] sm:$0xff]  ;;  %v5276_v60 = vpack.c.bf16 %v2782_v49, %v2781_v48  ;;  %v2801_v27 = vld [vmem:[%s6834_s27 + $0xd30] sm:$0xff]  ;;  %v5286_v35 = vpack.c.bf16 %v2770_v26, %v2769_v25  ;;  %v2319_v36 = vld [vmem:[%s6832_s0 + $0xd8] sm:$0xff] }
 0x208   : > { %5223 = vmatpush3.bf16.msra.mxu0 %v5222_v55  ;;  %v5306_v55 = vpack.c.bf16 %v2796_v47, %v2795_v46  ;;  %v2771_v39 = vld [vmem:[%s6834_s27 + $0xc40] sm:$0xff]  ;;  %v2804_v43 = vld [vmem:[%s6834_s27 + $0xd48] sm:$0xff]  ;;  %v2789_v44 = vld [vmem:[%s6834_s27 + $0xcd0] sm:$0xff] }
 0x209   : > { %5255 = vmatpush3.bf16.msra.mxu1 %v5254_v57  ;;  %5225 = vmatprep.subr.bf16.mxu0 %v5224_v58  ;;  %v2765_v57 = vld [vmem:[%s6834_s27 + $0xc10] sm:$0xff]  ;;  %v2766_v58 = vld [vmem:[%s6834_s27 + $0xc18] sm:$0xff]  ;;  %v2807_v1 = vld [vmem:[%s6834_s27 + $0xd60] sm:$0xff] }
 0x20a   : > { %5257 = vmatprep.subr.bf16.mxu1 %v5256_v62  ;;  %v2797_v62 = vld [vmem:[%s6834_s27 + $0xd10] sm:$0xff]  ;;  %v2822_v47 = vld [vmem:[%s6834_s27 + $0xdd8] sm:$0xff]  ;;  %v2808_v3 = vld [vmem:[%s6834_s27 + $0xd68] sm:$0xff] }
 0x20b   : > { %v5310_v8 = vpack.c.bf16 %v2798_v63, %v2797_v62  ;;  %v2821_v46 = vld [vmem:[%s6834_s27 + $0xdd0] sm:$0xff]  ;;  %v2775_v63 = vld [vmem:[%s6834_s27 + $0xc60] sm:$0xff]  ;;  %v2830_v25 = vld [vmem:[%s6834_s27 + $0xe18] sm:$0xff] }
 0x20c   : > { %5227 = vmatpush3.bf16.msra.mxu0 %v5226_v4  ;;  %v2344_v4 = vld [vmem:[%s6832_s0 + $0x1a0] sm:$0xff]  ;;  %v2346_v26 = vld [vmem:[%s6832_s0 + $0x1b0] sm:$0xff] }
 0x20d   : > { %5259 = vmatpush3.bf16.msra.mxu1 %v5258_v5  ;;  %5229 = vmatprep.subr.bf16.mxu0 %v5228_v6  ;;  %v5278_v5 = vpack.c.bf16 %v2766_v58, %v2765_v57  ;;  %v2343_v6 = vld [vmem:[%s6832_s0 + $0x198] sm:$0xff]  ;;  %v2777_v11 = vld [vmem:[%s6834_s27 + $0xc70] sm:$0xff] }
 0x20e   : > { %5261 = vmatprep.subr.bf16.mxu1 %v5260_v10  ;;  %v2768_v10 = vld [vmem:[%s6834_s27 + $0xc28] sm:$0xff]  ;;  %v2823_v58 = vld [vmem:[%s6834_s27 + $0xde0] sm:$0xff]  ;;  %v2809_v14 = vld [vmem:[%s6834_s27 + $0xd70] sm:$0xff] }
 0x20f   : > { %v5282_v21 = vpack.c.bf16 %v2768_v10, %v2767_v9  ;;  %v2792_v57 = vld [vmem:[%s6834_s27 + $0xce8] sm:$0xff]  ;;  %v5330_v9 = vpack.c.bf16 %v2808_v3, %v2807_v1 }
 0x210   : > { %5231 = vmatpush3.bf16.msra.mxu0 %v5230_v16  ;;  %v2786_v16 = vld [vmem:[%s6834_s27 + $0xcb8] sm:$0xff] }
 0x211   : > { %5263 = vmatpush3.bf16.msra.mxu1 %v5262_v17  ;;  %5233 = vmatprep.subr.bf16.mxu0 %v5232_v18  ;;  %v2817_v17 = vld [vmem:[%s6834_s27 + $0xdb0] sm:$0xff]  ;;  %v2818_v18 = vld [vmem:[%s6834_s27 + $0xdb8] sm:$0xff]  ;;  %v5284_v24 = vpack.c.bf16 %v2786_v16, %v2785_v15 }
 0x212   : > { %5265 = vmatprep.subr.bf16.mxu1 %v5264_v22  ;;  %v2372_v22 = vld [vmem:[%s6832_s0 + $0x280] sm:$0xff]  ;;  %v2810_v15 = vld [vmem:[%s6834_s27 + $0xd78] sm:$0xff] }
 0x214   : > { %5235 = vmatpush3.bf16.msra.mxu0 %v5234_v28  ;;  %v5316_v28 = vpack.c.bf16 %v2818_v18, %v2817_v17  ;;  %v5334_v17 = vpack.c.bf16 %v2810_v15, %v2809_v14  ;;  %v2827_v18 = vld [vmem:[%s6834_s27 + $0xe00] sm:$0xff] }
 0x215   : > { %5267 = vmatpush3.bf16.msra.mxu1 %v5266_v29  ;;  %5237 = vmatprep.subr.bf16.mxu0 %v5236_v30  ;;  %v2802_v29 = vld [vmem:[%s6834_s27 + $0xd38] sm:$0xff]  ;;  %v2787_v30 = vld [vmem:[%s6834_s27 + $0xcc0] sm:$0xff] }
 0x216   : > { %5269 = vmatprep.subr.bf16.mxu1 %v5268_v34  ;;  %v2317_v34 = vld [vmem:[%s6832_s0 + $0xc8] sm:$0xff]  ;;  %v5318_v37 = vpack.c.bf16 %v2802_v29, %v2801_v27  ;;  %v5288_v38 = vpack.c.bf16 %v2788_v31, %v2787_v30  ;;  %v2347_v30 = vld [vmem:[%s6832_s0 + $0x1b8] sm:$0xff] }
 0x217   : > { %v2345_v27 = vld [vmem:[%s6832_s0 + $0x1a8] sm:$0xff]  ;;  %v2831_v31 = vld [vmem:[%s6834_s27 + $0xe20] sm:$0xff] }
 0x218   : > { %5239 = vmatpush3.bf16.msra.mxu0 %v5238_v40  ;;  %v2772_v40 = vld [vmem:[%s6834_s27 + $0xc48] sm:$0xff] }
 0x219   : > { %5271 = vmatpush3.bf16.msra.mxu1 %v5270_v41  ;;  %5273 = vmatprep.subr.bf16.mxu0 %v5272_v42  ;;  %v2803_v41 = vld [vmem:[%s6834_s27 + $0xd40] sm:$0xff]  ;;  %v5320_v42 = vpack.c.bf16 %v2820_v33, %v2819_v32  ;;  %v5290_v48 = vpack.c.bf16 %v2772_v40, %v2771_v39  ;;  %v2832_v32 = vld [vmem:[%s6834_s27 + $0xe28] sm:$0xff]  ;;  %v2834_v39 = vld [vmem:[%s6834_s27 + $0xe38] sm:$0xff] }
 0x21a   : > { %5305 = vmatprep.subr.bf16.mxu1 %v5304_v45  ;;  %v2790_v45 = vld [vmem:[%s6834_s27 + $0xcd8] sm:$0xff]  ;;  %v5322_v49 = vpack.c.bf16 %v2804_v43, %v2803_v41  ;;  %v2375_v33 = vld [vmem:[%s6832_s0 + $0x298] sm:$0xff]  ;;  %v5581_v43 = vmov 0.0  }
 0x21b   : > { %3708 = vmatmul.mubr.f32.vlgmr.msra.gmra.mrb[30].mxu0 %v2312_v52  ;;  %v5292_v50 = vpack.c.bf16 %v2790_v45, %v2789_v44  ;;  %v2774_v52 = vld [vmem:[%s6834_s27 + $0xc58] sm:$0xff]  ;;  %v2835_v41 = vld [vmem:[%s6834_s27 + $0xe40] sm:$0xff]  ;;  %v2837_v45 = vld [vmem:[%s6834_s27 + $0xe50] sm:$0xff] }
 0x21c   : > { %3788 = vmatmul.mubr.f32.vlgmr.msra.gmra.mrb[30].mxu1 %v2314_v53  ;;  %5275 = vmatpush3.bf16.msra.mxu0 %v5274_v54  ;;  %v2805_v53 = vld [vmem:[%s6834_s27 + $0xd50] sm:$0xff]  ;;  %v5324_v54 = vpack.c.bf16 %v2822_v47, %v2821_v46  ;;  %v2838_v46 = vld [vmem:[%s6834_s27 + $0xe58] sm:$0xff] }
 0x21d   : > { %5307 = vmatpush3.bf16.msra.mxu1 %v5306_v55  ;;  %3712 = vmatprep.mubr.f32.mxu0 %v2342_v56  ;;  %v2806_v55 = vld [vmem:[%s6834_s27 + $0xd58] sm:$0xff]  ;;  %v2791_v56 = vld [vmem:[%s6834_s27 + $0xce0] sm:$0xff]  ;;  %v5352_v47 = vpack.c.bf16 %v2838_v46, %v2837_v45 }
 0x21e   : > { %5277 = vmatprep.subr.bf16.mxu0 %v5276_v60  ;;  %5309 = vmatprep.subr.bf16.mxu1 %v5308_v61  ;;  %v5294_v60 = vpack.c.bf16 %v2774_v52, %v2773_v51  ;;  %v5326_v61 = vpack.c.bf16 %v2806_v55, %v2805_v53  ;;  %v5296_v62 = vpack.c.bf16 %v2792_v57, %v2791_v56  ;;  %v2841_v57 = vld [vmem:[%s6834_s27 + $0xe70] sm:$0xff] }
 0x21f   : > { %3713 = vmatmul.mubr.f32.gmra.mrb[32].mxu0 %v2341_v59  ;;  %3792 = vmatprep.mubr.f32.mxu1 %v2344_v4  ;;  %v2824_v59 = vld [vmem:[%s6834_s27 + $0xde8] sm:$0xff]  ;;  %v2793_v4 = vld [vmem:[%s6834_s27 + $0xcf0] sm:$0xff] }
 0x220   : > { %5279 = vmatpush3.bf16.msra.mxu0 %v5278_v5  ;;  %3793 = vmatmul.mubr.f32.gmra.mrb[32].mxu1 %v2343_v6  ;;  %v5328_v2 = vpack.c.bf16 %v2824_v59, %v2823_v58  ;;  %v2794_v5 = vld [vmem:[%s6834_s27 + $0xcf8] sm:$0xff]  ;;  %v2825_v6 = vld [vmem:[%s6834_s27 + $0xdf0] sm:$0xff] }
 0x221   : > { %5311 = vmatpush3.bf16.msra.mxu1 %v5310_v8  ;;  %3717 = vmatprep.mubr.f32.mxu0 %v2371_v7  ;;  %v2826_v7 = vld [vmem:[%s6834_s27 + $0xdf8] sm:$0xff]  ;;  %v5298_v8 = vpack.c.bf16 %v2776_v0, %v2775_v63  ;;  %v5300_v10 = vpack.c.bf16 %v2794_v5, %v2793_v4 }
 0x222   : > { %5281 = vmatprep.subr.bf16.mxu0 %v5280_v12  ;;  %5313 = vmatprep.subr.bf16.mxu1 %v5312_v13  ;;  %v2778_v12 = vld [vmem:[%s6834_s27 + $0xc78] sm:$0xff]  ;;  %v5332_v13 = vpack.c.bf16 %v2826_v7, %v2825_v6 }
 0x223   : > { %3718 = vmatmul.mubr.f32.gmra.mrb[34].mxu0 %v2370_v19  ;;  %3797 = vmatprep.mubr.f32.mxu1 %v2373_v20  ;;  %v5302_v16 = vpack.c.bf16 %v2778_v12, %v2777_v11  ;;  %v2828_v19 = vld [vmem:[%s6834_s27 + $0xe08] sm:$0xff]  ;;  %v2842_v58 = vld [vmem:[%s6834_s27 + $0xe78] sm:$0xff] }
 0x224   : > { %5283 = vmatpush3.bf16.msra.mxu0 %v5282_v21  ;;  %3798 = vmatmul.mubr.f32.gmra.mrb[34].mxu1 %v2372_v22  ;;  %v2316_v20 = vld [vmem:[%s6832_s0 + $0xc0] sm:$0xff]  ;;  %v5337_v21 = vpack.c.bf16 %v2828_v19, %v2827_v18  ;;  %v2318_v22 = vld [vmem:[%s6832_s0 + $0xd0] sm:$0xff]  ;;  %v2349_v4 = vld [vmem:[%s6832_s0 + $0x1c8] sm:$0xff] }
 0x225   : > { %5315 = vmatpush3.bf16.msra.mxu1 %v5314_v23  ;;  %5285 = vmatprep.subr.bf16.mxu0 %v5284_v24  ;;  %v5579_v23 = vmov 0.0|0.0   ;;  %v2829_v24 = vld [vmem:[%s6834_s27 + $0xe10] sm:$0xff]  ;;  %v2378_v12 = vld [vmem:[%s6832_s0 + $0x2b0] sm:$0xff] }
 0x226   : > { %5317 = vmatprep.subr.bf16.mxu1 %v5316_v28  ;;  %3867 = vmatprep.mubr.f32.mxu0 %v2317_v34  ;;  %v2348_v28 = vld [vmem:[%s6832_s0 + $0x1c0] sm:$0xff]  ;;  %v5340_v29 = vpack.c.bf16 %v2830_v25, %v2829_v24  ;;  %v2374_v34 = vld [vmem:[%s6832_s0 + $0x290] sm:$0xff] }
 0x227   : > { %3947 = vmatprep.mubr.f32.mxu1 %v2319_v36  ;;  %v5343_v36 = vpack.c.bf16 %v2832_v32, %v2831_v31 }
 0x228   : > { %5287 = vmatpush3.bf16.msra.mxu0 %v5286_v35  ;;  %v2377_v35 = vld [vmem:[%s6832_s0 + $0x2a8] sm:$0xff] }
 0x229   : > { %5319 = vmatpush3.bf16.msra.mxu1 %v5318_v37  ;;  %5289 = vmatprep.subr.bf16.mxu0 %v5288_v38  ;;  %v2376_v37 = vld [vmem:[%s6832_s0 + $0x2a0] sm:$0xff] }
 0x22a   : > { %5321 = vmatprep.subr.bf16.mxu1 %v5320_v42  ;;  %v2833_v38 = vld [vmem:[%s6834_s27 + $0xe30] sm:$0xff]  ;;  %v2836_v42 = vld [vmem:[%s6834_s27 + $0xe48] sm:$0xff] }
 0x22b   : > { %v5346_v40 = vpack.c.bf16 %v2834_v39, %v2833_v38  ;;  %v5349_v44 = vpack.c.bf16 %v2836_v42, %v2835_v41 }
 0x22c   : > { %5291 = vmatpush3.bf16.msra.mxu0 %v5290_v48  ;;  %v2839_v48 = vld [vmem:[%s6834_s27 + $0xe60] sm:$0xff] }
 0x22d   : > { %5323 = vmatpush3.bf16.msra.mxu1 %v5322_v49  ;;  %5293 = vmatprep.subr.bf16.mxu0 %v5292_v50  ;;  %v2840_v49 = vld [vmem:[%s6834_s27 + $0xe68] sm:$0xff] }
 0x22e   : > { %5325 = vmatprep.subr.bf16.mxu1 %v5324_v54  ;;  %v5355_v55 = vpack.c.bf16 %v2840_v49, %v2839_v48 }
 0x230   : > { %5295 = vmatpush3.bf16.msra.mxu0 %v5294_v60  ;;  %v5358_v60 = vpack.c.bf16 %v2842_v58, %v2841_v57 }
 0x231   : > { %5327 = vmatpush3.bf16.msra.mxu1 %v5326_v61  ;;  %5297 = vmatprep.subr.bf16.mxu0 %v5296_v62 }
 0x232   : > { %5329 = vmatprep.subr.bf16.mxu1 %v5328_v2  ;;  %v2320_v2 = vld [vmem:[%s6832_s0 + $0xe0] sm:$0xff] }
 0x234   : > { %5299 = vmatpush3.bf16.msra.mxu0 %v5298_v8 }
 0x235   : > { %5331 = vmatpush3.bf16.msra.mxu1 %v5330_v9  ;;  %5301 = vmatprep.subr.bf16.mxu0 %v5300_v10 }
 0x236   : > { %5333 = vmatprep.subr.bf16.mxu1 %v5332_v13 }
 0x238   : > { %5303 = vmatpush3.bf16.msra.mxu0 %v5302_v16 }
 0x239   : > { %5335 = vmatpush3.bf16.msra.mxu1 %v5334_v17  ;;  %5336 = vmatprep.subr.bf16.mxu0 %v5579_v23 }
 0x23a   : > { %5360 = vmatprep.subr.bf16.mxu1 %v5579_v23 }
 0x23b   : > { %3868 = vmatmul.mubr.f32.vlgmr.msra.gmra.mrb[36].mxu0 %v2316_v20 }
 0x23c   : > { %3948 = vmatmul.mubr.f32.vlgmr.msra.gmra.mrb[36].mxu1 %v2318_v22  ;;  %5338 = vmatpush3.bf16.msra.mxu0 %v5337_v21 }
 0x23d   : > { %5368 = vmatpush3.bf16.msra.mxu1 %v5337_v21  ;;  %3872 = vmatprep.mubr.f32.mxu0 %v2346_v26 }
 0x23e   : > { %5339 = vmatprep.subr.bf16.mxu0 %v5579_v23  ;;  %5361 = vmatprep.subr.bf16.mxu1 %v5579_v23 }
 0x23f   : > { %3873 = vmatmul.mubr.f32.gmra.mrb[38].mxu0 %v2345_v27  ;;  %3952 = vmatprep.mubr.f32.mxu1 %v2348_v28 }
 0x240   : > { %5341 = vmatpush3.bf16.msra.mxu0 %v5340_v29  ;;  %3953 = vmatmul.mubr.f32.gmra.mrb[38].mxu1 %v2347_v30 }
 0x241   : > { %5369 = vmatpush3.bf16.msra.mxu1 %v5340_v29  ;;  %3877 = vmatprep.mubr.f32.mxu0 %v2375_v33 }
 0x242   : > { %5342 = vmatprep.subr.bf16.mxu0 %v5579_v23  ;;  %5362 = vmatprep.subr.bf16.mxu1 %v5579_v23 }
 0x243   : > { %3878 = vmatmul.mubr.f32.gmra.mrb[40].mxu0 %v2374_v34  ;;  %3957 = vmatprep.mubr.f32.mxu1 %v2377_v35 }
 0x244   : > { %5344 = vmatpush3.bf16.msra.mxu0 %v5343_v36  ;;  %3958 = vmatmul.mubr.f32.gmra.mrb[40].mxu1 %v2376_v37 }
 0x245   : > { %5370 = vmatpush3.bf16.msra.mxu1 %v5343_v36  ;;  %5345 = vmatprep.subr.bf16.mxu0 %v5579_v23 }
 0x246   : > { %5363 = vmatprep.subr.bf16.mxu1 %v5579_v23  ;;  %4879 = vmatprep.mubr.msk.f32.mxu0 %vm5580_vm0, %v5581_v43 }
 0x247   : > { %4882 = vmatprep.mubr.msk.f32.mxu1 %vm5580_vm0, %v5581_v43 }
 0x248   : > { %5347 = vmatpush3.bf16.msra.mxu0 %v5346_v40 }
 0x249   : > { %5371 = vmatpush3.bf16.msra.mxu1 %v5346_v40  ;;  %5348 = vmatprep.subr.bf16.mxu0 %v5579_v23 }
 0x24a   : > { %5364 = vmatprep.subr.bf16.mxu1 %v5579_v23 }
 0x24c   : > { %5350 = vmatpush3.bf16.msra.mxu0 %v5349_v44 }
 0x24d   : > { %5372 = vmatpush3.bf16.msra.mxu1 %v5349_v44  ;;  %5351 = vmatprep.subr.bf16.mxu0 %v5579_v23 }
 0x24e   : > { %v4286_v50 = vpop.f32.mrb[0].mxu0  ;;  %5365 = vmatprep.subr.bf16.mxu1 %v5579_v23 }
 0x24f   : > { %v4327_v51 = vpop.f32.mrb[0].mxu1  ;;  %v4287_v52 = vpop.f32.mrb[1].mxu0 }
 0x250   : > { %v4288_v53 = vadd.f32 %v4287_v52, %v4286_v50  ;;  %v4328_v54 = vpop.f32.mrb[1].mxu1  ;;  %5353 = vmatpush3.bf16.msra.mxu0 %v5352_v47 }
 0x251   : > { %v4329_v56 = vadd.f32 %v4328_v54, %v4327_v51  ;;  %5373 = vmatpush3.bf16.msra.mxu1 %v5352_v47  ;;  %5354 = vmatprep.subr.bf16.mxu0 %v5579_v23 }
 0x252   : > { %5366 = vmatprep.subr.bf16.mxu1 %v5579_v23  ;;  %v4289_v61 = vpop.f32.mrb[2].mxu0 }
 0x253   : > { %v2990_v59 = vadd.f32 %v4329_v56, %v4288_v53  ;;  %v4330_v62 = vpop.f32.mrb[2].mxu1  ;;  %v4290_v63 = vpop.f32.mrb[3].mxu0 }
 0x254   : > { %5356 = vmatpush3.bf16.msra.mxu0 %v5355_v55  ;;  %v4291_v0 = vadd.f32 %v4290_v63, %v4289_v61  ;;  %v4331_v1 = vpop.f32.mrb[3].mxu1 }
 0x255   : > { %5374 = vmatpush3.bf16.msra.mxu1 %v5355_v55  ;;  %5357 = vmatprep.subr.bf16.mxu0 %v5579_v23  ;;  %v4332_v3 = vadd.f32 %v4331_v1, %v4330_v62 }
 0x256   : > { %5367 = vmatprep.subr.bf16.mxu1 %v5579_v23  ;;  %v4292_v5 = vpop.f32.mrb[4].mxu0 }
 0x257   : > { %v2995_v6 = vadd.f32 %v4332_v3, %v4291_v0  ;;  %v4333_v7 = vpop.f32.mrb[4].mxu1  ;;  %v4293_v8 = vpop.f32.mrb[5].mxu0 }
 0x258   : > { %5359 = vmatpush3.bf16.msra.mxu0 %v5358_v60  ;;  %v4294_v9 = vadd.f32 %v4293_v8, %v4292_v5  ;;  %v4334_v10 = vpop.f32.mrb[5].mxu1 }
 0x259   : > { %5375 = vmatpush3.bf16.msra.mxu1 %v5358_v60  ;;  %v4335_v11 = vadd.f32 %v4334_v10, %v4333_v7 }
 0x25b   : > { %4880 = vmatmul.mubr.f32.vlgmr.msra.gmra.mrb[42].mxu0 %v2320_v2  ;;  %v3000_v13 = vadd.f32 %v4335_v11, %v4294_v9 }
 0x25c   : > { %4883 = vmatmul.mubr.f32.vlgmr.msra.gmra.mrb[42].mxu1 %v2349_v4 }
 0x25d   : > { %4885 = vmatprep.mubr.msk.f32.mxu1 %vm5580_vm0, %v5581_v43 }
 0x260   : > { %4886 = vmatmul.mubr.f32.gmra.mrb[44].mxu1 %v2378_v12 }
 0x26e   : > { %v4368_v14 = vpop.f32.mrb[6].mxu0 }
 0x26f   : > { %v4409_v15 = vpop.f32.mrb[6].mxu1  ;;  %v4369_v16 = vpop.f32.mrb[7].mxu0 }
 0x270   : > { %v4370_v17 = vadd.f32 %v4369_v16, %v4368_v14  ;;  %v4410_v18 = vpop.f32.mrb[7].mxu1 }
 0x271   : > { %v4411_v19 = vadd.f32 %v4410_v18, %v4409_v15 }
 0x272   : > { %v3070_v20 = vadd.f32 %v4370_v17, %v2990_v59  ;;  %v4371_v21 = vpop.f32.mrb[8].mxu0 }
 0x273   : > { %v4372_v22 = vpop.f32.mrb[9].mxu0  ;;  %v4412_v23 = vpop.f32.mrb[8].mxu1 }
 0x274   : > { %v3150_v24 = vadd.f32 %v4411_v19, %v3070_v20  ;;  %v4373_v25 = vadd.f32 %v4372_v22, %v4371_v21  ;;  %v4413_v26 = vpop.f32.mrb[9].mxu1 }
 0x275   : > { %v4414_v27 = vadd.f32 %v4413_v26, %v4412_v23 }
 0x276   : > { %v3075_v28 = vadd.f32 %v4373_v25, %v2995_v6  ;;  %v4374_v29 = vpop.f32.mrb[10].mxu0 }
 0x277   : > { %v4375_v30 = vpop.f32.mrb[11].mxu0  ;;  %v4415_v31 = vpop.f32.mrb[10].mxu1 }
 0x278   : > { %v3155_v32 = vadd.f32 %v4414_v27, %v3075_v28  ;;  %v4376_v33 = vadd.f32 %v4375_v30, %v4374_v29  ;;  %v4416_v34 = vpop.f32.mrb[11].mxu1 }
 0x279   : > { %v4417_v35 = vadd.f32 %v4416_v34, %v4415_v31 }
 0x27a   : > { %v3080_v36 = vadd.f32 %v4376_v33, %v3000_v13 }
 0x27c   : > { %v3160_v37 = vadd.f32 %v4417_v35, %v3080_v36 }
 0x28e   : > { %v4450_v38 = vpop.f32.mrb[12].mxu0 }
 0x28f   : > { %v4491_v39 = vpop.f32.mrb[12].mxu1  ;;  %v4451_v40 = vpop.f32.mrb[13].mxu0 }
 0x290   : > { %v4452_v41 = vadd.f32 %v4451_v40, %v4450_v38  ;;  %v4492_v42 = vpop.f32.mrb[13].mxu1 }
 0x291   : > { %v4493_v43 = vadd.f32 %v4492_v42, %v4491_v39 }
 0x292   : > { %v3230_v44 = vadd.f32 %v4452_v41, %v3150_v24  ;;  %v4453_v45 = vpop.f32.mrb[14].mxu0 }
 0x293   : > { %v4454_v46 = vpop.f32.mrb[15].mxu0  ;;  %v4494_v47 = vpop.f32.mrb[14].mxu1 }
 0x294   : > { %v3310_v48 = vadd.f32 %v4493_v43, %v3230_v44  ;;  %v4455_v49 = vadd.f32 %v4454_v46, %v4453_v45  ;;  %v4495_v50 = vpop.f32.mrb[15].mxu1 }
 0x295   : > { %v4496_v51 = vadd.f32 %v4495_v50, %v4494_v47 }
 0x296   : > { %v3235_v52 = vadd.f32 %v4455_v49, %v3155_v32  ;;  %v4456_v53 = vpop.f32.mrb[16].mxu0 }
 0x297   : > { %v4457_v54 = vpop.f32.mrb[17].mxu0  ;;  %v4497_v55 = vpop.f32.mrb[16].mxu1 }
 0x298   : > { %v3315_v56 = vadd.f32 %v4496_v51, %v3235_v52  ;;  %v4458_v57 = vadd.f32 %v4457_v54, %v4456_v53  ;;  %v4498_v58 = vpop.f32.mrb[17].mxu1 }
 0x299   : > { %v4499_v59 = vadd.f32 %v4498_v58, %v4497_v55 }
 0x29a   : > { %v3240_v60 = vadd.f32 %v4458_v57, %v3160_v37 }
 0x29c   : > { %v3320_v61 = vadd.f32 %v4499_v59, %v3240_v60 }
 0x2ae   : > { %v4532_v62 = vpop.f32.mrb[18].mxu0 }
 0x2af   : > { %v4573_v63 = vpop.f32.mrb[18].mxu1  ;;  %v4533_v0 = vpop.f32.mrb[19].mxu0 }
 0x2b0   : > { %v4534_v1 = vadd.f32 %v4533_v0, %v4532_v62  ;;  %v4574_v2 = vpop.f32.mrb[19].mxu1 }
 0x2b1   : > { %v4575_v3 = vadd.f32 %v4574_v2, %v4573_v63 }
 0x2b2   : > { %v3390_v4 = vadd.f32 %v4534_v1, %v3310_v48  ;;  %v4535_v5 = vpop.f32.mrb[20].mxu0 }
 0x2b3   : > { %v4536_v6 = vpop.f32.mrb[21].mxu0  ;;  %v4576_v7 = vpop.f32.mrb[20].mxu1 }
 0x2b4   : > { %v3470_v8 = vadd.f32 %v4575_v3, %v3390_v4  ;;  %v4537_v9 = vadd.f32 %v4536_v6, %v4535_v5  ;;  %v4577_v10 = vpop.f32.mrb[21].mxu1 }
 0x2b5   : > { %v4578_v11 = vadd.f32 %v4577_v10, %v4576_v7 }
 0x2b6   : > { %v3395_v12 = vadd.f32 %v4537_v9, %v3315_v56  ;;  %v4538_v13 = vpop.f32.mrb[22].mxu0 }
 0x2b7   : > { %v4539_v14 = vpop.f32.mrb[23].mxu0  ;;  %v4579_v15 = vpop.f32.mrb[22].mxu1 }
 0x2b8   : > { %v3475_v16 = vadd.f32 %v4578_v11, %v3395_v12  ;;  %v4540_v17 = vadd.f32 %v4539_v14, %v4538_v13  ;;  %v4580_v18 = vpop.f32.mrb[23].mxu1 }
 0x2b9   : > { %v4581_v19 = vadd.f32 %v4580_v18, %v4579_v15 }
 0x2ba   : > { %v3400_v20 = vadd.f32 %v4540_v17, %v3320_v61 }
 0x2bc   : > { %v3480_v21 = vadd.f32 %v4581_v19, %v3400_v20 }
 0x2ce   : > { %v4614_v22 = vpop.f32.mrb[24].mxu0 }
 0x2cf   : > { %v4655_v23 = vpop.f32.mrb[24].mxu1  ;;  %v4615_v24 = vpop.f32.mrb[25].mxu0 }
 0x2d0   : > { %v4616_v25 = vadd.f32 %v4615_v24, %v4614_v22  ;;  %v4656_v26 = vpop.f32.mrb[25].mxu1 }
 0x2d1   : > { %v4657_v27 = vadd.f32 %v4656_v26, %v4655_v23 }
 0x2d2   : > { %v3550_v28 = vadd.f32 %v4616_v25, %v3470_v8  ;;  %v4617_v29 = vpop.f32.mrb[26].mxu0 }
 0x2d3   : > { %v4618_v30 = vpop.f32.mrb[27].mxu0  ;;  %v4658_v31 = vpop.f32.mrb[26].mxu1 }
 0x2d4   : > { %v3630_v32 = vadd.f32 %v4657_v27, %v3550_v28  ;;  %v4619_v33 = vadd.f32 %v4618_v30, %v4617_v29  ;;  %v4659_v34 = vpop.f32.mrb[27].mxu1  ;;  %v2289_v30 = vld [vmem:[#allocation2] sm:$0xff] }
 0x2d5   : > { %v4660_v35 = vadd.f32 %v4659_v34, %v4658_v31 }
 0x2d6   : > { %v3555_v36 = vadd.f32 %v4619_v33, %v3475_v16  ;;  %v4620_v37 = vpop.f32.mrb[28].mxu0  ;;  %v2290_v33 = vld [vmem:[#allocation2 + $0x8] sm:$0xff] }
 0x2d7   : > { %v4621_v38 = vpop.f32.mrb[29].mxu0  ;;  %v4661_v39 = vpop.f32.mrb[28].mxu1 }
 0x2d8   : > { %v3635_v40 = vadd.f32 %v4660_v35, %v3555_v36  ;;  %v4622_v41 = vadd.f32 %v4621_v38, %v4620_v37  ;;  %v4662_v42 = vpop.f32.mrb[29].mxu1 }
 0x2d9   : > { %v4663_v43 = vadd.f32 %v4662_v42, %v4661_v39 }
 0x2da   : > { %v3560_v44 = vadd.f32 %v4622_v41, %v3480_v21 }
 0x2dc   : > { %v3640_v45 = vadd.f32 %v4663_v43, %v3560_v44 }
 0x2ee   : > { %v4696_v46 = vpop.f32.mrb[30].mxu0 }
 0x2ef   : > { %v4737_v47 = vpop.f32.mrb[30].mxu1  ;;  %v4697_v48 = vpop.f32.mrb[31].mxu0 }
 0x2f0   : > { %v4698_v49 = vadd.f32 %v4697_v48, %v4696_v46  ;;  %v4738_v50 = vpop.f32.mrb[31].mxu1  ;;  %v4056_v46 = vld [vmem:[%s7466_s2] sm:$0xff] (!%p4246_p4)  ;;  %v4057_v48 = vld [vmem:[%s7466_s2 + $0x8] sm:$0xff] (!%p4246_p4) }
 0x2f1   : > { %v4739_v51 = vadd.f32 %v4738_v50, %v4737_v47  ;;  %v5582_v47 = vmov (!%p4246_p4), 0  }
 0x2f2   : > { %v3710_v52 = vadd.f32 %v4698_v49, %v3630_v32  ;;  %v4699_v53 = vpop.f32.mrb[32].mxu0  ;;  %5477 = vset.pattern.permute.xlu1 (!%p4246_p4), %v5582_v47  ;;  %5476 = vset.pattern.permute.xlu0 (!%p4246_p4), %v5582_v47 }
 0x2f3   : > { %v4700_v54 = vpop.f32.mrb[33].mxu0  ;;  %v4740_v55 = vpop.f32.mrb[32].mxu1  ;;  %4061 = vperm.xlu0 (!%p4246_p4), %5476, %v4056_v46  }
 0x2f4   : > { %v3790_v56 = vadd.f32 %v4739_v51, %v3710_v52  ;;  %v4701_v57 = vadd.f32 %v4700_v54, %v4699_v53  ;;  %v4741_v58 = vpop.f32.mrb[33].mxu1 }
 0x2f5   : > { %v4742_v59 = vadd.f32 %v4741_v58, %v4740_v55 }
 0x2f6   : > { %v3715_v60 = vadd.f32 %v4701_v57, %v3635_v40  ;;  %v4702_v61 = vpop.f32.mrb[34].mxu0  ;;  %v2291_v40 = vld [vmem:[#allocation2 + $0x10] sm:$0xff] }
 0x2f7   : > { %v4703_v62 = vpop.f32.mrb[35].mxu0  ;;  %v4743_v63 = vpop.f32.mrb[34].mxu1  ;;  %4066 = vperm.xlu0 (!%p4246_p4), %5476, %v4057_v48  }
 0x2f8   : > { %v3795_v0 = vadd.f32 %v4742_v59, %v3715_v60  ;;  %v4704_v1 = vadd.f32 %v4703_v62, %v4702_v61  ;;  %v4744_v2 = vpop.f32.mrb[35].mxu1 }
 0x2f9   : > { %v4745_v3 = vadd.f32 %v4744_v2, %v4743_v63 }
 0x2fa   : > { %v3720_v4 = vadd.f32 %v4704_v1, %v3640_v45  ;;  %v4058_v45 = vld [vmem:[%s7466_s2 + $0x10] sm:$0xff] (!%p4246_p4) }
 0x2fb   : > { %4071 = vperm.xlu1 (!%p4246_p4), %5477, %v4058_v45  }
 0x2fc   : > { %v3800_v5 = vadd.f32 %v4745_v3, %v3720_v4 }
 0x30e   : > { %v4778_v6 = vpop.f32.mrb[36].mxu0 }
 0x30f   : > { %v4819_v7 = vpop.f32.mrb[36].mxu1  ;;  %v4779_v8 = vpop.f32.mrb[37].mxu0 }
 0x310   : > { %v4780_v9 = vadd.f32 %v4779_v8, %v4778_v6  ;;  %v4820_v10 = vpop.f32.mrb[37].mxu1 }
 0x311   : > { %v4821_v11 = vadd.f32 %v4820_v10, %v4819_v7 }
 0x312   : > { %v3870_v12 = vadd.f32 %v4780_v9, %v3790_v56  ;;  %v4781_v13 = vpop.f32.mrb[38].mxu0 }
 0x313   : > { %v4782_v14 = vpop.f32.mrb[39].mxu0  ;;  %v4822_v15 = vpop.f32.mrb[38].mxu1 }
 0x314   : > { %v4783_v16 = vadd.f32 %v4782_v14, %v4781_v13  ;;  %v4823_v17 = vpop.f32.mrb[39].mxu1  ;;  %v3950_v18 = vadd.f32 %v4821_v11, %v3870_v12 }
 0x315   : > { %v4824_v19 = vadd.f32 %v4823_v17, %v4822_v15 }
 0x316   : > { %v3875_v20 = vadd.f32 %v4783_v16, %v3795_v0  ;;  %v4784_v21 = vpop.f32.mrb[40].mxu0 }
 0x317   : > { %v4785_v22 = vpop.f32.mrb[41].mxu0  ;;  %v4825_v23 = vpop.f32.mrb[40].mxu1 }
 0x318   : > { %v4786_v24 = vadd.f32 %v4785_v22, %v4784_v21  ;;  %v4826_v25 = vpop.f32.mrb[41].mxu1  ;;  %v3955_v26 = vadd.f32 %v4824_v19, %v3875_v20 }
 0x319   : > { %v4827_v27 = vadd.f32 %v4826_v25, %v4825_v23 }
 0x31a   : > { %v3880_v28 = vadd.f32 %v4786_v24, %v3800_v5 }
 0x31c   : > { %v3960_v29 = vadd.f32 %v4827_v27, %v3880_v28 }
 0x32e   : > { %v4029_v31 = vpop.f32.mrb[42].mxu0 }
 0x32f   : > { %v4030_v32 = vadd.f32 %v4029_v31, %v3950_v18  ;;  %v4034_v34 = vpop.f32.mrb[42].mxu1  ;;  %v4881_v35 = vpop.f32.mrb[43].mxu0 }
 0x330   : > { %v4035_v36 = vadd.f32 %v4034_v34, %v3955_v26  ;;  %v4884_v37 = vpop.f32.mrb[43].mxu1 }
 0x331   : > { %v4043_v38 = vadd.f32 %v4030_v32, %v2289_v30 }
 0x332   : > { %v4044_v39 = vadd.f32 %v4035_v36, %v2290_v33  ;;  %4052 = sbr.rel (%p4246_p4) target bundleno = 924 (0x39c), region = 101 }
 0x333   : > { %4046 = vst [vmem:[#allocation2] sm:$0xff] %v4043_v38  ;;  %v4039_v41 = vpop.f32.mrb[44].mxu1 }
 0x334   : > { %4047 = vst [vmem:[#allocation2 + $0x8] sm:$0xff] %v4044_v39  ;;  %v4040_v42 = vadd.f32 %v4039_v41, %v3960_v29  ;;  %v4887_v43 = vpop.f32.mrb[45].mxu1 }
 0x336   : > { %v4045_v44 = vadd.f32 %v4040_v42, %v2291_v40 }
 0x338   : > { %4048 = vst [vmem:[#allocation2 + $0x10] sm:$0xff] %v4045_v44 }
 0x33a   : > { %v4053_v50 = vld [vmem:[#allocation2] sm:$0xff] }
 0x33b   : > { %v4054_v55 = vld [vmem:[#allocation2 + $0x8] sm:$0xff] }
 0x33f   : > { %v4055_v49 = vld [vmem:[#allocation2 + $0x10] sm:$0xff] }
 0x372   : > { %v4062_v52 = vpop.permute.xlu0 %4061 }
 0x373   : > { %v4074_v54 = vadd.f32 %v4062_v52, %v4053_v50 }
 0x375   : > { %v4247_v57 = vmul.f32 -1.442695, %v4074_v54 }
 0x376   : > { %v4067_v58 = vpop.permute.xlu0 %4066 }
 0x377   : > { %v4075_v59 = vadd.f32 %v4067_v58, %v4054_v55 }
 0x379   : > { %v4248_v60 = vmul.f32 -1.442695, %v4075_v59 }
 0x37a   : > { %v4072_v51 = vpop.permute.xlu1 %4071 }
 0x37b   : > { %v4076_v53 = vadd.f32 %v4072_v51, %v4055_v49 }
 0x37d   : > { %v4249_v56 = vmul.f32 -1.442695, %v4076_v53 }
 0x37f   : > { %5478 = vpow2.f32 %v4249_v56 }
 0x380   : > { %5480 = vpow2.f32 %v4247_v57 }
 0x381   : > { %5482 = vpow2.f32 %v4248_v60 }
 0x389   : > { %v5479_v61 = vpop.eup %5478 }
 0x38a   : > { %v5481_v62 = vpop.eup %5480  ;;  %v4088_v63 = vadd.f32 1.0, %v5479_v61 }
 0x38b   : > { %v4086_v0 = vadd.f32 1.0, %v5481_v62  ;;  %v5483_v1 = vpop.eup %5482 }
 0x38c   : > { %5484 = vrcp.f32 %v4088_v63  ;;  %v4087_v2 = vadd.f32 1.0, %v5483_v1 }
 0x38d   : > { %5486 = vrcp.f32 %v4086_v0 }
 0x38e   : > { %5488 = vrcp.f32 %v4087_v2 }
 0x396   : > { %v5485_v3 = vpop.eup %5484 }
 0x397   : > { %v5487_v4 = vpop.eup %5486  ;;  %v4097_v5 = vmul.f32 %v5485_v3, %v4076_v53 }
 0x398   : > { %v4095_v6 = vmul.f32 %v5487_v4, %v4074_v54  ;;  %v5489_v7 = vpop.eup %5488 }
 0x399   : > { %4100 = vst [vmem:[%s6836_s29 + $0x10] sm:$0xff] %v4097_v5  ;;  %v4096_v8 = vmul.f32 %v5489_v7, %v4075_v59 }
 0x39a   : > { %4098 = vst [vmem:[%s6836_s29] sm:$0xff] %v4095_v6 }
 0x39b   : > { %4099 = vst [vmem:[%s6836_s29 + $0x8] sm:$0xff] %v4096_v8 }
 0x39c PF: > { %4107 = sbr.rel (!%p5697_p12) target bundleno = 932 (0x3a4), region = 105  ;;  %s4250_s18 = sshll.u32 (%p5697_p12), %s5564_s19, 3 }
 0x39d   : > { %s4109_s7 = scalar_lea.vmem (%p5697_p12), %s7467_s3, %s4250_s18 }
 0x3a0   : > { %v4145_v11 = vld [vmem:[%s6836_s29 + $0x10] sm:$0xff] (%p5697_p12) }
 0x3a1   : > { %v4141_v9 = vld [vmem:[%s6836_s29] sm:$0xff] (%p5697_p12)  ;;  %4146 = vst [vmem:[%s4109_s7 + $0x30] sm:$0xff] (%p5697_p12), %v4145_v11 }
 0x3a2   : > { %v4143_v10 = vld [vmem:[%s6836_s29 + $0x8] sm:$0xff] (%p5697_p12)  ;;  %4142 = vst [vmem:[%s4109_s7] sm:$0xff] (%p5697_p12), %v4141_v9 }
 0x3a3   : > { %4144 = vst [vmem:[%s4109_s7 + $0x18] sm:$0xff] %v4143_v10 }
 0x3a4 PF: > { %s13_s22 = sadd.s32 1, %s5576_s22   ;;  %s7473_s12 = smov %s5540_s13 }
 0x3a5   : > { %p10_p5 = scmp.ge.s32.totalorder %s13_s22, 8   ;;  %s7474_s13 = smov %s5695_s9 }
 0x3a6   : > { %s7475_s14 = smov %s5548_s15  ;;  %s7476_s15 = smov %s5692_s8 }
 0x3a7   : > { %s7477_s16 = smov %s5556_s17  ;;  %s7478_s17 = smov %s5678_s30 }
 0x3a8   : > { %s7479_s18 = smov %s5568_s20  ;;  %s7480_s19 = smov %s5572_s21 }
 0x3a9   : > { %s7481_s20 = smov %s7484_s24  ;;  %s7482_s21 = smov %s7488_s25 }
 0x3aa   :  { %12 = sbr.rel (!%p10_p5) target bundleno = 8 (0x8), region = 182 }

// kernel: model_forward.5
= control target key start
LH: loop header
LB: loop body
LE: loop exit
PB: predicated region body
PF: predicated region fallthrough
CT: control target
= control target key end

     0   :  { %s1830_s18 = smov 0   ;;  %s1832_s19 = smov 0   ;;  %s2292_s0 = inlined_call_operand.vmem [shape: f32[16,896], index: 0, kind: input, shape index: {}]   ;;  %s2293_s1 = inlined_call_operand.vmem [shape: f32[896,640], index: 1, kind: input, shape index: {}]   ;;  %s2294_s2 = inlined_call_operand.vmem [shape: f32[16,1], index: 2, kind: input, shape index: {}]   ;;  %s2295_s3 = inlined_call_operand.vmem [shape: f32[8,16], index: 3, kind: input, shape index: {}]   ;;  %s2296_s4 = inlined_call_operand.vmem [shape: f32[8,1], index: 4, kind: input, shape index: {}]   ;;  %s2297_s5 = inlined_call_operand.vmem [shape: f32[8,640], index: 5, kind: output, shape index: {}]  }
   0x1   :  { %s1834_s20 = smov 0   ;;  %s1836_s21 = smov 0  }
   0x2   :  { %s1838_s22 = smov 0  }
   0x3 LB: > { %s27_s23 = sadd.s32 1, %s1790_s21  ;;  %p69_p1 = scmp.ne.s32.totalorder %s1782_s19, %s1778_s18  ;;  %s1794_s22 = sphi %s1838_s22, %s15_s22   ;;  %s1790_s21 = sphi %s1836_s21, %s2301_s21   ;;  %s1786_s20 = sphi %s1834_s20, %s2300_s20   ;;  %s1782_s19 = sphi %s1832_s19, %s2299_s19   ;;  %s1778_s18 = sphi %s1830_s18, %s2298_s18  }
   0x4   : > { %p29_p0 = scmp.ge.s32.totalorder %s27_s23, 5  ;;  %p70_p2 = scmp.eq.s32.totalorder %s1794_s22, 0 }
   0x5   : > { %s62_s25 = sadd.s32 1, %s1782_s19  ;;  %p1383_p5 = scmp.ge.s32.totalorder %s1794_s22, 5 }
   0x6   : > { %s2303_s23 = smov (%p29_p0, %s27_s23), 0  ;;  %p71_p3 = por %p70_p2, %p69_p1 }
   0x7   : > { %s58_s24 = ssub.s32 %s1790_s21, %s2303_s23  ;;  %202 = sbr.rel (%p1383_p5) target bundleno = 75 (0x4b), region = 32 }
   0x8   : > { %p60_p4 = scmp.eq.s32.totalorder %s58_s24, 0 }
   0xa   : > { %s1865_s26 = scalar_select %p60_p4, %s1782_s19, %s62_s25  }
   0xe   : > { %205 = sbr.rel (!%p71_p3) target bundleno = 75 (0x4b), region = 36  ;;  %s207_s27 = sand.u32 (%p71_p3), 1, %s1782_s19  }
   0xf   : > { %s1384_s28 = sshll.u32 (%p71_p3), %s1790_s21, 3  ;;  %s1700_s29 = smul.u32 (%p71_p3), 896, %s207_s27 }
  0x10   : > { %s1873_s7 = scalar_lea.vmem (%p71_p3), %s2293_s1, %s1384_s28 }
  0x11   : > { %v464_v0 = vld [vmem:[%s1873_s7] sm:$0xff] (%p71_p3)  ;;  %v466_v1 = vld [vmem:[%s1873_s7 + $0x28] sm:$0xff] (%p71_p3)  ;;  %v468_v2 = vld [vmem:[%s1873_s7 + $0x50] sm:$0xff] (%p71_p3)  ;;  %s1881_s8 = scalar_lea.vmem (%p71_p3), [#allocation3], %s1700_s29 }
  0x12   : > { %v470_v3 = vld [vmem:[%s1873_s7 + $0x78] sm:$0xff] (%p71_p3)  ;;  %v472_v4 = vld [vmem:[%s1873_s7 + $0xa0] sm:$0xff] (%p71_p3)  ;;  %v474_v5 = vld [vmem:[%s1873_s7 + $0xc8] sm:$0xff] (%p71_p3)  ;;  %465 = vst [vmem:[%s1881_s8] sm:$0xff] (%p71_p3), %v464_v0 }
  0x13   : > { %467 = vst [vmem:[%s1881_s8 + $0x8] sm:$0xff] (%p71_p3), %v466_v1  ;;  %469 = vst [vmem:[%s1881_s8 + $0x10] sm:$0xff] (%p71_p3), %v468_v2  ;;  %v476_v6 = vld [vmem:[%s1873_s7 + $0xf0] sm:$0xff] (%p71_p3)  ;;  %v478_v7 = vld [vmem:[%s1873_s7 + $0x118] sm:$0xff] (%p71_p3) }
  0x14   : > { %471 = vst [vmem:[%s1881_s8 + $0x18] sm:$0xff] (%p71_p3), %v470_v3  ;;  %473 = vst [vmem:[%s1881_s8 + $0x20] sm:$0xff] (%p71_p3), %v472_v4  ;;  %v480_v8 = vld [vmem:[%s1873_s7 + $0x140] sm:$0xff] (%p71_p3)  ;;  %v482_v9 = vld [vmem:[%s1873_s7 + $0x168] sm:$0xff] (%p71_p3) }
  0x15   : > { %475 = vst [vmem:[%s1881_s8 + $0x28] sm:$0xff] %v474_v5  ;;  %477 = vst [vmem:[%s1881_s8 + $0x30] sm:$0xff] %v476_v6  ;;  %v484_v10 = vld [vmem:[%s1873_s7 + $0x190] sm:$0xff]  ;;  %v486_v11 = vld [vmem:[%s1873_s7 + $0x1b8] sm:$0xff] }
  0x16   : > { %479 = vst [vmem:[%s1881_s8 + $0x38] sm:$0xff] %v478_v7  ;;  %481 = vst [vmem:[%s1881_s8 + $0x40] sm:$0xff] %v480_v8  ;;  %v488_v12 = vld [vmem:[%s1873_s7 + $0x1e0] sm:$0xff]  ;;  %v490_v13 = vld [vmem:[%s1873_s7 + $0x208] sm:$0xff] }
  0x17   : > { %483 = vst [vmem:[%s1881_s8 + $0x48] sm:$0xff] %v482_v9  ;;  %485 = vst [vmem:[%s1881_s8 + $0x50] sm:$0xff] %v484_v10  ;;  %v492_v14 = vld [vmem:[%s1873_s7 + $0x230] sm:$0xff]  ;;  %v494_v15 = vld [vmem:[%s1873_s7 + $0x258] sm:$0xff] }
  0x18   : > { %487 = vst [vmem:[%s1881_s8 + $0x58] sm:$0xff] %v486_v11  ;;  %489 = vst [vmem:[%s1881_s8 + $0x60] sm:$0xff] %v488_v12  ;;  %v496_v16 = vld [vmem:[%s1873_s7 + $0x280] sm:$0xff]  ;;  %v498_v17 = vld [vmem:[%s1873_s7 + $0x2a8] sm:$0xff] }
  0x19   : > { %491 = vst [vmem:[%s1881_s8 + $0x68] sm:$0xff] %v490_v13  ;;  %493 = vst [vmem:[%s1881_s8 + $0x70] sm:$0xff] %v492_v14  ;;  %v500_v18 = vld [vmem:[%s1873_s7 + $0x2d0] sm:$0xff]  ;;  %v502_v19 = vld [vmem:[%s1873_s7 + $0x2f8] sm:$0xff] }
  0x1a   : > { %495 = vst [vmem:[%s1881_s8 + $0x78] sm:$0xff] %v494_v15  ;;  %497 = vst [vmem:[%s1881_s8 + $0x80] sm:$0xff] %v496_v16  ;;  %v504_v20 = vld [vmem:[%s1873_s7 + $0x320] sm:$0xff]  ;;  %v506_v21 = vld [vmem:[%s1873_s7 + $0x348] sm:$0xff] }
  0x1b   : > { %499 = vst [vmem:[%s1881_s8 + $0x88] sm:$0xff] %v498_v17  ;;  %501 = vst [vmem:[%s1881_s8 + $0x90] sm:$0xff] %v500_v18  ;;  %v508_v22 = vld [vmem:[%s1873_s7 + $0x370] sm:$0xff]  ;;  %v510_v23 = vld [vmem:[%s1873_s7 + $0x398] sm:$0xff] }
  0x1c   : > { %503 = vst [vmem:[%s1881_s8 + $0x98] sm:$0xff] %v502_v19  ;;  %505 = vst [vmem:[%s1881_s8 + $0xa0] sm:$0xff] %v504_v20  ;;  %v512_v24 = vld [vmem:[%s1873_s7 + $0x3c0] sm:$0xff]  ;;  %v514_v25 = vld [vmem:[%s1873_s7 + $0x3e8] sm:$0xff] }
  0x1d   : > { %507 = vst [vmem:[%s1881_s8 + $0xa8] sm:$0xff] %v506_v21  ;;  %509 = vst [vmem:[%s1881_s8 + $0xb0] sm:$0xff] %v508_v22  ;;  %v516_v26 = vld [vmem:[%s1873_s7 + $0x410] sm:$0xff]  ;;  %v518_v27 = vld [vmem:[%s1873_s7 + $0x438] sm:$0xff] }
  0x1e   : > { %511 = vst [vmem:[%s1881_s8 + $0xb8] sm:$0xff] %v510_v23  ;;  %513 = vst [vmem:[%s1881_s8 + $0xc0] sm:$0xff] %v512_v24  ;;  %v520_v28 = vld [vmem:[%s1873_s7 + $0x460] sm:$0xff]  ;;  %v522_v29 = vld [vmem:[%s1873_s7 + $0x488] sm:$0xff] }
  0x1f   : > { %515 = vst [vmem:[%s1881_s8 + $0xc8] sm:$0xff] %v514_v25  ;;  %517 = vst [vmem:[%s1881_s8 + $0xd0] sm:$0xff] %v516_v26  ;;  %v524_v30 = vld [vmem:[%s1873_s7 + $0x4b0] sm:$0xff]  ;;  %v526_v31 = vld [vmem:[%s1873_s7 + $0x4d8] sm:$0xff] }
  0x20   : > { %519 = vst [vmem:[%s1881_s8 + $0xd8] sm:$0xff] %v518_v27  ;;  %521 = vst [vmem:[%s1881_s8 + $0xe0] sm:$0xff] %v520_v28  ;;  %v528_v32 = vld [vmem:[%s1873_s7 + $0x500] sm:$0xff]  ;;  %v530_v33 = vld [vmem:[%s1873_s7 + $0x528] sm:$0xff] }
  0x21   : > { %523 = vst [vmem:[%s1881_s8 + $0xe8] sm:$0xff] %v522_v29  ;;  %525 = vst [vmem:[%s1881_s8 + $0xf0] sm:$0xff] %v524_v30  ;;  %v532_v34 = vld [vmem:[%s1873_s7 + $0x550] sm:$0xff]  ;;  %v534_v35 = vld [vmem:[%s1873_s7 + $0x578] sm:$0xff] }
  0x22   : > { %527 = vst [vmem:[%s1881_s8 + $0xf8] sm:$0xff] %v526_v31  ;;  %529 = vst [vmem:[%s1881_s8 + $0x100] sm:$0xff] %v528_v32  ;;  %v536_v36 = vld [vmem:[%s1873_s7 + $0x5a0] sm:$0xff]  ;;  %v538_v37 = vld [vmem:[%s1873_s7 + $0x5c8] sm:$0xff] }
  0x23   : > { %531 = vst [vmem:[%s1881_s8 + $0x108] sm:$0xff] %v530_v33  ;;  %533 = vst [vmem:[%s1881_s8 + $0x110] sm:$0xff] %v532_v34  ;;  %v540_v38 = vld [vmem:[%s1873_s7 + $0x5f0] sm:$0xff]  ;;  %v542_v39 = vld [vmem:[%s1873_s7 + $0x618] sm:$0xff] }
  0x24   : > { %535 = vst [vmem:[%s1881_s8 + $0x118] sm:$0xff] %v534_v35  ;;  %537 = vst [vmem:[%s1881_s8 + $0x120] sm:$0xff] %v536_v36  ;;  %v544_v40 = vld [vmem:[%s1873_s7 + $0x640] sm:$0xff]  ;;  %v546_v41 = vld [vmem:[%s1873_s7 + $0x668] sm:$0xff] }
  0x25   : > { %539 = vst [vmem:[%s1881_s8 + $0x128] sm:$0xff] %v538_v37  ;;  %541 = vst [vmem:[%s1881_s8 + $0x130] sm:$0xff] %v540_v38  ;;  %v548_v42 = vld [vmem:[%s1873_s7 + $0x690] sm:$0xff]  ;;  %v550_v43 = vld [vmem:[%s1873_s7 + $0x6b8] sm:$0xff] }
  0x26   : > { %543 = vst [vmem:[%s1881_s8 + $0x138] sm:$0xff] %v542_v39  ;;  %545 = vst [vmem:[%s1881_s8 + $0x140] sm:$0xff] %v544_v40  ;;  %v552_v44 = vld [vmem:[%s1873_s7 + $0x6e0] sm:$0xff]  ;;  %v554_v45 = vld [vmem:[%s1873_s7 + $0x708] sm:$0xff] }
  0x27   : > { %547 = vst [vmem:[%s1881_s8 + $0x148] sm:$0xff] %v546_v41  ;;  %549 = vst [vmem:[%s1881_s8 + $0x150] sm:$0xff] %v548_v42  ;;  %v556_v46 = vld [vmem:[%s1873_s7 + $0x730] sm:$0xff]  ;;  %v558_v47 = vld [vmem:[%s1873_s7 + $0x758] sm:$0xff] }
  0x28   : > { %551 = vst [vmem:[%s1881_s8 + $0x158] sm:$0xff] %v550_v43  ;;  %553 = vst [vmem:[%s1881_s8 + $0x160] sm:$0xff] %v552_v44  ;;  %v560_v48 = vld [vmem:[%s1873_s7 + $0x780] sm:$0xff]  ;;  %v562_v49 = vld [vmem:[%s1873_s7 + $0x7a8] sm:$0xff] }
  0x29   : > { %555 = vst [vmem:[%s1881_s8 + $0x168] sm:$0xff] %v554_v45  ;;  %557 = vst [vmem:[%s1881_s8 + $0x170] sm:$0xff] %v556_v46  ;;  %v564_v50 = vld [vmem:[%s1873_s7 + $0x7d0] sm:$0xff]  ;;  %v566_v51 = vld [vmem:[%s1873_s7 + $0x7f8] sm:$0xff] }
  0x2a   : > { %559 = vst [vmem:[%s1881_s8 + $0x178] sm:$0xff] %v558_v47  ;;  %561 = vst [vmem:[%s1881_s8 + $0x180] sm:$0xff] %v560_v48  ;;  %v568_v52 = vld [vmem:[%s1873_s7 + $0x820] sm:$0xff]  ;;  %v570_v53 = vld [vmem:[%s1873_s7 + $0x848] sm:$0xff] }
  0x2b   : > { %563 = vst [vmem:[%s1881_s8 + $0x188] sm:$0xff] %v562_v49  ;;  %565 = vst [vmem:[%s1881_s8 + $0x190] sm:$0xff] %v564_v50  ;;  %v572_v54 = vld [vmem:[%s1873_s7 + $0x870] sm:$0xff]  ;;  %v574_v55 = vld [vmem:[%s1873_s7 + $0x898] sm:$0xff] }
  0x2c   : > { %567 = vst [vmem:[%s1881_s8 + $0x198] sm:$0xff] %v566_v51  ;;  %569 = vst [vmem:[%s1881_s8 + $0x1a0] sm:$0xff] %v568_v52  ;;  %v576_v56 = vld [vmem:[%s1873_s7 + $0x8c0] sm:$0xff]  ;;  %v578_v57 = vld [vmem:[%s1873_s7 + $0x8e8] sm:$0xff] }
  0x2d   : > { %571 = vst [vmem:[%s1881_s8 + $0x1a8] sm:$0xff] %v570_v53  ;;  %573 = vst [vmem:[%s1881_s8 + $0x1b0] sm:$0xff] %v572_v54  ;;  %v580_v58 = vld [vmem:[%s1873_s7 + $0x910] sm:$0xff]  ;;  %v582_v59 = vld [vmem:[%s1873_s7 + $0x938] sm:$0xff] }
  0x2e   : > { %575 = vst [vmem:[%s1881_s8 + $0x1b8] sm:$0xff] %v574_v55  ;;  %577 = vst [vmem:[%s1881_s8 + $0x1c0] sm:$0xff] %v576_v56  ;;  %v584_v60 = vld [vmem:[%s1873_s7 + $0x960] sm:$0xff]  ;;  %v586_v61 = vld [vmem:[%s1873_s7 + $0x988] sm:$0xff] }
  0x2f   : > { %579 = vst [vmem:[%s1881_s8 + $0x1c8] sm:$0xff] %v578_v57  ;;  %581 = vst [vmem:[%s1881_s8 + $0x1d0] sm:$0xff] %v580_v58  ;;  %v588_v62 = vld [vmem:[%s1873_s7 + $0x9b0] sm:$0xff]  ;;  %v590_v63 = vld [vmem:[%s1873_s7 + $0x9d8] sm:$0xff] }
  0x30   : > { %583 = vst [vmem:[%s1881_s8 + $0x1d8] sm:$0xff] %v582_v59  ;;  %585 = vst [vmem:[%s1881_s8 + $0x1e0] sm:$0xff] %v584_v60  ;;  %v592_v0 = vld [vmem:[%s1873_s7 + $0xa00] sm:$0xff]  ;;  %v594_v1 = vld [vmem:[%s1873_s7 + $0xa28] sm:$0xff] }
  0x31   : > { %587 = vst [vmem:[%s1881_s8 + $0x1e8] sm:$0xff] %v586_v61  ;;  %589 = vst [vmem:[%s1881_s8 + $0x1f0] sm:$0xff] %v588_v62  ;;  %v596_v2 = vld [vmem:[%s1873_s7 + $0xa50] sm:$0xff]  ;;  %v598_v3 = vld [vmem:[%s1873_s7 + $0xa78] sm:$0xff] }
  0x32   : > { %591 = vst [vmem:[%s1881_s8 + $0x1f8] sm:$0xff] %v590_v63  ;;  %593 = vst [vmem:[%s1881_s8 + $0x200] sm:$0xff] %v592_v0  ;;  %v600_v4 = vld [vmem:[%s1873_s7 + $0xaa0] sm:$0xff]  ;;  %v602_v5 = vld [vmem:[%s1873_s7 + $0xac8] sm:$0xff] }
  0x33   : > { %595 = vst [vmem:[%s1881_s8 + $0x208] sm:$0xff] %v594_v1  ;;  %597 = vst [vmem:[%s1881_s8 + $0x210] sm:$0xff] %v596_v2  ;;  %v604_v6 = vld [vmem:[%s1873_s7 + $0xaf0] sm:$0xff]  ;;  %v606_v7 = vld [vmem:[%s1873_s7 + $0xb18] sm:$0xff] }
  0x34   : > { %599 = vst [vmem:[%s1881_s8 + $0x218] sm:$0xff] %v598_v3  ;;  %601 = vst [vmem:[%s1881_s8 + $0x220] sm:$0xff] %v600_v4  ;;  %v608_v8 = vld [vmem:[%s1873_s7 + $0xb40] sm:$0xff]  ;;  %v610_v9 = vld [vmem:[%s1873_s7 + $0xb68] sm:$0xff] }
  0x35   : > { %603 = vst [vmem:[%s1881_s8 + $0x228] sm:$0xff] %v602_v5  ;;  %605 = vst [vmem:[%s1881_s8 + $0x230] sm:$0xff] %v604_v6  ;;  %v612_v10 = vld [vmem:[%s1873_s7 + $0xb90] sm:$0xff]  ;;  %v614_v11 = vld [vmem:[%s1873_s7 + $0xbb8] sm:$0xff] }
  0x36   : > { %607 = vst [vmem:[%s1881_s8 + $0x238] sm:$0xff] %v606_v7  ;;  %609 = vst [vmem:[%s1881_s8 + $0x240] sm:$0xff] %v608_v8  ;;  %v616_v12 = vld [vmem:[%s1873_s7 + $0xbe0] sm:$0xff]  ;;  %v618_v13 = vld [vmem:[%s1873_s7 + $0xc08] sm:$0xff] }
  0x37   : > { %611 = vst [vmem:[%s1881_s8 + $0x248] sm:$0xff] %v610_v9  ;;  %613 = vst [vmem:[%s1881_s8 + $0x250] sm:$0xff] %v612_v10  ;;  %v620_v14 = vld [vmem:[%s1873_s7 + $0xc30] sm:$0xff]  ;;  %v622_v15 = vld [vmem:[%s1873_s7 + $0xc58] sm:$0xff] }
  0x38   : > { %615 = vst [vmem:[%s1881_s8 + $0x258] sm:$0xff] %v614_v11  ;;  %617 = vst [vmem:[%s1881_s8 + $0x260] sm:$0xff] %v616_v12  ;;  %v624_v16 = vld [vmem:[%s1873_s7 + $0xc80] sm:$0xff]  ;;  %v626_v17 = vld [vmem:[%s1873_s7 + $0xca8] sm:$0xff] }
  0x39   : > { %619 = vst [vmem:[%s1881_s8 + $0x268] sm:$0xff] %v618_v13  ;;  %621 = vst [vmem:[%s1881_s8 + $0x270] sm:$0xff] %v620_v14  ;;  %v628_v18 = vld [vmem:[%s1873_s7 + $0xcd0] sm:$0xff]  ;;  %v630_v19 = vld [vmem:[%s1873_s7 + $0xcf8] sm:$0xff] }
  0x3a   : > { %623 = vst [vmem:[%s1881_s8 + $0x278] sm:$0xff] %v622_v15  ;;  %625 = vst [vmem:[%s1881_s8 + $0x280] sm:$0xff] %v624_v16  ;;  %v632_v20 = vld [vmem:[%s1873_s7 + $0xd20] sm:$0xff]  ;;  %v634_v21 = vld [vmem:[%s1873_s7 + $0xd48] sm:$0xff] }
  0x3b   : > { %627 = vst [vmem:[%s1881_s8 + $0x288] sm:$0xff] %v626_v17  ;;  %629 = vst [vmem:[%s1881_s8 + $0x290] sm:$0xff] %v628_v18  ;;  %v636_v22 = vld [vmem:[%s1873_s7 + $0xd70] sm:$0xff]  ;;  %v638_v23 = vld [vmem:[%s1873_s7 + $0xd98] sm:$0xff] }
  0x3c   : > { %631 = vst [vmem:[%s1881_s8 + $0x298] sm:$0xff] %v630_v19  ;;  %633 = vst [vmem:[%s1881_s8 + $0x2a0] sm:$0xff] %v632_v20  ;;  %v640_v24 = vld [vmem:[%s1873_s7 + $0xdc0] sm:$0xff]  ;;  %v642_v25 = vld [vmem:[%s1873_s7 + $0xde8] sm:$0xff] }
  0x3d   : > { %635 = vst [vmem:[%s1881_s8 + $0x2a8] sm:$0xff] %v634_v21  ;;  %637 = vst [vmem:[%s1881_s8 + $0x2b0] sm:$0xff] %v636_v22  ;;  %v644_v26 = vld [vmem:[%s1873_s7 + $0xe10] sm:$0xff]  ;;  %v646_v27 = vld [vmem:[%s1873_s7 + $0xe38] sm:$0xff] }
  0x3e   : > { %639 = vst [vmem:[%s1881_s8 + $0x2b8] sm:$0xff] %v638_v23  ;;  %641 = vst [vmem:[%s1881_s8 + $0x2c0] sm:$0xff] %v640_v24  ;;  %v648_v28 = vld [vmem:[%s1873_s7 + $0xe60] sm:$0xff]  ;;  %v650_v29 = vld [vmem:[%s1873_s7 + $0xe88] sm:$0xff] }
  0x3f   : > { %643 = vst [vmem:[%s1881_s8 + $0x2c8] sm:$0xff] %v642_v25  ;;  %645 = vst [vmem:[%s1881_s8 + $0x2d0] sm:$0xff] %v644_v26  ;;  %v652_v30 = vld [vmem:[%s1873_s7 + $0xeb0] sm:$0xff]  ;;  %v654_v31 = vld [vmem:[%s1873_s7 + $0xed8] sm:$0xff] }
  0x40   : > { %647 = vst [vmem:[%s1881_s8 + $0x2d8] sm:$0xff] %v646_v27  ;;  %649 = vst [vmem:[%s1881_s8 + $0x2e0] sm:$0xff] %v648_v28  ;;  %v656_v32 = vld [vmem:[%s1873_s7 + $0xf00] sm:$0xff]  ;;  %v658_v33 = vld [vmem:[%s1873_s7 + $0xf28] sm:$0xff] }
  0x41   : > { %651 = vst [vmem:[%s1881_s8 + $0x2e8] sm:$0xff] %v650_v29  ;;  %653 = vst [vmem:[%s1881_s8 + $0x2f0] sm:$0xff] %v652_v30  ;;  %v660_v34 = vld [vmem:[%s1873_s7 + $0xf50] sm:$0xff]  ;;  %v662_v35 = vld [vmem:[%s1873_s7 + $0xf78] sm:$0xff] }
  0x42   : > { %655 = vst [vmem:[%s1881_s8 + $0x2f8] sm:$0xff] %v654_v31  ;;  %657 = vst [vmem:[%s1881_s8 + $0x300] sm:$0xff] %v656_v32  ;;  %v664_v36 = vld [vmem:[%s1873_s7 + $0xfa0] sm:$0xff]  ;;  %v666_v37 = vld [vmem:[%s1873_s7 + $0xfc8] sm:$0xff] }
  0x43   : > { %659 = vst [vmem:[%s1881_s8 + $0x308] sm:$0xff] %v658_v33  ;;  %661 = vst [vmem:[%s1881_s8 + $0x310] sm:$0xff] %v660_v34  ;;  %v668_v38 = vld [vmem:[%s1873_s7 + $0xff0] sm:$0xff]  ;;  %v670_v39 = vld [vmem:[%s1873_s7 + $0x1018] sm:$0xff] }
  0x44   : > { %663 = vst [vmem:[%s1881_s8 + $0x318] sm:$0xff] %v662_v35  ;;  %665 = vst [vmem:[%s1881_s8 + $0x320] sm:$0xff] %v664_v36  ;;  %v672_v40 = vld [vmem:[%s1873_s7 + $0x1040] sm:$0xff]  ;;  %v674_v41 = vld [vmem:[%s1873_s7 + $0x1068] sm:$0xff] }
  0x45   : > { %667 = vst [vmem:[%s1881_s8 + $0x328] sm:$0xff] %v666_v37  ;;  %669 = vst [vmem:[%s1881_s8 + $0x330] sm:$0xff] %v668_v38  ;;  %v676_v42 = vld [vmem:[%s1873_s7 + $0x1090] sm:$0xff]  ;;  %v678_v43 = vld [vmem:[%s1873_s7 + $0x10b8] sm:$0xff] }
  0x46   : > { %671 = vst [vmem:[%s1881_s8 + $0x338] sm:$0xff] %v670_v39  ;;  %673 = vst [vmem:[%s1881_s8 + $0x340] sm:$0xff] %v672_v40  ;;  %v680_v44 = vld [vmem:[%s1873_s7 + $0x10e0] sm:$0xff]  ;;  %v682_v45 = vld [vmem:[%s1873_s7 + $0x1108] sm:$0xff] }
  0x47   : > { %675 = vst [vmem:[%s1881_s8 + $0x348] sm:$0xff] %v674_v41  ;;  %677 = vst [vmem:[%s1881_s8 + $0x350] sm:$0xff] %v676_v42  ;;  %v684_v46 = vld [vmem:[%s1873_s7 + $0x1130] sm:$0xff]  ;;  %v686_v47 = vld [vmem:[%s1873_s7 + $0x1158] sm:$0xff] }
  0x48   : > { %679 = vst [vmem:[%s1881_s8 + $0x358] sm:$0xff] %v678_v43  ;;  %681 = vst [vmem:[%s1881_s8 + $0x360] sm:$0xff] %v680_v44 }
  0x49   : > { %683 = vst [vmem:[%s1881_s8 + $0x368] sm:$0xff] %v682_v45  ;;  %685 = vst [vmem:[%s1881_s8 + $0x370] sm:$0xff] %v684_v46 }
  0x4a   : > { %687 = vst [vmem:[%s1881_s8 + $0x378] sm:$0xff] %v686_v47 }
  0x4b PF: > { %p1385_p6 = scmp.ge.s32.totalorder %s1794_s22, 1  ;;  %p692_p7 = scmp.lt.s32.totalorder %s1794_s22, 6 }
  0x4d   : > { %p693_p8 = pnand %p1385_p6, %p692_p7 }
  0x4e   : > { %s699_s9 = sand.u32 (!%p693_p8), 1, %s1778_s18   ;;  %v750_v48 = vld [vmem:[%s2292_s0 + $0x8] sm:$0xff] (!%p693_p8)  ;;  %v752_v49 = vld [vmem:[%s2292_s0 + $0x18] sm:$0xff] (!%p693_p8)  ;;  %v1796_v50 = vmov (!%p693_p8), 0   ;;  %vm1798_vm0 = vmmov (!%p693_p8), 0   ;;  %vm1219_vm1 = vcmask (!%p693_p8), 130048  }
  0x4f   : > { %696 = sbr.rel (%p693_p8) target bundleno = 624 (0x270), region = 74  ;;  %939 = vmatprep.mubr.f32.mxu0 (!%p693_p8), %v750_v48  ;;  %1014 = vmatprep.mubr.f32.mxu1 (!%p693_p8), %v752_v49  ;;  %p737_p9 = scmp.lt.s32.totalorder (!%p693_p8), %s1786_s20, 4 }
  0x50   : > { %s1701_s14 = smul.u32 (!%p693_p8), 896, %s699_s9  ;;  %1746 = vset.pattern.permute.xlu0 (!%p693_p8), %v1796_v50  ;;  %1747 = vset.pattern.permute.xlu1 (!%p693_p8), %v1796_v50 }
  0x52   : > { %s2110_s15 = scalar_lea.vmem (!%p693_p8), [#allocation3], %s1701_s14 }
  0x53   : > { %v779_v51 = vld [vmem:[%s2110_s15 + $0x80] sm:$0xff] (!%p693_p8)  ;;  %v780_v52 = vld [vmem:[%s2110_s15 + $0x88] sm:$0xff] (!%p693_p8)  ;;  %v781_v62 = vld [vmem:[%s2110_s15 + $0x90] sm:$0xff] (!%p693_p8) }
  0x54   : > { %v811_v53 = vld [vmem:[%s2110_s15 + $0x180] sm:$0xff] (!%p693_p8)  ;;  %v1569_v54 = vpack.c.bf16 (!%p693_p8), %v780_v52, %v779_v51  ;;  %v812_v55 = vld [vmem:[%s2110_s15 + $0x188] sm:$0xff] (!%p693_p8)  ;;  %v782_v0 = vld [vmem:[%s2110_s15 + $0x98] sm:$0xff] (!%p693_p8) }
  0x55   : > { %v763_v56 = vld [vmem:[%s2110_s15] sm:$0xff] (!%p693_p8)  ;;  %v764_v57 = vld [vmem:[%s2110_s15 + $0x8] sm:$0xff] (!%p693_p8)  ;;  %v1601_v58 = vpack.c.bf16 (!%p693_p8), %v812_v55, %v811_v53  ;;  %v813_v1 = vld [vmem:[%s2110_s15 + $0x190] sm:$0xff] (!%p693_p8)  ;;  %v1573_v3 = vpack.c.bf16 (!%p693_p8), %v782_v0, %v781_v62 }
  0x56   : > { %v1571_v59 = vpack.c.bf16 %v764_v57, %v763_v56  ;;  %v795_v60 = vld [vmem:[%s2110_s15 + $0x100] sm:$0xff]  ;;  %v796_v61 = vld [vmem:[%s2110_s15 + $0x108] sm:$0xff]  ;;  %1570 = vmatprep.subr.bf16.mxu0 %v1569_v54  ;;  %v814_v2 = vld [vmem:[%s2110_s15 + $0x198] sm:$0xff]  ;;  %s2305_s20 = smov (!%p737_p9, %s1786_s20), 4 }
  0x57   : > { %v1603_v63 = vpack.c.bf16 %v796_v61, %v795_v60  ;;  %1602 = vmatprep.subr.bf16.mxu1 %v1601_v58  ;;  %v1605_v4 = vpack.c.bf16 %v814_v2, %v813_v1  ;;  %v765_v5 = vld [vmem:[%s2110_s15 + $0x10] sm:$0xff]  ;;  %v766_v6 = vld [vmem:[%s2110_s15 + $0x18] sm:$0xff]  ;;  %v783_v10 = vld [vmem:[%s2110_s15 + $0xa0] sm:$0xff]  ;;  %s1386_s10 = sshll.u32 %s2305_s20, 3 }
  0x58   : > { %1572 = vmatpush3.bf16.msra.mxu0 %v1571_v59  ;;  %v797_v7 = vld [vmem:[%s2110_s15 + $0x110] sm:$0xff]  ;;  %v1575_v8 = vpack.c.bf16 %v766_v6, %v765_v5  ;;  %v798_v9 = vld [vmem:[%s2110_s15 + $0x118] sm:$0xff]  ;;  %v784_v11 = vld [vmem:[%s2110_s15 + $0xa8] sm:$0xff]  ;;  %s740_s13 = scalar_lea.vmem %s2297_s5, %s1386_s10 }
  0x59   : > { %1604 = vmatpush3.bf16.msra.mxu1 %v1603_v63  ;;  %1574 = vmatprep.subr.bf16.mxu0 %v1573_v3  ;;  %v1607_v12 = vpack.c.bf16 %v798_v9, %v797_v7  ;;  %v1577_v13 = vpack.c.bf16 %v784_v11, %v783_v10  ;;  %v815_v14 = vld [vmem:[%s2110_s15 + $0x1a0] sm:$0xff]  ;;  %v816_v15 = vld [vmem:[%s2110_s15 + $0x1a8] sm:$0xff]  ;;  %v785_v22 = vld [vmem:[%s2110_s15 + $0xb0] sm:$0xff] }
  0x5a   : > { %1606 = vmatprep.subr.bf16.mxu1 %v1605_v4  ;;  %v767_v16 = vld [vmem:[%s2110_s15 + $0x20] sm:$0xff]  ;;  %v1609_v17 = vpack.c.bf16 %v816_v15, %v815_v14  ;;  %v768_v18 = vld [vmem:[%s2110_s15 + $0x28] sm:$0xff]  ;;  %v786_v23 = vld [vmem:[%s2110_s15 + $0xb8] sm:$0xff] }
  0x5b   : > { %v799_v19 = vld [vmem:[%s2110_s15 + $0x120] sm:$0xff]  ;;  %v800_v20 = vld [vmem:[%s2110_s15 + $0x128] sm:$0xff]  ;;  %v1579_v21 = vpack.c.bf16 %v768_v18, %v767_v16  ;;  %v817_v24 = vld [vmem:[%s2110_s15 + $0x1b0] sm:$0xff]  ;;  %v1581_v26 = vpack.c.bf16 %v786_v23, %v785_v22 }
  0x5c   : > { %1576 = vmatpush3.bf16.msra.mxu0 %v1575_v8  ;;  %v1611_v25 = vpack.c.bf16 %v800_v20, %v799_v19  ;;  %v818_v27 = vld [vmem:[%s2110_s15 + $0x1b8] sm:$0xff]  ;;  %v769_v28 = vld [vmem:[%s2110_s15 + $0x30] sm:$0xff]  ;;  %v787_v33 = vld [vmem:[%s2110_s15 + $0xc0] sm:$0xff] }
  0x5d   : > { %1608 = vmatpush3.bf16.msra.mxu1 %v1607_v12  ;;  %1578 = vmatprep.subr.bf16.mxu0 %v1577_v13  ;;  %v770_v29 = vld [vmem:[%s2110_s15 + $0x38] sm:$0xff]  ;;  %v1613_v30 = vpack.c.bf16 %v818_v27, %v817_v24  ;;  %v801_v31 = vld [vmem:[%s2110_s15 + $0x130] sm:$0xff]  ;;  %v788_v34 = vld [vmem:[%s2110_s15 + $0xc8] sm:$0xff] }
  0x5e   : > { %1610 = vmatprep.subr.bf16.mxu1 %v1609_v17  ;;  %v802_v32 = vld [vmem:[%s2110_s15 + $0x138] sm:$0xff]  ;;  %v819_v35 = vld [vmem:[%s2110_s15 + $0x1c0] sm:$0xff]  ;;  %v820_v36 = vld [vmem:[%s2110_s15 + $0x1c8] sm:$0xff]  ;;  %v1583_v37 = vpack.c.bf16 %v770_v29, %v769_v28  ;;  %v1585_v39 = vpack.c.bf16 %v788_v34, %v787_v33 }
  0x5f   : > { %v1615_v38 = vpack.c.bf16 %v802_v32, %v801_v31  ;;  %v771_v40 = vld [vmem:[%s2110_s15 + $0x40] sm:$0xff]  ;;  %v772_v41 = vld [vmem:[%s2110_s15 + $0x48] sm:$0xff]  ;;  %v1617_v43 = vpack.c.bf16 %v820_v36, %v819_v35  ;;  %v789_v45 = vld [vmem:[%s2110_s15 + $0xd0] sm:$0xff] }
  0x60   : > { %1580 = vmatpush3.bf16.msra.mxu0 %v1579_v21  ;;  %v803_v42 = vld [vmem:[%s2110_s15 + $0x140] sm:$0xff]  ;;  %v804_v44 = vld [vmem:[%s2110_s15 + $0x148] sm:$0xff]  ;;  %v790_v46 = vld [vmem:[%s2110_s15 + $0xd8] sm:$0xff]  ;;  %v1587_v49 = vpack.c.bf16 %v772_v41, %v771_v40 }
  0x61   : > { %1612 = vmatpush3.bf16.msra.mxu1 %v1611_v25  ;;  %1582 = vmatprep.subr.bf16.mxu0 %v1581_v26  ;;  %v821_v47 = vld [vmem:[%s2110_s15 + $0x1d0] sm:$0xff]  ;;  %v822_v48 = vld [vmem:[%s2110_s15 + $0x1d8] sm:$0xff]  ;;  %v1619_v50 = vpack.c.bf16 %v804_v44, %v803_v42  ;;  %v1589_v51 = vpack.c.bf16 %v790_v46, %v789_v45  ;;  %v791_v57 = vld [vmem:[%s2110_s15 + $0xe0] sm:$0xff] }
  0x62   : > { %1614 = vmatprep.subr.bf16.mxu1 %v1613_v30  ;;  %v773_v52 = vld [vmem:[%s2110_s15 + $0x50] sm:$0xff]  ;;  %v774_v53 = vld [vmem:[%s2110_s15 + $0x58] sm:$0xff]  ;;  %v1621_v55 = vpack.c.bf16 %v822_v48, %v821_v47  ;;  %v792_v58 = vld [vmem:[%s2110_s15 + $0xe8] sm:$0xff] }
  0x63   : > { %v805_v54 = vld [vmem:[%s2110_s15 + $0x150] sm:$0xff]  ;;  %v806_v56 = vld [vmem:[%s2110_s15 + $0x158] sm:$0xff]  ;;  %v823_v59 = vld [vmem:[%s2110_s15 + $0x1e0] sm:$0xff]  ;;  %v1591_v61 = vpack.c.bf16 %v774_v53, %v773_v52  ;;  %v1593_v63 = vpack.c.bf16 %v792_v58, %v791_v57 }
  0x64   : > { %1584 = vmatpush3.bf16.msra.mxu0 %v1583_v37  ;;  %v824_v60 = vld [vmem:[%s2110_s15 + $0x1e8] sm:$0xff]  ;;  %v1623_v62 = vpack.c.bf16 %v806_v56, %v805_v54  ;;  %v775_v0 = vld [vmem:[%s2110_s15 + $0x60] sm:$0xff]  ;;  %v793_v5 = vld [vmem:[%s2110_s15 + $0xf0] sm:$0xff] }
  0x65   : > { %1616 = vmatpush3.bf16.msra.mxu1 %v1615_v38  ;;  %1586 = vmatprep.subr.bf16.mxu0 %v1585_v39  ;;  %v776_v1 = vld [vmem:[%s2110_s15 + $0x68] sm:$0xff]  ;;  %v807_v2 = vld [vmem:[%s2110_s15 + $0x160] sm:$0xff]  ;;  %v1625_v3 = vpack.c.bf16 %v824_v60, %v823_v59  ;;  %v794_v6 = vld [vmem:[%s2110_s15 + $0xf8] sm:$0xff] }
  0x66   : > { %1618 = vmatprep.subr.bf16.mxu1 %v1617_v43  ;;  %v808_v4 = vld [vmem:[%s2110_s15 + $0x168] sm:$0xff]  ;;  %v825_v7 = vld [vmem:[%s2110_s15 + $0x1f0] sm:$0xff]  ;;  %v826_v8 = vld [vmem:[%s2110_s15 + $0x1f8] sm:$0xff]  ;;  %v1595_v9 = vpack.c.bf16 %v776_v1, %v775_v0  ;;  %v1597_v11 = vpack.c.bf16 %v794_v6, %v793_v5 }
  0x67   : > { %v1627_v10 = vpack.c.bf16 %v808_v4, %v807_v2  ;;  %v777_v12 = vld [vmem:[%s2110_s15 + $0x70] sm:$0xff]  ;;  %v778_v13 = vld [vmem:[%s2110_s15 + $0x78] sm:$0xff]  ;;  %v1629_v15 = vpack.c.bf16 %v826_v8, %v825_v7  ;;  %v843_v17 = vld [vmem:[%s2110_s15 + $0x280] sm:$0xff] }
  0x68   : > { %1588 = vmatpush3.bf16.msra.mxu0 %v1587_v49  ;;  %v809_v14 = vld [vmem:[%s2110_s15 + $0x170] sm:$0xff]  ;;  %v810_v16 = vld [vmem:[%s2110_s15 + $0x178] sm:$0xff]  ;;  %v844_v18 = vld [vmem:[%s2110_s15 + $0x288] sm:$0xff]  ;;  %v1599_v21 = vpack.c.bf16 %v778_v13, %v777_v12 }
  0x69   : > { %1620 = vmatpush3.bf16.msra.mxu1 %v1619_v50  ;;  %1590 = vmatprep.subr.bf16.mxu0 %v1589_v51  ;;  %v859_v19 = vld [vmem:[%s2110_s15 + $0x300] sm:$0xff]  ;;  %v860_v20 = vld [vmem:[%s2110_s15 + $0x308] sm:$0xff]  ;;  %v1631_v22 = vpack.c.bf16 %v810_v16, %v809_v14  ;;  %v1633_v23 = vpack.c.bf16 %v844_v18, %v843_v17  ;;  %v845_v26 = vld [vmem:[%s2110_s15 + $0x290] sm:$0xff] }
  0x6a   : > { %1622 = vmatprep.subr.bf16.mxu1 %v1621_v55  ;;  %v827_v24 = vld [vmem:[%s2110_s15 + $0x200] sm:$0xff]  ;;  %v828_v25 = vld [vmem:[%s2110_s15 + $0x208] sm:$0xff]  ;;  %v846_v27 = vld [vmem:[%s2110_s15 + $0x298] sm:$0xff]  ;;  %v1665_v28 = vpack.c.bf16 %v860_v20, %v859_v19 }
  0x6b   : > { %v861_v29 = vld [vmem:[%s2110_s15 + $0x310] sm:$0xff]  ;;  %v862_v30 = vld [vmem:[%s2110_s15 + $0x318] sm:$0xff]  ;;  %v749_v31 = vld [vmem:[%s2292_s0] sm:$0xff]  ;;  %v1635_v32 = vpack.c.bf16 %v828_v25, %v827_v24  ;;  %v1637_v34 = vpack.c.bf16 %v846_v27, %v845_v26 }
  0x6c   : > { %1592 = vmatpush3.bf16.msra.mxu0 %v1591_v61  ;;  %v751_v33 = vld [vmem:[%s2292_s0 + $0x10] sm:$0xff]  ;;  %v830_v36 = vld [vmem:[%s2110_s15 + $0x218] sm:$0xff]  ;;  %v847_v37 = vld [vmem:[%s2110_s15 + $0x2a0] sm:$0xff]  ;;  %v1669_v39 = vpack.c.bf16 %v862_v30, %v861_v29 }
  0x6d   : > { %1624 = vmatpush3.bf16.msra.mxu1 %v1623_v62  ;;  %1594 = vmatprep.subr.bf16.mxu0 %v1593_v63  ;;  %v829_v35 = vld [vmem:[%s2110_s15 + $0x210] sm:$0xff]  ;;  %v848_v38 = vld [vmem:[%s2110_s15 + $0x2a8] sm:$0xff]  ;;  %v863_v40 = vld [vmem:[%s2110_s15 + $0x320] sm:$0xff] }
  0x6e   : > { %1626 = vmatprep.subr.bf16.mxu1 %v1625_v3  ;;  %v864_v41 = vld [vmem:[%s2110_s15 + $0x328] sm:$0xff]  ;;  %v757_v42 = vld [vmem:[%s2292_s0 + $0x40] sm:$0xff]  ;;  %v1639_v43 = vpack.c.bf16 %v830_v36, %v829_v35  ;;  %v759_v44 = vld [vmem:[%s2292_s0 + $0x50] sm:$0xff]  ;;  %v1641_v46 = vpack.c.bf16 %v848_v38, %v847_v37 }
  0x6f   : > { %v756_v45 = vld [vmem:[%s2292_s0 + $0x38] sm:$0xff]  ;;  %v831_v47 = vld [vmem:[%s2110_s15 + $0x220] sm:$0xff]  ;;  %v832_v48 = vld [vmem:[%s2110_s15 + $0x228] sm:$0xff]  ;;  %v1673_v52 = vpack.c.bf16 %v864_v41, %v863_v40  ;;  %v1797_v41 = vmov 0.0|0.0  }
  0x70   : > { %1596 = vmatpush3.bf16.msra.mxu0 %v1595_v9  ;;  %v758_v49 = vld [vmem:[%s2292_s0 + $0x48] sm:$0xff]  ;;  %v849_v50 = vld [vmem:[%s2110_s15 + $0x2b0] sm:$0xff]  ;;  %v850_v51 = vld [vmem:[%s2110_s15 + $0x2b8] sm:$0xff]  ;;  %v1643_v56 = vpack.c.bf16 %v832_v48, %v831_v47 }
  0x71   : > { %1628 = vmatpush3.bf16.msra.mxu1 %v1627_v10  ;;  %1598 = vmatprep.subr.bf16.mxu0 %v1597_v11  ;;  %v865_v53 = vld [vmem:[%s2110_s15 + $0x330] sm:$0xff]  ;;  %v866_v54 = vld [vmem:[%s2110_s15 + $0x338] sm:$0xff]  ;;  %v754_v55 = vld [vmem:[%s2292_s0 + $0x28] sm:$0xff]  ;;  %v1645_v59 = vpack.c.bf16 %v850_v51, %v849_v50 }
  0x72   : > { %1630 = vmatprep.subr.bf16.mxu1 %v1629_v15  ;;  %v755_v57 = vld [vmem:[%s2292_s0 + $0x30] sm:$0xff]  ;;  %v1184_v58 = vld [vmem:[%s2294_s2] sm:$0xff]  ;;  %v834_v61 = vld [vmem:[%s2110_s15 + $0x238] sm:$0xff]  ;;  %v1677_v0 = vpack.c.bf16 %v866_v54, %v865_v53 }
  0x73   : > { %v833_v60 = vld [vmem:[%s2110_s15 + $0x230] sm:$0xff]  ;;  %v851_v62 = vld [vmem:[%s2110_s15 + $0x2c0] sm:$0xff]  ;;  %v852_v63 = vld [vmem:[%s2110_s15 + $0x2c8] sm:$0xff]  ;;  %1188 = vperm.xlu0 %1746, %v1184_v58  }
  0x74   : > { %1600 = vmatpush3.bf16.msra.mxu0 %v1599_v21  ;;  %v867_v1 = vld [vmem:[%s2110_s15 + $0x340] sm:$0xff]  ;;  %v868_v2 = vld [vmem:[%s2110_s15 + $0x348] sm:$0xff]  ;;  %v1647_v3 = vpack.c.bf16 %v834_v61, %v833_v60  ;;  %v1649_v5 = vpack.c.bf16 %v852_v63, %v851_v62  ;;  %v853_v8 = vld [vmem:[%s2110_s15 + $0x2d0] sm:$0xff] }
  0x75   : > { %1632 = vmatpush3.bf16.msra.mxu1 %v1631_v22  ;;  %1634 = vmatprep.subr.bf16.mxu0 %v1633_v23  ;;  %v1185_v4 = vld [vmem:[%s2294_s2 + $0x8] sm:$0xff]  ;;  %v835_v6 = vld [vmem:[%s2110_s15 + $0x240] sm:$0xff]  ;;  %v854_v9 = vld [vmem:[%s2110_s15 + $0x2d8] sm:$0xff]  ;;  %v1681_v10 = vpack.c.bf16 %v868_v2, %v867_v1 }
  0x76   : > { %1666 = vmatprep.subr.bf16.mxu1 %v1665_v28  ;;  %v836_v7 = vld [vmem:[%s2110_s15 + $0x248] sm:$0xff]  ;;  %v869_v11 = vld [vmem:[%s2110_s15 + $0x350] sm:$0xff]  ;;  %v870_v12 = vld [vmem:[%s2110_s15 + $0x358] sm:$0xff]  ;;  %v1653_v14 = vpack.c.bf16 %v854_v9, %v853_v8 }
  0x77   : > { %940 = vmatmul.mubr.f32.vlgmr.msra.gmra.mrb[0].mxu0 %v749_v31  ;;  %1193 = vperm.xlu0 %1746, %v1185_v4   ;;  %v1651_v13 = vpack.c.bf16 %v836_v7, %v835_v6  ;;  %v837_v15 = vld [vmem:[%s2110_s15 + $0x250] sm:$0xff]  ;;  %v838_v16 = vld [vmem:[%s2110_s15 + $0x258] sm:$0xff]  ;;  %v855_v17 = vld [vmem:[%s2110_s15 + $0x2e0] sm:$0xff]  ;;  %v1685_v19 = vpack.c.bf16 %v870_v12, %v869_v11 }
  0x78   : > { %1015 = vmatmul.mubr.f32.vlgmr.msra.gmra.mrb[0].mxu1 %v751_v33  ;;  %1636 = vmatpush3.bf16.msra.mxu0 %v1635_v32  ;;  %v856_v18 = vld [vmem:[%s2110_s15 + $0x2e8] sm:$0xff]  ;;  %v871_v20 = vld [vmem:[%s2110_s15 + $0x360] sm:$0xff]  ;;  %v1655_v22 = vpack.c.bf16 %v838_v16, %v837_v15  ;;  %v857_v26 = vld [vmem:[%s2110_s15 + $0x2f0] sm:$0xff] }
  0x79   : > { %1638 = vmatprep.subr.bf16.mxu0 %v1637_v34  ;;  %1668 = vmatpush3.bf16.msra.mxu1 %v1665_v28  ;;  %v872_v21 = vld [vmem:[%s2110_s15 + $0x368] sm:$0xff]  ;;  %v1657_v23 = vpack.c.bf16 %v856_v18, %v855_v17  ;;  %v839_v24 = vld [vmem:[%s2110_s15 + $0x260] sm:$0xff]  ;;  %v858_v27 = vld [vmem:[%s2110_s15 + $0x2f8] sm:$0xff] }
  0x7a   : > { %1670 = vmatprep.subr.bf16.mxu1 %v1669_v39  ;;  %944 = vmatprep.mubr.f32.mxu0 %v757_v42  ;;  %v840_v25 = vld [vmem:[%s2110_s15 + $0x268] sm:$0xff]  ;;  %v1689_v28 = vpack.c.bf16 %v872_v21, %v871_v20  ;;  %v873_v29 = vld [vmem:[%s2110_s15 + $0x370] sm:$0xff]  ;;  %v874_v30 = vld [vmem:[%s2110_s15 + $0x378] sm:$0xff]  ;;  %v1661_v32 = vpack.c.bf16 %v858_v27, %v857_v26  ;;  %v1799_v42 = vmov 0.0  }
  0x7b   : > { %1019 = vmatprep.mubr.f32.mxu1 %v759_v44  ;;  %945 = vmatmul.mubr.f32.gmra.mrb[2].mxu0 %v756_v45  ;;  %v1659_v31 = vpack.c.bf16 %v840_v25, %v839_v24  ;;  %v841_v33 = vld [vmem:[%s2110_s15 + $0x270] sm:$0xff]  ;;  %v842_v34 = vld [vmem:[%s2110_s15 + $0x278] sm:$0xff]  ;;  %v1693_v35 = vpack.c.bf16 %v874_v30, %v873_v29  ;;  %v753_v37 = vld [vmem:[%s2292_s0 + $0x20] sm:$0xff] }
  0x7c   : > { %1640 = vmatpush3.bf16.msra.mxu0 %v1639_v43  ;;  %1020 = vmatmul.mubr.f32.gmra.mrb[2].mxu1 %v758_v49  ;;  %v1663_v36 = vpack.c.bf16 %v842_v34, %v841_v33  ;;  %v761_v38 = vld [vmem:[%s2292_s0 + $0x60] sm:$0xff]  ;;  %v760_v40 = vld [vmem:[%s2292_s0 + $0x58] sm:$0xff] }
  0x7d   : > { %1642 = vmatprep.subr.bf16.mxu0 %v1641_v46  ;;  %1672 = vmatpush3.bf16.msra.mxu1 %v1669_v39  ;;  %v762_v39 = vld [vmem:[%s2292_s0 + $0x68] sm:$0xff]  ;;  %v1213_v43 = vld [vmem:[%s2296_s4] sm:$0xff] }
  0x7e   : > { %1674 = vmatprep.subr.bf16.mxu1 %v1673_v52  ;;  %1089 = vmatprep.mubr.f32.mxu0 %v754_v55  ;;  %v1212_v21 = vld [vmem:[%s2295_s3] sm:$0xff] }
  0x7f   : > { %1559 = vmatprep.mubr.f32.mxu1 %v755_v57  ;;  %1216 = vperm.xlu1 %1747, %v1213_v43  }
  0x80   : > { %1644 = vmatpush3.bf16.msra.mxu0 %v1643_v56 }
  0x81   : > { %1646 = vmatprep.subr.bf16.mxu0 %v1645_v59  ;;  %1676 = vmatpush3.bf16.msra.mxu1 %v1673_v52 }
  0x82   : > { %1678 = vmatprep.subr.bf16.mxu1 %v1677_v0 }
  0x84   : > { %1648 = vmatpush3.bf16.msra.mxu0 %v1647_v3 }
  0x85   : > { %1650 = vmatprep.subr.bf16.mxu0 %v1649_v5  ;;  %1680 = vmatpush3.bf16.msra.mxu1 %v1677_v0 }
  0x86   : > { %1682 = vmatprep.subr.bf16.mxu1 %v1681_v10 }
  0x88   : > { %1652 = vmatpush3.bf16.msra.mxu0 %v1651_v13 }
  0x89   : > { %1654 = vmatprep.subr.bf16.mxu0 %v1653_v14  ;;  %1684 = vmatpush3.bf16.msra.mxu1 %v1681_v10 }
  0x8a   : > { %1686 = vmatprep.subr.bf16.mxu1 %v1685_v19 }
  0x8c   : > { %1656 = vmatpush3.bf16.msra.mxu0 %v1655_v22 }
  0x8d   : > { %1658 = vmatprep.subr.bf16.mxu0 %v1657_v23  ;;  %1688 = vmatpush3.bf16.msra.mxu1 %v1685_v19 }
  0x8e   : > { %1690 = vmatprep.subr.bf16.mxu1 %v1689_v28 }
  0x90   : > { %1660 = vmatpush3.bf16.msra.mxu0 %v1659_v31 }
  0x91   : > { %1662 = vmatprep.subr.bf16.mxu0 %v1661_v32  ;;  %1692 = vmatpush3.bf16.msra.mxu1 %v1689_v28 }
  0x92   : > { %1694 = vmatprep.subr.bf16.mxu1 %v1693_v35 }
  0x94   : > { %1664 = vmatpush3.bf16.msra.mxu0 %v1663_v36 }
  0x95   : > { %1696 = vmatpush3.bf16.msra.mxu1 %v1693_v35 }
  0x96   : > { %1697 = vmatprep.subr.bf16.mxu1 %v1797_v41 }
  0x97   : > { %1090 = vmatmul.mubr.f32.vlgmr.msra.gmra.mrb[4].mxu0 %v753_v37 }
  0x98   : > { %1094 = vmatprep.mubr.f32.mxu0 %v761_v38  ;;  %1560 = vmatmul.mubr.f32.vlgmr.msra.gmra.mrb[4].mxu1 %v762_v39 }
  0x99   : > { %1566 = vmatprep.mubr.msk.f32.mxu1 %vm1798_vm0, %v1799_v42 }
  0x9b   : > { %1095 = vmatmul.mubr.f32.gmra.mrb[6].mxu0 %v760_v40 }
  0xf2   : > { %v1189_v1 = vpop.permute.xlu0 %1188 }
  0xf6   : > { %v1194_v9 = vpop.permute.xlu0 %1193 }
  0xfe   : > { %v1217_v22 = vpop.permute.xlu1 %1216 }
 0x14a   : > { %v1424_v44 = vpop.f32.mrb[0].mxu0 }
 0x14b   : > { %v1462_v45 = vpop.f32.mrb[0].mxu1  ;;  %v1425_v46 = vpop.f32.mrb[1].mxu0 }
 0x14c   : > { %v1426_v47 = vadd.f32 %v1425_v46, %v1424_v44  ;;  %v1463_v48 = vpop.f32.mrb[1].mxu1 }
 0x14d   : > { %v1464_v49 = vadd.f32 %v1463_v48, %v1462_v45 }
 0x14e   : > { %v1427_v50 = vpop.f32.mrb[2].mxu0 }
 0x14f   : > { %v1017_v51 = vadd.f32 %v1464_v49, %v1426_v47  ;;  %v1465_v52 = vpop.f32.mrb[2].mxu1  ;;  %v1428_v53 = vpop.f32.mrb[3].mxu0 }
 0x150   : > { %v1429_v54 = vadd.f32 %v1428_v53, %v1427_v50  ;;  %v1466_v55 = vpop.f32.mrb[3].mxu1 }
 0x151   : > { %v1467_v56 = vadd.f32 %v1466_v55, %v1465_v52 }
 0x153   : > { %v1022_v57 = vadd.f32 %v1467_v56, %v1429_v54 }
 0x16a   : > { %v1500_v58 = vpop.f32.mrb[4].mxu0 }
 0x16b   : > { %v1501_v59 = vpop.f32.mrb[5].mxu0  ;;  %v1561_v60 = vpop.f32.mrb[4].mxu1 }
 0x16c   : > { %v1502_v61 = vadd.f32 %v1501_v59, %v1500_v58  ;;  %v1166_v62 = vpop.f32.mrb[5].mxu1 }
 0x16e   : > { %v1503_v63 = vpop.f32.mrb[6].mxu0  ;;  %v1092_v0 = vadd.f32 %v1502_v61, %v1017_v51 }
 0x16f   : > { %v1504_v2 = vpop.f32.mrb[7].mxu0 }
 0x170   : > { %v1505_v3 = vadd.f32 %v1504_v2, %v1503_v63  ;;  %v1167_v4 = vadd.f32 %v1166_v62, %v1092_v0 }
 0x172   : > { %v1097_v5 = vadd.f32 %v1505_v3, %v1022_v57  ;;  %v1196_v6 = vadd.f32 %v1189_v1, %v1167_v4 }
 0x174   : > { %v1387_v7 = vmul.f32 -1.442695, %v1196_v6  ;;  %v1172_v8 = vadd.f32 %v1561_v60, %v1097_v5 }
 0x176   : > { %1748 = vpow2.f32 %v1387_v7  ;;  %v1197_v10 = vadd.f32 %v1194_v9, %v1172_v8 }
 0x178   : > { %v1388_v11 = vmul.f32 -1.442695, %v1197_v10 }
 0x17a   : > { %1750 = vpow2.f32 %v1388_v11 }
 0x180   : > { %v1749_v12 = vpop.eup %1748 }
 0x181   : > { %v1204_v13 = vadd.f32 1.0, %v1749_v12 }
 0x183   : > { %1752 = vrcp.f32 %v1204_v13 }
 0x184   : > { %v1751_v14 = vpop.eup %1750 }
 0x185   : > { %v1205_v15 = vadd.f32 1.0, %v1751_v14 }
 0x187   : > { %1754 = vrcp.f32 %v1205_v15 }
 0x18d   : > { %v1753_v16 = vpop.eup %1752 }
 0x18e   : > { %v1210_v18 = vmul.f32 %v1753_v16, %v1196_v6 }
 0x191   : > { %v1755_v17 = vpop.eup %1754 }
 0x192   : > { %v1211_v19 = vmul.f32 %v1755_v17, %v1197_v10 }
 0x194   : > { %v1698_v20 = vpack.c.bf16 %v1211_v19, %v1210_v18 }
 0x196   : > { %1699 = vmatpush3.bf16.msra.mxu1 %v1698_v20 }
 0x199   : > { %1567 = vmatmul.mubr.msk.f32.vlgmr.msra.gmra.mrb[6].mxu1 %vm1219_vm1, %v1212_v21 }
 0x26c   : > { %v1289_v23 = vpop.f32.mrb[6].mxu1 }
 0x26d   : > { %v1290_v24 = vadd.f32 %v1289_v23, %v1217_v22  ;;  %v1568_v25 = vpop.f32.mrb[7].mxu1 }
 0x26f   : > { %1293 = vst [vmem:[%s740_s13] sm:$0xff] %v1290_v24 }
 0x270 PF: > { %s15_s22 = sadd.s32 1, %s1794_s22   ;;  %s2298_s18 = smov %s1782_s19 }
 0x271   : > { %p12_p10 = scmp.ge.s32.totalorder %s15_s22, 7   ;;  %s2299_s19 = smov %s1865_s26 }
 0x272   : > { %s2300_s20 = smov %s1790_s21  ;;  %s2301_s21 = smov %s2303_s23 }
 0x273   :  { %14 = sbr.rel (!%p12_p10) target bundleno = 3 (0x3), region = 124 }

</bundles_post_ra>
